<compile_context>
chip_gen: v5e
topology: v5e:2x2
jax: 0.10.0
libtpu: 0.0.40
codegen_flags: <defaults>
</compile_context>

<pallas_src>
import jax
import jax.numpy as jnp
from jax.experimental import pallas as pl
from jax.experimental.pallas import tpu as pltpu

D_IN = 1024
D_HID = 1024
D_OUT = 706
D_OUT_PAD = 768   # next multiple of 128 (lane-dense output tile)

_MIB = 1024 * 1024


def mlp_kernel(x_ref, w1_ref, b1_ref, w2_ref, b2_ref, w3_ref, b3_ref, o_ref):
    # x arrives f32; cast to bf16 in-kernel (rides the VPU under the MXU).
    x = x_ref[...].astype(jnp.bfloat16)
    # layer 1: Linear(1024, 1024) + ReLU   (bf16 operands, f32 accumulate)
    h1 = jnp.dot(x, w1_ref[...], preferred_element_type=jnp.float32)
    h1 = jnp.maximum(h1 + b1_ref[...], 0.0).astype(jnp.bfloat16)
    # layer 2: Linear(1024, 1024) + ReLU
    h2 = jnp.dot(h1, w2_ref[...], preferred_element_type=jnp.float32)
    h2 = jnp.maximum(h2 + b2_ref[...], 0.0).astype(jnp.bfloat16)
    # dropout(p=0.5): identity in eval mode.
    # TODO(synk): training-mode dropout would need pltpu.prng_seed / prng_random_bits.
    # layer 3: Linear(1024, 706 padded to 768) + Sigmoid
    logits = jnp.dot(h2, w3_ref[...], preferred_element_type=jnp.float32)
    o_ref[...] = jax.nn.sigmoid(logits + b3_ref[...]).astype(o_ref.dtype)


def prepare_params(params):
    """One-time parameter prep: bf16 weights, zero-padded final layer, (1, N) f32 biases.

    Input weights are in (in, out) layout (already transposed vs. PyTorch)."""
    w3p = jnp.zeros((D_HID, D_OUT_PAD), jnp.float32).at[:, :D_OUT].set(params["w3"])
    b3p = jnp.zeros((1, D_OUT_PAD), jnp.float32).at[:, :D_OUT].set(params["b3"])
    return {
        "w1": params["w1"].astype(jnp.bfloat16),
        "b1": params["b1"].reshape(1, D_HID).astype(jnp.float32),
        "w2": params["w2"].astype(jnp.bfloat16),
        "b2": params["b2"].reshape(1, D_HID).astype(jnp.float32),
        "w3": w3p.astype(jnp.bfloat16),
        "b3": b3p,
    }


def _round_up(v, m):
    return ((v + m - 1) // m) * m


def _tpu_vmem_bytes():
    """Per-core VMEM capacity; conservative (v7x-sized) fallback if the query fails."""
    try:
        info = pltpu.get_tpu_info()
        return int(getattr(info, "vmem_capacity_bytes", 64 * _MIB))
    except Exception:
        return 64 * _MIB


def _choose_tile_b(batch, tile_max):
    """Batch tile: big enough to amortize per-step overhead, small enough that the
    grid has >= 2 steps (v7x megacore sharding) whenever the batch allows it."""
    if batch <= 8:
        return batch          # single block; block dim == full batch dim is legal
    if batch <= 16:
        return 8              # two grid steps even at tiny batches
    half = _round_up(pl.cdiv(batch, 2), 16)   # multiple of 16 (bf16 sublane packing)
    return min(tile_max, half)


@jax.jit
def mlp_forward(x, prepared):
    """x: (B, 1024) float32. prepared: output of prepare_params(). Returns (B, 706) bf16."""
    B = x.shape[0]

    vmem_cap = _tpu_vmem_bytes()
    if vmem_cap >= 96 * _MIB:            # v5e / v6e: 128 MiB VMEM per core
        tile_max, vmem_limit = 1024, 96 * _MIB
    else:                                # v7x: 64 MiB VMEM per TensorCore
        tile_max, vmem_limit = 512, 40 * _MIB

    tile_b = _choose_tile_b(B, tile_max)
    grid = (pl.cdiv(B, tile_b),)         # ragged last tile: masked edge handling

    # Weights/biases are resident across the batch grid and single-buffered:
    # a constant index_map never needs the second pipeline buffer.
    def resident(shape):
        nd = len(shape)
        return pl.BlockSpec(shape, lambda i: (0,) * nd,
                            pipeline_mode=pl.Buffered(1))

    weight_bytes = (D_IN * D_HID + D_HID * D_HID + D_HID * D_OUT_PAD) * 2  # bf16
    bias_bytes = (D_HID + D_HID + D_OUT_PAD) * 4                           # f32
    io_bytes = B * D_IN * 4 + B * D_OUT_PAD * 2                            # f32 in, bf16 out
    cost = pl.CostEstimate(
        flops=2 * B * (D_IN * D_HID + D_HID * D_HID + D_HID * D_OUT_PAD),
        transcendentals=B * D_OUT_PAD,
        bytes_accessed=weight_bytes + bias_bytes + io_bytes,
    )

    out = pl.pallas_call(
        mlp_kernel,
        out_shape=jax.ShapeDtypeStruct((B, D_OUT_PAD), jnp.bfloat16),
        grid_spec=pltpu.PrefetchScalarGridSpec(
            num_scalar_prefetch=0,
            grid=grid,
            in_specs=[
                pl.BlockSpec((tile_b, D_IN), lambda i: (i, 0)),   # x tile moves with grid
                resident((D_IN, D_HID)),
                resident((1, D_HID)),
                resident((D_HID, D_HID)),
                resident((1, D_HID)),
                resident((D_HID, D_OUT_PAD)),
                resident((1, D_OUT_PAD)),
            ],
            out_specs=pl.BlockSpec((tile_b, D_OUT_PAD), lambda i: (i, 0)),
        ),
        compiler_params=pltpu.CompilerParams(
            dimension_semantics=("parallel",),
            vmem_limit_bytes=vmem_limit,
        ),
        cost_estimate=cost,
    )(x, prepared["w1"], prepared["b1"], prepared["w2"], prepared["b2"],
      prepared["w3"], prepared["b3"])

    # Crop the padded lanes.  (If the consumer tolerates the padded (B, 768)
    # slab, this slice — a separate XLA copy — can be skipped.)
    return out[:, :D_OUT]


def init_params(key):
    """Deterministic init mimicking PyTorch nn.Linear default (uniform ±1/sqrt(fan_in)).
    Weights returned in (in, out) layout (i.e. already transposed)."""
    ks = jax.random.split(key, 6)

    def linear(kw, kb, fan_in, fan_out):
        bound = 1.0 / jnp.sqrt(fan_in)
        w = jax.random.uniform(kw, (fan_in, fan_out), jnp.float32, -bound, bound)
        b = jax.random.uniform(kb, (fan_out,), jnp.float32, -bound, bound)
        return w, b

    w1, b1 = linear(ks[0], ks[1], D_IN, D_HID)
    w2, b2 = linear(ks[2], ks[3], D_HID, D_HID)
    w3, b3 = linear(ks[4], ks[5], D_HID, D_OUT)
    return {"w1": w1, "b1": b1, "w2": w2, "b2": b2, "w3": w3, "b3": b3}


if __name__ == "__main__":
    key = jax.random.PRNGKey(0)
    k_x, k_p = jax.random.split(key)
    B = 8
    x = jax.random.normal(k_x, (B, D_IN), jnp.float32)
    params = init_params(k_p)
    prepared = prepare_params(params)   # one-time: bf16 cast + lane padding

    y = mlp_forward(x, prepared)
    jax.block_until_ready(y)

    # sanity check against plain-JAX f32 reference (bf16 weights/output => loose tol)
    h1 = jnp.maximum(x @ params["w1"] + params["b1"], 0.0)
    h2 = jnp.maximum(h1 @ params["w2"] + params["b2"], 0.0)
    y_ref = jax.nn.sigmoid(h2 @ params["w3"] + params["b3"])
    assert y.shape == (B, D_OUT)
    err = jnp.max(jnp.abs(y.astype(jnp.float32) - y_ref))
    assert err < 4e-2, f"max abs err {err}"

    print("KERNEL_OK")
</pallas_src>

<mosaic_0001>
module attributes {stable_mosaic.version = 11 : i64} {
  func.func @mlp_kernel(%arg0: i32, %arg1: memref<8x1024xf32, #tpu.memory_space<vmem>>, %arg2: memref<1024x1024xbf16, #tpu.memory_space<vmem>>, %arg3: memref<1x1024xf32, #tpu.memory_space<vmem>>, %arg4: memref<1024x1024xbf16, #tpu.memory_space<vmem>>, %arg5: memref<1x1024xf32, #tpu.memory_space<vmem>>, %arg6: memref<1024x768xbf16, #tpu.memory_space<vmem>>, %arg7: memref<1x768xf32, #tpu.memory_space<vmem>>, %arg8: memref<8x768xbf16, #tpu.memory_space<vmem>>) attributes {dimension_semantics = [#tpu.dimension_semantics<parallel>], iteration_bounds = array<i64: 1>, scalar_prefetch = 0 : i64, scratch_operands = 0 : i64, tpu.core_type = #tpu.core_type<tc>, window_params = [{transform_indices = @transform_0, window_bounds = array<i64: 8, 1024>}, {pipeline_mode = #tpu.pipeline_mode<synchronous>, transform_indices = @transform_1, window_bounds = array<i64: 1024, 1024>}, {pipeline_mode = #tpu.pipeline_mode<synchronous>, transform_indices = @transform_2, window_bounds = array<i64: 1, 1024>}, {pipeline_mode = #tpu.pipeline_mode<synchronous>, transform_indices = @transform_3, window_bounds = array<i64: 1024, 1024>}, {pipeline_mode = #tpu.pipeline_mode<synchronous>, transform_indices = @transform_4, window_bounds = array<i64: 1, 1024>}, {pipeline_mode = #tpu.pipeline_mode<synchronous>, transform_indices = @transform_5, window_bounds = array<i64: 1024, 768>}, {pipeline_mode = #tpu.pipeline_mode<synchronous>, transform_indices = @transform_6, window_bounds = array<i64: 1, 768>}, {transform_indices = @transform_7, window_bounds = array<i64: 8, 768>}]} {
    %c0 = arith.constant 0 : index
    %c0_0 = arith.constant 0 : index
    %0 = vector.load %arg1[%c0, %c0_0] : memref<8x1024xf32, #tpu.memory_space<vmem>>, vector<8x1024xf32>
    %1 = arith.truncf %0 : vector<8x1024xf32> to vector<8x1024xbf16>
    %c0_1 = arith.constant 0 : index
    %c0_2 = arith.constant 0 : index
    %2 = vector.load %arg2[%c0_1, %c0_2] : memref<1024x1024xbf16, #tpu.memory_space<vmem>>, vector<1024x1024xbf16>
    %cst = arith.constant dense<0.000000e+00> : vector<8x1024xf32>
    %3 = tpu.matmul %1, %2, %cst {dimension_numbers = #tpu.dot_dimension_numbers<[1], [0], [0], [1], [0, 0, 1, 1], [], []>} : vector<8x1024xbf16>, vector<1024x1024xbf16>, vector<8x1024xf32> -> vector<8x1024xf32>
    %c0_3 = arith.constant 0 : index
    %c0_4 = arith.constant 0 : index
    %4 = vector.load %arg3[%c0_3, %c0_4] : memref<1x1024xf32, #tpu.memory_space<vmem>>, vector<1x1024xf32>
    %5 = vector.broadcast %4 : vector<1x1024xf32> to vector<8x1024xf32>
    %6 = arith.addf %3, %5 : vector<8x1024xf32>
    %cst_5 = arith.constant 0.000000e+00 : f32
    %7 = vector.broadcast %cst_5 : f32 to vector<8x1024xf32>
    %8 = arith.maximumf %6, %7 : vector<8x1024xf32>
    %9 = arith.truncf %8 : vector<8x1024xf32> to vector<8x1024xbf16>
    %c0_6 = arith.constant 0 : index
    %c0_7 = arith.constant 0 : index
    %10 = vector.load %arg4[%c0_6, %c0_7] : memref<1024x1024xbf16, #tpu.memory_space<vmem>>, vector<1024x1024xbf16>
    %cst_8 = arith.constant dense<0.000000e+00> : vector<8x1024xf32>
    %11 = tpu.matmul %9, %10, %cst_8 {dimension_numbers = #tpu.dot_dimension_numbers<[1], [0], [0], [1], [0, 0, 1, 1], [], []>} : vector<8x1024xbf16>, vector<1024x1024xbf16>, vector<8x1024xf32> -> vector<8x1024xf32>
    %c0_9 = arith.constant 0 : index
    %c0_10 = arith.constant 0 : index
    %12 = vector.load %arg5[%c0_9, %c0_10] : memref<1x1024xf32, #tpu.memory_space<vmem>>, vector<1x1024xf32>
    %13 = vector.broadcast %12 : vector<1x1024xf32> to vector<8x1024xf32>
    %14 = arith.addf %11, %13 : vector<8x1024xf32>
    %cst_11 = arith.constant 0.000000e+00 : f32
    %15 = vector.broadcast %cst_11 : f32 to vector<8x1024xf32>
    %16 = arith.maximumf %14, %15 : vector<8x1024xf32>
    %17 = arith.truncf %16 : vector<8x1024xf32> to vector<8x1024xbf16>
    %c0_12 = arith.constant 0 : index
    %c0_13 = arith.constant 0 : index
    %18 = vector.load %arg6[%c0_12, %c0_13] : memref<1024x768xbf16, #tpu.memory_space<vmem>>, vector<1024x768xbf16>
    %cst_14 = arith.constant dense<0.000000e+00> : vector<8x768xf32>
    %19 = tpu.matmul %17, %18, %cst_14 {dimension_numbers = #tpu.dot_dimension_numbers<[1], [0], [0], [1], [0, 0, 1, 1], [], []>} : vector<8x1024xbf16>, vector<1024x768xbf16>, vector<8x768xf32> -> vector<8x768xf32>
    %c0_15 = arith.constant 0 : index
    %c0_16 = arith.constant 0 : index
    %20 = vector.load %arg7[%c0_15, %c0_16] : memref<1x768xf32, #tpu.memory_space<vmem>>, vector<1x768xf32>
    %21 = vector.broadcast %20 : vector<1x768xf32> to vector<8x768xf32>
    %22 = arith.addf %19, %21 : vector<8x768xf32>
    %23 = arith.negf %22 : vector<8x768xf32>
    %24 = math.exp %23 : vector<8x768xf32>
    %cst_17 = arith.constant 1.000000e+00 : f32
    %25 = vector.broadcast %cst_17 : f32 to vector<8x768xf32>
    %26 = arith.addf %25, %24 : vector<8x768xf32>
    %27 = arith.divf %25, %26 : vector<8x768xf32>
    %28 = arith.truncf %27 : vector<8x768xf32> to vector<8x768xbf16>
    %c0_18 = arith.constant 0 : index
    %c0_19 = arith.constant 0 : index
    %29 = vector.load %arg8[%c0_18, %c0_19] : memref<8x768xbf16, #tpu.memory_space<vmem>>, vector<8x768xbf16>
    tpu.vector_store %arg8[%c0_18, %c0_19], %28 {strides = array<i32>} : memref<8x768xbf16, #tpu.memory_space<vmem>>, vector<8x768xbf16>,
    return
  }
  func.func @transform_0(%arg0: i32) -> (i32, i32) {
    %c0_i32 = arith.constant 0 : i32
    %c0_i32_0 = arith.constant 0 : i32
    return %arg0, %c0_i32 : i32, i32
  }
  func.func @transform_1(%arg0: i32) -> (i32, i32) {
    %c0_i32 = arith.constant 0 : i32
    %c0_i32_0 = arith.constant 0 : i32
    %c0_i32_1 = arith.constant 0 : i32
    return %c0_i32, %c0_i32_0 : i32, i32
  }
  func.func @transform_2(%arg0: i32) -> (i32, i32) {
    %c0_i32 = arith.constant 0 : i32
    %c0_i32_0 = arith.constant 0 : i32
    %c0_i32_1 = arith.constant 0 : i32
    return %c0_i32, %c0_i32_0 : i32, i32
  }
  func.func @transform_3(%arg0: i32) -> (i32, i32) {
    %c0_i32 = arith.constant 0 : i32
    %c0_i32_0 = arith.constant 0 : i32
    %c0_i32_1 = arith.constant 0 : i32
    return %c0_i32, %c0_i32_0 : i32, i32
  }
  func.func @transform_4(%arg0: i32) -> (i32, i32) {
    %c0_i32 = arith.constant 0 : i32
    %c0_i32_0 = arith.constant 0 : i32
    %c0_i32_1 = arith.constant 0 : i32
    return %c0_i32, %c0_i32_0 : i32, i32
  }
  func.func @transform_5(%arg0: i32) -> (i32, i32) {
    %c0_i32 = arith.constant 0 : i32
    %c0_i32_0 = arith.constant 0 : i32
    %c0_i32_1 = arith.constant 0 : i32
    return %c0_i32, %c0_i32_0 : i32, i32
  }
  func.func @transform_6(%arg0: i32) -> (i32, i32) {
    %c0_i32 = arith.constant 0 : i32
    %c0_i32_0 = arith.constant 0 : i32
    %c0_i32_1 = arith.constant 0 : i32
    return %c0_i32, %c0_i32_0 : i32, i32
  }
  func.func @transform_7(%arg0: i32) -> (i32, i32) {
    %c0_i32 = arith.constant 0 : i32
    %c0_i32_0 = arith.constant 0 : i32
    return %arg0, %c0_i32 : i32, i32
  }
}

</mosaic_0001>

<bundles_post_ra>
// kernel: mlp_forward.1
= control target key start
LH: loop header
LB: loop body
LE: loop exit
PB: predicated region body
PF: predicated region fallthrough
CT: control target
= control target key end

     0   :  { %12 = vsyncpa [#allocation3], 0  ;;  %s19066_s0 = inlined_call_operand.hbm [shape: f32[8,1024], index: 0, kind: input, shape index: {}]   ;;  %s19067_s1 = inlined_call_operand.hbm [shape: bf16[1024,1024], index: 1, kind: input, shape index: {}]   ;;  %s19068_s2 = inlined_call_operand.hbm [shape: f32[1,1024], index: 2, kind: input, shape index: {}]   ;;  %s19069_s3 = inlined_call_operand.hbm [shape: bf16[1024,1024], index: 3, kind: input, shape index: {}]   ;;  %s19070_s4 = inlined_call_operand.hbm [shape: f32[1,1024], index: 4, kind: input, shape index: {}]   ;;  %s19071_s5 = inlined_call_operand.hbm [shape: bf16[1024,768], index: 5, kind: input, shape index: {}]   ;;  %s19072_s6 = inlined_call_operand.hbm [shape: f32[1,768], index: 6, kind: input, shape index: {}]   ;;  %s19073_s7 = inlined_call_operand.hbm [shape: bf16[8,768], index: 7, kind: output, shape index: {}]  }
   0x1   :  { %13 = vsyncpa [#allocation6], 0 }
   0x2   :  { %14 = vsyncpa [#allocation9], 0 }
   0x3   :  { %15 = vsyncpa [#allocation12], 0  ;;  %s32_s26 = sshll.u32 %s19067_s1, 4  ;;  %s33_s26 = int_to_ptr.hbm [resolvable:$true] %s32_s26 }
   0x4   :  { %16 = vsyncpa [#allocation4], 0  ;;  %s18394_s27 = smov [#allocation5]   ;;  %s56_s8 = sshll.u32 %s19069_s3, 4  ;;  %s57_s8 = int_to_ptr.hbm [resolvable:$true] %s56_s8 }
   0x5   :  { %s34_s28 = sshll.u32 %s18394_s27, 4  ;;  %s18395_s9 = smov 512   ;;  %s35_s28 = int_to_ptr.vmem [resolvable:$true] %s34_s28 }
   0x6   :  { %s18396_s10 = smov 32   ;;  %s18397_s11 = smov [#allocation8]  }
   0x7   :  { %40 = dma.hbm_to_vmem [thread:$0]  %s33_s26, 65536, %s35_s28, [#allocation6], %s18395_s9, %s18395_s9, %s18396_s10  }
   0x8   :  { %s58_s12 = sshll.u32 %s18397_s11, 4  ;;  %s80_s15 = sshll.u32 %s19071_s5, 4  ;;  %s59_s12 = int_to_ptr.vmem [resolvable:$true] %s58_s12  ;;  %s81_s15 = int_to_ptr.hbm [resolvable:$true] %s80_s15 }
   0x9   :  { %64 = dma.hbm_to_vmem [thread:$0]  %s57_s8, 65536, %s59_s12, [#allocation9], %s18395_s9, %s18395_s9, %s18396_s10  }
   0xa   :  { %s18398_s1 = smov [#allocation11]   ;;  %s22_s3 = sshll.u32 %s19066_s0, 4  ;;  %s23_s3 = int_to_ptr.hbm [resolvable:$true] %s22_s3 }
   0xb   :  { %s82_s16 = sshll.u32 %s18398_s1, 4  ;;  %s18399_s19 = smov 384   ;;  %s83_s16 = int_to_ptr.vmem [resolvable:$true] %s82_s16 }
   0xc   :  { %s18400_s20 = smov 24   ;;  %s18401_s21 = smov [#allocation2]  }
   0xd   :  { %88 = dma.hbm_to_vmem [thread:$0]  %s81_s15, 49152, %s83_s16, [#allocation12], %s18399_s19, %s18399_s19, %s18400_s20  }
   0xe   :  { %s24_s22 = sshll.u32 %s18401_s21, 4  ;;  %s46_s5 = sshll.u32 %s19068_s2, 4  ;;  %s25_s22 = int_to_ptr.vmem [resolvable:$true] %s24_s22  ;;  %s47_s5 = int_to_ptr.hbm [resolvable:$true] %s46_s5 }
   0xf   :  { %27 = dma.hbm_to_vmem [thread:$0]  %s23_s3, 1024, %s25_s22, [#allocation3]  }
  0x10   :  { %s70_s27 = sshll.u32 %s19070_s4, 4  ;;  %s18402_s28 = smov [#allocation7]   ;;  %s71_s27 = int_to_ptr.hbm [resolvable:$true] %s70_s27 }
  0x11   :  { %s48_s29 = sshll.u32 %s18402_s28, 4  ;;  %s18403_s0 = smov [#allocation10]   ;;  %s49_s29 = int_to_ptr.vmem [resolvable:$true] %s48_s29 }
  0x12   :  { %51 = dma.hbm_to_vmem [thread:$0]  %s47_s5, 128, %s49_s29, [#allocation6]  }
  0x13   :  { %s72_s30 = sshll.u32 %s18403_s0, 4  ;;  %s94_s10 = sshll.u32 %s19072_s6, 4  ;;  %s73_s30 = int_to_ptr.vmem [resolvable:$true] %s72_s30  ;;  %s95_s10 = int_to_ptr.hbm [resolvable:$true] %s94_s10 }
  0x14   :  { %75 = dma.hbm_to_vmem [thread:$0]  %s71_s27, 128, %s73_s30, [#allocation9]  }
  0x15   :  { %s18404_s2 = smov [#allocation13]  }
  0x16   :  { %s96_s11 = sshll.u32 %s18404_s2, 4  ;;  %s97_s11 = int_to_ptr.vmem [resolvable:$true] %s96_s11 }
  0x17   :  { %99 = dma.hbm_to_vmem [thread:$0]  %s95_s10, 96, %s97_s11, [#allocation12]  }
  0x18   :  { %18384 = dma.done.wait [#allocation3], 1024  }
  0x19   :  { %18385 = vsyncadd [#allocation3], 4294966272 }
  0x1a   :  { %18386 = dma.done.wait [#allocation6], 65664  }
  0x1b   :  { %18387 = vsyncadd [#allocation6], 4294901632 }
  0x1c   :  { %18388 = dma.done.wait [#allocation9], 65664  }
  0x1d   :  { %18389 = vsyncadd [#allocation9], 4294901632 }
  0x1e   :  { %18390 = dma.done.wait [#allocation12], 49248  }
  0x1f   :  { %18391 = vsyncadd [#allocation12], 4294918048  ;;  %v11328_v0 = vld [vmem:[#allocation5 + $0x1c0] sm:$0xf]  ;;  %s18405_s4 = smov [#allocation14]   ;;  %s11089_s14 = sshll.u32 %s19073_s7, 4  ;;  %s11090_s14 = int_to_ptr.hbm [resolvable:$true] %s11089_s14 }
  0x20   :  { %v16800_v1 = vld [vmem:[#allocation5 + $0x1dc] sm:$0xf0]  ;;  %s11087_s6 = sshll.u32 %s18405_s4, 4  ;;  %s11088_s6 = int_to_ptr.vmem [resolvable:$true] %s11087_s6 }
  0x21   :  { %v11584_v2 = vld [vmem:[#allocation5 + $0x3c0] sm:$0xf]  ;;  %v11329_v3 = vor.u32 %v16800_v1, %v11328_v0 }
  0x22   :  { %v16864_v4 = vld [vmem:[#allocation5 + $0x3dc] sm:$0xf0] }
  0x23   :  { %v11840_v5 = vld [vmem:[#allocation5 + $0x5c0] sm:$0xf]  ;;  %v11585_v7 = vor.u32 %v16864_v4, %v11584_v2  ;;  %3234 = vmatpush.bf16.msra.mxu0 %v11329_v3 }
  0x24   :  { %v16928_v6 = vld [vmem:[#allocation5 + $0x5dc] sm:$0xf0] }
  0x25   :  { %v11841_v8 = vor.u32 %v16928_v6, %v11840_v5  ;;  %v12096_v9 = vld [vmem:[#allocation5 + $0x7c0] sm:$0xf]  ;;  %3247 = vmatpush.bf16.msra.mxu1 %v11585_v7 }
  0x26   :  { %v16992_v10 = vld [vmem:[#allocation5 + $0x7dc] sm:$0xf0] }
  0x27   :  { %v11296_v11 = vld [vmem:[#allocation5 + $0x180] sm:$0xf]  ;;  %v12097_v12 = vor.u32 %v16992_v10, %v12096_v9  ;;  %3260 = vmatpush.bf16.msra.mxu2 %v11841_v8 }
  0x28   :  { %v16792_v13 = vld [vmem:[#allocation5 + $0x19c] sm:$0xf0] }
  0x29   :  { %v11552_v14 = vld [vmem:[#allocation5 + $0x380] sm:$0xf]  ;;  %v11297_v16 = vor.u32 %v16792_v13, %v11296_v11  ;;  %3273 = vmatpush.bf16.msra.mxu3 %v12097_v12 }
  0x2a   :  { %v16856_v15 = vld [vmem:[#allocation5 + $0x39c] sm:$0xf0] }
  0x2b   :  { %v11553_v17 = vor.u32 %v16856_v15, %v11552_v14  ;;  %v11808_v18 = vld [vmem:[#allocation5 + $0x580] sm:$0xf]  ;;  %3235 = vmatpush.bf16.msra.mxu0 %v11297_v16 }
  0x2c   :  { %v16920_v19 = vld [vmem:[#allocation5 + $0x59c] sm:$0xf0] }
  0x2d   :  { %v12064_v20 = vld [vmem:[#allocation5 + $0x780] sm:$0xf]  ;;  %v11809_v21 = vor.u32 %v16920_v19, %v11808_v18  ;;  %3248 = vmatpush.bf16.msra.mxu1 %v11553_v17 }
  0x2e   :  { %v16984_v22 = vld [vmem:[#allocation5 + $0x79c] sm:$0xf0] }
  0x2f   :  { %v11264_v23 = vld [vmem:[#allocation5 + $0x140] sm:$0xf]  ;;  %v12065_v25 = vor.u32 %v16984_v22, %v12064_v20  ;;  %3261 = vmatpush.bf16.msra.mxu2 %v11809_v21 }
  0x30   :  { %v16784_v24 = vld [vmem:[#allocation5 + $0x15c] sm:$0xf0] }
  0x31   :  { %v11520_v26 = vld [vmem:[#allocation5 + $0x340] sm:$0xf]  ;;  %v11265_v29 = vor.u32 %v16784_v24, %v11264_v23  ;;  %3274 = vmatpush.bf16.msra.mxu3 %v12065_v25 }
  0x32   :  { %v16848_v27 = vld [vmem:[#allocation5 + $0x35c] sm:$0xf0] }
  0x33   :  { %v11776_v28 = vld [vmem:[#allocation5 + $0x540] sm:$0xf]  ;;  %v11521_v33 = vor.u32 %v16848_v27, %v11520_v26  ;;  %3236 = vmatpush.bf16.msra.mxu0 %v11265_v29 }
  0x34   :  { %v16912_v30 = vld [vmem:[#allocation5 + $0x55c] sm:$0xf0] }
  0x35   :  { %v12032_v31 = vld [vmem:[#allocation5 + $0x740] sm:$0xf]  ;;  %v11777_v34 = vor.u32 %v16912_v30, %v11776_v28  ;;  %3249 = vmatpush.bf16.msra.mxu1 %v11521_v33 }
  0x36   :  { %v16976_v32 = vld [vmem:[#allocation5 + $0x75c] sm:$0xf0] }
  0x37   :  { %v11232_v35 = vld [vmem:[#allocation5 + $0x100] sm:$0xf]  ;;  %v12033_v38 = vor.u32 %v16976_v32, %v12032_v31  ;;  %3262 = vmatpush.bf16.msra.mxu2 %v11777_v34 }
  0x38   :  { %v16776_v36 = vld [vmem:[#allocation5 + $0x11c] sm:$0xf0] }
  0x39   :  { %v11488_v37 = vld [vmem:[#allocation5 + $0x300] sm:$0xf]  ;;  %v11233_v44 = vor.u32 %v16776_v36, %v11232_v35  ;;  %3275 = vmatpush.bf16.msra.mxu3 %v12033_v38 }
  0x3a   :  { %v16840_v39 = vld [vmem:[#allocation5 + $0x31c] sm:$0xf0] }
  0x3b   :  { %v11744_v40 = vld [vmem:[#allocation5 + $0x500] sm:$0xf]  ;;  %v11489_v45 = vor.u32 %v16840_v39, %v11488_v37  ;;  %3237 = vmatpush.bf16.msra.mxu0 %v11233_v44 }
  0x3c   :  { %v16904_v41 = vld [vmem:[#allocation5 + $0x51c] sm:$0xf0] }
  0x3d   :  { %v12000_v42 = vld [vmem:[#allocation5 + $0x700] sm:$0xf]  ;;  %v11745_v46 = vor.u32 %v16904_v41, %v11744_v40  ;;  %3250 = vmatpush.bf16.msra.mxu1 %v11489_v45 }
  0x3e   :  { %v16968_v43 = vld [vmem:[#allocation5 + $0x71c] sm:$0xf0] }
  0x3f   :  { %v11200_v47 = vld [vmem:[#allocation5 + $0xc0] sm:$0xf]  ;;  %v12001_v50 = vor.u32 %v16968_v43, %v12000_v42  ;;  %3263 = vmatpush.bf16.msra.mxu2 %v11745_v46 }
  0x40   :  { %v16768_v48 = vld [vmem:[#allocation5 + $0xdc] sm:$0xf0] }
  0x41   :  { %v11456_v49 = vld [vmem:[#allocation5 + $0x2c0] sm:$0xf]  ;;  %v11201_v56 = vor.u32 %v16768_v48, %v11200_v47  ;;  %3276 = vmatpush.bf16.msra.mxu3 %v12001_v50 }
  0x42   :  { %v16832_v51 = vld [vmem:[#allocation5 + $0x2dc] sm:$0xf0] }
  0x43   :  { %v11712_v52 = vld [vmem:[#allocation5 + $0x4c0] sm:$0xf]  ;;  %v11457_v57 = vor.u32 %v16832_v51, %v11456_v49  ;;  %3238 = vmatpush.bf16.msra.mxu0 %v11201_v56 }
  0x44   :  { %v16896_v53 = vld [vmem:[#allocation5 + $0x4dc] sm:$0xf0] }
  0x45   :  { %v11968_v54 = vld [vmem:[#allocation5 + $0x6c0] sm:$0xf]  ;;  %v11713_v58 = vor.u32 %v16896_v53, %v11712_v52  ;;  %3251 = vmatpush.bf16.msra.mxu1 %v11457_v57 }
  0x46   :  { %v16960_v55 = vld [vmem:[#allocation5 + $0x6dc] sm:$0xf0] }
  0x47   :  { %v11168_v59 = vld [vmem:[#allocation5 + $0x80] sm:$0xf]  ;;  %v11969_v62 = vor.u32 %v16960_v55, %v11968_v54  ;;  %3264 = vmatpush.bf16.msra.mxu2 %v11713_v58 }
  0x48   :  { %v16760_v60 = vld [vmem:[#allocation5 + $0x9c] sm:$0xf0] }
  0x49   :  { %v11424_v61 = vld [vmem:[#allocation5 + $0x280] sm:$0xf]  ;;  %v11169_v4 = vor.u32 %v16760_v60, %v11168_v59  ;;  %3277 = vmatpush.bf16.msra.mxu3 %v11969_v62 }
  0x4a   :  { %v16824_v63 = vld [vmem:[#allocation5 + $0x29c] sm:$0xf0] }
  0x4b   :  { %v11680_v0 = vld [vmem:[#allocation5 + $0x480] sm:$0xf]  ;;  %v11425_v5 = vor.u32 %v16824_v63, %v11424_v61  ;;  %3239 = vmatpush.bf16.msra.mxu0 %v11169_v4 }
  0x4c   :  { %v16888_v1 = vld [vmem:[#allocation5 + $0x49c] sm:$0xf0] }
  0x4d   :  { %v11936_v2 = vld [vmem:[#allocation5 + $0x680] sm:$0xf]  ;;  %v11681_v6 = vor.u32 %v16888_v1, %v11680_v0  ;;  %3252 = vmatpush.bf16.msra.mxu1 %v11425_v5 }
  0x4e   :  { %v16952_v3 = vld [vmem:[#allocation5 + $0x69c] sm:$0xf0] }
  0x4f   :  { %v11136_v7 = vld [vmem:[#allocation5 + $0x40] sm:$0xf]  ;;  %v11937_v10 = vor.u32 %v16952_v3, %v11936_v2  ;;  %3265 = vmatpush.bf16.msra.mxu2 %v11681_v6  ;;  %v130_v3 = vld [vmem:[#allocation2 + $0x10] sm:$0xff] }
  0x50   :  { %v16752_v8 = vld [vmem:[#allocation5 + $0x5c] sm:$0xf0] }
  0x51   :  { %v11392_v9 = vld [vmem:[#allocation5 + $0x240] sm:$0xf]  ;;  %v11137_v16 = vor.u32 %v16752_v8, %v11136_v7  ;;  %3278 = vmatpush.bf16.msra.mxu3 %v11937_v10  ;;  %v18467_v8 = vpack.c.bf16 %v130_v3, %v130_v3  ;;  %v131_v10 = vld [vmem:[#allocation2 + $0x18] sm:$0xff] }
  0x52   :  { %v16816_v11 = vld [vmem:[#allocation5 + $0x25c] sm:$0xf0] }
  0x53   :  { %v11648_v12 = vld [vmem:[#allocation5 + $0x440] sm:$0xf]  ;;  %v11393_v19 = vor.u32 %v16816_v11, %v11392_v9  ;;  %3240 = vmatpush.bf16.msra.mxu0 %v11137_v16 }
  0x54   :  { %v16880_v13 = vld [vmem:[#allocation5 + $0x45c] sm:$0xf0] }
  0x55   :  { %v11904_v14 = vld [vmem:[#allocation5 + $0x640] sm:$0xf]  ;;  %v11649_v20 = vor.u32 %v16880_v13, %v11648_v12  ;;  %3253 = vmatpush.bf16.msra.mxu1 %v11393_v19  ;;  %v129_v19 = vld [vmem:[#allocation2 + $0x8] sm:$0xff] }
  0x56   :  { %v16944_v15 = vld [vmem:[#allocation5 + $0x65c] sm:$0xf0] }
  0x57   :  { %v11104_v17 = vld [vmem:[#allocation5] sm:$0xf]  ;;  %v11905_v24 = vor.u32 %v16944_v15, %v11904_v14  ;;  %3266 = vmatpush.bf16.msra.mxu2 %v11649_v20  ;;  %v18471_v15 = vpack.c.bf16 %v131_v10, %v131_v10  ;;  %v11586_v10 = vld [vmem:[#allocation5 + $0x3e0] sm:$0xf0] }
  0x58   :  { %v16744_v18 = vld [vmem:[#allocation5 + $0x1c] sm:$0xf0] }
  0x59   :  { %v11360_v21 = vld [vmem:[#allocation5 + $0x200] sm:$0xf]  ;;  %v11105_v31 = vor.u32 %v16744_v18, %v11104_v17  ;;  %3279 = vmatpush.bf16.msra.mxu3 %v11905_v24 }
  0x5a   :  { %v16808_v22 = vld [vmem:[#allocation5 + $0x21c] sm:$0xf0] }
  0x5b   :  { %v11616_v23 = vld [vmem:[#allocation5 + $0x400] sm:$0xf]  ;;  %v11361_v35 = vor.u32 %v16808_v22, %v11360_v21  ;;  %3241 = vmatpush.bf16.msra.mxu0 %v11105_v31 }
  0x5c   :  { %v16872_v25 = vld [vmem:[#allocation5 + $0x41c] sm:$0xf0] }
  0x5d   :  { %v11872_v26 = vld [vmem:[#allocation5 + $0x600] sm:$0xf]  ;;  %v11617_v36 = vor.u32 %v16872_v25, %v11616_v23  ;;  %3254 = vmatpush.bf16.msra.mxu1 %v11361_v35  ;;  %v18476_v25 = vpack.c.bf16 %v129_v19, %v129_v19 }
  0x5e   :  { %v16936_v27 = vld [vmem:[#allocation5 + $0x61c] sm:$0xf0] }
  0x5f   :  { %v12352_v28 = vld [vmem:[#allocation5 + $0x9c0] sm:$0xf]  ;;  %v11873_v39 = vor.u32 %v16936_v27, %v11872_v26  ;;  %3267 = vmatpush.bf16.msra.mxu2 %v11617_v36 }
  0x60   :  { %v17056_v29 = vld [vmem:[#allocation5 + $0x9dc] sm:$0xf0]  ;;  %3255 = vmatmul.bf16.vlgmr.msra.gmra.mxu1 %v18476_v25 }
  0x61   :  { %v12608_v30 = vld [vmem:[#allocation5 + $0xbc0] sm:$0xf]  ;;  %v12353_v40 = vor.u32 %v17056_v29, %v12352_v28  ;;  %3280 = vmatpush.bf16.msra.mxu3 %v11873_v39 }
  0x62   :  { %v17120_v32 = vld [vmem:[#allocation5 + $0xbdc] sm:$0xf0]  ;;  %3268 = vmatmul.bf16.vlgmr.msra.gmra.mxu2 %v18467_v8 }
  0x63   :  { %v12864_v33 = vld [vmem:[#allocation5 + $0xdc0] sm:$0xf]  ;;  %v12609_v41 = vor.u32 %v17120_v32, %v12608_v30  ;;  %3286 = vmatpush.bf16.msrb.mxu0 %v12353_v40 }
  0x64   :  { %v17184_v34 = vld [vmem:[#allocation5 + $0xddc] sm:$0xf0]  ;;  %3281 = vmatmul.bf16.vlgmr.msra.gmra.mxu3 %v18471_v15 }
  0x65   :  { %v13120_v37 = vld [vmem:[#allocation5 + $0xfc0] sm:$0xf]  ;;  %v12865_v42 = vor.u32 %v17184_v34, %v12864_v33  ;;  %3299 = vmatpush.bf16.msrb.mxu1 %v12609_v41 }
  0x66   :  { %v17248_v38 = vld [vmem:[#allocation5 + $0xfdc] sm:$0xf0] }
  0x67   :  { %v12320_v43 = vld [vmem:[#allocation5 + $0x980] sm:$0xf]  ;;  %v13121_v46 = vor.u32 %v17248_v38, %v13120_v37  ;;  %3312 = vmatpush.bf16.msrb.mxu2 %v12865_v42 }
  0x68   :  { %v17048_v44 = vld [vmem:[#allocation5 + $0x99c] sm:$0xf0] }
  0x69   :  { %v12576_v45 = vld [vmem:[#allocation5 + $0xb80] sm:$0xf]  ;;  %v12321_v52 = vor.u32 %v17048_v44, %v12320_v43  ;;  %3325 = vmatpush.bf16.msrb.mxu3 %v13121_v46 }
  0x6a   :  { %v17112_v47 = vld [vmem:[#allocation5 + $0xb9c] sm:$0xf0] }
  0x6b   :  { %v12832_v48 = vld [vmem:[#allocation5 + $0xd80] sm:$0xf]  ;;  %v12577_v54 = vor.u32 %v17112_v47, %v12576_v45  ;;  %3287 = vmatpush.bf16.msrb.mxu0 %v12321_v52 }
  0x6c   :  { %v17176_v49 = vld [vmem:[#allocation5 + $0xd9c] sm:$0xf0] }
  0x6d   :  { %v13088_v50 = vld [vmem:[#allocation5 + $0xf80] sm:$0xf]  ;;  %v12833_v55 = vor.u32 %v17176_v49, %v12832_v48  ;;  %3300 = vmatpush.bf16.msrb.mxu1 %v12577_v54 }
  0x6e   :  { %v17240_v51 = vld [vmem:[#allocation5 + $0xf9c] sm:$0xf0] }
  0x6f   :  { %v12288_v53 = vld [vmem:[#allocation5 + $0x940] sm:$0xf]  ;;  %v13089_v59 = vor.u32 %v17240_v51, %v13088_v50  ;;  %3313 = vmatpush.bf16.msrb.mxu2 %v12833_v55 }
  0x70   :  { %v17040_v56 = vld [vmem:[#allocation5 + $0x95c] sm:$0xf0] }
  0x71   :  { %v12544_v57 = vld [vmem:[#allocation5 + $0xb40] sm:$0xf]  ;;  %v12289_v0 = vor.u32 %v17040_v56, %v12288_v53  ;;  %3326 = vmatpush.bf16.msrb.mxu3 %v13089_v59 }
  0x72   :  { %v17104_v58 = vld [vmem:[#allocation5 + $0xb5c] sm:$0xf0] }
  0x73   :  { %v12800_v60 = vld [vmem:[#allocation5 + $0xd40] sm:$0xf]  ;;  %v12545_v1 = vor.u32 %v17104_v58, %v12544_v57  ;;  %3288 = vmatpush.bf16.msrb.mxu0 %v12289_v0 }
  0x74   :  { %v17168_v61 = vld [vmem:[#allocation5 + $0xd5c] sm:$0xf0] }
  0x75   :  { %v13056_v62 = vld [vmem:[#allocation5 + $0xf40] sm:$0xf]  ;;  %v12801_v5 = vor.u32 %v17168_v61, %v12800_v60  ;;  %3301 = vmatpush.bf16.msrb.mxu1 %v12545_v1 }
  0x76   :  { %v17232_v63 = vld [vmem:[#allocation5 + $0xf5c] sm:$0xf0] }
  0x77   :  { %v12256_v2 = vld [vmem:[#allocation5 + $0x900] sm:$0xf]  ;;  %v13057_v11 = vor.u32 %v17232_v63, %v13056_v62  ;;  %3314 = vmatpush.bf16.msrb.mxu2 %v12801_v5  ;;  %v11330_v5 = vld [vmem:[#allocation5 + $0x1e0] sm:$0xf0] }
  0x78   :  { %v128_v4 = vld [vmem:[#allocation2] sm:$0xff] }
  0x79   :  { %v17032_v6 = vld [vmem:[#allocation5 + $0x91c] sm:$0xf0]  ;;  %v18469_v9 = vpack.c.bf16 %v128_v4, %v128_v4  ;;  %3327 = vmatpush.bf16.msrb.mxu3 %v13057_v11  ;;  %v16796_v4 = vld [vmem:[#allocation5 + $0x1c4] sm:$0xf] }
  0x7a   :  { %v12512_v7 = vld [vmem:[#allocation5 + $0xb00] sm:$0xf]  ;;  %v12257_v18 = vor.u32 %v17032_v6, %v12256_v2  ;;  %v16860_v6 = vld [vmem:[#allocation5 + $0x3c4] sm:$0xf] }
  0x7b   :  { %v17096_v12 = vld [vmem:[#allocation5 + $0xb1c] sm:$0xf0]  ;;  %3242 = vmatmul.bf16.vlgmr.msra.gmra.mxu0 %v18469_v9  ;;  %v16924_v11 = vld [vmem:[#allocation5 + $0x5c4] sm:$0xf] }
  0x7c   :  { %v12768_v13 = vld [vmem:[#allocation5 + $0xd00] sm:$0xf]  ;;  %v12513_v20 = vor.u32 %v17096_v12, %v12512_v7  ;;  %3289 = vmatpush.bf16.msrb.mxu0 %v12257_v18  ;;  %v11842_v12 = vld [vmem:[#allocation5 + $0x5e0] sm:$0xf0]  ;;  %v134_v18 = vld [vmem:[#allocation2 + $0x30] sm:$0xff] }
  0x7d   :  { %v17160_v14 = vld [vmem:[#allocation5 + $0xd1c] sm:$0xf0] }
  0x7e   :  { %v13024_v16 = vld [vmem:[#allocation5 + $0xf00] sm:$0xf]  ;;  %v12769_v21 = vor.u32 %v17160_v14, %v12768_v13  ;;  %3302 = vmatpush.bf16.msrb.mxu1 %v12513_v20  ;;  %v11333_v20 = vor.u32 %v16796_v4, %v11330_v5  ;;  %v11202_v4 = vld [vmem:[#allocation5 + $0xe0] sm:$0xf0] }
  0x7f   :  { %v17224_v17 = vld [vmem:[#allocation5 + $0xf1c] sm:$0xf0]  ;;  %v16828_v5 = vld [vmem:[#allocation5 + $0x2c4] sm:$0xf] }
  0x80   :  { %v12224_v22 = vld [vmem:[#allocation5 + $0x8c0] sm:$0xf]  ;;  %v13025_v26 = vor.u32 %v17224_v17, %v13024_v16  ;;  %3315 = vmatpush.bf16.msrb.mxu2 %v12769_v21  ;;  %v16988_v16 = vld [vmem:[#allocation5 + $0x7c4] sm:$0xf] }
  0x81   :  { %v17024_v23 = vld [vmem:[#allocation5 + $0x8dc] sm:$0xf0]  ;;  %v12098_v17 = vld [vmem:[#allocation5 + $0x7e0] sm:$0xf0] }
  0x82   :  { %v12480_v24 = vld [vmem:[#allocation5 + $0xac0] sm:$0xf]  ;;  %v12225_v32 = vor.u32 %v17024_v23, %v12224_v22  ;;  %3328 = vmatpush.bf16.msrb.mxu3 %v13025_v26  ;;  %v16788_v21 = vld [vmem:[#allocation5 + $0x184] sm:$0xf]  ;;  %v135_v23 = vld [vmem:[#allocation2 + $0x38] sm:$0xff]  ;;  %v11845_v26 = vor.u32 %v16924_v11, %v11842_v12 }
  0x83   :  { %v17088_v27 = vld [vmem:[#allocation5 + $0xadc] sm:$0xf0]  ;;  %v11714_v11 = vld [vmem:[#allocation5 + $0x4e0] sm:$0xf0] }
  0x84   :  { %v12736_v28 = vld [vmem:[#allocation5 + $0xcc0] sm:$0xf]  ;;  %v12481_v33 = vor.u32 %v17088_v27, %v12480_v24  ;;  %3290 = vmatpush.bf16.msrb.mxu0 %v12225_v32  ;;  %v11589_v24 = vor.u32 %v16860_v6, %v11586_v10  ;;  %v11298_v27 = vld [vmem:[#allocation5 + $0x1a0] sm:$0xf0] }
  0x85   :  { %v17152_v29 = vld [vmem:[#allocation5 + $0xcdc] sm:$0xf0]  ;;  %v16916_v32 = vld [vmem:[#allocation5 + $0x584] sm:$0xf] }
  0x86   :  { %v12992_v30 = vld [vmem:[#allocation5 + $0xec0] sm:$0xf]  ;;  %v12737_v34 = vor.u32 %v17152_v29, %v12736_v28  ;;  %3303 = vmatpush.bf16.msrb.mxu1 %v12481_v33  ;;  %v16852_v28 = vld [vmem:[#allocation5 + $0x384] sm:$0xf]  ;;  %v133_v29 = vld [vmem:[#allocation2 + $0x28] sm:$0xff] }
  0x87   :  { %v17216_v31 = vld [vmem:[#allocation5 + $0xedc] sm:$0xf0]  ;;  %v11810_v33 = vld [vmem:[#allocation5 + $0x5a0] sm:$0xf0] }
  0x88   :  { %v12192_v35 = vld [vmem:[#allocation5 + $0x880] sm:$0xf]  ;;  %v12993_v38 = vor.u32 %v17216_v31, %v12992_v30  ;;  %3316 = vmatpush.bf16.msrb.mxu2 %v12737_v34  ;;  %v12101_v30 = vor.u32 %v16988_v16, %v12098_v17  ;;  %v11554_v31 = vld [vmem:[#allocation5 + $0x3a0] sm:$0xf0]  ;;  %v18479_v34 = vpack.c.bf16 %v134_v18, %v134_v18 }
  0x89   :  { %v17016_v36 = vld [vmem:[#allocation5 + $0x89c] sm:$0xf0]  ;;  %v16892_v10 = vld [vmem:[#allocation5 + $0x4c4] sm:$0xf] }
  0x8a   :  { %v12448_v37 = vld [vmem:[#allocation5 + $0xa80] sm:$0xf]  ;;  %v12193_v44 = vor.u32 %v17016_v36, %v12192_v35  ;;  %3329 = vmatpush.bf16.msrb.mxu3 %v12993_v38  ;;  %v16980_v35 = vld [vmem:[#allocation5 + $0x784] sm:$0xf]  ;;  %v18483_v38 = vpack.c.bf16 %v135_v23, %v135_v23  ;;  %v11717_v17 = vor.u32 %v16892_v10, %v11714_v11 }
  0x8b   :  { %v17080_v39 = vld [vmem:[#allocation5 + $0xa9c] sm:$0xf0]  ;;  %v12066_v36 = vld [vmem:[#allocation5 + $0x7a0] sm:$0xf0] }
  0x8c   :  { %v12704_v40 = vld [vmem:[#allocation5 + $0xc80] sm:$0xf]  ;;  %v12449_v45 = vor.u32 %v17080_v39, %v12448_v37  ;;  %3291 = vmatpush.bf16.msrb.mxu0 %v12193_v44  ;;  %v11301_v39 = vor.u32 %v16788_v21, %v11298_v27  ;;  %v11266_v44 = vld [vmem:[#allocation5 + $0x160] sm:$0xf0] }
  0x8d   :  { %v17144_v41 = vld [vmem:[#allocation5 + $0xc9c] sm:$0xf0]  ;;  %v16956_v12 = vld [vmem:[#allocation5 + $0x6c4] sm:$0xf] }
  0x8e   :  { %v12960_v42 = vld [vmem:[#allocation5 + $0xe80] sm:$0xf]  ;;  %v12705_v46 = vor.u32 %v17144_v41, %v12704_v40  ;;  %3304 = vmatpush.bf16.msrb.mxu1 %v12449_v45  ;;  %v18485_v40 = vpack.c.bf16 %v133_v29, %v133_v29  ;;  %v11557_v41 = vor.u32 %v16852_v28, %v11554_v31  ;;  %v16844_v45 = vld [vmem:[#allocation5 + $0x344] sm:$0xf] }
  0x8f   :  { %v17208_v43 = vld [vmem:[#allocation5 + $0xe9c] sm:$0xf0]  ;;  %v16756_v18 = vld [vmem:[#allocation5 + $0x84] sm:$0xf] }
  0x90   :  { %v12160_v47 = vld [vmem:[#allocation5 + $0x840] sm:$0xf]  ;;  %v12961_v50 = vor.u32 %v17208_v43, %v12960_v42  ;;  %3317 = vmatpush.bf16.msrb.mxu2 %v12705_v46  ;;  %v11813_v42 = vor.u32 %v16916_v32, %v11810_v33  ;;  %v16780_v43 = vld [vmem:[#allocation5 + $0x144] sm:$0xf]  ;;  %v12069_v46 = vor.u32 %v16980_v35, %v12066_v36 }
  0x91   :  { %v17008_v48 = vld [vmem:[#allocation5 + $0x85c] sm:$0xf0]  ;;  %v16884_v23 = vld [vmem:[#allocation5 + $0x484] sm:$0xf] }
  0x92   :  { %v12416_v49 = vld [vmem:[#allocation5 + $0xa40] sm:$0xf]  ;;  %v12161_v56 = vor.u32 %v17008_v48, %v12160_v47  ;;  %3330 = vmatpush.bf16.msrb.mxu3 %v12961_v50  ;;  %v11522_v47 = vld [vmem:[#allocation5 + $0x360] sm:$0xf0] }
  0x93   :  { %v17072_v51 = vld [vmem:[#allocation5 + $0xa5c] sm:$0xf0]  ;;  %v16908_v48 = vld [vmem:[#allocation5 + $0x544] sm:$0xf] }
  0x94   :  { %v12672_v52 = vld [vmem:[#allocation5 + $0xc40] sm:$0xf]  ;;  %v12417_v59 = vor.u32 %v17072_v51, %v12416_v49  ;;  %3292 = vmatpush.bf16.msrb.mxu0 %v12161_v56  ;;  %v11778_v49 = vld [vmem:[#allocation5 + $0x560] sm:$0xf0] }
  0x95   :  { %v17136_v53 = vld [vmem:[#allocation5 + $0xc5c] sm:$0xf0]  ;;  %v16972_v50 = vld [vmem:[#allocation5 + $0x744] sm:$0xf] }
  0x96   :  { %v12928_v54 = vld [vmem:[#allocation5 + $0xe40] sm:$0xf]  ;;  %v12673_v60 = vor.u32 %v17136_v53, %v12672_v52  ;;  %3305 = vmatpush.bf16.msrb.mxu1 %v12417_v59  ;;  %v12034_v51 = vld [vmem:[#allocation5 + $0x760] sm:$0xf0]  ;;  %v11269_v52 = vor.u32 %v16780_v43, %v11266_v44  ;;  %v11525_v53 = vor.u32 %v16844_v45, %v11522_v47 }
  0x97   :  { %v17200_v55 = vld [vmem:[#allocation5 + $0xe5c] sm:$0xf0]  ;;  %v11234_v56 = vld [vmem:[#allocation5 + $0x120] sm:$0xf0] }
  0x98   :  { %v12128_v57 = vld [vmem:[#allocation5 + $0x800] sm:$0xf]  ;;  %v12929_v0 = vor.u32 %v17200_v55, %v12928_v54  ;;  %3318 = vmatpush.bf16.msrb.mxu2 %v12673_v60  ;;  %v11781_v54 = vor.u32 %v16908_v48, %v11778_v49  ;;  %v16772_v55 = vld [vmem:[#allocation5 + $0x104] sm:$0xf] }
  0x99   :  { %v17000_v58 = vld [vmem:[#allocation5 + $0x81c] sm:$0xf0]  ;;  %v11490_v59 = vld [vmem:[#allocation5 + $0x320] sm:$0xf0] }
  0x9a   :  { %v12384_v61 = vld [vmem:[#allocation5 + $0xa00] sm:$0xf]  ;;  %v12129_v7 = vor.u32 %v17000_v58, %v12128_v57  ;;  %3331 = vmatpush.bf16.msrb.mxu3 %v12929_v0  ;;  %v16836_v57 = vld [vmem:[#allocation5 + $0x304] sm:$0xf]  ;;  %v12037_v58 = vor.u32 %v16972_v50, %v12034_v51  ;;  %v11237_v0 = vor.u32 %v16772_v55, %v11234_v56 }
  0x9b   :  { %v17064_v62 = vld [vmem:[#allocation5 + $0xa1c] sm:$0xf0]  ;;  %v16900_v60 = vld [vmem:[#allocation5 + $0x504] sm:$0xf] }
  0x9c   :  { %v12640_v63 = vld [vmem:[#allocation5 + $0xc00] sm:$0xf]  ;;  %v12385_v13 = vor.u32 %v17064_v62, %v12384_v61  ;;  %3293 = vmatpush.bf16.msrb.mxu0 %v12129_v7  ;;  %v11746_v61 = vld [vmem:[#allocation5 + $0x520] sm:$0xf0] }
  0x9d   :  { %v17128_v1 = vld [vmem:[#allocation5 + $0xc1c] sm:$0xf0]  ;;  %v16964_v62 = vld [vmem:[#allocation5 + $0x704] sm:$0xf] }
  0x9e   :  { %v12896_v2 = vld [vmem:[#allocation5 + $0xe00] sm:$0xf]  ;;  %v12641_v14 = vor.u32 %v17128_v1, %v12640_v63  ;;  %3306 = vmatpush.bf16.msrb.mxu1 %v12385_v13  ;;  %v12002_v63 = vld [vmem:[#allocation5 + $0x720] sm:$0xf0]  ;;  %v11493_v1 = vor.u32 %v16836_v57, %v11490_v59 }
  0x9f   :  { %v17192_v3 = vld [vmem:[#allocation5 + $0xe1c] sm:$0xf0]  ;;  %v12005_v6 = vor.u32 %v16964_v62, %v12002_v63  ;;  %v11458_v7 = vld [vmem:[#allocation5 + $0x2e0] sm:$0xf0] }
  0xa0   :  { %v12897_v19 = vor.u32 %v17192_v3, %v12896_v2  ;;  %v132_v22 = vld [vmem:[#allocation2 + $0x20] sm:$0xff]  ;;  %3319 = vmatpush.bf16.msrb.mxu2 %v12641_v14  ;;  %3338 = vmatpush.bf16.msra.mxu0 %v11333_v20  ;;  %v11749_v2 = vor.u32 %v16900_v60, %v11746_v61  ;;  %v11461_v16 = vor.u32 %v16828_v5, %v11458_v7 }
  0xa1   :  { %v18481_v37 = vpack.c.bf16 %v132_v22, %v132_v22  ;;  %3307 = vmatmul.bf16.vlgmr.msrb.gmra.mxu1 %v18485_v40  ;;  %v16764_v3 = vld [vmem:[#allocation5 + $0xc4] sm:$0xf] }
  0xa2   :  { %3332 = vmatpush.bf16.msrb.mxu3 %v12897_v19  ;;  %3351 = vmatpush.bf16.msra.mxu1 %v11589_v24  ;;  %v11970_v13 = vld [vmem:[#allocation5 + $0x6e0] sm:$0xf0]  ;;  %v11205_v14 = vor.u32 %v16764_v3, %v11202_v4 }
  0xa3   :  { %3320 = vmatmul.bf16.vlgmr.msrb.gmra.mxu2 %v18479_v34  ;;  %3294 = vmatmul.bf16.vlgmr.msrb.gmra.mxu0 %v18481_v37  ;;  %v11170_v19 = vld [vmem:[#allocation5 + $0xa0] sm:$0xf0]  ;;  %v11973_v21 = vor.u32 %v16956_v12, %v11970_v13 }
  0xa4   :  { %3364 = vmatpush.bf16.msra.mxu2 %v11845_v26  ;;  %3339 = vmatpush.bf16.msra.mxu0 %v11301_v39  ;;  %v16820_v20 = vld [vmem:[#allocation5 + $0x284] sm:$0xf]  ;;  %v11173_v28 = vor.u32 %v16756_v18, %v11170_v19 }
  0xa5   :  { %3333 = vmatmul.bf16.vlgmr.msrb.gmra.mxu3 %v18483_v38  ;;  %v11426_v22 = vld [vmem:[#allocation5 + $0x2a0] sm:$0xf0] }
  0xa6   :  { %3377 = vmatpush.bf16.msra.mxu3 %v12101_v30  ;;  %3352 = vmatpush.bf16.msra.mxu1 %v11557_v41  ;;  %v11682_v24 = vld [vmem:[#allocation5 + $0x4a0] sm:$0xf0]  ;;  %v11429_v29 = vor.u32 %v16820_v20, %v11426_v22 }
  0xa7   :  { %v16948_v26 = vld [vmem:[#allocation5 + $0x684] sm:$0xf]  ;;  %v11685_v30 = vor.u32 %v16884_v23, %v11682_v24 }
  0xa8   :  { %3365 = vmatpush.bf16.msra.mxu2 %v11813_v42  ;;  %3340 = vmatpush.bf16.msra.mxu0 %v11269_v52  ;;  %v11938_v27 = vld [vmem:[#allocation5 + $0x6a0] sm:$0xf0] }
  0xa9   :  { %v16748_v31 = vld [vmem:[#allocation5 + $0x44] sm:$0xf]  ;;  %v11941_v35 = vor.u32 %v16948_v26, %v11938_v27 }
  0xaa   :  { %3378 = vmatpush.bf16.msra.mxu3 %v12069_v46  ;;  %3353 = vmatpush.bf16.msra.mxu1 %v11525_v53  ;;  %v11138_v32 = vld [vmem:[#allocation5 + $0x60] sm:$0xf0] }
  0xab   :  { %v16812_v33 = vld [vmem:[#allocation5 + $0x244] sm:$0xf]  ;;  %v11141_v44 = vor.u32 %v16748_v31, %v11138_v32 }
  0xac   :  { %3366 = vmatpush.bf16.msra.mxu2 %v11781_v54  ;;  %3341 = vmatpush.bf16.msra.mxu0 %v11237_v0  ;;  %v11394_v36 = vld [vmem:[#allocation5 + $0x260] sm:$0xf0] }
  0xad   :  { %v16876_v39 = vld [vmem:[#allocation5 + $0x444] sm:$0xf]  ;;  %v11397_v47 = vor.u32 %v16812_v33, %v11394_v36 }
  0xae   :  { %3379 = vmatpush.bf16.msra.mxu3 %v12037_v58  ;;  %3354 = vmatpush.bf16.msra.mxu1 %v11493_v1  ;;  %v11650_v41 = vld [vmem:[#allocation5 + $0x460] sm:$0xf0] }
  0xaf   :  { %v16940_v42 = vld [vmem:[#allocation5 + $0x644] sm:$0xf]  ;;  %v11653_v48 = vor.u32 %v16876_v39, %v11650_v41 }
  0xb0   :  { %3367 = vmatpush.bf16.msra.mxu2 %v11749_v2  ;;  %3342 = vmatpush.bf16.msra.mxu0 %v11205_v14  ;;  %v11906_v43 = vld [vmem:[#allocation5 + $0x660] sm:$0xf0] }
  0xb1   :  { %v16740_v45 = vld [vmem:[#allocation5 + $0x4] sm:$0xf]  ;;  %v11909_v52 = vor.u32 %v16940_v42, %v11906_v43 }
  0xb2   :  { %3380 = vmatpush.bf16.msra.mxu3 %v12005_v6  ;;  %3355 = vmatpush.bf16.msra.mxu1 %v11461_v16  ;;  %v11106_v46 = vld [vmem:[#allocation5 + $0x20] sm:$0xf0] }
  0xb3   :  { %v16804_v49 = vld [vmem:[#allocation5 + $0x204] sm:$0xf]  ;;  %v11109_v59 = vor.u32 %v16740_v45, %v11106_v46 }
  0xb4   :  { %3368 = vmatpush.bf16.msra.mxu2 %v11717_v17  ;;  %3343 = vmatpush.bf16.msra.mxu0 %v11173_v28  ;;  %v11362_v50 = vld [vmem:[#allocation5 + $0x220] sm:$0xf0] }
  0xb5   :  { %v16868_v51 = vld [vmem:[#allocation5 + $0x404] sm:$0xf]  ;;  %v11365_v63 = vor.u32 %v16804_v49, %v11362_v50 }
  0xb6   :  { %3381 = vmatpush.bf16.msra.mxu3 %v11973_v21  ;;  %3356 = vmatpush.bf16.msra.mxu1 %v11429_v29  ;;  %v11618_v53 = vld [vmem:[#allocation5 + $0x420] sm:$0xf0] }
  0xb7   :  { %v16932_v54 = vld [vmem:[#allocation5 + $0x604] sm:$0xf]  ;;  %v11621_v0 = vor.u32 %v16868_v51, %v11618_v53 }
  0xb8   :  { %3369 = vmatpush.bf16.msra.mxu2 %v11685_v30  ;;  %v11874_v55 = vld [vmem:[#allocation5 + $0x620] sm:$0xf0]  ;;  %3344 = vmatpush.bf16.msra.mxu0 %v11141_v44 }
  0xb9   :  { %v17052_v56 = vld [vmem:[#allocation5 + $0x9c4] sm:$0xf]  ;;  %v11877_v3 = vor.u32 %v16932_v54, %v11874_v55 }
  0xba   :  { %3382 = vmatpush.bf16.msra.mxu3 %v11941_v35  ;;  %v12354_v57 = vld [vmem:[#allocation5 + $0x9e0] sm:$0xf0]  ;;  %3357 = vmatpush.bf16.msra.mxu1 %v11397_v47 }
  0xbb   :  { %v17116_v58 = vld [vmem:[#allocation5 + $0xbc4] sm:$0xf]  ;;  %v12357_v4 = vor.u32 %v17052_v56, %v12354_v57 }
  0xbc   :  { %v12610_v60 = vld [vmem:[#allocation5 + $0xbe0] sm:$0xf0]  ;;  %3370 = vmatpush.bf16.msra.mxu2 %v11653_v48  ;;  %3345 = vmatpush.bf16.msra.mxu0 %v11109_v59 }
  0xbd   :  { %v17180_v61 = vld [vmem:[#allocation5 + $0xdc4] sm:$0xf]  ;;  %v12613_v5 = vor.u32 %v17116_v58, %v12610_v60 }
  0xbe   :  { %v12866_v62 = vld [vmem:[#allocation5 + $0xde0] sm:$0xf0]  ;;  %3383 = vmatpush.bf16.msra.mxu3 %v11909_v52  ;;  %3358 = vmatpush.bf16.msra.mxu1 %v11365_v63 }
  0xbf   :  { %v17244_v1 = vld [vmem:[#allocation5 + $0xfc4] sm:$0xf]  ;;  %v12869_v6 = vor.u32 %v17180_v61, %v12866_v62  ;;  %3346 = vmatmul.bf16.vlgmr.msra.gmra.mxu0 %v18469_v9 }
  0xc0   :  { %v13122_v2 = vld [vmem:[#allocation5 + $0xfe0] sm:$0xf0]  ;;  %3371 = vmatpush.bf16.msra.mxu2 %v11621_v0  ;;  %3390 = vmatpush.bf16.msrb.mxu0 %v12357_v4 }
  0xc1   :  { %v17044_v7 = vld [vmem:[#allocation5 + $0x984] sm:$0xf]  ;;  %v13125_v12 = vor.u32 %v17244_v1, %v13122_v2  ;;  %3359 = vmatmul.bf16.vlgmr.msra.gmra.mxu1 %v18476_v25 }
  0xc2   :  { %v12322_v10 = vld [vmem:[#allocation5 + $0x9a0] sm:$0xf0]  ;;  %3384 = vmatpush.bf16.msra.mxu3 %v11877_v3  ;;  %3403 = vmatpush.bf16.msrb.mxu1 %v12613_v5 }
  0xc3   :  { %v17108_v11 = vld [vmem:[#allocation5 + $0xb84] sm:$0xf]  ;;  %v12325_v19 = vor.u32 %v17044_v7, %v12322_v10  ;;  %3372 = vmatmul.bf16.vlgmr.msra.gmra.mxu2 %v18467_v8 }
  0xc4   :  { %v12578_v13 = vld [vmem:[#allocation5 + $0xba0] sm:$0xf0]  ;;  %3416 = vmatpush.bf16.msrb.mxu2 %v12869_v6 }
  0xc5   :  { %v17172_v14 = vld [vmem:[#allocation5 + $0xd84] sm:$0xf]  ;;  %v12581_v20 = vor.u32 %v17108_v11, %v12578_v13  ;;  %3385 = vmatmul.bf16.vlgmr.msra.gmra.mxu3 %v18471_v15  ;;  %3391 = vmatpush.bf16.msrb.mxu0 %v12325_v19 }
  0xc6   :  { %v12834_v16 = vld [vmem:[#allocation5 + $0xda0] sm:$0xf0]  ;;  %3429 = vmatpush.bf16.msrb.mxu3 %v13125_v12 }
  0xc7   :  { %v17236_v17 = vld [vmem:[#allocation5 + $0xf84] sm:$0xf]  ;;  %v12837_v21 = vor.u32 %v17172_v14, %v12834_v16  ;;  %3404 = vmatpush.bf16.msrb.mxu1 %v12581_v20 }
  0xc8   :  { %v13090_v18 = vld [vmem:[#allocation5 + $0xfa0] sm:$0xf0] }
  0xc9   :  { %v17036_v22 = vld [vmem:[#allocation5 + $0x944] sm:$0xf]  ;;  %v13093_v26 = vor.u32 %v17236_v17, %v13090_v18  ;;  %3417 = vmatpush.bf16.msrb.mxu2 %v12837_v21 }
  0xca   :  { %v12290_v23 = vld [vmem:[#allocation5 + $0x960] sm:$0xf0] }
  0xcb   :  { %v17100_v24 = vld [vmem:[#allocation5 + $0xb44] sm:$0xf]  ;;  %v12293_v32 = vor.u32 %v17036_v22, %v12290_v23  ;;  %3430 = vmatpush.bf16.msrb.mxu3 %v13093_v26 }
  0xcc   :  { %v12546_v27 = vld [vmem:[#allocation5 + $0xb60] sm:$0xf0] }
  0xcd   :  { %v17164_v28 = vld [vmem:[#allocation5 + $0xd44] sm:$0xf]  ;;  %v12549_v33 = vor.u32 %v17100_v24, %v12546_v27  ;;  %3392 = vmatpush.bf16.msrb.mxu0 %v12293_v32 }
  0xce   :  { %v12802_v29 = vld [vmem:[#allocation5 + $0xd60] sm:$0xf0] }
  0xcf   :  { %v17228_v30 = vld [vmem:[#allocation5 + $0xf44] sm:$0xf]  ;;  %v12805_v35 = vor.u32 %v17164_v28, %v12802_v29  ;;  %3405 = vmatpush.bf16.msrb.mxu1 %v12549_v33 }
  0xd0   :  { %v13058_v31 = vld [vmem:[#allocation5 + $0xf60] sm:$0xf0] }
  0xd1   :  { %v17028_v36 = vld [vmem:[#allocation5 + $0x904] sm:$0xf]  ;;  %v13061_v42 = vor.u32 %v17228_v30, %v13058_v31  ;;  %3418 = vmatpush.bf16.msrb.mxu2 %v12805_v35 }
  0xd2   :  { %v12258_v39 = vld [vmem:[#allocation5 + $0x920] sm:$0xf0] }
  0xd3   :  { %v17092_v41 = vld [vmem:[#allocation5 + $0xb04] sm:$0xf]  ;;  %v12261_v48 = vor.u32 %v17028_v36, %v12258_v39  ;;  %3431 = vmatpush.bf16.msrb.mxu3 %v13061_v42  ;;  %v11336_v39 = vld [vmem:[#allocation5 + $0x1c8] sm:$0xf] }
  0xd4   :  { %v12514_v43 = vld [vmem:[#allocation5 + $0xb20] sm:$0xf0]  ;;  %v11592_v42 = vld [vmem:[#allocation5 + $0x3c8] sm:$0xf] }
  0xd5   :  { %v17156_v44 = vld [vmem:[#allocation5 + $0xd04] sm:$0xf]  ;;  %v12517_v49 = vor.u32 %v17092_v41, %v12514_v43  ;;  %3393 = vmatpush.bf16.msrb.mxu0 %v12261_v48  ;;  %v16801_v41 = vld [vmem:[#allocation5 + $0x1e4] sm:$0xf0] }
  0xd6   :  { %v12770_v45 = vld [vmem:[#allocation5 + $0xd20] sm:$0xf0] }
  0xd7   :  { %v17220_v46 = vld [vmem:[#allocation5 + $0xf04] sm:$0xf]  ;;  %v12773_v50 = vor.u32 %v17156_v44, %v12770_v45  ;;  %3406 = vmatpush.bf16.msrb.mxu1 %v12517_v49  ;;  %v16865_v44 = vld [vmem:[#allocation5 + $0x3e4] sm:$0xf0] }
  0xd8   :  { %v13026_v47 = vld [vmem:[#allocation5 + $0xf20] sm:$0xf0]  ;;  %v11848_v45 = vld [vmem:[#allocation5 + $0x5c8] sm:$0xf] }
  0xd9   :  { %v17020_v51 = vld [vmem:[#allocation5 + $0x8c4] sm:$0xf]  ;;  %v13029_v54 = vor.u32 %v17220_v46, %v13026_v47  ;;  %3419 = vmatpush.bf16.msrb.mxu2 %v12773_v50  ;;  %v16929_v46 = vld [vmem:[#allocation5 + $0x5e4] sm:$0xf0] }
  0xda   :  { %v12226_v52 = vld [vmem:[#allocation5 + $0x8e0] sm:$0xf0]  ;;  %v12104_v49 = vld [vmem:[#allocation5 + $0x7c8] sm:$0xf] }
  0xdb   :  { %v17084_v53 = vld [vmem:[#allocation5 + $0xac4] sm:$0xf]  ;;  %v12229_v60 = vor.u32 %v17020_v51, %v12226_v52  ;;  %3432 = vmatpush.bf16.msrb.mxu3 %v13029_v54  ;;  %v16993_v50 = vld [vmem:[#allocation5 + $0x7e4] sm:$0xf0]  ;;  %v11337_v52 = vor.u32 %v16801_v41, %v11336_v39  ;;  %v11849_v54 = vor.u32 %v16929_v46, %v11848_v45 }
  0xdc   :  { %v12482_v55 = vld [vmem:[#allocation5 + $0xae0] sm:$0xf0]  ;;  %v11720_v39 = vld [vmem:[#allocation5 + $0x4c8] sm:$0xf] }
  0xdd   :  { %v17148_v56 = vld [vmem:[#allocation5 + $0xcc4] sm:$0xf]  ;;  %v12485_v61 = vor.u32 %v17084_v53, %v12482_v55  ;;  %3394 = vmatpush.bf16.msrb.mxu0 %v12229_v60  ;;  %v11593_v53 = vor.u32 %v16865_v44, %v11592_v42  ;;  %v11304_v55 = vld [vmem:[#allocation5 + $0x188] sm:$0xf] }
  0xde   :  { %v12738_v57 = vld [vmem:[#allocation5 + $0xce0] sm:$0xf0]  ;;  %v11816_v60 = vld [vmem:[#allocation5 + $0x588] sm:$0xf] }
  0xdf   :  { %v17212_v58 = vld [vmem:[#allocation5 + $0xec4] sm:$0xf]  ;;  %v12741_v62 = vor.u32 %v17148_v56, %v12738_v57  ;;  %3407 = vmatpush.bf16.msrb.mxu1 %v12485_v61  ;;  %v16793_v56 = vld [vmem:[#allocation5 + $0x1a4] sm:$0xf0] }
  0xe0   :  { %v12994_v59 = vld [vmem:[#allocation5 + $0xee0] sm:$0xf0]  ;;  %v11560_v57 = vld [vmem:[#allocation5 + $0x388] sm:$0xf] }
  0xe1   :  { %v17012_v63 = vld [vmem:[#allocation5 + $0x884] sm:$0xf]  ;;  %v12997_v2 = vor.u32 %v17212_v58, %v12994_v59  ;;  %3420 = vmatpush.bf16.msrb.mxu2 %v12741_v62  ;;  %v12105_v58 = vor.u32 %v16993_v50, %v12104_v49  ;;  %v16857_v59 = vld [vmem:[#allocation5 + $0x3a4] sm:$0xf0] }
  0xe2   :  { %v12194_v0 = vld [vmem:[#allocation5 + $0x8a0] sm:$0xf0]  ;;  %v16921_v61 = vld [vmem:[#allocation5 + $0x5a4] sm:$0xf0] }
  0xe3   :  { %v17076_v1 = vld [vmem:[#allocation5 + $0xa84] sm:$0xf]  ;;  %v12197_v10 = vor.u32 %v17012_v63, %v12194_v0  ;;  %3433 = vmatpush.bf16.msrb.mxu3 %v12997_v2  ;;  %v12072_v62 = vld [vmem:[#allocation5 + $0x788] sm:$0xf]  ;;  %v11305_v0 = vor.u32 %v16793_v56, %v11304_v55  ;;  %v11817_v2 = vor.u32 %v16921_v61, %v11816_v60 }
  0xe4   :  { %v12450_v3 = vld [vmem:[#allocation5 + $0xaa0] sm:$0xf0]  ;;  %v16985_v63 = vld [vmem:[#allocation5 + $0x7a4] sm:$0xf0] }
  0xe5   :  { %v17140_v4 = vld [vmem:[#allocation5 + $0xc84] sm:$0xf]  ;;  %v12453_v11 = vor.u32 %v17076_v1, %v12450_v3  ;;  %3395 = vmatpush.bf16.msrb.mxu0 %v12197_v10  ;;  %v11561_v1 = vor.u32 %v16857_v59, %v11560_v57  ;;  %v11272_v3 = vld [vmem:[#allocation5 + $0x148] sm:$0xf] }
  0xe6   :  { %v12706_v5 = vld [vmem:[#allocation5 + $0xca0] sm:$0xf0]  ;;  %v11784_v10 = vld [vmem:[#allocation5 + $0x548] sm:$0xf] }
  0xe7   :  { %v17204_v6 = vld [vmem:[#allocation5 + $0xe84] sm:$0xf]  ;;  %v12709_v12 = vor.u32 %v17140_v4, %v12706_v5  ;;  %3408 = vmatpush.bf16.msrb.mxu1 %v12453_v11  ;;  %v16785_v4 = vld [vmem:[#allocation5 + $0x164] sm:$0xf0] }
  0xe8   :  { %v12962_v7 = vld [vmem:[#allocation5 + $0xea0] sm:$0xf0]  ;;  %v11528_v5 = vld [vmem:[#allocation5 + $0x348] sm:$0xf] }
  0xe9   :  { %v17004_v13 = vld [vmem:[#allocation5 + $0x844] sm:$0xf]  ;;  %v12965_v17 = vor.u32 %v17204_v6, %v12962_v7  ;;  %3421 = vmatpush.bf16.msrb.mxu2 %v12709_v12  ;;  %v12073_v6 = vor.u32 %v16985_v63, %v12072_v62  ;;  %v16849_v7 = vld [vmem:[#allocation5 + $0x364] sm:$0xf0] }
  0xea   :  { %v12162_v14 = vld [vmem:[#allocation5 + $0x860] sm:$0xf0]  ;;  %v16913_v11 = vld [vmem:[#allocation5 + $0x564] sm:$0xf0] }
  0xeb   :  { %v17068_v16 = vld [vmem:[#allocation5 + $0xa44] sm:$0xf]  ;;  %v12165_v23 = vor.u32 %v17004_v13, %v12162_v14  ;;  %3434 = vmatpush.bf16.msrb.mxu3 %v12965_v17  ;;  %v12040_v12 = vld [vmem:[#allocation5 + $0x748] sm:$0xf]  ;;  %v11273_v14 = vor.u32 %v16785_v4, %v11272_v3  ;;  %v11785_v17 = vor.u32 %v16913_v11, %v11784_v10 }
  0xec   :  { %v12418_v18 = vld [vmem:[#allocation5 + $0xa60] sm:$0xf0]  ;;  %v16977_v13 = vld [vmem:[#allocation5 + $0x764] sm:$0xf0] }
  0xed   :  { %v17132_v19 = vld [vmem:[#allocation5 + $0xc44] sm:$0xf]  ;;  %v12421_v27 = vor.u32 %v17068_v16, %v12418_v18  ;;  %3396 = vmatpush.bf16.msrb.mxu0 %v12165_v23  ;;  %v11529_v16 = vor.u32 %v16849_v7, %v11528_v5  ;;  %v11240_v18 = vld [vmem:[#allocation5 + $0x108] sm:$0xf] }
  0xee   :  { %v12674_v20 = vld [vmem:[#allocation5 + $0xc60] sm:$0xf0]  ;;  %v11752_v23 = vld [vmem:[#allocation5 + $0x508] sm:$0xf] }
  0xef   :  { %v17196_v21 = vld [vmem:[#allocation5 + $0xe44] sm:$0xf]  ;;  %v12677_v28 = vor.u32 %v17132_v19, %v12674_v20  ;;  %3409 = vmatpush.bf16.msrb.mxu1 %v12421_v27  ;;  %v16777_v19 = vld [vmem:[#allocation5 + $0x124] sm:$0xf0] }
  0xf0   :  { %v12930_v22 = vld [vmem:[#allocation5 + $0xe60] sm:$0xf0]  ;;  %v11496_v20 = vld [vmem:[#allocation5 + $0x308] sm:$0xf] }
  0xf1   :  { %v16996_v24 = vld [vmem:[#allocation5 + $0x804] sm:$0xf]  ;;  %v12933_v32 = vor.u32 %v17196_v21, %v12930_v22  ;;  %3422 = vmatpush.bf16.msrb.mxu2 %v12677_v28  ;;  %v12041_v21 = vor.u32 %v16977_v13, %v12040_v12  ;;  %v16841_v22 = vld [vmem:[#allocation5 + $0x324] sm:$0xf0]  ;;  %v11241_v28 = vor.u32 %v16777_v19, %v11240_v18 }
  0xf2   :  { %v12130_v26 = vld [vmem:[#allocation5 + $0x820] sm:$0xf0]  ;;  %v16969_v27 = vld [vmem:[#allocation5 + $0x724] sm:$0xf0] }
  0xf3   :  { %v17060_v29 = vld [vmem:[#allocation5 + $0xa04] sm:$0xf]  ;;  %v12133_v43 = vor.u32 %v16996_v24, %v12130_v26  ;;  %3435 = vmatpush.bf16.msrb.mxu3 %v12933_v32  ;;  %v16905_v24 = vld [vmem:[#allocation5 + $0x524] sm:$0xf0] }
  0xf4   :  { %v12386_v30 = vld [vmem:[#allocation5 + $0xa20] sm:$0xf0]  ;;  %v12008_v26 = vld [vmem:[#allocation5 + $0x708] sm:$0xf] }
  0xf5   :  { %v17124_v31 = vld [vmem:[#allocation5 + $0xc04] sm:$0xf]  ;;  %v12389_v47 = vor.u32 %v17060_v29, %v12386_v30  ;;  %3397 = vmatpush.bf16.msrb.mxu0 %v12133_v43  ;;  %v11497_v29 = vor.u32 %v16841_v22, %v11496_v20  ;;  %v11753_v30 = vor.u32 %v16905_v24, %v11752_v23  ;;  %v16769_v32 = vld [vmem:[#allocation5 + $0xe4] sm:$0xf0] }
  0xf6   :  { %v12642_v33 = vld [vmem:[#allocation5 + $0xc20] sm:$0xf0]  ;;  %v16897_v41 = vld [vmem:[#allocation5 + $0x4e4] sm:$0xf0] }
  0xf7   :  { %v17188_v35 = vld [vmem:[#allocation5 + $0xe04] sm:$0xf]  ;;  %v12645_v48 = vor.u32 %v17124_v31, %v12642_v33  ;;  %3410 = vmatpush.bf16.msrb.mxu1 %v12389_v47  ;;  %v11208_v31 = vld [vmem:[#allocation5 + $0xc8] sm:$0xf]  ;;  %v11721_v46 = vor.u32 %v16897_v41, %v11720_v39 }
  0xf8   :  { %v12898_v36 = vld [vmem:[#allocation5 + $0xe20] sm:$0xf0]  ;;  %3398 = vmatmul.bf16.vlgmr.msrb.gmra.mxu0 %v18481_v37  ;;  %v11464_v33 = vld [vmem:[#allocation5 + $0x2c8] sm:$0xf]  ;;  %v11209_v44 = vor.u32 %v16769_v32, %v11208_v31 }
  0xf9   :  { %v12901_v51 = vor.u32 %v17188_v35, %v12898_v36  ;;  %3423 = vmatpush.bf16.msrb.mxu2 %v12645_v48  ;;  %3442 = vmatpush.bf16.msra.mxu0 %v11337_v52  ;;  %v12009_v35 = vor.u32 %v16969_v27, %v12008_v26  ;;  %v16833_v36 = vld [vmem:[#allocation5 + $0x2e4] sm:$0xf0] }
  0xfa   :  { %3411 = vmatmul.bf16.vlgmr.msrb.gmra.mxu1 %v18485_v40  ;;  %v11976_v42 = vld [vmem:[#allocation5 + $0x6c8] sm:$0xf]  ;;  %v11465_v45 = vor.u32 %v16833_v36, %v11464_v33 }
  0xfb   :  { %3436 = vmatpush.bf16.msrb.mxu3 %v12901_v51  ;;  %3455 = vmatpush.bf16.msra.mxu1 %v11593_v53  ;;  %v16961_v43 = vld [vmem:[#allocation5 + $0x6e4] sm:$0xf0] }
  0xfc   :  { %3424 = vmatmul.bf16.vlgmr.msrb.gmra.mxu2 %v18479_v34  ;;  %v11176_v47 = vld [vmem:[#allocation5 + $0x88] sm:$0xf]  ;;  %v11977_v50 = vor.u32 %v16961_v43, %v11976_v42 }
  0xfd   :  { %3468 = vmatpush.bf16.msra.mxu2 %v11849_v54  ;;  %3443 = vmatpush.bf16.msra.mxu0 %v11305_v0  ;;  %v16761_v48 = vld [vmem:[#allocation5 + $0xa4] sm:$0xf0] }
  0xfe   :  { %3437 = vmatmul.bf16.vlgmr.msrb.gmra.mxu3 %v18483_v38  ;;  %v11432_v49 = vld [vmem:[#allocation5 + $0x288] sm:$0xf]  ;;  %v11177_v56 = vor.u32 %v16761_v48, %v11176_v47 }
  0xff   :  { %3481 = vmatpush.bf16.msra.mxu3 %v12105_v58  ;;  %3456 = vmatpush.bf16.msra.mxu1 %v11561_v1  ;;  %v16825_v51 = vld [vmem:[#allocation5 + $0x2a4] sm:$0xf0] }
 0x100   :  { %v11688_v52 = vld [vmem:[#allocation5 + $0x488] sm:$0xf]  ;;  %v11433_v57 = vor.u32 %v16825_v51, %v11432_v49 }
 0x101   :  { %3469 = vmatpush.bf16.msra.mxu2 %v11817_v2  ;;  %3444 = vmatpush.bf16.msra.mxu0 %v11273_v14  ;;  %v16889_v53 = vld [vmem:[#allocation5 + $0x4a4] sm:$0xf0] }
 0x102   :  { %v11944_v54 = vld [vmem:[#allocation5 + $0x688] sm:$0xf]  ;;  %v11689_v58 = vor.u32 %v16889_v53, %v11688_v52 }
 0x103   :  { %3482 = vmatpush.bf16.msra.mxu3 %v12073_v6  ;;  %3457 = vmatpush.bf16.msra.mxu1 %v11529_v16  ;;  %v16953_v55 = vld [vmem:[#allocation5 + $0x6a4] sm:$0xf0] }
 0x104   :  { %v11144_v59 = vld [vmem:[#allocation5 + $0x48] sm:$0xf]  ;;  %v11945_v62 = vor.u32 %v16953_v55, %v11944_v54 }
 0x105   :  { %3470 = vmatpush.bf16.msra.mxu2 %v11785_v17  ;;  %3445 = vmatpush.bf16.msra.mxu0 %v11241_v28  ;;  %v16753_v60 = vld [vmem:[#allocation5 + $0x64] sm:$0xf0] }
 0x106   :  { %v11400_v61 = vld [vmem:[#allocation5 + $0x248] sm:$0xf]  ;;  %v11145_v4 = vor.u32 %v16753_v60, %v11144_v59 }
 0x107   :  { %3483 = vmatpush.bf16.msra.mxu3 %v12041_v21  ;;  %3458 = vmatpush.bf16.msra.mxu1 %v11497_v29  ;;  %v16817_v63 = vld [vmem:[#allocation5 + $0x264] sm:$0xf0] }
 0x108   :  { %v11656_v0 = vld [vmem:[#allocation5 + $0x448] sm:$0xf]  ;;  %v11401_v7 = vor.u32 %v16817_v63, %v11400_v61 }
 0x109   :  { %3471 = vmatpush.bf16.msra.mxu2 %v11753_v30  ;;  %3446 = vmatpush.bf16.msra.mxu0 %v11209_v44  ;;  %v16881_v1 = vld [vmem:[#allocation5 + $0x464] sm:$0xf0] }
 0x10a   :  { %v11912_v2 = vld [vmem:[#allocation5 + $0x648] sm:$0xf]  ;;  %v11657_v10 = vor.u32 %v16881_v1, %v11656_v0 }
 0x10b   :  { %3484 = vmatpush.bf16.msra.mxu3 %v12009_v35  ;;  %3459 = vmatpush.bf16.msra.mxu1 %v11465_v45  ;;  %v16945_v3 = vld [vmem:[#allocation5 + $0x664] sm:$0xf0] }
 0x10c   :  { %v11112_v5 = vld [vmem:[#allocation5 + $0x8] sm:$0xf]  ;;  %v11913_v14 = vor.u32 %v16945_v3, %v11912_v2 }
 0x10d   :  { %3472 = vmatpush.bf16.msra.mxu2 %v11721_v46  ;;  %3447 = vmatpush.bf16.msra.mxu0 %v11177_v56  ;;  %v16745_v6 = vld [vmem:[#allocation5 + $0x24] sm:$0xf0] }
 0x10e   :  { %v11368_v11 = vld [vmem:[#allocation5 + $0x208] sm:$0xf]  ;;  %v11113_v22 = vor.u32 %v16745_v6, %v11112_v5  ;;  %v18503_v6 = vld [vmem:[#allocation7] sm:$0xff] }
 0x10f   :  { %3485 = vmatpush.bf16.msra.mxu3 %v11977_v50  ;;  %3460 = vmatpush.bf16.msra.mxu1 %v11433_v57  ;;  %v16809_v12 = vld [vmem:[#allocation5 + $0x224] sm:$0xf0] }
 0x110   :  { %v11624_v13 = vld [vmem:[#allocation5 + $0x408] sm:$0xf]  ;;  %v11369_v27 = vor.u32 %v16809_v12, %v11368_v11 }
 0x111   :  { %3473 = vmatpush.bf16.msra.mxu2 %v11689_v58  ;;  %v16873_v16 = vld [vmem:[#allocation5 + $0x424] sm:$0xf0]  ;;  %3448 = vmatpush.bf16.msra.mxu0 %v11145_v4 }
 0x112   :  { %v11880_v17 = vld [vmem:[#allocation5 + $0x608] sm:$0xf]  ;;  %v11625_v28 = vor.u32 %v16873_v16, %v11624_v13 }
 0x113   :  { %3486 = vmatpush.bf16.msra.mxu3 %v11945_v62  ;;  %v16937_v18 = vld [vmem:[#allocation5 + $0x624] sm:$0xf0]  ;;  %3461 = vmatpush.bf16.msra.mxu1 %v11401_v7 }
 0x114   :  { %v12360_v19 = vld [vmem:[#allocation5 + $0x9c8] sm:$0xf]  ;;  %v11881_v31 = vor.u32 %v16937_v18, %v11880_v17  ;;  %v658_v18 = vperm.slane %v18503_v6, 0 }
 0x115   :  { %v17057_v20 = vld [vmem:[#allocation5 + $0x9e4] sm:$0xf0]  ;;  %3474 = vmatpush.bf16.msra.mxu2 %v11657_v10  ;;  %3449 = vmatpush.bf16.msra.mxu0 %v11113_v22 }
 0x116   :  { %v12616_v21 = vld [vmem:[#allocation5 + $0xbc8] sm:$0xf]  ;;  %v12361_v32 = vor.u32 %v17057_v20, %v12360_v19 }
 0x117   :  { %v17121_v23 = vld [vmem:[#allocation5 + $0xbe4] sm:$0xf0]  ;;  %3487 = vmatpush.bf16.msra.mxu3 %v11913_v14  ;;  %3462 = vmatpush.bf16.msra.mxu1 %v11369_v27  ;;  %v3243_v27 = vpop.f32.mrf.mxu0 }
 0x118   :  { %v12872_v24 = vld [vmem:[#allocation5 + $0xdc8] sm:$0xf]  ;;  %v12617_v33 = vor.u32 %v17121_v23, %v12616_v21  ;;  %3450 = vmatmul.bf16.vlgmr.msra.gmra.mxu0 %v18469_v9 }
 0x119   :  { %v17185_v26 = vld [vmem:[#allocation5 + $0xde4] sm:$0xf0]  ;;  %3475 = vmatpush.bf16.msra.mxu2 %v11625_v28  ;;  %3494 = vmatpush.bf16.msrb.mxu0 %v12361_v32 }
 0x11a   :  { %v13128_v29 = vld [vmem:[#allocation5 + $0xfc8] sm:$0xf]  ;;  %v12873_v35 = vor.u32 %v17185_v26, %v12872_v24  ;;  %3463 = vmatmul.bf16.vlgmr.msra.gmra.mxu1 %v18476_v25 }
 0x11b   :  { %v17249_v30 = vld [vmem:[#allocation5 + $0xfe4] sm:$0xf0]  ;;  %3488 = vmatpush.bf16.msra.mxu3 %v11881_v31  ;;  %3507 = vmatpush.bf16.msrb.mxu1 %v12617_v33  ;;  %v3244_v33 = vadd.f32 %v3243_v27, %v658_v18  ;;  %v12106_v27 = vld [vmem:[#allocation5 + $0x7e8] sm:$0xf0] }
 0x11c   :  { %v12328_v36 = vld [vmem:[#allocation5 + $0x988] sm:$0xf]  ;;  %v13129_v42 = vor.u32 %v17249_v30, %v13128_v29  ;;  %3476 = vmatmul.bf16.vlgmr.msra.gmra.mxu2 %v18467_v8 }
 0x11d   :  { %v17049_v39 = vld [vmem:[#allocation5 + $0x9a4] sm:$0xf0]  ;;  %3520 = vmatpush.bf16.msrb.mxu2 %v12873_v35 }
 0x11e   :  { %v12584_v41 = vld [vmem:[#allocation5 + $0xb88] sm:$0xf]  ;;  %v12329_v48 = vor.u32 %v17049_v39, %v12328_v36  ;;  %3489 = vmatmul.bf16.vlgmr.msra.gmra.mxu3 %v18471_v15 }
 0x11f   :  { %v17113_v43 = vld [vmem:[#allocation5 + $0xba4] sm:$0xf0]  ;;  %3533 = vmatpush.bf16.msrb.mxu3 %v13129_v42 }
 0x120   :  { %v12840_v44 = vld [vmem:[#allocation5 + $0xd88] sm:$0xf]  ;;  %v12585_v49 = vor.u32 %v17113_v43, %v12584_v41  ;;  %3495 = vmatpush.bf16.msrb.mxu0 %v12329_v48 }
 0x121   :  { %v17177_v45 = vld [vmem:[#allocation5 + $0xda4] sm:$0xf0] }
 0x122   :  { %v13096_v46 = vld [vmem:[#allocation5 + $0xf88] sm:$0xf]  ;;  %v12841_v50 = vor.u32 %v17177_v45, %v12840_v44  ;;  %3508 = vmatpush.bf16.msrb.mxu1 %v12585_v49  ;;  %v3256_v45 = vpop.f32.mrf.mxu1 }
 0x123   :  { %v17241_v47 = vld [vmem:[#allocation5 + $0xfa4] sm:$0xf0] }
 0x124   :  { %v12296_v51 = vld [vmem:[#allocation5 + $0x948] sm:$0xf]  ;;  %v13097_v54 = vor.u32 %v17241_v47, %v13096_v46  ;;  %3521 = vmatpush.bf16.msrb.mxu2 %v12841_v50 }
 0x125   :  { %v17041_v52 = vld [vmem:[#allocation5 + $0x964] sm:$0xf0] }
 0x126   :  { %v12552_v53 = vld [vmem:[#allocation5 + $0xb48] sm:$0xf]  ;;  %v12297_v60 = vor.u32 %v17041_v52, %v12296_v51  ;;  %3534 = vmatpush.bf16.msrb.mxu3 %v13097_v54  ;;  %v3257_v51 = vadd.f32 %v3256_v45, %v3244_v33  ;;  %v16789_v33 = vld [vmem:[#allocation5 + $0x18c] sm:$0xf] }
 0x127   :  { %v17105_v55 = vld [vmem:[#allocation5 + $0xb64] sm:$0xf0]  ;;  %v16981_v45 = vld [vmem:[#allocation5 + $0x78c] sm:$0xf] }
 0x128   :  { %v12808_v56 = vld [vmem:[#allocation5 + $0xd48] sm:$0xf]  ;;  %v12553_v62 = vor.u32 %v17105_v55, %v12552_v53  ;;  %3496 = vmatpush.bf16.msrb.mxu0 %v12297_v60  ;;  %v3282_v60 = vpop.f32.mrf.mxu3 }
 0x129   :  { %v17169_v57 = vld [vmem:[#allocation5 + $0xd64] sm:$0xf0] }
 0x12a   :  { %v13064_v58 = vld [vmem:[#allocation5 + $0xf48] sm:$0xf]  ;;  %v12809_v63 = vor.u32 %v17169_v57, %v12808_v56  ;;  %3509 = vmatpush.bf16.msrb.mxu1 %v12553_v62  ;;  %v3269_v56 = vpop.f32.mrf.mxu2 }
 0x12b   :  { %v17233_v59 = vld [vmem:[#allocation5 + $0xf64] sm:$0xf0] }
 0x12c   :  { %v12264_v61 = vld [vmem:[#allocation5 + $0x908] sm:$0xf]  ;;  %v13065_v3 = vor.u32 %v17233_v59, %v13064_v58  ;;  %3522 = vmatpush.bf16.msrb.mxu2 %v12809_v63  ;;  %v3270_v59 = vadd.f32 %v3269_v56, %v3257_v51  ;;  %v11274_v51 = vld [vmem:[#allocation5 + $0x168] sm:$0xf0] }
 0x12d   :  { %v17033_v0 = vld [vmem:[#allocation5 + $0x924] sm:$0xf0]  ;;  %v11786_v56 = vld [vmem:[#allocation5 + $0x568] sm:$0xf0] }
 0x12e   :  { %v12520_v1 = vld [vmem:[#allocation5 + $0xb08] sm:$0xf]  ;;  %v12265_v11 = vor.u32 %v17033_v0, %v12264_v61  ;;  %3535 = vmatpush.bf16.msrb.mxu3 %v13065_v3  ;;  %v3245_v0 = vpop.f32.mrf.mxu0 }
 0x12f   :  { %v17097_v2 = vld [vmem:[#allocation5 + $0xb24] sm:$0xf0]  ;;  %v16837_v0 = vld [vmem:[#allocation5 + $0x30c] sm:$0xf] }
 0x130   :  { %v12776_v4 = vld [vmem:[#allocation5 + $0xd08] sm:$0xf]  ;;  %v12521_v13 = vor.u32 %v17097_v2, %v12520_v1  ;;  %3497 = vmatpush.bf16.msrb.mxu0 %v12265_v11 }
 0x131   :  { %v17161_v5 = vld [vmem:[#allocation5 + $0xd24] sm:$0xf0] }
 0x132   :  { %v13032_v7 = vld [vmem:[#allocation5 + $0xf08] sm:$0xf]  ;;  %v12777_v14 = vor.u32 %v17161_v5, %v12776_v4  ;;  %3510 = vmatpush.bf16.msrb.mxu1 %v12521_v13 }
 0x133   :  { %v17225_v10 = vld [vmem:[#allocation5 + $0xf24] sm:$0xf0] }
 0x134   :  { %v12232_v12 = vld [vmem:[#allocation5 + $0x8c8] sm:$0xf]  ;;  %v13033_v19 = vor.u32 %v17225_v10, %v13032_v7  ;;  %3523 = vmatpush.bf16.msrb.mxu2 %v12777_v14  ;;  %v18506_v7 = vadd.f32 %v3282_v60, %v3270_v59  ;;  %v16797_v14 = vld [vmem:[#allocation5 + $0x1cc] sm:$0xf] }
 0x135   :  { %v17025_v16 = vld [vmem:[#allocation5 + $0x8e4] sm:$0xf0] }
 0x136   :  { %v12488_v17 = vld [vmem:[#allocation5 + $0xac8] sm:$0xf]  ;;  %v12233_v26 = vor.u32 %v17025_v16, %v12232_v12  ;;  %3536 = vmatpush.bf16.msrb.mxu3 %v13033_v19  ;;  %v11338_v16 = vld [vmem:[#allocation5 + $0x1e8] sm:$0xf0] }
 0x137   :  { %v17089_v20 = vld [vmem:[#allocation5 + $0xae4] sm:$0xf0]  ;;  %v11594_v19 = vld [vmem:[#allocation5 + $0x3e8] sm:$0xf0] }
 0x138   :  { %v12744_v21 = vld [vmem:[#allocation5 + $0xcc8] sm:$0xf]  ;;  %v12489_v28 = vor.u32 %v17089_v20, %v12488_v17  ;;  %3498 = vmatpush.bf16.msrb.mxu0 %v12233_v26  ;;  %v16861_v17 = vld [vmem:[#allocation5 + $0x3cc] sm:$0xf] }
 0x139   :  { %v17153_v22 = vld [vmem:[#allocation5 + $0xce4] sm:$0xf0]  ;;  %v16925_v20 = vld [vmem:[#allocation5 + $0x5cc] sm:$0xf] }
 0x13a   :  { %v13000_v23 = vld [vmem:[#allocation5 + $0xec8] sm:$0xf]  ;;  %v12745_v29 = vor.u32 %v17153_v22, %v12744_v21  ;;  %3511 = vmatpush.bf16.msrb.mxu1 %v12489_v28  ;;  %v11850_v21 = vld [vmem:[#allocation5 + $0x5e8] sm:$0xf0]  ;;  %v3258_v22 = vpop.f32.mrf.mxu1 }
 0x13b   :  { %v17217_v24 = vld [vmem:[#allocation5 + $0xee4] sm:$0xf0]  ;;  %v16989_v26 = vld [vmem:[#allocation5 + $0x7cc] sm:$0xf] }
 0x13c   :  { %v12200_v30 = vld [vmem:[#allocation5 + $0x888] sm:$0xf]  ;;  %v13001_v35 = vor.u32 %v17217_v24, %v13000_v23  ;;  %3524 = vmatpush.bf16.msrb.mxu2 %v12745_v29  ;;  %v11341_v29 = vor.u32 %v16797_v14, %v11338_v16  ;;  %v16765_v16 = vld [vmem:[#allocation5 + $0xcc] sm:$0xf] }
 0x13d   :  { %v17017_v31 = vld [vmem:[#allocation5 + $0x8a4] sm:$0xf0]  ;;  %v11466_v22 = vld [vmem:[#allocation5 + $0x2e8] sm:$0xf0] }
 0x13e   :  { %v12456_v32 = vld [vmem:[#allocation5 + $0xa88] sm:$0xf]  ;;  %v12201_v44 = vor.u32 %v17017_v31, %v12200_v30  ;;  %3537 = vmatpush.bf16.msrb.mxu3 %v13001_v35  ;;  %v3271_v30 = vpop.f32.mrf.mxu2  ;;  %v11597_v31 = vor.u32 %v16861_v17, %v11594_v19  ;;  %v11306_v35 = vld [vmem:[#allocation5 + $0x1a8] sm:$0xf0] }
 0x13f   :  { %v17081_v36 = vld [vmem:[#allocation5 + $0xaa4] sm:$0xf0]  ;;  %v11210_v17 = vld [vmem:[#allocation5 + $0xe8] sm:$0xf0] }
 0x140   :  { %v12712_v39 = vld [vmem:[#allocation5 + $0xc88] sm:$0xf]  ;;  %v12457_v46 = vor.u32 %v17081_v36, %v12456_v32  ;;  %3499 = vmatpush.bf16.msrb.mxu0 %v12201_v44  ;;  %v11853_v32 = vor.u32 %v16925_v20, %v11850_v21  ;;  %v16853_v36 = vld [vmem:[#allocation5 + $0x38c] sm:$0xf] }
 0x141   :  { %v17145_v41 = vld [vmem:[#allocation5 + $0xca4] sm:$0xf0]  ;;  %v11818_v44 = vld [vmem:[#allocation5 + $0x5a8] sm:$0xf0] }
 0x142   :  { %v12968_v42 = vld [vmem:[#allocation5 + $0xe88] sm:$0xf]  ;;  %v12713_v47 = vor.u32 %v17145_v41, %v12712_v39  ;;  %3512 = vmatpush.bf16.msrb.mxu1 %v12457_v46  ;;  %v3284_v39 = vpop.f32.mrf.mxu3  ;;  %v12109_v41 = vor.u32 %v16989_v26, %v12106_v27  ;;  %v12074_v46 = vld [vmem:[#allocation5 + $0x7a8] sm:$0xf0]  ;;  %v3308_v20 = vpop.f32.mrf.mxu1 }
 0x143   :  { %v17209_v43 = vld [vmem:[#allocation5 + $0xea4] sm:$0xf0]  ;;  %v16957_v26 = vld [vmem:[#allocation5 + $0x6cc] sm:$0xf] }
 0x144   :  { %v12168_v48 = vld [vmem:[#allocation5 + $0x848] sm:$0xf]  ;;  %v12969_v52 = vor.u32 %v17209_v43, %v12968_v42  ;;  %3525 = vmatpush.bf16.msrb.mxu2 %v12713_v47  ;;  %v11562_v42 = vld [vmem:[#allocation5 + $0x3a8] sm:$0xf0]  ;;  %v11309_v47 = vor.u32 %v16789_v33, %v11306_v35 }
 0x145   :  { %v17009_v49 = vld [vmem:[#allocation5 + $0x864] sm:$0xf0]  ;;  %v16917_v43 = vld [vmem:[#allocation5 + $0x58c] sm:$0xf] }
 0x146   :  { %v12424_v50 = vld [vmem:[#allocation5 + $0xa48] sm:$0xf]  ;;  %v12169_v61 = vor.u32 %v17009_v49, %v12168_v48  ;;  %3538 = vmatpush.bf16.msrb.mxu3 %v12969_v52  ;;  %v11565_v48 = vor.u32 %v16853_v36, %v11562_v42  ;;  %v11821_v49 = vor.u32 %v16917_v43, %v11818_v44  ;;  %v16845_v52 = vld [vmem:[#allocation5 + $0x34c] sm:$0xf]  ;;  %v3321_v36 = vpop.f32.mrf.mxu2 }
 0x147   :  { %v17073_v53 = vld [vmem:[#allocation5 + $0xa64] sm:$0xf0]  ;;  %v11978_v27 = vld [vmem:[#allocation5 + $0x6e8] sm:$0xf0] }
 0x148   :  { %v12680_v54 = vld [vmem:[#allocation5 + $0xc48] sm:$0xf]  ;;  %v12425_v1 = vor.u32 %v17073_v53, %v12424_v50  ;;  %3500 = vmatpush.bf16.msrb.mxu0 %v12169_v61  ;;  %v16781_v50 = vld [vmem:[#allocation5 + $0x14c] sm:$0xf]  ;;  %v12077_v53 = vor.u32 %v16981_v45, %v12074_v46 }
 0x149   :  { %v17137_v55 = vld [vmem:[#allocation5 + $0xc64] sm:$0xf0]  ;;  %v11277_v59 = vor.u32 %v16781_v50, %v11274_v51  ;;  %v11178_v33 = vld [vmem:[#allocation5 + $0xa8] sm:$0xf0] }
 0x14a   :  { %v12936_v57 = vld [vmem:[#allocation5 + $0xe48] sm:$0xf]  ;;  %v12681_v2 = vor.u32 %v17137_v55, %v12680_v54  ;;  %3513 = vmatpush.bf16.msrb.mxu1 %v12425_v1  ;;  %v11530_v54 = vld [vmem:[#allocation5 + $0x368] sm:$0xf0]  ;;  %v3334_v44 = vpop.f32.mrf.mxu3 }
 0x14b   :  { %v17201_v58 = vld [vmem:[#allocation5 + $0xe64] sm:$0xf0]  ;;  %v16909_v55 = vld [vmem:[#allocation5 + $0x54c] sm:$0xf]  ;;  %v11533_v60 = vor.u32 %v16845_v52, %v11530_v54 }
 0x14c   :  { %v12136_v62 = vld [vmem:[#allocation5 + $0x808] sm:$0xf]  ;;  %v12937_v10 = vor.u32 %v17201_v58, %v12936_v57  ;;  %3526 = vmatpush.bf16.msrb.mxu2 %v12681_v2  ;;  %v16973_v57 = vld [vmem:[#allocation5 + $0x74c] sm:$0xf]  ;;  %v11789_v61 = vor.u32 %v16909_v55, %v11786_v56  ;;  %v3310_v55 = vpop.f32.mrf.mxu1 }
 0x14d   :  { %v17001_v63 = vld [vmem:[#allocation5 + $0x824] sm:$0xf0]  ;;  %v12042_v58 = vld [vmem:[#allocation5 + $0x768] sm:$0xf0] }
 0x14e   :  { %v12392_v3 = vld [vmem:[#allocation5 + $0xa08] sm:$0xf]  ;;  %v12137_v18 = vor.u32 %v17001_v63, %v12136_v62  ;;  %3539 = vmatpush.bf16.msrb.mxu3 %v12937_v10  ;;  %v16773_v62 = vld [vmem:[#allocation5 + $0x10c] sm:$0xf]  ;;  %v12045_v1 = vor.u32 %v16973_v57, %v12042_v58 }
 0x14f   :  { %v17065_v4 = vld [vmem:[#allocation5 + $0xa24] sm:$0xf0]  ;;  %v11242_v63 = vld [vmem:[#allocation5 + $0x128] sm:$0xf0] }
 0x150   :  { %v12648_v5 = vld [vmem:[#allocation5 + $0xc08] sm:$0xf]  ;;  %v12393_v23 = vor.u32 %v17065_v4, %v12392_v3  ;;  %3501 = vmatpush.bf16.msrb.mxu0 %v12137_v18  ;;  %v11498_v2 = vld [vmem:[#allocation5 + $0x328] sm:$0xf0] }
 0x151   :  { %v17129_v11 = vld [vmem:[#allocation5 + $0xc24] sm:$0xf0]  ;;  %v16901_v3 = vld [vmem:[#allocation5 + $0x50c] sm:$0xf] }
 0x152   :  { %v12904_v12 = vld [vmem:[#allocation5 + $0xe08] sm:$0xf]  ;;  %v12649_v24 = vor.u32 %v17129_v11, %v12648_v5  ;;  %3514 = vmatpush.bf16.msrb.mxu1 %v12393_v23  ;;  %v11754_v4 = vld [vmem:[#allocation5 + $0x528] sm:$0xf0]  ;;  %v11245_v11 = vor.u32 %v16773_v62, %v11242_v63 }
 0x153   :  { %v17193_v13 = vld [vmem:[#allocation5 + $0xe24] sm:$0xf0]  ;;  %3502 = vmatmul.bf16.vlgmr.msrb.gmra.mxu0 %v18481_v37  ;;  %v16965_v5 = vld [vmem:[#allocation5 + $0x70c] sm:$0xf]  ;;  %v11757_v14 = vor.u32 %v16901_v3, %v11754_v4 }
 0x154   :  { %v12905_v28 = vor.u32 %v17193_v13, %v12904_v12  ;;  %3527 = vmatpush.bf16.msrb.mxu2 %v12649_v24  ;;  %3546 = vmatpush.bf16.msra.mxu0 %v11341_v29  ;;  %v12010_v10 = vld [vmem:[#allocation5 + $0x728] sm:$0xf0]  ;;  %v3295_v12 = vpop.f32.mrf.mxu0  ;;  %v11501_v13 = vor.u32 %v16837_v0, %v11498_v2  ;;  %v11213_v29 = vor.u32 %v16765_v16, %v11210_v17  ;;  %v3336_v16 = vpop.f32.mrf.mxu3 }
 0x155   :  { %3515 = vmatmul.bf16.vlgmr.msrb.gmra.mxu1 %v18485_v40  ;;  %v16829_v18 = vld [vmem:[#allocation5 + $0x2cc] sm:$0xf]  ;;  %v3296_v19 = vadd.f32 %v3295_v12, %v18506_v7  ;;  %v12013_v21 = vor.u32 %v16965_v5, %v12010_v10  ;;  %v11981_v7 = vor.u32 %v16957_v26, %v11978_v27  ;;  %v3323_v10 = vpop.f32.mrf.mxu2 }
 0x156   :  { %3540 = vmatpush.bf16.msrb.mxu3 %v12905_v28  ;;  %3559 = vmatpush.bf16.msra.mxu1 %v11597_v31  ;;  %v16893_v23 = vld [vmem:[#allocation5 + $0x4cc] sm:$0xf]  ;;  %v11469_v30 = vor.u32 %v16829_v18, %v11466_v22 }
 0x157   :  { %3528 = vmatmul.bf16.vlgmr.msrb.gmra.mxu2 %v18479_v34  ;;  %v11722_v24 = vld [vmem:[#allocation5 + $0x4e8] sm:$0xf0]  ;;  %v3309_v28 = vadd.f32 %v3308_v20, %v3296_v19 }
 0x158   :  { %3572 = vmatpush.bf16.msra.mxu2 %v11853_v32  ;;  %3547 = vmatpush.bf16.msra.mxu0 %v11309_v47  ;;  %v11725_v31 = vor.u32 %v16893_v23, %v11722_v24  ;;  %v16757_v32 = vld [vmem:[#allocation5 + $0x8c] sm:$0xf] }
 0x159   :  { %3541 = vmatmul.bf16.vlgmr.msrb.gmra.mxu3 %v18483_v38  ;;  %v16821_v35 = vld [vmem:[#allocation5 + $0x28c] sm:$0xf]  ;;  %v3322_v43 = vadd.f32 %v3321_v36, %v3309_v28  ;;  %v11181_v47 = vor.u32 %v16757_v32, %v11178_v33 }
 0x15a   :  { %3585 = vmatpush.bf16.msra.mxu3 %v12109_v41  ;;  %3560 = vmatpush.bf16.msra.mxu1 %v11565_v48  ;;  %v11434_v39 = vld [vmem:[#allocation5 + $0x2a8] sm:$0xf0] }
 0x15b   :  { %v16885_v41 = vld [vmem:[#allocation5 + $0x48c] sm:$0xf]  ;;  %v18513_v48 = vadd.f32 %v3334_v44, %v3322_v43  ;;  %v11437_v50 = vor.u32 %v16821_v35, %v11434_v39 }
 0x15c   :  { %3573 = vmatpush.bf16.msra.mxu2 %v11821_v49  ;;  %3548 = vmatpush.bf16.msra.mxu0 %v11277_v59  ;;  %v11690_v42 = vld [vmem:[#allocation5 + $0x4a8] sm:$0xf0]  ;;  %v3297_v49 = vpop.f32.mrf.mxu0 }
 0x15d   :  { %v16949_v45 = vld [vmem:[#allocation5 + $0x68c] sm:$0xf]  ;;  %v11693_v51 = vor.u32 %v16885_v41, %v11690_v42 }
 0x15e   :  { %3586 = vmatpush.bf16.msra.mxu3 %v12077_v53  ;;  %3561 = vmatpush.bf16.msra.mxu1 %v11533_v60  ;;  %v11946_v46 = vld [vmem:[#allocation5 + $0x6a8] sm:$0xf0] }
 0x15f   :  { %v16749_v52 = vld [vmem:[#allocation5 + $0x4c] sm:$0xf]  ;;  %v11949_v56 = vor.u32 %v16949_v45, %v11946_v46 }
 0x160   :  { %3574 = vmatpush.bf16.msra.mxu2 %v11789_v61  ;;  %3549 = vmatpush.bf16.msra.mxu0 %v11245_v11  ;;  %v11146_v53 = vld [vmem:[#allocation5 + $0x68] sm:$0xf0] }
 0x161   :  { %v16813_v54 = vld [vmem:[#allocation5 + $0x24c] sm:$0xf]  ;;  %v11149_v62 = vor.u32 %v16749_v52, %v11146_v53 }
 0x162   :  { %3587 = vmatpush.bf16.msra.mxu3 %v12045_v1  ;;  %3562 = vmatpush.bf16.msra.mxu1 %v11501_v13  ;;  %v11402_v57 = vld [vmem:[#allocation5 + $0x268] sm:$0xf0] }
 0x163   :  { %v16877_v58 = vld [vmem:[#allocation5 + $0x44c] sm:$0xf]  ;;  %v11405_v1 = vor.u32 %v16813_v54, %v11402_v57 }
 0x164   :  { %3575 = vmatpush.bf16.msra.mxu2 %v11757_v14  ;;  %3550 = vmatpush.bf16.msra.mxu0 %v11213_v29  ;;  %v11658_v59 = vld [vmem:[#allocation5 + $0x468] sm:$0xf0] }
 0x165   :  { %v16941_v60 = vld [vmem:[#allocation5 + $0x64c] sm:$0xf]  ;;  %v11661_v2 = vor.u32 %v16877_v58, %v11658_v59 }
 0x166   :  { %3588 = vmatpush.bf16.msra.mxu3 %v12013_v21  ;;  %3563 = vmatpush.bf16.msra.mxu1 %v11469_v30  ;;  %v11914_v61 = vld [vmem:[#allocation5 + $0x668] sm:$0xf0] }
 0x167   :  { %v16741_v63 = vld [vmem:[#allocation5 + $0xc] sm:$0xf]  ;;  %v11917_v11 = vor.u32 %v16941_v60, %v11914_v61 }
 0x168   :  { %3576 = vmatpush.bf16.msra.mxu2 %v11725_v31  ;;  %3551 = vmatpush.bf16.msra.mxu0 %v11181_v47  ;;  %v11114_v0 = vld [vmem:[#allocation5 + $0x28] sm:$0xf0] }
 0x169   :  { %v16805_v3 = vld [vmem:[#allocation5 + $0x20c] sm:$0xf]  ;;  %v11117_v20 = vor.u32 %v16741_v63, %v11114_v0  ;;  %v659_v0 = vperm.slane %v18503_v6, 1 }
 0x16a   :  { %3589 = vmatpush.bf16.msra.mxu3 %v11981_v7  ;;  %3564 = vmatpush.bf16.msra.mxu1 %v11437_v50  ;;  %v11370_v4 = vld [vmem:[#allocation5 + $0x228] sm:$0xf0] }
 0x16b   :  { %v16869_v5 = vld [vmem:[#allocation5 + $0x40c] sm:$0xf]  ;;  %v11373_v24 = vor.u32 %v16805_v3, %v11370_v4 }
 0x16c   :  { %3577 = vmatpush.bf16.msra.mxu2 %v11693_v51  ;;  %v11626_v12 = vld [vmem:[#allocation5 + $0x428] sm:$0xf0]  ;;  %3552 = vmatpush.bf16.msra.mxu0 %v11149_v62 }
 0x16d   :  { %v16933_v13 = vld [vmem:[#allocation5 + $0x60c] sm:$0xf]  ;;  %v11629_v26 = vor.u32 %v16869_v5, %v11626_v12  ;;  %v3347_v12 = vpop.f32.mrf.mxu0 }
 0x16e   :  { %3590 = vmatpush.bf16.msra.mxu3 %v11949_v56  ;;  %v11882_v14 = vld [vmem:[#allocation5 + $0x628] sm:$0xf0]  ;;  %3565 = vmatpush.bf16.msra.mxu1 %v11405_v1 }
 0x16f   :  { %v17053_v17 = vld [vmem:[#allocation5 + $0x9cc] sm:$0xf]  ;;  %v11885_v29 = vor.u32 %v16933_v13, %v11882_v14 }
 0x170   :  { %v12362_v18 = vld [vmem:[#allocation5 + $0x9e8] sm:$0xf0]  ;;  %3578 = vmatpush.bf16.msra.mxu2 %v11661_v2  ;;  %3553 = vmatpush.bf16.msra.mxu0 %v11117_v20  ;;  %v3360_v20 = vpop.f32.mrf.mxu1 }
 0x171   :  { %v17117_v19 = vld [vmem:[#allocation5 + $0xbcc] sm:$0xf]  ;;  %v12365_v30 = vor.u32 %v17053_v17, %v12362_v18 }
 0x172   :  { %v12618_v21 = vld [vmem:[#allocation5 + $0xbe8] sm:$0xf0]  ;;  %3591 = vmatpush.bf16.msra.mxu3 %v11917_v11  ;;  %3566 = vmatpush.bf16.msra.mxu1 %v11373_v24 }
 0x173   :  { %v17181_v22 = vld [vmem:[#allocation5 + $0xdcc] sm:$0xf]  ;;  %v12621_v31 = vor.u32 %v17117_v19, %v12618_v21  ;;  %3554 = vmatmul.bf16.vlgmr.msra.gmra.mxu0 %v18469_v9  ;;  %v3348_v19 = vadd.f32 %v3347_v12, %v659_v0 }
 0x174   :  { %v12874_v23 = vld [vmem:[#allocation5 + $0xde8] sm:$0xf0]  ;;  %3579 = vmatpush.bf16.msra.mxu2 %v11629_v26  ;;  %3598 = vmatpush.bf16.msrb.mxu0 %v12365_v30 }
 0x175   :  { %v17245_v27 = vld [vmem:[#allocation5 + $0xfcc] sm:$0xf]  ;;  %v12877_v32 = vor.u32 %v17181_v22, %v12874_v23  ;;  %3567 = vmatmul.bf16.vlgmr.msra.gmra.mxu1 %v18476_v25 }
 0x176   :  { %v13130_v28 = vld [vmem:[#allocation5 + $0xfe8] sm:$0xf0]  ;;  %3592 = vmatpush.bf16.msra.mxu3 %v11885_v29  ;;  %3611 = vmatpush.bf16.msrb.mxu1 %v12621_v31 }
 0x177   :  { %v17045_v33 = vld [vmem:[#allocation5 + $0x98c] sm:$0xf]  ;;  %v13133_v7 = vor.u32 %v17245_v27, %v13130_v28  ;;  %3580 = vmatmul.bf16.vlgmr.msra.gmra.mxu2 %v18467_v8  ;;  %v3361_v27 = vadd.f32 %v3360_v20, %v3348_v19  ;;  %v11600_v19 = vld [vmem:[#allocation5 + $0x3d0] sm:$0xf] }
 0x178   :  { %v12330_v35 = vld [vmem:[#allocation5 + $0x9a8] sm:$0xf0]  ;;  %3624 = vmatpush.bf16.msrb.mxu2 %v12877_v32 }
 0x179   :  { %v17109_v36 = vld [vmem:[#allocation5 + $0xb8c] sm:$0xf]  ;;  %v12333_v45 = vor.u32 %v17045_v33, %v12330_v35  ;;  %3593 = vmatmul.bf16.vlgmr.msra.gmra.mxu3 %v18471_v15  ;;  %v3373_v35 = vpop.f32.mrf.mxu2 }
 0x17a   :  { %v12586_v39 = vld [vmem:[#allocation5 + $0xba8] sm:$0xf0]  ;;  %3637 = vmatpush.bf16.msrb.mxu3 %v13133_v7 }
 0x17b   :  { %v17173_v41 = vld [vmem:[#allocation5 + $0xd8c] sm:$0xf]  ;;  %v12589_v46 = vor.u32 %v17109_v36, %v12586_v39  ;;  %3599 = vmatpush.bf16.msrb.mxu0 %v12333_v45 }
 0x17c   :  { %v12842_v42 = vld [vmem:[#allocation5 + $0xda8] sm:$0xf0] }
 0x17d   :  { %v17237_v43 = vld [vmem:[#allocation5 + $0xf8c] sm:$0xf]  ;;  %v12845_v47 = vor.u32 %v17173_v41, %v12842_v42  ;;  %3612 = vmatpush.bf16.msrb.mxu1 %v12589_v46  ;;  %v3374_v42 = vadd.f32 %v3373_v35, %v3361_v27  ;;  %v16994_v27 = vld [vmem:[#allocation5 + $0x7ec] sm:$0xf0] }
 0x17e   :  { %v13098_v44 = vld [vmem:[#allocation5 + $0xfa8] sm:$0xf0]  ;;  %v11568_v35 = vld [vmem:[#allocation5 + $0x390] sm:$0xf] }
 0x17f   :  { %v17037_v49 = vld [vmem:[#allocation5 + $0x94c] sm:$0xf]  ;;  %v13101_v52 = vor.u32 %v17237_v43, %v13098_v44  ;;  %3625 = vmatpush.bf16.msrb.mxu2 %v12845_v47  ;;  %v3386_v43 = vpop.f32.mrf.mxu3 }
 0x180   :  { %v12298_v50 = vld [vmem:[#allocation5 + $0x968] sm:$0xf0]  ;;  %v18520_v47 = vadd.f32 %v3386_v43, %v3374_v42  ;;  %v12080_v42 = vld [vmem:[#allocation5 + $0x790] sm:$0xf] }
 0x181   :  { %v17101_v51 = vld [vmem:[#allocation5 + $0xb4c] sm:$0xf]  ;;  %v12301_v58 = vor.u32 %v17037_v49, %v12298_v50  ;;  %3638 = vmatpush.bf16.msrb.mxu3 %v13101_v52  ;;  %v3349_v49 = vpop.f32.mrf.mxu0  ;;  %v16986_v43 = vld [vmem:[#allocation5 + $0x7ac] sm:$0xf0] }
 0x182   :  { %v12554_v53 = vld [vmem:[#allocation5 + $0xb68] sm:$0xf0]  ;;  %v11280_v49 = vld [vmem:[#allocation5 + $0x150] sm:$0xf] }
 0x183   :  { %v17165_v54 = vld [vmem:[#allocation5 + $0xd4c] sm:$0xf]  ;;  %v12557_v60 = vor.u32 %v17101_v51, %v12554_v53  ;;  %3600 = vmatpush.bf16.msrb.mxu0 %v12301_v58 }
 0x184   :  { %v12810_v55 = vld [vmem:[#allocation5 + $0xd68] sm:$0xf0] }
 0x185   :  { %v17229_v56 = vld [vmem:[#allocation5 + $0xf4c] sm:$0xf]  ;;  %v12813_v61 = vor.u32 %v17165_v54, %v12810_v55  ;;  %3613 = vmatpush.bf16.msrb.mxu1 %v12557_v60  ;;  %v3362_v55 = vpop.f32.mrf.mxu1 }
 0x186   :  { %v13066_v57 = vld [vmem:[#allocation5 + $0xf68] sm:$0xf0]  ;;  %v16914_v55 = vld [vmem:[#allocation5 + $0x56c] sm:$0xf0] }
 0x187   :  { %v17029_v59 = vld [vmem:[#allocation5 + $0x90c] sm:$0xf]  ;;  %v13069_v1 = vor.u32 %v17229_v56, %v13066_v57  ;;  %3626 = vmatpush.bf16.msrb.mxu2 %v12813_v61 }
 0x188   :  { %v12266_v62 = vld [vmem:[#allocation5 + $0x928] sm:$0xf0] }
 0x189   :  { %v17093_v63 = vld [vmem:[#allocation5 + $0xb0c] sm:$0xf]  ;;  %v12269_v11 = vor.u32 %v17029_v59, %v12266_v62  ;;  %3639 = vmatpush.bf16.msrb.mxu3 %v13069_v1 }
 0x18a   :  { %v12522_v2 = vld [vmem:[#allocation5 + $0xb28] sm:$0xf0] }
 0x18b   :  { %v17157_v3 = vld [vmem:[#allocation5 + $0xd0c] sm:$0xf]  ;;  %v12525_v13 = vor.u32 %v17093_v63, %v12522_v2  ;;  %3601 = vmatpush.bf16.msrb.mxu0 %v12269_v11 }
 0x18c   :  { %v12778_v4 = vld [vmem:[#allocation5 + $0xd28] sm:$0xf0] }
 0x18d   :  { %v17221_v5 = vld [vmem:[#allocation5 + $0xf0c] sm:$0xf]  ;;  %v12781_v14 = vor.u32 %v17157_v3, %v12778_v4  ;;  %3614 = vmatpush.bf16.msrb.mxu1 %v12525_v13 }
 0x18e   :  { %v13034_v10 = vld [vmem:[#allocation5 + $0xf28] sm:$0xf0] }
 0x18f   :  { %v17021_v16 = vld [vmem:[#allocation5 + $0x8cc] sm:$0xf]  ;;  %v13037_v6 = vor.u32 %v17221_v5, %v13034_v10  ;;  %3627 = vmatpush.bf16.msrb.mxu2 %v12781_v14  ;;  %v3375_v10 = vpop.f32.mrf.mxu2 }
 0x190   :  { %v12234_v17 = vld [vmem:[#allocation5 + $0x8e8] sm:$0xf0] }
 0x191   :  { %v17085_v18 = vld [vmem:[#allocation5 + $0xacc] sm:$0xf]  ;;  %v12237_v28 = vor.u32 %v17021_v16, %v12234_v17  ;;  %3640 = vmatpush.bf16.msrb.mxu3 %v13037_v6  ;;  %v3388_v16 = vpop.f32.mrf.mxu3  ;;  %v11344_v17 = vld [vmem:[#allocation5 + $0x1d0] sm:$0xf] }
 0x192   :  { %v12490_v21 = vld [vmem:[#allocation5 + $0xae8] sm:$0xf0]  ;;  %v16866_v6 = vld [vmem:[#allocation5 + $0x3ec] sm:$0xf0] }
 0x193   :  { %v17149_v22 = vld [vmem:[#allocation5 + $0xccc] sm:$0xf]  ;;  %v12493_v29 = vor.u32 %v17085_v18, %v12490_v21  ;;  %3602 = vmatpush.bf16.msrb.mxu0 %v12237_v28  ;;  %v16802_v18 = vld [vmem:[#allocation5 + $0x1ec] sm:$0xf0] }
 0x194   :  { %v12746_v23 = vld [vmem:[#allocation5 + $0xce8] sm:$0xf0]  ;;  %v11856_v21 = vld [vmem:[#allocation5 + $0x5d0] sm:$0xf] }
 0x195   :  { %v17213_v24 = vld [vmem:[#allocation5 + $0xecc] sm:$0xf]  ;;  %v12749_v30 = vor.u32 %v17149_v22, %v12746_v23  ;;  %3615 = vmatpush.bf16.msrb.mxu1 %v12493_v29  ;;  %v16930_v22 = vld [vmem:[#allocation5 + $0x5ec] sm:$0xf0]  ;;  %v11345_v29 = vor.u32 %v16802_v18, %v11344_v17 }
 0x196   :  { %v13002_v26 = vld [vmem:[#allocation5 + $0xee8] sm:$0xf0]  ;;  %v16770_v16 = vld [vmem:[#allocation5 + $0xec] sm:$0xf0] }
 0x197   :  { %v17013_v31 = vld [vmem:[#allocation5 + $0x88c] sm:$0xf]  ;;  %v13005_v36 = vor.u32 %v17213_v24, %v13002_v26  ;;  %3628 = vmatpush.bf16.msrb.mxu2 %v12749_v30  ;;  %v12112_v26 = vld [vmem:[#allocation5 + $0x7d0] sm:$0xf]  ;;  %v11601_v30 = vor.u32 %v16866_v6, %v11600_v19  ;;  %v3412_v19 = vpop.f32.mrf.mxu1 }
 0x198   :  { %v12202_v32 = vld [vmem:[#allocation5 + $0x8a8] sm:$0xf0]  ;;  %v11472_v17 = vld [vmem:[#allocation5 + $0x2d0] sm:$0xf] }
 0x199   :  { %v17077_v33 = vld [vmem:[#allocation5 + $0xa8c] sm:$0xf]  ;;  %v12205_v46 = vor.u32 %v17013_v31, %v12202_v32  ;;  %3641 = vmatpush.bf16.msrb.mxu3 %v13005_v36  ;;  %v11857_v31 = vor.u32 %v16930_v22, %v11856_v21  ;;  %v11312_v32 = vld [vmem:[#allocation5 + $0x190] sm:$0xf]  ;;  %v12113_v36 = vor.u32 %v16994_v27, %v12112_v26 }
 0x19a   :  { %v12458_v7 = vld [vmem:[#allocation5 + $0xaa8] sm:$0xf0]  ;;  %v16834_v6 = vld [vmem:[#allocation5 + $0x2ec] sm:$0xf0] }
 0x19b   :  { %v17141_v39 = vld [vmem:[#allocation5 + $0xc8c] sm:$0xf]  ;;  %v12461_v50 = vor.u32 %v17077_v33, %v12458_v7  ;;  %3603 = vmatpush.bf16.msrb.mxu0 %v12205_v46  ;;  %v16794_v33 = vld [vmem:[#allocation5 + $0x1ac] sm:$0xf0] }
 0x19c   :  { %v12714_v41 = vld [vmem:[#allocation5 + $0xca8] sm:$0xf0]  ;;  %v16858_v7 = vld [vmem:[#allocation5 + $0x3ac] sm:$0xf0] }
 0x19d   :  { %v17205_v44 = vld [vmem:[#allocation5 + $0xe8c] sm:$0xf]  ;;  %v12717_v51 = vor.u32 %v17141_v39, %v12714_v41  ;;  %3616 = vmatpush.bf16.msrb.mxu1 %v12461_v50  ;;  %v11824_v39 = vld [vmem:[#allocation5 + $0x590] sm:$0xf] }
 0x19e   :  { %v12970_v45 = vld [vmem:[#allocation5 + $0xea8] sm:$0xf0]  ;;  %v16922_v41 = vld [vmem:[#allocation5 + $0x5ac] sm:$0xf0] }
 0x19f   :  { %v17005_v52 = vld [vmem:[#allocation5 + $0x84c] sm:$0xf]  ;;  %v12973_v56 = vor.u32 %v17205_v44, %v12970_v45  ;;  %3629 = vmatpush.bf16.msrb.mxu2 %v12717_v51  ;;  %v11313_v44 = vor.u32 %v16794_v33, %v11312_v32  ;;  %v11569_v45 = vor.u32 %v16858_v7, %v11568_v35  ;;  %v11825_v46 = vor.u32 %v16922_v41, %v11824_v39  ;;  %v16786_v50 = vld [vmem:[#allocation5 + $0x16c] sm:$0xf0]  ;;  %v3425_v33 = vpop.f32.mrf.mxu2  ;;  %v3438_v41 = vpop.f32.mrf.mxu3 }
 0x1a0   :  { %v12170_v53 = vld [vmem:[#allocation5 + $0x868] sm:$0xf0]  ;;  %v11536_v51 = vld [vmem:[#allocation5 + $0x350] sm:$0xf] }
 0x1a1   :  { %v17069_v54 = vld [vmem:[#allocation5 + $0xa4c] sm:$0xf]  ;;  %v12173_v62 = vor.u32 %v17005_v52, %v12170_v53  ;;  %3642 = vmatpush.bf16.msrb.mxu3 %v12973_v56  ;;  %v12081_v52 = vor.u32 %v16986_v43, %v12080_v42  ;;  %v16850_v53 = vld [vmem:[#allocation5 + $0x36c] sm:$0xf0] }
 0x1a2   :  { %v12426_v57 = vld [vmem:[#allocation5 + $0xa68] sm:$0xf0]  ;;  %v12048_v56 = vld [vmem:[#allocation5 + $0x750] sm:$0xf] }
 0x1a3   :  { %v17133_v58 = vld [vmem:[#allocation5 + $0xc4c] sm:$0xf]  ;;  %v12429_v1 = vor.u32 %v17069_v54, %v12426_v57  ;;  %3604 = vmatpush.bf16.msrb.mxu0 %v12173_v62  ;;  %v11792_v54 = vld [vmem:[#allocation5 + $0x550] sm:$0xf] }
 0x1a4   :  { %v12682_v59 = vld [vmem:[#allocation5 + $0xc68] sm:$0xf0]  ;;  %v16978_v57 = vld [vmem:[#allocation5 + $0x76c] sm:$0xf0] }
 0x1a5   :  { %v17197_v60 = vld [vmem:[#allocation5 + $0xe4c] sm:$0xf]  ;;  %v12685_v2 = vor.u32 %v17133_v58, %v12682_v59  ;;  %3617 = vmatpush.bf16.msrb.mxu1 %v12429_v1  ;;  %v11281_v58 = vor.u32 %v16786_v50, %v11280_v49  ;;  %v11537_v59 = vor.u32 %v16850_v53, %v11536_v51  ;;  %v16778_v62 = vld [vmem:[#allocation5 + $0x12c] sm:$0xf0] }
 0x1a6   :  { %v12938_v61 = vld [vmem:[#allocation5 + $0xe68] sm:$0xf0]  ;;  %v16842_v1 = vld [vmem:[#allocation5 + $0x32c] sm:$0xf0] }
 0x1a7   :  { %v16997_v63 = vld [vmem:[#allocation5 + $0x80c] sm:$0xf]  ;;  %v12941_v11 = vor.u32 %v17197_v60, %v12938_v61  ;;  %3630 = vmatpush.bf16.msrb.mxu2 %v12685_v2  ;;  %v11793_v60 = vor.u32 %v16914_v55, %v11792_v54  ;;  %v11248_v61 = vld [vmem:[#allocation5 + $0x110] sm:$0xf]  ;;  %v3414_v54 = vpop.f32.mrf.mxu1 }
 0x1a8   :  { %v12138_v0 = vld [vmem:[#allocation5 + $0x828] sm:$0xf0]  ;;  %v11760_v2 = vld [vmem:[#allocation5 + $0x510] sm:$0xf]  ;;  %v11249_v10 = vor.u32 %v16778_v62, %v11248_v61 }
 0x1a9   :  { %v17061_v3 = vld [vmem:[#allocation5 + $0xa0c] sm:$0xf]  ;;  %v12141_v20 = vor.u32 %v16997_v63, %v12138_v0  ;;  %3643 = vmatpush.bf16.msrb.mxu3 %v12941_v11  ;;  %v11504_v63 = vld [vmem:[#allocation5 + $0x310] sm:$0xf]  ;;  %v12049_v0 = vor.u32 %v16978_v57, %v12048_v56  ;;  %v3399_v11 = vpop.f32.mrf.mxu0 }
 0x1aa   :  { %v12394_v4 = vld [vmem:[#allocation5 + $0xa28] sm:$0xf0]  ;;  %v3400_v18 = vadd.f32 %v3399_v11, %v18520_v47  ;;  %v11728_v21 = vld [vmem:[#allocation5 + $0x4d0] sm:$0xf] }
 0x1ab   :  { %v17125_v5 = vld [vmem:[#allocation5 + $0xc0c] sm:$0xf]  ;;  %v12397_v23 = vor.u32 %v17061_v3, %v12394_v4  ;;  %3605 = vmatpush.bf16.msrb.mxu0 %v12141_v20  ;;  %v16906_v3 = vld [vmem:[#allocation5 + $0x52c] sm:$0xf0] }
 0x1ac   :  { %v12650_v12 = vld [vmem:[#allocation5 + $0xc28] sm:$0xf0]  ;;  %v12016_v4 = vld [vmem:[#allocation5 + $0x710] sm:$0xf]  ;;  %v3413_v26 = vadd.f32 %v3412_v19, %v3400_v18 }
 0x1ad   :  { %v17189_v13 = vld [vmem:[#allocation5 + $0xe0c] sm:$0xf]  ;;  %v12653_v24 = vor.u32 %v17125_v5, %v12650_v12  ;;  %3618 = vmatpush.bf16.msrb.mxu1 %v12397_v23  ;;  %v16970_v5 = vld [vmem:[#allocation5 + $0x72c] sm:$0xf0]  ;;  %v11505_v12 = vor.u32 %v16842_v1, %v11504_v63 }
 0x1ae   :  { %v12906_v14 = vld [vmem:[#allocation5 + $0xe28] sm:$0xf0]  ;;  %3606 = vmatmul.bf16.vlgmr.msrb.gmra.mxu0 %v18481_v37  ;;  %v12017_v20 = vor.u32 %v16970_v5, %v12016_v4  ;;  %v16898_v22 = vld [vmem:[#allocation5 + $0x4ec] sm:$0xf0]  ;;  %v3426_v39 = vadd.f32 %v3425_v33, %v3413_v26  ;;  %v3427_v5 = vpop.f32.mrf.mxu2 }
 0x1af   :  { %v12909_v28 = vor.u32 %v17189_v13, %v12906_v14  ;;  %3631 = vmatpush.bf16.msrb.mxu2 %v12653_v24  ;;  %3650 = vmatpush.bf16.msra.mxu0 %v11345_v29  ;;  %v11761_v13 = vor.u32 %v16906_v3, %v11760_v2  ;;  %v11216_v14 = vld [vmem:[#allocation5 + $0xd0] sm:$0xf]  ;;  %v11729_v29 = vor.u32 %v16898_v22, %v11728_v21 }
 0x1b0   :  { %3619 = vmatmul.bf16.vlgmr.msrb.gmra.mxu1 %v18485_v40  ;;  %v11984_v23 = vld [vmem:[#allocation5 + $0x6d0] sm:$0xf]  ;;  %v11217_v27 = vor.u32 %v16770_v16, %v11216_v14  ;;  %v3440_v14 = vpop.f32.mrf.mxu3 }
 0x1b1   :  { %3644 = vmatpush.bf16.msrb.mxu3 %v12909_v28  ;;  %3663 = vmatpush.bf16.msra.mxu1 %v11601_v30  ;;  %v16962_v24 = vld [vmem:[#allocation5 + $0x6ec] sm:$0xf0]  ;;  %v11473_v28 = vor.u32 %v16834_v6, %v11472_v17 }
 0x1b2   :  { %3632 = vmatmul.bf16.vlgmr.msrb.gmra.mxu2 %v18479_v34  ;;  %v11184_v30 = vld [vmem:[#allocation5 + $0x90] sm:$0xf]  ;;  %v11985_v47 = vor.u32 %v16962_v24, %v11984_v23 }
 0x1b3   :  { %3676 = vmatpush.bf16.msra.mxu2 %v11857_v31  ;;  %3651 = vmatpush.bf16.msra.mxu0 %v11313_v44  ;;  %v16762_v31 = vld [vmem:[#allocation5 + $0xac] sm:$0xf0] }
 0x1b4   :  { %3645 = vmatmul.bf16.vlgmr.msrb.gmra.mxu3 %v18483_v38  ;;  %v11440_v32 = vld [vmem:[#allocation5 + $0x290] sm:$0xf]  ;;  %v11185_v44 = vor.u32 %v16762_v31, %v11184_v30 }
 0x1b5   :  { %3689 = vmatpush.bf16.msra.mxu3 %v12113_v36  ;;  %3664 = vmatpush.bf16.msra.mxu1 %v11569_v45  ;;  %v16826_v35 = vld [vmem:[#allocation5 + $0x2ac] sm:$0xf0]  ;;  %v18527_v45 = vadd.f32 %v3438_v41, %v3426_v39 }
 0x1b6   :  { %v11696_v36 = vld [vmem:[#allocation5 + $0x490] sm:$0xf]  ;;  %v11441_v49 = vor.u32 %v16826_v35, %v11440_v32 }
 0x1b7   :  { %3677 = vmatpush.bf16.msra.mxu2 %v11825_v46  ;;  %3652 = vmatpush.bf16.msra.mxu0 %v11281_v58  ;;  %v16890_v7 = vld [vmem:[#allocation5 + $0x4ac] sm:$0xf0]  ;;  %v3401_v46 = vpop.f32.mrf.mxu0 }
 0x1b8   :  { %v11952_v42 = vld [vmem:[#allocation5 + $0x690] sm:$0xf]  ;;  %v11697_v50 = vor.u32 %v16890_v7, %v11696_v36 }
 0x1b9   :  { %3690 = vmatpush.bf16.msra.mxu3 %v12081_v52  ;;  %3665 = vmatpush.bf16.msra.mxu1 %v11537_v59  ;;  %v16954_v43 = vld [vmem:[#allocation5 + $0x6ac] sm:$0xf0] }
 0x1ba   :  { %v11152_v51 = vld [vmem:[#allocation5 + $0x50] sm:$0xf]  ;;  %v11953_v55 = vor.u32 %v16954_v43, %v11952_v42 }
 0x1bb   :  { %3678 = vmatpush.bf16.msra.mxu2 %v11793_v60  ;;  %3653 = vmatpush.bf16.msra.mxu0 %v11249_v10  ;;  %v16754_v52 = vld [vmem:[#allocation5 + $0x6c] sm:$0xf0] }
 0x1bc   :  { %v11408_v53 = vld [vmem:[#allocation5 + $0x250] sm:$0xf]  ;;  %v11153_v61 = vor.u32 %v16754_v52, %v11152_v51 }
 0x1bd   :  { %3691 = vmatpush.bf16.msra.mxu3 %v12049_v0  ;;  %3666 = vmatpush.bf16.msra.mxu1 %v11505_v12  ;;  %v16818_v56 = vld [vmem:[#allocation5 + $0x26c] sm:$0xf0] }
 0x1be   :  { %v11664_v57 = vld [vmem:[#allocation5 + $0x450] sm:$0xf]  ;;  %v11409_v0 = vor.u32 %v16818_v56, %v11408_v53 }
 0x1bf   :  { %3679 = vmatpush.bf16.msra.mxu2 %v11761_v13  ;;  %3654 = vmatpush.bf16.msra.mxu0 %v11217_v27  ;;  %v16882_v58 = vld [vmem:[#allocation5 + $0x46c] sm:$0xf0] }
 0x1c0   :  { %v11920_v59 = vld [vmem:[#allocation5 + $0x650] sm:$0xf]  ;;  %v11665_v1 = vor.u32 %v16882_v58, %v11664_v57 }
 0x1c1   :  { %3692 = vmatpush.bf16.msra.mxu3 %v12017_v20  ;;  %3667 = vmatpush.bf16.msra.mxu1 %v11473_v28  ;;  %v16946_v60 = vld [vmem:[#allocation5 + $0x66c] sm:$0xf0] }
 0x1c2   :  { %v11120_v62 = vld [vmem:[#allocation5 + $0x10] sm:$0xf]  ;;  %v11921_v10 = vor.u32 %v16946_v60, %v11920_v59 }
 0x1c3   :  { %3680 = vmatpush.bf16.msra.mxu2 %v11729_v29  ;;  %3655 = vmatpush.bf16.msra.mxu0 %v11185_v44  ;;  %v16746_v63 = vld [vmem:[#allocation5 + $0x2c] sm:$0xf0] }
 0x1c4   :  { %v11376_v2 = vld [vmem:[#allocation5 + $0x210] sm:$0xf]  ;;  %v11121_v19 = vor.u32 %v16746_v63, %v11120_v62  ;;  %v18533_v63 = vld [vmem:[#allocation7] sm:$0xff] }
 0x1c5   :  { %3693 = vmatpush.bf16.msra.mxu3 %v11985_v47  ;;  %3668 = vmatpush.bf16.msra.mxu1 %v11441_v49  ;;  %v16810_v3 = vld [vmem:[#allocation5 + $0x22c] sm:$0xf0] }
 0x1c6   :  { %v11632_v4 = vld [vmem:[#allocation5 + $0x410] sm:$0xf]  ;;  %v11377_v22 = vor.u32 %v16810_v3, %v11376_v2 }
 0x1c7   :  { %3681 = vmatpush.bf16.msra.mxu2 %v11697_v50  ;;  %v16874_v11 = vld [vmem:[#allocation5 + $0x42c] sm:$0xf0]  ;;  %3656 = vmatpush.bf16.msra.mxu0 %v11153_v61 }
 0x1c8   :  { %v11888_v12 = vld [vmem:[#allocation5 + $0x610] sm:$0xf]  ;;  %v11633_v23 = vor.u32 %v16874_v11, %v11632_v4 }
 0x1c9   :  { %3694 = vmatpush.bf16.msra.mxu3 %v11953_v55  ;;  %v16938_v13 = vld [vmem:[#allocation5 + $0x62c] sm:$0xf0]  ;;  %3669 = vmatpush.bf16.msra.mxu1 %v11409_v0  ;;  %v660_v0 = vperm.slane %v18533_v63, 2 }
 0x1ca   :  { %v12368_v16 = vld [vmem:[#allocation5 + $0x9d0] sm:$0xf]  ;;  %v11889_v27 = vor.u32 %v16938_v13, %v11888_v12  ;;  %v3451_v12 = vpop.f32.mrf.mxu0 }
 0x1cb   :  { %v17058_v17 = vld [vmem:[#allocation5 + $0x9ec] sm:$0xf0]  ;;  %3682 = vmatpush.bf16.msra.mxu2 %v11665_v1  ;;  %3657 = vmatpush.bf16.msra.mxu0 %v11121_v19  ;;  %v3452_v19 = vadd.f32 %v3451_v12, %v660_v0 }
 0x1cc   :  { %v12624_v18 = vld [vmem:[#allocation5 + $0xbd0] sm:$0xf]  ;;  %v12369_v28 = vor.u32 %v17058_v17, %v12368_v16 }
 0x1cd   :  { %v17122_v20 = vld [vmem:[#allocation5 + $0xbec] sm:$0xf0]  ;;  %3695 = vmatpush.bf16.msra.mxu3 %v11921_v10  ;;  %3670 = vmatpush.bf16.msra.mxu1 %v11377_v22 }
 0x1ce   :  { %v12880_v6 = vld [vmem:[#allocation5 + $0xdd0] sm:$0xf]  ;;  %v12625_v29 = vor.u32 %v17122_v20, %v12624_v18  ;;  %3658 = vmatmul.bf16.vlgmr.msra.gmra.mxu0 %v18469_v9  ;;  %v3464_v20 = vpop.f32.mrf.mxu1 }
 0x1cf   :  { %v17186_v21 = vld [vmem:[#allocation5 + $0xdec] sm:$0xf0]  ;;  %3683 = vmatpush.bf16.msra.mxu2 %v11633_v23  ;;  %3702 = vmatpush.bf16.msrb.mxu0 %v12369_v28 }
 0x1d0   :  { %v13136_v24 = vld [vmem:[#allocation5 + $0xfd0] sm:$0xf]  ;;  %v12881_v30 = vor.u32 %v17186_v21, %v12880_v6  ;;  %3671 = vmatmul.bf16.vlgmr.msra.gmra.mxu1 %v18476_v25 }
 0x1d1   :  { %v17250_v26 = vld [vmem:[#allocation5 + $0xfec] sm:$0xf0]  ;;  %3696 = vmatpush.bf16.msra.mxu3 %v11889_v27  ;;  %3715 = vmatpush.bf16.msrb.mxu1 %v12625_v29  ;;  %v3465_v27 = vadd.f32 %v3464_v20, %v3452_v19  ;;  %v16798_v19 = vld [vmem:[#allocation5 + $0x1d4] sm:$0xf] }
 0x1d2   :  { %v12336_v31 = vld [vmem:[#allocation5 + $0x990] sm:$0xf]  ;;  %v13137_v47 = vor.u32 %v17250_v26, %v13136_v24  ;;  %3684 = vmatmul.bf16.vlgmr.msra.gmra.mxu2 %v18467_v8  ;;  %v11346_v20 = vld [vmem:[#allocation5 + $0x1f0] sm:$0xf0] }
 0x1d3   :  { %v17050_v32 = vld [vmem:[#allocation5 + $0x9ac] sm:$0xf0]  ;;  %3728 = vmatpush.bf16.msrb.mxu2 %v12881_v30 }
 0x1d4   :  { %v12592_v33 = vld [vmem:[#allocation5 + $0xb90] sm:$0xf]  ;;  %v12337_v42 = vor.u32 %v17050_v32, %v12336_v31  ;;  %3697 = vmatmul.bf16.vlgmr.msra.gmra.mxu3 %v18471_v15 }
 0x1d5   :  { %v17114_v35 = vld [vmem:[#allocation5 + $0xbac] sm:$0xf0]  ;;  %3741 = vmatpush.bf16.msrb.mxu3 %v13137_v47  ;;  %v3477_v47 = vpop.f32.mrf.mxu2 }
 0x1d6   :  { %v12848_v36 = vld [vmem:[#allocation5 + $0xd90] sm:$0xf]  ;;  %v12593_v43 = vor.u32 %v17114_v35, %v12592_v33  ;;  %3703 = vmatpush.bf16.msrb.mxu0 %v12337_v42  ;;  %v3490_v42 = vpop.f32.mrf.mxu3 }
 0x1d7   :  { %v17178_v7 = vld [vmem:[#allocation5 + $0xdac] sm:$0xf0] }
 0x1d8   :  { %v13104_v39 = vld [vmem:[#allocation5 + $0xf90] sm:$0xf]  ;;  %v12849_v44 = vor.u32 %v17178_v7, %v12848_v36  ;;  %3716 = vmatpush.bf16.msrb.mxu1 %v12593_v43 }
 0x1d9   :  { %v17242_v41 = vld [vmem:[#allocation5 + $0xfac] sm:$0xf0] }
 0x1da   :  { %v12304_v46 = vld [vmem:[#allocation5 + $0x950] sm:$0xf]  ;;  %v13105_v51 = vor.u32 %v17242_v41, %v13104_v39  ;;  %3729 = vmatpush.bf16.msrb.mxu2 %v12849_v44  ;;  %v3478_v41 = vadd.f32 %v3477_v47, %v3465_v27  ;;  %v16790_v47 = vld [vmem:[#allocation5 + $0x194] sm:$0xf] }
 0x1db   :  { %v17042_v49 = vld [vmem:[#allocation5 + $0x96c] sm:$0xf0] }
 0x1dc   :  { %v12560_v50 = vld [vmem:[#allocation5 + $0xb50] sm:$0xf]  ;;  %v12305_v57 = vor.u32 %v17042_v49, %v12304_v46  ;;  %3742 = vmatpush.bf16.msrb.mxu3 %v13105_v51  ;;  %v18536_v49 = vadd.f32 %v3490_v42, %v3478_v41  ;;  %v16918_v41 = vld [vmem:[#allocation5 + $0x594] sm:$0xf] }
 0x1dd   :  { %v17106_v52 = vld [vmem:[#allocation5 + $0xb6c] sm:$0xf0]  ;;  %v3479_v12 = vpop.f32.mrf.mxu2  ;;  %v11826_v42 = vld [vmem:[#allocation5 + $0x5b0] sm:$0xf0] }
 0x1de   :  { %v12816_v53 = vld [vmem:[#allocation5 + $0xd50] sm:$0xf]  ;;  %v12561_v59 = vor.u32 %v17106_v52, %v12560_v50  ;;  %3704 = vmatpush.bf16.msrb.mxu0 %v12305_v57  ;;  %v3453_v50 = vpop.f32.mrf.mxu0  ;;  %v16966_v12 = vld [vmem:[#allocation5 + $0x714] sm:$0xf] }
 0x1df   :  { %v17170_v54 = vld [vmem:[#allocation5 + $0xd6c] sm:$0xf0] }
 0x1e0   :  { %v13072_v55 = vld [vmem:[#allocation5 + $0xf50] sm:$0xf]  ;;  %v12817_v60 = vor.u32 %v17170_v54, %v12816_v53  ;;  %3717 = vmatpush.bf16.msrb.mxu1 %v12561_v59 }
 0x1e1   :  { %v17234_v56 = vld [vmem:[#allocation5 + $0xf6c] sm:$0xf0] }
 0x1e2   :  { %v12272_v58 = vld [vmem:[#allocation5 + $0x910] sm:$0xf]  ;;  %v13073_v1 = vor.u32 %v17234_v56, %v13072_v55  ;;  %3730 = vmatpush.bf16.msrb.mxu2 %v12817_v60  ;;  %v3466_v56 = vpop.f32.mrf.mxu1 }
 0x1e3   :  { %v17034_v61 = vld [vmem:[#allocation5 + $0x92c] sm:$0xf0]  ;;  %v11538_v56 = vld [vmem:[#allocation5 + $0x370] sm:$0xf0] }
 0x1e4   :  { %v12528_v62 = vld [vmem:[#allocation5 + $0xb10] sm:$0xf]  ;;  %v12273_v11 = vor.u32 %v17034_v61, %v12272_v58  ;;  %3743 = vmatpush.bf16.msrb.mxu3 %v13073_v1 }
 0x1e5   :  { %v17098_v2 = vld [vmem:[#allocation5 + $0xb2c] sm:$0xf0] }
 0x1e6   :  { %v12784_v3 = vld [vmem:[#allocation5 + $0xd10] sm:$0xf]  ;;  %v12529_v13 = vor.u32 %v17098_v2, %v12528_v62  ;;  %3705 = vmatpush.bf16.msrb.mxu0 %v12273_v11 }
 0x1e7   :  { %v17162_v4 = vld [vmem:[#allocation5 + $0xd2c] sm:$0xf0] }
 0x1e8   :  { %v13040_v5 = vld [vmem:[#allocation5 + $0xf10] sm:$0xf]  ;;  %v12785_v14 = vor.u32 %v17162_v4, %v12784_v3  ;;  %3718 = vmatpush.bf16.msrb.mxu1 %v12529_v13 }
 0x1e9   :  { %v17226_v10 = vld [vmem:[#allocation5 + $0xf2c] sm:$0xf0] }
 0x1ea   :  { %v12240_v16 = vld [vmem:[#allocation5 + $0x8d0] sm:$0xf]  ;;  %v13041_v6 = vor.u32 %v17226_v10, %v13040_v5  ;;  %3731 = vmatpush.bf16.msrb.mxu2 %v12785_v14 }
 0x1eb   :  { %v17026_v17 = vld [vmem:[#allocation5 + $0x8ec] sm:$0xf0] }
 0x1ec   :  { %v12496_v18 = vld [vmem:[#allocation5 + $0xad0] sm:$0xf]  ;;  %v12241_v28 = vor.u32 %v17026_v17, %v12240_v16  ;;  %3744 = vmatpush.bf16.msrb.mxu3 %v13041_v6  ;;  %v16862_v6 = vld [vmem:[#allocation5 + $0x3d4] sm:$0xf] }
 0x1ed   :  { %v17090_v21 = vld [vmem:[#allocation5 + $0xaec] sm:$0xf0] }
 0x1ee   :  { %v12752_v22 = vld [vmem:[#allocation5 + $0xcd0] sm:$0xf]  ;;  %v12497_v29 = vor.u32 %v17090_v21, %v12496_v18  ;;  %3706 = vmatpush.bf16.msrb.mxu0 %v12241_v28  ;;  %v3492_v18 = vpop.f32.mrf.mxu3  ;;  %v16990_v28 = vld [vmem:[#allocation5 + $0x7d4] sm:$0xf] }
 0x1ef   :  { %v17154_v23 = vld [vmem:[#allocation5 + $0xcec] sm:$0xf0] }
 0x1f0   :  { %v13008_v24 = vld [vmem:[#allocation5 + $0xed0] sm:$0xf]  ;;  %v12753_v30 = vor.u32 %v17154_v23, %v12752_v22  ;;  %3719 = vmatpush.bf16.msrb.mxu1 %v12497_v29  ;;  %v11602_v22 = vld [vmem:[#allocation5 + $0x3f0] sm:$0xf0] }
 0x1f1   :  { %v17218_v26 = vld [vmem:[#allocation5 + $0xeec] sm:$0xf0]  ;;  %v16926_v23 = vld [vmem:[#allocation5 + $0x5d4] sm:$0xf] }
 0x1f2   :  { %v12208_v31 = vld [vmem:[#allocation5 + $0x890] sm:$0xf]  ;;  %v13009_v35 = vor.u32 %v17218_v26, %v13008_v24  ;;  %3732 = vmatpush.bf16.msrb.mxu2 %v12753_v30  ;;  %v11858_v24 = vld [vmem:[#allocation5 + $0x5f0] sm:$0xf0] }
 0x1f3   :  { %v17018_v32 = vld [vmem:[#allocation5 + $0x8ac] sm:$0xf0]  ;;  %v12114_v29 = vld [vmem:[#allocation5 + $0x7f0] sm:$0xf0] }
 0x1f4   :  { %v12464_v33 = vld [vmem:[#allocation5 + $0xa90] sm:$0xf]  ;;  %v12209_v46 = vor.u32 %v17018_v32, %v12208_v31  ;;  %3745 = vmatpush.bf16.msrb.mxu3 %v13009_v35  ;;  %v11349_v31 = vor.u32 %v16798_v19, %v11346_v20  ;;  %v11605_v32 = vor.u32 %v16862_v6, %v11602_v22  ;;  %v11314_v35 = vld [vmem:[#allocation5 + $0x1b0] sm:$0xf0]  ;;  %v3516_v22 = vpop.f32.mrf.mxu1 }
 0x1f5   :  { %v17082_v36 = vld [vmem:[#allocation5 + $0xaac] sm:$0xf0]  ;;  %v16766_v19 = vld [vmem:[#allocation5 + $0xd4] sm:$0xf] }
 0x1f6   :  { %v12720_v7 = vld [vmem:[#allocation5 + $0xc90] sm:$0xf]  ;;  %v12465_v51 = vor.u32 %v17082_v36, %v12464_v33  ;;  %3707 = vmatpush.bf16.msrb.mxu0 %v12209_v46  ;;  %v11861_v33 = vor.u32 %v16926_v23, %v11858_v24  ;;  %v16854_v36 = vld [vmem:[#allocation5 + $0x394] sm:$0xf]  ;;  %v11317_v46 = vor.u32 %v16790_v47, %v11314_v35 }
 0x1f7   :  { %v17146_v39 = vld [vmem:[#allocation5 + $0xcac] sm:$0xf0]  ;;  %v11218_v20 = vld [vmem:[#allocation5 + $0xf0] sm:$0xf0] }
 0x1f8   :  { %v12976_v43 = vld [vmem:[#allocation5 + $0xe90] sm:$0xf]  ;;  %v12721_v52 = vor.u32 %v17146_v39, %v12720_v7  ;;  %3720 = vmatpush.bf16.msrb.mxu1 %v12465_v51  ;;  %v12117_v7 = vor.u32 %v16990_v28, %v12114_v29  ;;  %v11570_v39 = vld [vmem:[#allocation5 + $0x3b0] sm:$0xf0]  ;;  %v11829_v51 = vor.u32 %v16918_v41, %v11826_v42 }
 0x1f9   :  { %v17210_v44 = vld [vmem:[#allocation5 + $0xeac] sm:$0xf0]  ;;  %v11573_v50 = vor.u32 %v16854_v36, %v11570_v39  ;;  %v16830_v6 = vld [vmem:[#allocation5 + $0x2d4] sm:$0xf] }
 0x1fa   :  { %v12176_v53 = vld [vmem:[#allocation5 + $0x850] sm:$0xf]  ;;  %v12977_v57 = vor.u32 %v17210_v44, %v12976_v43  ;;  %3733 = vmatpush.bf16.msrb.mxu2 %v12721_v52  ;;  %v16982_v43 = vld [vmem:[#allocation5 + $0x794] sm:$0xf] }
 0x1fb   :  { %v17010_v54 = vld [vmem:[#allocation5 + $0x86c] sm:$0xf0]  ;;  %v12082_v44 = vld [vmem:[#allocation5 + $0x7b0] sm:$0xf0] }
 0x1fc   :  { %v12432_v55 = vld [vmem:[#allocation5 + $0xa50] sm:$0xf]  ;;  %v12177_v0 = vor.u32 %v17010_v54, %v12176_v53  ;;  %3746 = vmatpush.bf16.msrb.mxu3 %v12977_v57  ;;  %v16782_v52 = vld [vmem:[#allocation5 + $0x154] sm:$0xf] }
 0x1fd   :  { %v17074_v58 = vld [vmem:[#allocation5 + $0xa6c] sm:$0xf0]  ;;  %v11282_v53 = vld [vmem:[#allocation5 + $0x170] sm:$0xf0] }
 0x1fe   :  { %v12688_v59 = vld [vmem:[#allocation5 + $0xc50] sm:$0xf]  ;;  %v12433_v3 = vor.u32 %v17074_v58, %v12432_v55  ;;  %3708 = vmatpush.bf16.msrb.mxu0 %v12177_v0  ;;  %v16846_v54 = vld [vmem:[#allocation5 + $0x354] sm:$0xf]  ;;  %v12085_v55 = vor.u32 %v16982_v43, %v12082_v44  ;;  %v3542_v44 = vpop.f32.mrf.mxu3 }
 0x1ff   :  { %v17138_v60 = vld [vmem:[#allocation5 + $0xc6c] sm:$0xf0]  ;;  %v16910_v57 = vld [vmem:[#allocation5 + $0x554] sm:$0xf] }
 0x200   :  { %v12944_v61 = vld [vmem:[#allocation5 + $0xe50] sm:$0xf]  ;;  %v12689_v4 = vor.u32 %v17138_v60, %v12688_v59  ;;  %3721 = vmatpush.bf16.msrb.mxu1 %v12433_v3  ;;  %v11794_v58 = vld [vmem:[#allocation5 + $0x570] sm:$0xf0] }
 0x201   :  { %v17202_v62 = vld [vmem:[#allocation5 + $0xe6c] sm:$0xf0]  ;;  %v16974_v59 = vld [vmem:[#allocation5 + $0x754] sm:$0xf]  ;;  %v11797_v0 = vor.u32 %v16910_v57, %v11794_v58 }
 0x202   :  { %v12144_v1 = vld [vmem:[#allocation5 + $0x810] sm:$0xf]  ;;  %v12945_v13 = vor.u32 %v17202_v62, %v12944_v61  ;;  %3734 = vmatpush.bf16.msrb.mxu2 %v12689_v4  ;;  %v12050_v60 = vld [vmem:[#allocation5 + $0x770] sm:$0xf0]  ;;  %v11285_v61 = vor.u32 %v16782_v52, %v11282_v53  ;;  %v11541_v62 = vor.u32 %v16846_v54, %v11538_v56 }
 0x203   :  { %v17002_v2 = vld [vmem:[#allocation5 + $0x82c] sm:$0xf0]  ;;  %v16838_v3 = vld [vmem:[#allocation5 + $0x314] sm:$0xf]  ;;  %v12053_v4 = vor.u32 %v16974_v59, %v12050_v60  ;;  %v3518_v59 = vpop.f32.mrf.mxu1 }
 0x204   :  { %v12400_v5 = vld [vmem:[#allocation5 + $0xa10] sm:$0xf]  ;;  %v12145_v21 = vor.u32 %v17002_v2, %v12144_v1  ;;  %3747 = vmatpush.bf16.msrb.mxu3 %v12945_v13  ;;  %v16774_v1 = vld [vmem:[#allocation5 + $0x114] sm:$0xf] }
 0x205   :  { %v17066_v10 = vld [vmem:[#allocation5 + $0xa2c] sm:$0xf0]  ;;  %v11250_v2 = vld [vmem:[#allocation5 + $0x130] sm:$0xf0] }
 0x206   :  { %v12656_v11 = vld [vmem:[#allocation5 + $0xc10] sm:$0xf]  ;;  %v12401_v26 = vor.u32 %v17066_v10, %v12400_v5  ;;  %3709 = vmatpush.bf16.msrb.mxu0 %v12145_v21  ;;  %v11506_v5 = vld [vmem:[#allocation5 + $0x330] sm:$0xf0] }
 0x207   :  { %v17130_v14 = vld [vmem:[#allocation5 + $0xc2c] sm:$0xf0]  ;;  %v16902_v10 = vld [vmem:[#allocation5 + $0x514] sm:$0xf] }
 0x208   :  { %v12912_v16 = vld [vmem:[#allocation5 + $0xe10] sm:$0xf]  ;;  %v12657_v27 = vor.u32 %v17130_v14, %v12656_v11  ;;  %3722 = vmatpush.bf16.msrb.mxu1 %v12401_v26  ;;  %v11762_v11 = vld [vmem:[#allocation5 + $0x530] sm:$0xf0]  ;;  %v11253_v14 = vor.u32 %v16774_v1, %v11250_v2 }
 0x209   :  { %v17194_v17 = vld [vmem:[#allocation5 + $0xe2c] sm:$0xf0]  ;;  %3710 = vmatmul.bf16.vlgmr.msrb.gmra.mxu0 %v18481_v37  ;;  %v12018_v13 = vld [vmem:[#allocation5 + $0x730] sm:$0xf0]  ;;  %v11765_v18 = vor.u32 %v16902_v10, %v11762_v11 }
 0x20a   :  { %v12913_v30 = vor.u32 %v17194_v17, %v12912_v16  ;;  %3735 = vmatpush.bf16.msrb.mxu2 %v12657_v27  ;;  %3754 = vmatpush.bf16.msra.mxu0 %v11349_v31  ;;  %v3503_v16 = vpop.f32.mrf.mxu0  ;;  %v11509_v17 = vor.u32 %v16838_v3, %v11506_v5  ;;  %v12021_v23 = vor.u32 %v16966_v12, %v12018_v13  ;;  %v11474_v24 = vld [vmem:[#allocation5 + $0x2f0] sm:$0xf0] }
 0x20b   :  { %3723 = vmatmul.bf16.vlgmr.msrb.gmra.mxu1 %v18485_v40  ;;  %v3504_v21 = vadd.f32 %v3503_v16, %v18536_v49  ;;  %v16894_v26 = vld [vmem:[#allocation5 + $0x4d4] sm:$0xf]  ;;  %v11221_v31 = vor.u32 %v16766_v19, %v11218_v20 }
 0x20c   :  { %3748 = vmatpush.bf16.msrb.mxu3 %v12913_v30  ;;  %3767 = vmatpush.bf16.msra.mxu1 %v11605_v32  ;;  %v11730_v27 = vld [vmem:[#allocation5 + $0x4f0] sm:$0xf0]  ;;  %v11477_v32 = vor.u32 %v16830_v6, %v11474_v24  ;;  %v3544_v6 = vpop.f32.mrf.mxu3 }
 0x20d   :  { %3736 = vmatmul.bf16.vlgmr.msrb.gmra.mxu2 %v18479_v34  ;;  %v16958_v28 = vld [vmem:[#allocation5 + $0x6d4] sm:$0xf]  ;;  %v3517_v30 = vadd.f32 %v3516_v22, %v3504_v21 }
 0x20e   :  { %3780 = vmatpush.bf16.msra.mxu2 %v11861_v33  ;;  %3755 = vmatpush.bf16.msra.mxu0 %v11317_v46  ;;  %v11986_v29 = vld [vmem:[#allocation5 + $0x6f0] sm:$0xf0]  ;;  %v11733_v33 = vor.u32 %v16894_v26, %v11730_v27 }
 0x20f   :  { %3749 = vmatmul.bf16.vlgmr.msrb.gmra.mxu3 %v18483_v38  ;;  %v16758_v47 = vld [vmem:[#allocation5 + $0x94] sm:$0xf]  ;;  %v11989_v49 = vor.u32 %v16958_v28, %v11986_v29 }
 0x210   :  { %3793 = vmatpush.bf16.msra.mxu3 %v12117_v7  ;;  %3768 = vmatpush.bf16.msra.mxu1 %v11573_v50  ;;  %v11186_v35 = vld [vmem:[#allocation5 + $0xb0] sm:$0xf0]  ;;  %v3529_v7 = vpop.f32.mrf.mxu2 }
 0x211   :  { %v16822_v36 = vld [vmem:[#allocation5 + $0x294] sm:$0xf]  ;;  %v3530_v43 = vadd.f32 %v3529_v7, %v3517_v30 }
 0x212   :  { %3781 = vmatpush.bf16.msra.mxu2 %v11829_v51  ;;  %3756 = vmatpush.bf16.msra.mxu0 %v11285_v61  ;;  %v11442_v39 = vld [vmem:[#allocation5 + $0x2b0] sm:$0xf0]  ;;  %v11189_v51 = vor.u32 %v16758_v47, %v11186_v35  ;;  %v3505_v53 = vpop.f32.mrf.mxu0 }
 0x213   :  { %v16886_v41 = vld [vmem:[#allocation5 + $0x494] sm:$0xf]  ;;  %v18543_v52 = vadd.f32 %v3542_v44, %v3530_v43  ;;  %v11445_v54 = vor.u32 %v16822_v36, %v11442_v39 }
 0x214   :  { %3794 = vmatpush.bf16.msra.mxu3 %v12085_v55  ;;  %3769 = vmatpush.bf16.msra.mxu1 %v11541_v62  ;;  %v11698_v42 = vld [vmem:[#allocation5 + $0x4b0] sm:$0xf0] }
 0x215   :  { %v16950_v46 = vld [vmem:[#allocation5 + $0x694] sm:$0xf]  ;;  %v11701_v55 = vor.u32 %v16886_v41, %v11698_v42 }
 0x216   :  { %3782 = vmatpush.bf16.msra.mxu2 %v11797_v0  ;;  %3757 = vmatpush.bf16.msra.mxu0 %v11253_v14  ;;  %v11954_v50 = vld [vmem:[#allocation5 + $0x6b0] sm:$0xf0] }
 0x217   :  { %v16750_v56 = vld [vmem:[#allocation5 + $0x54] sm:$0xf]  ;;  %v11957_v60 = vor.u32 %v16950_v46, %v11954_v50 }
 0x218   :  { %3795 = vmatpush.bf16.msra.mxu3 %v12053_v4  ;;  %3770 = vmatpush.bf16.msra.mxu1 %v11509_v17  ;;  %v11154_v57 = vld [vmem:[#allocation5 + $0x70] sm:$0xf0]  ;;  %v3531_v16 = vpop.f32.mrf.mxu2 }
 0x219   :  { %v16814_v58 = vld [vmem:[#allocation5 + $0x254] sm:$0xf]  ;;  %v11157_v3 = vor.u32 %v16750_v56, %v11154_v57 }
 0x21a   :  { %3783 = vmatpush.bf16.msra.mxu2 %v11765_v18  ;;  %3758 = vmatpush.bf16.msra.mxu0 %v11221_v31  ;;  %v11410_v61 = vld [vmem:[#allocation5 + $0x270] sm:$0xf0] }
 0x21b   :  { %v16878_v62 = vld [vmem:[#allocation5 + $0x454] sm:$0xf]  ;;  %v11413_v10 = vor.u32 %v16814_v58, %v11410_v61 }
 0x21c   :  { %3796 = vmatpush.bf16.msra.mxu3 %v12021_v23  ;;  %3771 = vmatpush.bf16.msra.mxu1 %v11477_v32  ;;  %v11666_v0 = vld [vmem:[#allocation5 + $0x470] sm:$0xf0] }
 0x21d   :  { %v16942_v1 = vld [vmem:[#allocation5 + $0x654] sm:$0xf]  ;;  %v11669_v11 = vor.u32 %v16878_v62, %v11666_v0 }
 0x21e   :  { %3784 = vmatpush.bf16.msra.mxu2 %v11733_v33  ;;  %v11922_v2 = vld [vmem:[#allocation5 + $0x670] sm:$0xf0]  ;;  %3759 = vmatpush.bf16.msra.mxu0 %v11189_v51 }
 0x21f   :  { %v16742_v4 = vld [vmem:[#allocation5 + $0x14] sm:$0xf]  ;;  %v11925_v17 = vor.u32 %v16942_v1, %v11922_v2 }
 0x220   :  { %3797 = vmatpush.bf16.msra.mxu3 %v11989_v49  ;;  %v11122_v5 = vld [vmem:[#allocation5 + $0x30] sm:$0xf0]  ;;  %3772 = vmatpush.bf16.msra.mxu1 %v11445_v54 }
 0x221   :  { %v16806_v12 = vld [vmem:[#allocation5 + $0x214] sm:$0xf]  ;;  %v11125_v24 = vor.u32 %v16742_v4, %v11122_v5 }
 0x222   :  { %3785 = vmatpush.bf16.msra.mxu2 %v11701_v55  ;;  %v11378_v13 = vld [vmem:[#allocation5 + $0x230] sm:$0xf0]  ;;  %3760 = vmatpush.bf16.msra.mxu0 %v11157_v3 }
 0x223   :  { %v16870_v14 = vld [vmem:[#allocation5 + $0x414] sm:$0xf]  ;;  %v11381_v29 = vor.u32 %v16806_v12, %v11378_v13 }
 0x224   :  { %3798 = vmatpush.bf16.msra.mxu3 %v11957_v60  ;;  %v11634_v18 = vld [vmem:[#allocation5 + $0x430] sm:$0xf0]  ;;  %3773 = vmatpush.bf16.msra.mxu1 %v11413_v10 }
 0x225   :  { %v16934_v19 = vld [vmem:[#allocation5 + $0x614] sm:$0xf]  ;;  %v11637_v30 = vor.u32 %v16870_v14, %v11634_v18 }
 0x226   :  { %v11890_v20 = vld [vmem:[#allocation5 + $0x630] sm:$0xf0]  ;;  %3786 = vmatpush.bf16.msra.mxu2 %v11669_v11  ;;  %3761 = vmatpush.bf16.msra.mxu0 %v11125_v24  ;;  %v661_v11 = vperm.slane %v18533_v63, 3 }
 0x227   :  { %v17054_v21 = vld [vmem:[#allocation5 + $0x9d4] sm:$0xf]  ;;  %v11893_v33 = vor.u32 %v16934_v19, %v11890_v20  ;;  %v3555_v20 = vpop.f32.mrf.mxu0 }
 0x228   :  { %v12370_v22 = vld [vmem:[#allocation5 + $0x9f0] sm:$0xf0]  ;;  %3799 = vmatpush.bf16.msra.mxu3 %v11925_v17  ;;  %3774 = vmatpush.bf16.msra.mxu1 %v11381_v29 }
 0x229   :  { %v17118_v23 = vld [vmem:[#allocation5 + $0xbd4] sm:$0xf]  ;;  %v12373_v47 = vor.u32 %v17054_v21, %v12370_v22  ;;  %3762 = vmatmul.bf16.vlgmr.msra.gmra.mxu0 %v18469_v9 }
 0x22a   :  { %v12626_v26 = vld [vmem:[#allocation5 + $0xbf0] sm:$0xf0]  ;;  %3787 = vmatpush.bf16.msra.mxu2 %v11637_v30 }
 0x22b   :  { %v17182_v27 = vld [vmem:[#allocation5 + $0xdd4] sm:$0xf]  ;;  %v12629_v35 = vor.u32 %v17118_v23, %v12626_v26  ;;  %3806 = vmatpush.bf16.msrb.mxu0 %v12373_v47  ;;  %3775 = vmatmul.bf16.vlgmr.msra.gmra.mxu1 %v18476_v25  ;;  %v3556_v26 = vadd.f32 %v3555_v20, %v661_v11 }
 0x22c   :  { %v12882_v28 = vld [vmem:[#allocation5 + $0xdf0] sm:$0xf0]  ;;  %3800 = vmatpush.bf16.msra.mxu3 %v11893_v33 }
 0x22d   :  { %v17246_v31 = vld [vmem:[#allocation5 + $0xfd4] sm:$0xf]  ;;  %v12885_v36 = vor.u32 %v17182_v27, %v12882_v28  ;;  %3819 = vmatpush.bf16.msrb.mxu1 %v12629_v35  ;;  %3788 = vmatmul.bf16.vlgmr.msra.gmra.mxu2 %v18467_v8  ;;  %v3568_v27 = vpop.f32.mrf.mxu1 }
 0x22e   :  { %v13138_v32 = vld [vmem:[#allocation5 + $0xff0] sm:$0xf0]  ;;  %v3569_v33 = vadd.f32 %v3568_v27, %v3556_v26  ;;  %v11352_v26 = vld [vmem:[#allocation5 + $0x1d8] sm:$0xf] }
 0x22f   :  { %v17046_v7 = vld [vmem:[#allocation5 + $0x994] sm:$0xf]  ;;  %v13141_v41 = vor.u32 %v17246_v31, %v13138_v32  ;;  %3832 = vmatpush.bf16.msrb.mxu2 %v12885_v36  ;;  %3801 = vmatmul.bf16.vlgmr.msra.gmra.mxu3 %v18471_v15  ;;  %v16803_v27 = vld [vmem:[#allocation5 + $0x1f4] sm:$0xf0] }
 0x230   :  { %v12338_v49 = vld [vmem:[#allocation5 + $0x9b0] sm:$0xf0] }
 0x231   :  { %v17110_v39 = vld [vmem:[#allocation5 + $0xb94] sm:$0xf]  ;;  %v12341_v51 = vor.u32 %v17046_v7, %v12338_v49  ;;  %3845 = vmatpush.bf16.msrb.mxu3 %v13141_v41  ;;  %v3581_v41 = vpop.f32.mrf.mxu2 }
 0x232   :  { %v12594_v42 = vld [vmem:[#allocation5 + $0xbb0] sm:$0xf0] }
 0x233   :  { %v17174_v43 = vld [vmem:[#allocation5 + $0xd94] sm:$0xf]  ;;  %v12597_v53 = vor.u32 %v17110_v39, %v12594_v42  ;;  %3807 = vmatpush.bf16.msrb.mxu0 %v12341_v51  ;;  %v3594_v51 = vpop.f32.mrf.mxu3 }
 0x234   :  { %v12850_v44 = vld [vmem:[#allocation5 + $0xdb0] sm:$0xf0] }
 0x235   :  { %v17238_v46 = vld [vmem:[#allocation5 + $0xf94] sm:$0xf]  ;;  %v12853_v54 = vor.u32 %v17174_v43, %v12850_v44  ;;  %3820 = vmatpush.bf16.msrb.mxu1 %v12597_v53 }
 0x236   :  { %v13106_v50 = vld [vmem:[#allocation5 + $0xfb0] sm:$0xf0] }
 0x237   :  { %v17038_v55 = vld [vmem:[#allocation5 + $0x954] sm:$0xf]  ;;  %v13109_v58 = vor.u32 %v17238_v46, %v13106_v50  ;;  %3833 = vmatpush.bf16.msrb.mxu2 %v12853_v54  ;;  %v3582_v50 = vadd.f32 %v3581_v41, %v3569_v33  ;;  %v11320_v41 = vld [vmem:[#allocation5 + $0x198] sm:$0xf] }
 0x238   :  { %v12306_v56 = vld [vmem:[#allocation5 + $0x970] sm:$0xf0] }
 0x239   :  { %v17102_v57 = vld [vmem:[#allocation5 + $0xb54] sm:$0xf]  ;;  %v12309_v1 = vor.u32 %v17038_v55, %v12306_v56  ;;  %3846 = vmatpush.bf16.msrb.mxu3 %v13109_v58  ;;  %v18550_v56 = vadd.f32 %v3594_v51, %v3582_v50  ;;  %v3583_v20 = vpop.f32.mrf.mxu2  ;;  %v11832_v50 = vld [vmem:[#allocation5 + $0x598] sm:$0xf] }
 0x23a   :  { %v12562_v59 = vld [vmem:[#allocation5 + $0xb70] sm:$0xf0]  ;;  %v16923_v51 = vld [vmem:[#allocation5 + $0x5b4] sm:$0xf0] }
 0x23b   :  { %v17166_v60 = vld [vmem:[#allocation5 + $0xd54] sm:$0xf]  ;;  %v12565_v3 = vor.u32 %v17102_v57, %v12562_v59  ;;  %3808 = vmatpush.bf16.msrb.mxu0 %v12309_v1  ;;  %v3557_v57 = vpop.f32.mrf.mxu0  ;;  %v12024_v20 = vld [vmem:[#allocation5 + $0x718] sm:$0xf] }
 0x23c   :  { %v12818_v61 = vld [vmem:[#allocation5 + $0xd70] sm:$0xf0] }
 0x23d   :  { %v17230_v62 = vld [vmem:[#allocation5 + $0xf54] sm:$0xf]  ;;  %v12821_v4 = vor.u32 %v17166_v60, %v12818_v61  ;;  %3821 = vmatpush.bf16.msrb.mxu1 %v12565_v3 }
 0x23e   :  { %v13074_v0 = vld [vmem:[#allocation5 + $0xf70] sm:$0xf0] }
 0x23f   :  { %v17030_v2 = vld [vmem:[#allocation5 + $0x914] sm:$0xf]  ;;  %v13077_v12 = vor.u32 %v17230_v62, %v13074_v0  ;;  %3834 = vmatpush.bf16.msrb.mxu2 %v12821_v4  ;;  %v3570_v0 = vpop.f32.mrf.mxu1 }
 0x240   :  { %v12274_v5 = vld [vmem:[#allocation5 + $0x930] sm:$0xf0]  ;;  %v16851_v0 = vld [vmem:[#allocation5 + $0x374] sm:$0xf0] }
 0x241   :  { %v17094_v10 = vld [vmem:[#allocation5 + $0xb14] sm:$0xf]  ;;  %v12277_v19 = vor.u32 %v17030_v2, %v12274_v5  ;;  %3847 = vmatpush.bf16.msrb.mxu3 %v13077_v12 }
 0x242   :  { %v12530_v13 = vld [vmem:[#allocation5 + $0xb30] sm:$0xf0] }
 0x243   :  { %v17158_v14 = vld [vmem:[#allocation5 + $0xd14] sm:$0xf]  ;;  %v12533_v6 = vor.u32 %v17094_v10, %v12530_v13  ;;  %3809 = vmatpush.bf16.msrb.mxu0 %v12277_v19 }
 0x244   :  { %v12786_v16 = vld [vmem:[#allocation5 + $0xd30] sm:$0xf0] }
 0x245   :  { %v17222_v17 = vld [vmem:[#allocation5 + $0xf14] sm:$0xf]  ;;  %v12789_v21 = vor.u32 %v17158_v14, %v12786_v16  ;;  %3822 = vmatpush.bf16.msrb.mxu1 %v12533_v6 }
 0x246   :  { %v13042_v18 = vld [vmem:[#allocation5 + $0xf30] sm:$0xf0] }
 0x247   :  { %v17022_v22 = vld [vmem:[#allocation5 + $0x8d4] sm:$0xf]  ;;  %v13045_v63 = vor.u32 %v17222_v17, %v13042_v18  ;;  %3835 = vmatpush.bf16.msrb.mxu2 %v12789_v21 }
 0x248   :  { %v12242_v23 = vld [vmem:[#allocation5 + $0x8f0] sm:$0xf0] }
 0x249   :  { %v17086_v24 = vld [vmem:[#allocation5 + $0xad4] sm:$0xf]  ;;  %v12245_v47 = vor.u32 %v17022_v22, %v12242_v23  ;;  %3848 = vmatpush.bf16.msrb.mxu3 %v13045_v63  ;;  %v11608_v63 = vld [vmem:[#allocation5 + $0x3d8] sm:$0xf] }
 0x24a   :  { %v12498_v28 = vld [vmem:[#allocation5 + $0xaf0] sm:$0xf0] }
 0x24b   :  { %v17150_v29 = vld [vmem:[#allocation5 + $0xcd4] sm:$0xf]  ;;  %v12501_v35 = vor.u32 %v17086_v24, %v12498_v28  ;;  %3810 = vmatpush.bf16.msrb.mxu0 %v12245_v47  ;;  %v3596_v24 = vpop.f32.mrf.mxu3  ;;  %v12120_v47 = vld [vmem:[#allocation5 + $0x7d8] sm:$0xf] }
 0x24c   :  { %v12754_v30 = vld [vmem:[#allocation5 + $0xcf0] sm:$0xf0] }
 0x24d   :  { %v17214_v31 = vld [vmem:[#allocation5 + $0xed4] sm:$0xf]  ;;  %v12757_v36 = vor.u32 %v17150_v29, %v12754_v30  ;;  %3823 = vmatpush.bf16.msrb.mxu1 %v12501_v35  ;;  %v16867_v29 = vld [vmem:[#allocation5 + $0x3f4] sm:$0xf0] }
 0x24e   :  { %v13010_v32 = vld [vmem:[#allocation5 + $0xef0] sm:$0xf0]  ;;  %v11864_v30 = vld [vmem:[#allocation5 + $0x5d8] sm:$0xf] }
 0x24f   :  { %v17014_v7 = vld [vmem:[#allocation5 + $0x894] sm:$0xf]  ;;  %v13013_v42 = vor.u32 %v17214_v31, %v13010_v32  ;;  %3836 = vmatpush.bf16.msrb.mxu2 %v12757_v36  ;;  %v16931_v31 = vld [vmem:[#allocation5 + $0x5f4] sm:$0xf0] }
 0x250   :  { %v12210_v49 = vld [vmem:[#allocation5 + $0x8b0] sm:$0xf0]  ;;  %v16995_v35 = vld [vmem:[#allocation5 + $0x7f4] sm:$0xf0] }
 0x251   :  { %v17078_v39 = vld [vmem:[#allocation5 + $0xa94] sm:$0xf]  ;;  %v12213_v55 = vor.u32 %v17014_v7, %v12210_v49  ;;  %3849 = vmatpush.bf16.msrb.mxu3 %v13013_v42  ;;  %v11353_v7 = vor.u32 %v16803_v27, %v11352_v26  ;;  %v11609_v49 = vor.u32 %v16867_v29, %v11608_v63  ;;  %v16795_v42 = vld [vmem:[#allocation5 + $0x1b4] sm:$0xf0]  ;;  %v3620_v29 = vpop.f32.mrf.mxu1 }
 0x252   :  { %v12466_v43 = vld [vmem:[#allocation5 + $0xab0] sm:$0xf0]  ;;  %v11224_v26 = vld [vmem:[#allocation5 + $0xd8] sm:$0xf] }
 0x253   :  { %v17142_v44 = vld [vmem:[#allocation5 + $0xc94] sm:$0xf]  ;;  %v12469_v58 = vor.u32 %v17078_v39, %v12466_v43  ;;  %3811 = vmatpush.bf16.msrb.mxu0 %v12213_v55  ;;  %v11865_v39 = vor.u32 %v16931_v31, %v11864_v30  ;;  %v11576_v43 = vld [vmem:[#allocation5 + $0x398] sm:$0xf]  ;;  %v11321_v55 = vor.u32 %v16795_v42, %v11320_v41 }
 0x254   :  { %v12722_v46 = vld [vmem:[#allocation5 + $0xcb0] sm:$0xf0]  ;;  %v16771_v27 = vld [vmem:[#allocation5 + $0xf4] sm:$0xf0] }
 0x255   :  { %v17206_v53 = vld [vmem:[#allocation5 + $0xe94] sm:$0xf]  ;;  %v12725_v59 = vor.u32 %v17142_v44, %v12722_v46  ;;  %3824 = vmatpush.bf16.msrb.mxu1 %v12469_v58  ;;  %v12121_v44 = vor.u32 %v16995_v35, %v12120_v47  ;;  %v16859_v46 = vld [vmem:[#allocation5 + $0x3b4] sm:$0xf0]  ;;  %v11833_v58 = vor.u32 %v16923_v51, %v11832_v50 }
 0x256   :  { %v12978_v54 = vld [vmem:[#allocation5 + $0xeb0] sm:$0xf0]  ;;  %v11577_v57 = vor.u32 %v16859_v46, %v11576_v43  ;;  %v11480_v63 = vld [vmem:[#allocation5 + $0x2d8] sm:$0xf] }
 0x257   :  { %v17006_v60 = vld [vmem:[#allocation5 + $0x854] sm:$0xf]  ;;  %v12981_v1 = vor.u32 %v17206_v53, %v12978_v54  ;;  %3837 = vmatpush.bf16.msrb.mxu2 %v12725_v59  ;;  %v12088_v53 = vld [vmem:[#allocation5 + $0x798] sm:$0xf] }
 0x258   :  { %v12178_v61 = vld [vmem:[#allocation5 + $0x870] sm:$0xf0]  ;;  %v16987_v54 = vld [vmem:[#allocation5 + $0x7b4] sm:$0xf0] }
 0x259   :  { %v17070_v62 = vld [vmem:[#allocation5 + $0xa54] sm:$0xf]  ;;  %v12181_v11 = vor.u32 %v17006_v60, %v12178_v61  ;;  %3850 = vmatpush.bf16.msrb.mxu3 %v12981_v1  ;;  %v11288_v59 = vld [vmem:[#allocation5 + $0x158] sm:$0xf] }
 0x25a   :  { %v12434_v2 = vld [vmem:[#allocation5 + $0xa70] sm:$0xf0]  ;;  %v16787_v60 = vld [vmem:[#allocation5 + $0x174] sm:$0xf0] }
 0x25b   :  { %v17134_v3 = vld [vmem:[#allocation5 + $0xc54] sm:$0xf]  ;;  %v12437_v14 = vor.u32 %v17070_v62, %v12434_v2  ;;  %3812 = vmatpush.bf16.msrb.mxu0 %v12181_v11  ;;  %v11544_v61 = vld [vmem:[#allocation5 + $0x358] sm:$0xf]  ;;  %v12089_v62 = vor.u32 %v16987_v54, %v12088_v53  ;;  %v3646_v54 = vpop.f32.mrf.mxu3 }
 0x25c   :  { %v12690_v4 = vld [vmem:[#allocation5 + $0xc70] sm:$0xf0]  ;;  %v11800_v1 = vld [vmem:[#allocation5 + $0x558] sm:$0xf] }
 0x25d   :  { %v17198_v5 = vld [vmem:[#allocation5 + $0xe54] sm:$0xf]  ;;  %v12693_v16 = vor.u32 %v17134_v3, %v12690_v4  ;;  %3825 = vmatpush.bf16.msrb.mxu1 %v12437_v14  ;;  %v16915_v2 = vld [vmem:[#allocation5 + $0x574] sm:$0xf0] }
 0x25e   :  { %v12946_v10 = vld [vmem:[#allocation5 + $0xe70] sm:$0xf0]  ;;  %v12056_v3 = vld [vmem:[#allocation5 + $0x758] sm:$0xf]  ;;  %v11801_v11 = vor.u32 %v16915_v2, %v11800_v1 }
 0x25f   :  { %v16998_v12 = vld [vmem:[#allocation5 + $0x814] sm:$0xf]  ;;  %v12949_v6 = vor.u32 %v17198_v5, %v12946_v10  ;;  %3838 = vmatpush.bf16.msrb.mxu2 %v12693_v16  ;;  %v16979_v4 = vld [vmem:[#allocation5 + $0x774] sm:$0xf0]  ;;  %v11289_v5 = vor.u32 %v16787_v60, %v11288_v59  ;;  %v11545_v10 = vor.u32 %v16851_v0, %v11544_v61 }
 0x260   :  { %v12146_v13 = vld [vmem:[#allocation5 + $0x830] sm:$0xf0]  ;;  %v11512_v14 = vld [vmem:[#allocation5 + $0x318] sm:$0xf]  ;;  %v12057_v16 = vor.u32 %v16979_v4, %v12056_v3  ;;  %v3622_v3 = vpop.f32.mrf.mxu1 }
 0x261   :  { %v17062_v17 = vld [vmem:[#allocation5 + $0xa14] sm:$0xf]  ;;  %v12149_v28 = vor.u32 %v16998_v12, %v12146_v13  ;;  %3851 = vmatpush.bf16.msrb.mxu3 %v12949_v6  ;;  %v11256_v12 = vld [vmem:[#allocation5 + $0x118] sm:$0xf] }
 0x262   :  { %v12402_v18 = vld [vmem:[#allocation5 + $0xa30] sm:$0xf0]  ;;  %v16779_v13 = vld [vmem:[#allocation5 + $0x134] sm:$0xf0] }
 0x263   :  { %v17126_v19 = vld [vmem:[#allocation5 + $0xc14] sm:$0xf]  ;;  %v12405_v32 = vor.u32 %v17062_v17, %v12402_v18  ;;  %3813 = vmatpush.bf16.msrb.mxu0 %v12149_v28  ;;  %v16843_v17 = vld [vmem:[#allocation5 + $0x334] sm:$0xf0] }
 0x264   :  { %v12658_v21 = vld [vmem:[#allocation5 + $0xc30] sm:$0xf0]  ;;  %v11768_v18 = vld [vmem:[#allocation5 + $0x518] sm:$0xf] }
 0x265   :  { %v17190_v22 = vld [vmem:[#allocation5 + $0xe14] sm:$0xf]  ;;  %v12661_v33 = vor.u32 %v17126_v19, %v12658_v21  ;;  %3826 = vmatpush.bf16.msrb.mxu1 %v12405_v32  ;;  %v16907_v19 = vld [vmem:[#allocation5 + $0x534] sm:$0xf0]  ;;  %v11257_v21 = vor.u32 %v16779_v13, %v11256_v12 }
 0x266   :  { %v12914_v23 = vld [vmem:[#allocation5 + $0xe30] sm:$0xf0]  ;;  %3814 = vmatmul.bf16.vlgmr.msrb.gmra.mxu0 %v18481_v37  ;;  %v16971_v6 = vld [vmem:[#allocation5 + $0x734] sm:$0xf0]  ;;  %v11769_v24 = vor.u32 %v16907_v19, %v11768_v18 }
 0x267   :  { %v12917_v36 = vor.u32 %v17190_v22, %v12914_v23  ;;  %3839 = vmatpush.bf16.msrb.mxu2 %v12661_v33  ;;  %3858 = vmatpush.bf16.msra.mxu0 %v11353_v7  ;;  %v3607_v22 = vpop.f32.mrf.mxu0  ;;  %v11513_v23 = vor.u32 %v16843_v17, %v11512_v14  ;;  %v12025_v30 = vor.u32 %v16971_v6, %v12024_v20  ;;  %v16835_v31 = vld [vmem:[#allocation5 + $0x2f4] sm:$0xf0] }
 0x268   :  { %3827 = vmatmul.bf16.vlgmr.msrb.gmra.mxu1 %v18485_v40  ;;  %v3608_v28 = vadd.f32 %v3607_v22, %v18550_v56  ;;  %v11736_v32 = vld [vmem:[#allocation5 + $0x4d8] sm:$0xf]  ;;  %v11225_v7 = vor.u32 %v16771_v27, %v11224_v26 }
 0x269   :  { %3852 = vmatpush.bf16.msrb.mxu3 %v12917_v36  ;;  %3871 = vmatpush.bf16.msra.mxu1 %v11609_v49  ;;  %v16899_v33 = vld [vmem:[#allocation5 + $0x4f4] sm:$0xf0]  ;;  %v11481_v49 = vor.u32 %v16835_v31, %v11480_v63  ;;  %v3648_v63 = vpop.f32.mrf.mxu3 }
 0x26a   :  { %3840 = vmatmul.bf16.vlgmr.msrb.gmra.mxu2 %v18479_v34  ;;  %v11992_v47 = vld [vmem:[#allocation5 + $0x6d8] sm:$0xf]  ;;  %v3621_v36 = vadd.f32 %v3620_v29, %v3608_v28 }
 0x26b   :  { %3884 = vmatpush.bf16.msra.mxu2 %v11865_v39  ;;  %3859 = vmatpush.bf16.msra.mxu0 %v11321_v55  ;;  %v16963_v35 = vld [vmem:[#allocation5 + $0x6f4] sm:$0xf0]  ;;  %v11737_v39 = vor.u32 %v16899_v33, %v11736_v32 }
 0x26c   :  { %3853 = vmatmul.bf16.vlgmr.msrb.gmra.mxu3 %v18483_v38  ;;  %v11192_v41 = vld [vmem:[#allocation5 + $0x98] sm:$0xf]  ;;  %v11993_v56 = vor.u32 %v16963_v35, %v11992_v47 }
 0x26d   :  { %3897 = vmatpush.bf16.msra.mxu3 %v12121_v44  ;;  %3872 = vmatpush.bf16.msra.mxu1 %v11577_v57  ;;  %v16763_v42 = vld [vmem:[#allocation5 + $0xb4] sm:$0xf0]  ;;  %v3633_v44 = vpop.f32.mrf.mxu2 }
 0x26e   :  { %v11448_v43 = vld [vmem:[#allocation5 + $0x298] sm:$0xf]  ;;  %v3634_v53 = vadd.f32 %v3633_v44, %v3621_v36 }
 0x26f   :  { %3885 = vmatpush.bf16.msra.mxu2 %v11833_v58  ;;  %3860 = vmatpush.bf16.msra.mxu0 %v11289_v5  ;;  %v16827_v46 = vld [vmem:[#allocation5 + $0x2b4] sm:$0xf0]  ;;  %v11193_v58 = vor.u32 %v16763_v42, %v11192_v41  ;;  %v3609_v60 = vpop.f32.mrf.mxu0 }
 0x270   :  { %v11704_v50 = vld [vmem:[#allocation5 + $0x498] sm:$0xf]  ;;  %v18557_v59 = vadd.f32 %v3646_v54, %v3634_v53  ;;  %v11449_v61 = vor.u32 %v16827_v46, %v11448_v43 }
 0x271   :  { %3898 = vmatpush.bf16.msra.mxu3 %v12089_v62  ;;  %3873 = vmatpush.bf16.msra.mxu1 %v11545_v10  ;;  %v16891_v51 = vld [vmem:[#allocation5 + $0x4b4] sm:$0xf0] }
 0x272   :  { %v11960_v55 = vld [vmem:[#allocation5 + $0x698] sm:$0xf]  ;;  %v11705_v62 = vor.u32 %v16891_v51, %v11704_v50 }
 0x273   :  { %3886 = vmatpush.bf16.msra.mxu2 %v11801_v11  ;;  %3861 = vmatpush.bf16.msra.mxu0 %v11257_v21  ;;  %v16955_v57 = vld [vmem:[#allocation5 + $0x6b4] sm:$0xf0] }
 0x274   :  { %v11160_v0 = vld [vmem:[#allocation5 + $0x58] sm:$0xf]  ;;  %v11961_v4 = vor.u32 %v16955_v57, %v11960_v55 }
 0x275   :  { %3899 = vmatpush.bf16.msra.mxu3 %v12057_v16  ;;  %3874 = vmatpush.bf16.msra.mxu1 %v11513_v23  ;;  %v16755_v1 = vld [vmem:[#allocation5 + $0x74] sm:$0xf0]  ;;  %v3635_v22 = vpop.f32.mrf.mxu2 }
 0x276   :  { %v11416_v2 = vld [vmem:[#allocation5 + $0x258] sm:$0xf]  ;;  %v11161_v14 = vor.u32 %v16755_v1, %v11160_v0 }
 0x277   :  { %3887 = vmatpush.bf16.msra.mxu2 %v11769_v24  ;;  %3862 = vmatpush.bf16.msra.mxu0 %v11225_v7  ;;  %v16819_v5 = vld [vmem:[#allocation5 + $0x274] sm:$0xf0]  ;;  %v3659_v63 = vpop.f32.mrf.mxu0 }
 0x278   :  { %v11672_v10 = vld [vmem:[#allocation5 + $0x458] sm:$0xf]  ;;  %v11417_v18 = vor.u32 %v16819_v5, %v11416_v2 }
 0x279   :  { %3900 = vmatpush.bf16.msra.mxu3 %v12025_v30  ;;  %3875 = vmatpush.bf16.msra.mxu1 %v11481_v49  ;;  %v16883_v11 = vld [vmem:[#allocation5 + $0x474] sm:$0xf0] }
 0x27a   :  { %v11928_v12 = vld [vmem:[#allocation5 + $0x658] sm:$0xf]  ;;  %v11673_v19 = vor.u32 %v16883_v11, %v11672_v10 }
 0x27b   :  { %3888 = vmatpush.bf16.msra.mxu2 %v11737_v39  ;;  %v16947_v13 = vld [vmem:[#allocation5 + $0x674] sm:$0xf0]  ;;  %3863 = vmatpush.bf16.msra.mxu0 %v11193_v58 }
 0x27c   :  { %v11128_v16 = vld [vmem:[#allocation5 + $0x18] sm:$0xf]  ;;  %v11929_v23 = vor.u32 %v16947_v13, %v11928_v12 }
 0x27d   :  { %3901 = vmatpush.bf16.msra.mxu3 %v11993_v56  ;;  %v16747_v17 = vld [vmem:[#allocation5 + $0x34] sm:$0xf0]  ;;  %3876 = vmatpush.bf16.msra.mxu1 %v11449_v61 }
 0x27e   :  { %v11384_v20 = vld [vmem:[#allocation5 + $0x218] sm:$0xf]  ;;  %v11129_v31 = vor.u32 %v16747_v17, %v11128_v16 }
 0x27f   :  { %3889 = vmatpush.bf16.msra.mxu2 %v11705_v62  ;;  %v16811_v6 = vld [vmem:[#allocation5 + $0x234] sm:$0xf0]  ;;  %3864 = vmatpush.bf16.msra.mxu0 %v11161_v14 }
 0x280   :  { %v11640_v21 = vld [vmem:[#allocation5 + $0x418] sm:$0xf]  ;;  %v11385_v35 = vor.u32 %v16811_v6, %v11384_v20 }
 0x281   :  { %3902 = vmatpush.bf16.msra.mxu3 %v11961_v4  ;;  %v16875_v24 = vld [vmem:[#allocation5 + $0x434] sm:$0xf0]  ;;  %3877 = vmatpush.bf16.msra.mxu1 %v11417_v18 }
 0x282   :  { %v11896_v26 = vld [vmem:[#allocation5 + $0x618] sm:$0xf]  ;;  %v11641_v36 = vor.u32 %v16875_v24, %v11640_v21 }
 0x283   :  { %v16939_v27 = vld [vmem:[#allocation5 + $0x634] sm:$0xf0]  ;;  %3890 = vmatpush.bf16.msra.mxu2 %v11673_v19  ;;  %3865 = vmatpush.bf16.msra.mxu0 %v11129_v31  ;;  %v18563_v19 = vld [vmem:[#allocation7] sm:$0xff] }
 0x284   :  { %v12376_v28 = vld [vmem:[#allocation5 + $0x9d8] sm:$0xf]  ;;  %v11897_v39 = vor.u32 %v16939_v27, %v11896_v26  ;;  %v662_v20 = vperm.slane %v18563_v19, 4 }
 0x285   :  { %v17059_v29 = vld [vmem:[#allocation5 + $0x9f4] sm:$0xf0]  ;;  %3903 = vmatpush.bf16.msra.mxu3 %v11929_v23  ;;  %3878 = vmatpush.bf16.msra.mxu1 %v11385_v35 }
 0x286   :  { %v12632_v30 = vld [vmem:[#allocation5 + $0xbd8] sm:$0xf]  ;;  %v12377_v41 = vor.u32 %v17059_v29, %v12376_v28  ;;  %3866 = vmatmul.bf16.vlgmr.msra.gmra.mxu0 %v18469_v9 }
 0x287   :  { %v17123_v32 = vld [vmem:[#allocation5 + $0xbf4] sm:$0xf0]  ;;  %3891 = vmatpush.bf16.msra.mxu2 %v11641_v36 }
 0x288   :  { %v12888_v33 = vld [vmem:[#allocation5 + $0xdd8] sm:$0xf]  ;;  %v12633_v42 = vor.u32 %v17123_v32, %v12632_v30  ;;  %3910 = vmatpush.bf16.msrb.mxu0 %v12377_v41  ;;  %3879 = vmatmul.bf16.vlgmr.msra.gmra.mxu1 %v18476_v25 }
 0x289   :  { %v17187_v47 = vld [vmem:[#allocation5 + $0xdf4] sm:$0xf0]  ;;  %3904 = vmatpush.bf16.msra.mxu3 %v11897_v39 }
 0x28a   :  { %v13144_v7 = vld [vmem:[#allocation5 + $0xfd8] sm:$0xf]  ;;  %v12889_v43 = vor.u32 %v17187_v47, %v12888_v33  ;;  %3923 = vmatpush.bf16.msrb.mxu1 %v12633_v42  ;;  %3892 = vmatmul.bf16.vlgmr.msra.gmra.mxu2 %v18467_v8  ;;  %v3660_v33 = vadd.f32 %v3659_v63, %v662_v20  ;;  %v3672_v47 = vpop.f32.mrf.mxu1 }
 0x28b   :  { %v17251_v49 = vld [vmem:[#allocation5 + $0xff4] sm:$0xf0] }
 0x28c   :  { %v12344_v44 = vld [vmem:[#allocation5 + $0x998] sm:$0xf]  ;;  %v13145_v50 = vor.u32 %v17251_v49, %v13144_v7  ;;  %3936 = vmatpush.bf16.msrb.mxu2 %v12889_v43  ;;  %3905 = vmatmul.bf16.vlgmr.msra.gmra.mxu3 %v18471_v15  ;;  %v3673_v42 = vadd.f32 %v3672_v47, %v3660_v33 }
 0x28d   :  { %v17051_v56 = vld [vmem:[#allocation5 + $0x9b4] sm:$0xf0] }
 0x28e   :  { %v12600_v46 = vld [vmem:[#allocation5 + $0xb98] sm:$0xf]  ;;  %v12345_v58 = vor.u32 %v17051_v56, %v12344_v44  ;;  %3949 = vmatpush.bf16.msrb.mxu3 %v13145_v50 }
 0x28f   :  { %v17115_v51 = vld [vmem:[#allocation5 + $0xbb4] sm:$0xf0] }
 0x290   :  { %v12856_v53 = vld [vmem:[#allocation5 + $0xd98] sm:$0xf]  ;;  %v12601_v60 = vor.u32 %v17115_v51, %v12600_v46  ;;  %3911 = vmatpush.bf16.msrb.mxu0 %v12345_v58 }
 0x291   :  { %v17179_v54 = vld [vmem:[#allocation5 + $0xdb4] sm:$0xf0] }
 0x292   :  { %v13112_v55 = vld [vmem:[#allocation5 + $0xf98] sm:$0xf]  ;;  %v12857_v61 = vor.u32 %v17179_v54, %v12856_v53  ;;  %3924 = vmatpush.bf16.msrb.mxu1 %v12601_v60  ;;  %v3685_v53 = vpop.f32.mrf.mxu2 }
 0x293   :  { %v17243_v57 = vld [vmem:[#allocation5 + $0xfb4] sm:$0xf0]  ;;  %v3686_v60 = vadd.f32 %v3685_v53, %v3673_v42  ;;  %v11866_v42 = vld [vmem:[#allocation5 + $0x5f8] sm:$0xf0] }
 0x294   :  { %v12312_v62 = vld [vmem:[#allocation5 + $0x958] sm:$0xf]  ;;  %v13113_v2 = vor.u32 %v17243_v57, %v13112_v55  ;;  %3937 = vmatpush.bf16.msrb.mxu2 %v12857_v61  ;;  %v3698_v61 = vpop.f32.mrf.mxu3 }
 0x295   :  { %v17043_v0 = vld [vmem:[#allocation5 + $0x974] sm:$0xf0] }
 0x296   :  { %v12568_v1 = vld [vmem:[#allocation5 + $0xb58] sm:$0xf]  ;;  %v12313_v12 = vor.u32 %v17043_v0, %v12312_v62  ;;  %3950 = vmatpush.bf16.msrb.mxu3 %v13113_v2  ;;  %v18566_v2 = vadd.f32 %v3698_v61, %v3686_v60  ;;  %v11578_v61 = vld [vmem:[#allocation5 + $0x3b8] sm:$0xf0] }
 0x297   :  { %v17107_v3 = vld [vmem:[#allocation5 + $0xb74] sm:$0xf0] }
 0x298   :  { %v12824_v4 = vld [vmem:[#allocation5 + $0xd58] sm:$0xf]  ;;  %v12569_v14 = vor.u32 %v17107_v3, %v12568_v1  ;;  %3912 = vmatpush.bf16.msrb.mxu0 %v12313_v12  ;;  %v3661_v3 = vpop.f32.mrf.mxu0 }
 0x299   :  { %v17171_v5 = vld [vmem:[#allocation5 + $0xd74] sm:$0xf0]  ;;  %v12090_v3 = vld [vmem:[#allocation5 + $0x7b8] sm:$0xf0] }
 0x29a   :  { %v13080_v10 = vld [vmem:[#allocation5 + $0xf58] sm:$0xf]  ;;  %v12825_v16 = vor.u32 %v17171_v5, %v12824_v4  ;;  %3925 = vmatpush.bf16.msrb.mxu1 %v12569_v14 }
 0x29b   :  { %v17235_v11 = vld [vmem:[#allocation5 + $0xf74] sm:$0xf0] }
 0x29c   :  { %v12280_v13 = vld [vmem:[#allocation5 + $0x918] sm:$0xf]  ;;  %v13081_v6 = vor.u32 %v17235_v11, %v13080_v10  ;;  %3938 = vmatpush.bf16.msrb.mxu2 %v12825_v16  ;;  %v3700_v47 = vpop.f32.mrf.mxu3 }
 0x29d   :  { %v17035_v17 = vld [vmem:[#allocation5 + $0x934] sm:$0xf0] }
 0x29e   :  { %v12536_v18 = vld [vmem:[#allocation5 + $0xb18] sm:$0xf]  ;;  %v12281_v27 = vor.u32 %v17035_v17, %v12280_v13  ;;  %3951 = vmatpush.bf16.msrb.mxu3 %v13081_v6  ;;  %v3674_v13 = vpop.f32.mrf.mxu1 }
 0x29f   :  { %v17099_v21 = vld [vmem:[#allocation5 + $0xb34] sm:$0xf0]  ;;  %v16847_v13 = vld [vmem:[#allocation5 + $0x35c] sm:$0xf] }
 0x2a0   :  { %v12792_v22 = vld [vmem:[#allocation5 + $0xd18] sm:$0xf]  ;;  %v12537_v28 = vor.u32 %v17099_v21, %v12536_v18  ;;  %3913 = vmatpush.bf16.msrb.mxu0 %v12281_v27  ;;  %v3711_v47 = vpop.f32.mrf.mxu0 }
 0x2a1   :  { %v17163_v23 = vld [vmem:[#allocation5 + $0xd34] sm:$0xf0] }
 0x2a2   :  { %v13048_v24 = vld [vmem:[#allocation5 + $0xf18] sm:$0xf]  ;;  %v12793_v29 = vor.u32 %v17163_v23, %v12792_v22  ;;  %3926 = vmatpush.bf16.msrb.mxu1 %v12537_v28 }
 0x2a3   :  { %v17227_v26 = vld [vmem:[#allocation5 + $0xf34] sm:$0xf0] }
 0x2a4   :  { %v12248_v30 = vld [vmem:[#allocation5 + $0x8d8] sm:$0xf]  ;;  %v13049_v35 = vor.u32 %v17227_v26, %v13048_v24  ;;  %3939 = vmatpush.bf16.msrb.mxu2 %v12793_v29  ;;  %v3687_v29 = vpop.f32.mrf.mxu2 }
 0x2a5   :  { %v17027_v31 = vld [vmem:[#allocation5 + $0x8f4] sm:$0xf0]  ;;  %v16903_v29 = vld [vmem:[#allocation5 + $0x51c] sm:$0xf] }
 0x2a6   :  { %v12504_v32 = vld [vmem:[#allocation5 + $0xad8] sm:$0xf]  ;;  %v12249_v43 = vor.u32 %v17027_v31, %v12248_v30  ;;  %3952 = vmatpush.bf16.msrb.mxu3 %v13049_v35  ;;  %v16799_v35 = vld [vmem:[#allocation5 + $0x1dc] sm:$0xf] }
 0x2a7   :  { %v17091_v36 = vld [vmem:[#allocation5 + $0xaf4] sm:$0xf0] }
 0x2a8   :  { %v12760_v7 = vld [vmem:[#allocation5 + $0xcd8] sm:$0xf]  ;;  %v12505_v44 = vor.u32 %v17091_v36, %v12504_v32  ;;  %3914 = vmatpush.bf16.msrb.mxu0 %v12249_v43  ;;  %v11354_v36 = vld [vmem:[#allocation5 + $0x1f8] sm:$0xf0] }
 0x2a9   :  { %v17155_v49 = vld [vmem:[#allocation5 + $0xcf4] sm:$0xf0] }
 0x2aa   :  { %v13016_v39 = vld [vmem:[#allocation5 + $0xed8] sm:$0xf]  ;;  %v12761_v56 = vor.u32 %v17155_v49, %v12760_v7  ;;  %3927 = vmatpush.bf16.msrb.mxu1 %v12505_v44  ;;  %v16863_v7 = vld [vmem:[#allocation5 + $0x3dc] sm:$0xf] }
 0x2ab   :  { %v17219_v41 = vld [vmem:[#allocation5 + $0xef4] sm:$0xf0] }
 0x2ac   :  { %v12216_v46 = vld [vmem:[#allocation5 + $0x898] sm:$0xf]  ;;  %v13017_v54 = vor.u32 %v17219_v41, %v13016_v39  ;;  %3940 = vmatpush.bf16.msrb.mxu2 %v12761_v56  ;;  %v11610_v39 = vld [vmem:[#allocation5 + $0x3f8] sm:$0xf0] }
 0x2ad   :  { %v17019_v50 = vld [vmem:[#allocation5 + $0x8b4] sm:$0xf0]  ;;  %v16927_v41 = vld [vmem:[#allocation5 + $0x5dc] sm:$0xf]  ;;  %v11613_v53 = vor.u32 %v16863_v7, %v11610_v39 }
 0x2ae   :  { %v12472_v51 = vld [vmem:[#allocation5 + $0xa98] sm:$0xf]  ;;  %v12217_v1 = vor.u32 %v17019_v50, %v12216_v46  ;;  %3953 = vmatpush.bf16.msrb.mxu3 %v13017_v54  ;;  %v16991_v56 = vld [vmem:[#allocation5 + $0x7dc] sm:$0xf]  ;;  %v11869_v54 = vor.u32 %v16927_v41, %v11866_v42  ;;  %v3712_v41 = vadd.f32 %v3711_v47, %v18566_v2  ;;  %v3724_v42 = vpop.f32.mrf.mxu1 }
 0x2af   :  { %v17083_v55 = vld [vmem:[#allocation5 + $0xab4] sm:$0xf0]  ;;  %v12122_v46 = vld [vmem:[#allocation5 + $0x7f8] sm:$0xf0] }
 0x2b0   :  { %v12728_v57 = vld [vmem:[#allocation5 + $0xc98] sm:$0xf]  ;;  %v12473_v4 = vor.u32 %v17083_v55, %v12472_v51  ;;  %3915 = vmatpush.bf16.msrb.mxu0 %v12217_v1  ;;  %v11357_v51 = vor.u32 %v16799_v35, %v11354_v36  ;;  %v16791_v55 = vld [vmem:[#allocation5 + $0x19c] sm:$0xf]  ;;  %v12125_v60 = vor.u32 %v16991_v56, %v12122_v46 }
 0x2b1   :  { %v17147_v58 = vld [vmem:[#allocation5 + $0xcb4] sm:$0xf0]  ;;  %v16983_v1 = vld [vmem:[#allocation5 + $0x79c] sm:$0xf] }
 0x2b2   :  { %v12984_v62 = vld [vmem:[#allocation5 + $0xe98] sm:$0xf]  ;;  %v12729_v5 = vor.u32 %v17147_v58, %v12728_v57  ;;  %3928 = vmatpush.bf16.msrb.mxu1 %v12473_v4  ;;  %v11322_v57 = vld [vmem:[#allocation5 + $0x1b8] sm:$0xf0] }
 0x2b3   :  { %v17211_v0 = vld [vmem:[#allocation5 + $0xeb4] sm:$0xf0]  ;;  %v16855_v58 = vld [vmem:[#allocation5 + $0x39c] sm:$0xf]  ;;  %v11325_v4 = vor.u32 %v16791_v55, %v11322_v57 }
 0x2b4   :  { %v12184_v10 = vld [vmem:[#allocation5 + $0x858] sm:$0xf]  ;;  %v12985_v14 = vor.u32 %v17211_v0, %v12984_v62  ;;  %3941 = vmatpush.bf16.msrb.mxu2 %v12729_v5  ;;  %v16919_v62 = vld [vmem:[#allocation5 + $0x59c] sm:$0xf]  ;;  %v11581_v5 = vor.u32 %v16855_v58, %v11578_v61 }
 0x2b5   :  { %v17011_v11 = vld [vmem:[#allocation5 + $0x874] sm:$0xf0]  ;;  %v11834_v0 = vld [vmem:[#allocation5 + $0x5b8] sm:$0xf0] }
 0x2b6   :  { %v12440_v12 = vld [vmem:[#allocation5 + $0xa58] sm:$0xf]  ;;  %v12185_v21 = vor.u32 %v17011_v11, %v12184_v10  ;;  %3954 = vmatpush.bf16.msrb.mxu3 %v12985_v14  ;;  %v11837_v10 = vor.u32 %v16919_v62, %v11834_v0  ;;  %v16783_v11 = vld [vmem:[#allocation5 + $0x15c] sm:$0xf]  ;;  %v12093_v14 = vor.u32 %v16983_v1, %v12090_v3  ;;  %v3737_v62 = vpop.f32.mrf.mxu2 }
 0x2b7   :  { %v17075_v16 = vld [vmem:[#allocation5 + $0xa74] sm:$0xf0]  ;;  %v16767_v7 = vld [vmem:[#allocation5 + $0xdc] sm:$0xf] }
 0x2b8   :  { %v12696_v17 = vld [vmem:[#allocation5 + $0xc58] sm:$0xf]  ;;  %v12441_v24 = vor.u32 %v17075_v16, %v12440_v12  ;;  %3916 = vmatpush.bf16.msrb.mxu0 %v12185_v21  ;;  %v11290_v12 = vld [vmem:[#allocation5 + $0x178] sm:$0xf0] }
 0x2b9   :  { %v17139_v18 = vld [vmem:[#allocation5 + $0xc74] sm:$0xf0]  ;;  %v11546_v16 = vld [vmem:[#allocation5 + $0x378] sm:$0xf0]  ;;  %v11293_v21 = vor.u32 %v16783_v11, %v11290_v12 }
 0x2ba   :  { %v12952_v20 = vld [vmem:[#allocation5 + $0xe58] sm:$0xf]  ;;  %v12697_v26 = vor.u32 %v17139_v18, %v12696_v17  ;;  %3929 = vmatpush.bf16.msrb.mxu1 %v12441_v24  ;;  %v16911_v17 = vld [vmem:[#allocation5 + $0x55c] sm:$0xf] }
 0x2bb   :  { %v17203_v6 = vld [vmem:[#allocation5 + $0xe74] sm:$0xf0]  ;;  %v11802_v18 = vld [vmem:[#allocation5 + $0x578] sm:$0xf0] }
 0x2bc   :  { %v12152_v22 = vld [vmem:[#allocation5 + $0x818] sm:$0xf]  ;;  %v12953_v30 = vor.u32 %v17203_v6, %v12952_v20  ;;  %3942 = vmatpush.bf16.msrb.mxu2 %v12697_v26  ;;  %v16975_v20 = vld [vmem:[#allocation5 + $0x75c] sm:$0xf] }
 0x2bd   :  { %v17003_v23 = vld [vmem:[#allocation5 + $0x834] sm:$0xf0]  ;;  %v12058_v6 = vld [vmem:[#allocation5 + $0x778] sm:$0xf0] }
 0x2be   :  { %v12408_v27 = vld [vmem:[#allocation5 + $0xa18] sm:$0xf]  ;;  %v12153_v49 = vor.u32 %v17003_v23, %v12152_v22  ;;  %3955 = vmatpush.bf16.msrb.mxu3 %v12953_v30  ;;  %v11549_v22 = vor.u32 %v16847_v13, %v11546_v16  ;;  %v11805_v23 = vor.u32 %v16911_v17, %v11802_v18  ;;  %v16775_v24 = vld [vmem:[#allocation5 + $0x11c] sm:$0xf] }
 0x2bf   :  { %v17067_v63 = vld [vmem:[#allocation5 + $0xa34] sm:$0xf0]  ;;  %v11258_v26 = vld [vmem:[#allocation5 + $0x138] sm:$0xf0] }
 0x2c0   :  { %v12664_v28 = vld [vmem:[#allocation5 + $0xc18] sm:$0xf]  ;;  %v12409_v43 = vor.u32 %v17067_v63, %v12408_v27  ;;  %3917 = vmatpush.bf16.msrb.mxu0 %v12153_v49  ;;  %v16839_v27 = vld [vmem:[#allocation5 + $0x31c] sm:$0xf]  ;;  %v12061_v63 = vor.u32 %v16975_v20, %v12058_v6 }
 0x2c1   :  { %v17131_v31 = vld [vmem:[#allocation5 + $0xc34] sm:$0xf0]  ;;  %v11770_v30 = vld [vmem:[#allocation5 + $0x538] sm:$0xf0] }
 0x2c2   :  { %v12920_v32 = vld [vmem:[#allocation5 + $0xe18] sm:$0xf]  ;;  %v12665_v44 = vor.u32 %v17131_v31, %v12664_v28  ;;  %3930 = vmatpush.bf16.msrb.mxu1 %v12409_v43  ;;  %v11514_v28 = vld [vmem:[#allocation5 + $0x338] sm:$0xf0]  ;;  %v11773_v36 = vor.u32 %v16903_v29, %v11770_v30 }
 0x2c3   :  { %v17195_v33 = vld [vmem:[#allocation5 + $0xe34] sm:$0xf0]  ;;  %3918 = vmatmul.bf16.vlgmr.msrb.gmra.mxu0 %v18481_v37  ;;  %v16967_v31 = vld [vmem:[#allocation5 + $0x71c] sm:$0xf]  ;;  %v11517_v35 = vor.u32 %v16839_v27, %v11514_v28 }
 0x2c4   :  { %v12921_v50 = vor.u32 %v17195_v33, %v12920_v32  ;;  %3943 = vmatpush.bf16.msrb.mxu2 %v12665_v44  ;;  %3962 = vmatpush.bf16.msra.mxu0 %v11357_v51  ;;  %v12026_v32 = vld [vmem:[#allocation5 + $0x738] sm:$0xf0]  ;;  %v11261_v33 = vor.u32 %v16775_v24, %v11258_v26 }
 0x2c5   :  { %3931 = vmatmul.bf16.vlgmr.msrb.gmra.mxu1 %v18485_v40  ;;  %v11226_v49 = vld [vmem:[#allocation5 + $0xf8] sm:$0xf0]  ;;  %v12029_v43 = vor.u32 %v16967_v31, %v12026_v32 }
 0x2c6   :  { %3956 = vmatpush.bf16.msrb.mxu3 %v12921_v50  ;;  %3975 = vmatpush.bf16.msra.mxu1 %v11613_v53  ;;  %v16831_v39 = vld [vmem:[#allocation5 + $0x2dc] sm:$0xf]  ;;  %v3725_v53 = vadd.f32 %v3724_v42, %v3712_v41 }
 0x2c7   :  { %3944 = vmatmul.bf16.vlgmr.msrb.gmra.mxu2 %v18479_v34  ;;  %v11482_v44 = vld [vmem:[#allocation5 + $0x2f8] sm:$0xf0] }
 0x2c8   :  { %3988 = vmatpush.bf16.msra.mxu2 %v11869_v54  ;;  %3963 = vmatpush.bf16.msra.mxu0 %v11325_v4  ;;  %v16895_v56 = vld [vmem:[#allocation5 + $0x4dc] sm:$0xf]  ;;  %v11229_v54 = vor.u32 %v16767_v7, %v11226_v49  ;;  %v11485_v55 = vor.u32 %v16831_v39, %v11482_v44  ;;  %v3738_v4 = vadd.f32 %v3737_v62, %v3725_v53 }
 0x2c9   :  { %3957 = vmatmul.bf16.vlgmr.msrb.gmra.mxu3 %v18483_v38  ;;  %v11738_v46 = vld [vmem:[#allocation5 + $0x4f8] sm:$0xf0] }
 0x2ca   :  { %4001 = vmatpush.bf16.msra.mxu3 %v12125_v60  ;;  %3976 = vmatpush.bf16.msra.mxu1 %v11581_v5  ;;  %v16959_v50 = vld [vmem:[#allocation5 + $0x6dc] sm:$0xf]  ;;  %v11741_v57 = vor.u32 %v16895_v56, %v11738_v46  ;;  %v3750_v5 = vpop.f32.mrf.mxu3 }
 0x2cb   :  { %v11994_v51 = vld [vmem:[#allocation5 + $0x6f8] sm:$0xf0]  ;;  %v18573_v13 = vadd.f32 %v3750_v5, %v3738_v4 }
 0x2cc   :  { %3989 = vmatpush.bf16.msra.mxu2 %v11837_v10  ;;  %3964 = vmatpush.bf16.msra.mxu0 %v11293_v21  ;;  %v16759_v58 = vld [vmem:[#allocation5 + $0x9c] sm:$0xf]  ;;  %v11997_v2 = vor.u32 %v16959_v50, %v11994_v51  ;;  %v3726_v21 = vpop.f32.mrf.mxu1 }
 0x2cd   :  { %v11194_v60 = vld [vmem:[#allocation5 + $0xb8] sm:$0xf0] }
 0x2ce   :  { %4002 = vmatpush.bf16.msra.mxu3 %v12093_v14  ;;  %3977 = vmatpush.bf16.msra.mxu1 %v11549_v22  ;;  %v16823_v61 = vld [vmem:[#allocation5 + $0x29c] sm:$0xf]  ;;  %v11197_v12 = vor.u32 %v16759_v58, %v11194_v60  ;;  %v3713_v14 = vpop.f32.mrf.mxu0 }
 0x2cf   :  { %v11450_v0 = vld [vmem:[#allocation5 + $0x2b8] sm:$0xf0] }
 0x2d0   :  { %3990 = vmatpush.bf16.msra.mxu2 %v11805_v23  ;;  %3965 = vmatpush.bf16.msra.mxu0 %v11261_v33  ;;  %v16887_v1 = vld [vmem:[#allocation5 + $0x49c] sm:$0xf]  ;;  %v11453_v16 = vor.u32 %v16823_v61, %v11450_v0 }
 0x2d1   :  { %v11706_v3 = vld [vmem:[#allocation5 + $0x4b8] sm:$0xf0] }
 0x2d2   :  { %4003 = vmatpush.bf16.msra.mxu3 %v12061_v63  ;;  %3978 = vmatpush.bf16.msra.mxu1 %v11517_v35  ;;  %v16951_v10 = vld [vmem:[#allocation5 + $0x69c] sm:$0xf]  ;;  %v11709_v17 = vor.u32 %v16887_v1, %v11706_v3  ;;  %v3752_v42 = vpop.f32.mrf.mxu3 }
 0x2d3   :  { %v11962_v11 = vld [vmem:[#allocation5 + $0x6b8] sm:$0xf0] }
 0x2d4   :  { %3991 = vmatpush.bf16.msra.mxu2 %v11773_v36  ;;  %3966 = vmatpush.bf16.msra.mxu0 %v11229_v54  ;;  %v16751_v18 = vld [vmem:[#allocation5 + $0x5c] sm:$0xf]  ;;  %v11965_v22 = vor.u32 %v16951_v10, %v11962_v11  ;;  %v3739_v36 = vpop.f32.mrf.mxu2 }
 0x2d5   :  { %v11162_v20 = vld [vmem:[#allocation5 + $0x78] sm:$0xf0] }
 0x2d6   :  { %4004 = vmatpush.bf16.msra.mxu3 %v12029_v43  ;;  %3979 = vmatpush.bf16.msra.mxu1 %v11485_v55  ;;  %v16815_v6 = vld [vmem:[#allocation5 + $0x25c] sm:$0xf]  ;;  %v11165_v28 = vor.u32 %v16751_v18, %v11162_v20 }
 0x2d7   :  { %v11418_v23 = vld [vmem:[#allocation5 + $0x278] sm:$0xf0] }
 0x2d8   :  { %3992 = vmatpush.bf16.msra.mxu2 %v11741_v57  ;;  %v16879_v24 = vld [vmem:[#allocation5 + $0x45c] sm:$0xf]  ;;  %3967 = vmatpush.bf16.msra.mxu0 %v11197_v12  ;;  %v11421_v31 = vor.u32 %v16815_v6, %v11418_v23 }
 0x2d9   :  { %v11674_v26 = vld [vmem:[#allocation5 + $0x478] sm:$0xf0] }
 0x2da   :  { %4005 = vmatpush.bf16.msra.mxu3 %v11997_v2  ;;  %v16943_v27 = vld [vmem:[#allocation5 + $0x65c] sm:$0xf]  ;;  %3980 = vmatpush.bf16.msra.mxu1 %v11453_v16  ;;  %v11677_v32 = vor.u32 %v16879_v24, %v11674_v26 }
 0x2db   :  { %v11930_v63 = vld [vmem:[#allocation5 + $0x678] sm:$0xf0] }
 0x2dc   :  { %v16743_v29 = vld [vmem:[#allocation5 + $0x1c] sm:$0xf]  ;;  %3993 = vmatpush.bf16.msra.mxu2 %v11709_v17  ;;  %v11933_v7 = vor.u32 %v16943_v27, %v11930_v63  ;;  %3968 = vmatpush.bf16.msra.mxu0 %v11165_v28 }
 0x2dd   :  { %v11130_v30 = vld [vmem:[#allocation5 + $0x38] sm:$0xf0] }
 0x2de   :  { %v16807_v33 = vld [vmem:[#allocation5 + $0x21c] sm:$0xf]  ;;  %4006 = vmatpush.bf16.msra.mxu3 %v11965_v22  ;;  %v11133_v46 = vor.u32 %v16743_v29, %v11130_v30  ;;  %3981 = vmatpush.bf16.msra.mxu1 %v11421_v31 }
 0x2df   :  { %v11386_v47 = vld [vmem:[#allocation5 + $0x238] sm:$0xf0] }
 0x2e0   :  { %v16871_v35 = vld [vmem:[#allocation5 + $0x41c] sm:$0xf]  ;;  %3994 = vmatpush.bf16.msra.mxu2 %v11677_v32  ;;  %v11389_v54 = vor.u32 %v16807_v33, %v11386_v47  ;;  %3969 = vmatpush.bf16.msra.mxu0 %v11133_v46 }
 0x2e1   :  { %v11642_v49 = vld [vmem:[#allocation5 + $0x438] sm:$0xf0] }
 0x2e2   :  { %v16935_v39 = vld [vmem:[#allocation5 + $0x61c] sm:$0xf]  ;;  %v11645_v55 = vor.u32 %v16871_v35, %v11642_v49  ;;  %4007 = vmatpush.bf16.msra.mxu3 %v11933_v7  ;;  %3982 = vmatpush.bf16.msra.mxu1 %v11389_v54  ;;  %v18579_v49 = vpop.f32.mrf.mxu0 }
 0x2e3   :  { %v11898_v41 = vld [vmem:[#allocation5 + $0x638] sm:$0xf0]  ;;  %3970 = vmatmul.bf16.vlgmr.msra.gmra.mxu0 %v18469_v9 }
 0x2e4   :  { %v17055_v43 = vld [vmem:[#allocation5 + $0x9dc] sm:$0xf]  ;;  %v11901_v60 = vor.u32 %v16935_v39, %v11898_v41  ;;  %3995 = vmatpush.bf16.msra.mxu2 %v11645_v55 }
 0x2e5   :  { %v12378_v44 = vld [vmem:[#allocation5 + $0x9f8] sm:$0xf0]  ;;  %3983 = vmatmul.bf16.vlgmr.msra.gmra.mxu1 %v18476_v25 }
 0x2e6   :  { %v17119_v56 = vld [vmem:[#allocation5 + $0xbdc] sm:$0xf]  ;;  %v12381_v61 = vor.u32 %v17055_v43, %v12378_v44  ;;  %4008 = vmatpush.bf16.msra.mxu3 %v11901_v60  ;;  %v18581_v44 = vpop.f32.mrf.mxu1 }
 0x2e7   :  { %v12634_v50 = vld [vmem:[#allocation5 + $0xbf8] sm:$0xf0]  ;;  %3996 = vmatmul.bf16.vlgmr.msra.gmra.mxu2 %v18467_v8 }
 0x2e8   :  { %v17183_v51 = vld [vmem:[#allocation5 + $0xddc] sm:$0xf]  ;;  %v12637_v62 = vor.u32 %v17119_v56, %v12634_v50  ;;  %4014 = vmatpush.bf16.msrb.mxu0 %v12381_v61 }
 0x2e9   :  { %v12890_v53 = vld [vmem:[#allocation5 + $0xdf8] sm:$0xf0]  ;;  %4009 = vmatmul.bf16.vlgmr.msra.gmra.mxu3 %v18471_v15 }
 0x2ea   :  { %v17247_v57 = vld [vmem:[#allocation5 + $0xfdc] sm:$0xf]  ;;  %v12893_v2 = vor.u32 %v17183_v51, %v12890_v53  ;;  %4027 = vmatpush.bf16.msrb.mxu1 %v12637_v62 }
 0x2eb   :  { %v13146_v58 = vld [vmem:[#allocation5 + $0xff8] sm:$0xf0] }
 0x2ec   :  { %v17047_v0 = vld [vmem:[#allocation5 + $0x99c] sm:$0xf]  ;;  %v13149_v4 = vor.u32 %v17247_v57, %v13146_v58  ;;  %4040 = vmatpush.bf16.msrb.mxu2 %v12893_v2  ;;  %v18583_v2 = vpop.f32.mrf.mxu2 }
 0x2ed   :  { %v12346_v1 = vld [vmem:[#allocation5 + $0x9b8] sm:$0xf0] }
 0x2ee   :  { %v17111_v3 = vld [vmem:[#allocation5 + $0xb9c] sm:$0xf]  ;;  %v12349_v16 = vor.u32 %v17047_v0, %v12346_v1  ;;  %4053 = vmatpush.bf16.msrb.mxu3 %v13149_v4 }
 0x2ef   :  { %v12602_v5 = vld [vmem:[#allocation5 + $0xbb8] sm:$0xf0] }
 0x2f0   :  { %v17175_v10 = vld [vmem:[#allocation5 + $0xd9c] sm:$0xf]  ;;  %v12605_v17 = vor.u32 %v17111_v3, %v12602_v5  ;;  %4015 = vmatpush.bf16.msrb.mxu0 %v12349_v16  ;;  %v18585_v5 = vpop.f32.mrf.mxu3 }
 0x2f1   :  { %v12858_v11 = vld [vmem:[#allocation5 + $0xdb8] sm:$0xf0] }
 0x2f2   :  { %v17239_v12 = vld [vmem:[#allocation5 + $0xf9c] sm:$0xf]  ;;  %v12861_v18 = vor.u32 %v17175_v10, %v12858_v11  ;;  %4028 = vmatpush.bf16.msrb.mxu1 %v12605_v17 }
 0x2f3   :  { %v13114_v14 = vld [vmem:[#allocation5 + $0xfb8] sm:$0xf0] }
 0x2f4   :  { %v17039_v20 = vld [vmem:[#allocation5 + $0x95c] sm:$0xf]  ;;  %v13117_v22 = vor.u32 %v17239_v12, %v13114_v14  ;;  %4041 = vmatpush.bf16.msrb.mxu2 %v12861_v18  ;;  %v3765_v14 = vpop.f32.mrf.mxu0 }
 0x2f5   :  { %v12314_v6 = vld [vmem:[#allocation5 + $0x978] sm:$0xf0]  ;;  %v17496_v14 = vld [vmem:[#allocation8 + $0x79c] sm:$0xf0] }
 0x2f6   :  { %v17103_v21 = vld [vmem:[#allocation5 + $0xb5c] sm:$0xf]  ;;  %v12317_v28 = vor.u32 %v17039_v20, %v12314_v6  ;;  %4054 = vmatpush.bf16.msrb.mxu3 %v13117_v22 }
 0x2f7   :  { %v12570_v23 = vld [vmem:[#allocation5 + $0xb78] sm:$0xf0] }
 0x2f8   :  { %v17167_v24 = vld [vmem:[#allocation5 + $0xd5c] sm:$0xf]  ;;  %v12573_v29 = vor.u32 %v17103_v21, %v12570_v23  ;;  %4016 = vmatpush.bf16.msrb.mxu0 %v12317_v28  ;;  %v3778_v21 = vpop.f32.mrf.mxu1 }
 0x2f9   :  { %v12826_v26 = vld [vmem:[#allocation5 + $0xd78] sm:$0xf0]  ;;  %v13568_v21 = vld [vmem:[#allocation8 + $0x340] sm:$0xf] }
 0x2fa   :  { %v17231_v27 = vld [vmem:[#allocation5 + $0xf5c] sm:$0xf]  ;;  %v12829_v30 = vor.u32 %v17167_v24, %v12826_v26  ;;  %4029 = vmatpush.bf16.msrb.mxu1 %v12573_v29 }
 0x2fb   :  { %v13082_v63 = vld [vmem:[#allocation5 + $0xf78] sm:$0xf0] }
 0x2fc   :  { %v17031_v31 = vld [vmem:[#allocation5 + $0x91c] sm:$0xf]  ;;  %v13085_v33 = vor.u32 %v17231_v27, %v13082_v63  ;;  %4042 = vmatpush.bf16.msrb.mxu2 %v12829_v30 }
 0x2fd   :  { %v12282_v32 = vld [vmem:[#allocation5 + $0x938] sm:$0xf0] }
 0x2fe   :  { %v17095_v8 = vld [vmem:[#allocation5 + $0xb1c] sm:$0xf]  ;;  %v12285_v15 = vor.u32 %v17031_v31, %v12282_v32  ;;  %4055 = vmatpush.bf16.msrb.mxu3 %v13085_v33 }
 0x2ff   :  { %v12538_v47 = vld [vmem:[#allocation5 + $0xb38] sm:$0xf0] }
 0x300   :  { %v17159_v35 = vld [vmem:[#allocation5 + $0xd1c] sm:$0xf]  ;;  %v12541_v25 = vor.u32 %v17095_v8, %v12538_v47  ;;  %4017 = vmatpush.bf16.msrb.mxu0 %v12285_v15 }
 0x301   :  { %v12794_v36 = vld [vmem:[#allocation5 + $0xd38] sm:$0xf0] }
 0x302   :  { %v17223_v7 = vld [vmem:[#allocation5 + $0xf1c] sm:$0xf]  ;;  %v12797_v39 = vor.u32 %v17159_v35, %v12794_v36  ;;  %4030 = vmatpush.bf16.msrb.mxu1 %v12541_v25  ;;  %v3791_v35 = vpop.f32.mrf.mxu2  ;;  %v3804_v25 = vpop.f32.mrf.mxu3 }
 0x303   :  { %v13050_v9 = vld [vmem:[#allocation5 + $0xf38] sm:$0xf0]  ;;  %v14048_v35 = vld [vmem:[#allocation8 + $0x700] sm:$0xf] }
 0x304   :  { %v17023_v41 = vld [vmem:[#allocation5 + $0x8dc] sm:$0xf]  ;;  %v13053_v56 = vor.u32 %v17223_v7, %v13050_v9  ;;  %4043 = vmatpush.bf16.msrb.mxu2 %v12797_v39  ;;  %v13376_v39 = vld [vmem:[#allocation8 + $0x1c0] sm:$0xf] }
 0x305   :  { %v12250_v42 = vld [vmem:[#allocation5 + $0x8f8] sm:$0xf0]  ;;  %v17280_v25 = vld [vmem:[#allocation8 + $0xdc] sm:$0xf0] }
 0x306   :  { %v17087_v43 = vld [vmem:[#allocation5 + $0xadc] sm:$0xf]  ;;  %v12253_v55 = vor.u32 %v17023_v41, %v12250_v42  ;;  %4056 = vmatpush.bf16.msrb.mxu3 %v13053_v56  ;;  %v17312_v41 = vld [vmem:[#allocation8 + $0x1dc] sm:$0xf0] }
 0x307   :  { %v12506_v46 = vld [vmem:[#allocation5 + $0xaf8] sm:$0xf0]  ;;  %v13632_v42 = vld [vmem:[#allocation8 + $0x3c0] sm:$0xf] }
 0x308   :  { %v17151_v50 = vld [vmem:[#allocation5 + $0xcdc] sm:$0xf]  ;;  %v12509_v57 = vor.u32 %v17087_v43, %v12506_v46  ;;  %4018 = vmatpush.bf16.msrb.mxu0 %v12253_v55  ;;  %v17376_v56 = vld [vmem:[#allocation8 + $0x3dc] sm:$0xf0] }
 0x309   :  { %v12762_v51 = vld [vmem:[#allocation5 + $0xcf8] sm:$0xf0]  ;;  %v13888_v46 = vld [vmem:[#allocation8 + $0x5c0] sm:$0xf] }
 0x30a   :  { %v17215_v53 = vld [vmem:[#allocation5 + $0xedc] sm:$0xf]  ;;  %v12765_v58 = vor.u32 %v17151_v50, %v12762_v51  ;;  %4031 = vmatpush.bf16.msrb.mxu1 %v12509_v57  ;;  %v17440_v50 = vld [vmem:[#allocation8 + $0x5dc] sm:$0xf0] }
 0x30b   :  { %v13018_v54 = vld [vmem:[#allocation5 + $0xef8] sm:$0xf0]  ;;  %v17504_v55 = vld [vmem:[#allocation8 + $0x7dc] sm:$0xf0] }
 0x30c   :  { %v17015_v60 = vld [vmem:[#allocation5 + $0x89c] sm:$0xf]  ;;  %v13021_v0 = vor.u32 %v17215_v53, %v13018_v54  ;;  %4044 = vmatpush.bf16.msrb.mxu2 %v12765_v58  ;;  %v14144_v54 = vld [vmem:[#allocation8 + $0x7c0] sm:$0xf]  ;;  %v13377_v58 = vor.u32 %v17312_v41, %v13376_v39  ;;  %v18593_v41 = vpop.f32.mrf.mxu1 }
 0x30d   :  { %v12218_v61 = vld [vmem:[#allocation5 + $0x8b8] sm:$0xf0]  ;;  %v13504_v39 = vld [vmem:[#allocation8 + $0x2c0] sm:$0xf] }
 0x30e   :  { %v17079_v62 = vld [vmem:[#allocation5 + $0xa9c] sm:$0xf]  ;;  %v12221_v12 = vor.u32 %v17015_v60, %v12218_v61  ;;  %4057 = vmatpush.bf16.msrb.mxu3 %v13021_v0  ;;  %v13633_v60 = vor.u32 %v17376_v56, %v13632_v42  ;;  %v13889_v61 = vor.u32 %v17440_v50, %v13888_v46  ;;  %v17304_v0 = vld [vmem:[#allocation8 + $0x19c] sm:$0xf0] }
 0x30f   :  { %v12474_v1 = vld [vmem:[#allocation5 + $0xab8] sm:$0xf0]  ;;  %v13760_v56 = vld [vmem:[#allocation8 + $0x4c0] sm:$0xf] }
 0x310   :  { %v17143_v3 = vld [vmem:[#allocation5 + $0xc9c] sm:$0xf]  ;;  %v12477_v16 = vor.u32 %v17079_v62, %v12474_v1  ;;  %4019 = vmatpush.bf16.msrb.mxu0 %v12221_v12  ;;  %v13344_v62 = vld [vmem:[#allocation8 + $0x180] sm:$0xf] }
 0x311   :  { %v12730_v4 = vld [vmem:[#allocation5 + $0xcb8] sm:$0xf0]  ;;  %v13600_v1 = vld [vmem:[#allocation8 + $0x380] sm:$0xf] }
 0x312   :  { %v17207_v10 = vld [vmem:[#allocation5 + $0xe9c] sm:$0xf]  ;;  %v12733_v17 = vor.u32 %v17143_v3, %v12730_v4  ;;  %4032 = vmatpush.bf16.msrb.mxu1 %v12477_v16  ;;  %v14145_v3 = vor.u32 %v17504_v55, %v14144_v54  ;;  %v17368_v4 = vld [vmem:[#allocation8 + $0x39c] sm:$0xf0]  ;;  %v13345_v16 = vor.u32 %v17304_v0, %v13344_v62 }
 0x313   :  { %v12986_v11 = vld [vmem:[#allocation5 + $0xeb8] sm:$0xf0]  ;;  %v14112_v12 = vld [vmem:[#allocation8 + $0x780] sm:$0xf] }
 0x314   :  { %v17007_v18 = vld [vmem:[#allocation5 + $0x85c] sm:$0xf]  ;;  %v12989_v22 = vor.u32 %v17207_v10, %v12986_v11  ;;  %4045 = vmatpush.bf16.msrb.mxu2 %v12733_v17  ;;  %v13856_v10 = vld [vmem:[#allocation8 + $0x580] sm:$0xf]  ;;  %v13601_v17 = vor.u32 %v17368_v4, %v13600_v1  ;;  %v18597_v4 = vpop.f32.mrf.mxu3 }
 0x315   :  { %v12186_v20 = vld [vmem:[#allocation5 + $0x878] sm:$0xf0]  ;;  %v17432_v11 = vld [vmem:[#allocation8 + $0x59c] sm:$0xf0] }
 0x316   :  { %v17071_v6 = vld [vmem:[#allocation5 + $0xa5c] sm:$0xf]  ;;  %v12189_v28 = vor.u32 %v17007_v18, %v12186_v20  ;;  %4058 = vmatpush.bf16.msrb.mxu3 %v12989_v22  ;;  %v13857_v18 = vor.u32 %v17432_v11, %v13856_v10  ;;  %v13312_v20 = vld [vmem:[#allocation8 + $0x140] sm:$0xf]  ;;  %v14113_v22 = vor.u32 %v17496_v14, %v14112_v12 }
 0x317   :  { %v12442_v23 = vld [vmem:[#allocation5 + $0xa78] sm:$0xf0]  ;;  %v17408_v46 = vld [vmem:[#allocation8 + $0x4dc] sm:$0xf0] }
 0x318   :  { %v17135_v24 = vld [vmem:[#allocation5 + $0xc5c] sm:$0xf]  ;;  %v12445_v31 = vor.u32 %v17071_v6, %v12442_v23  ;;  %4020 = vmatpush.bf16.msrb.mxu0 %v12189_v28  ;;  %v17296_v6 = vld [vmem:[#allocation8 + $0x15c] sm:$0xf0]  ;;  %v13761_v55 = vor.u32 %v17408_v46, %v13760_v56 }
 0x319   :  { %v12698_v26 = vld [vmem:[#allocation5 + $0xc78] sm:$0xf0]  ;;  %v17360_v23 = vld [vmem:[#allocation8 + $0x35c] sm:$0xf0]  ;;  %v13313_v28 = vor.u32 %v17296_v6, %v13312_v20 }
 0x31a   :  { %v17199_v27 = vld [vmem:[#allocation5 + $0xe5c] sm:$0xf]  ;;  %v12701_v32 = vor.u32 %v17135_v24, %v12698_v26  ;;  %4033 = vmatpush.bf16.msrb.mxu1 %v12445_v31  ;;  %v13824_v24 = vld [vmem:[#allocation8 + $0x540] sm:$0xf] }
 0x31b   :  { %v12954_v63 = vld [vmem:[#allocation5 + $0xe78] sm:$0xf0]  ;;  %v17424_v26 = vld [vmem:[#allocation8 + $0x55c] sm:$0xf0] }
 0x31c   :  { %v16999_v29 = vld [vmem:[#allocation5 + $0x81c] sm:$0xf]  ;;  %v12957_v36 = vor.u32 %v17199_v27, %v12954_v63  ;;  %4046 = vmatpush.bf16.msrb.mxu2 %v12701_v32  ;;  %v14080_v27 = vld [vmem:[#allocation8 + $0x740] sm:$0xf] }
 0x31d   :  { %v12154_v30 = vld [vmem:[#allocation5 + $0x838] sm:$0xf0]  ;;  %v17488_v63 = vld [vmem:[#allocation8 + $0x75c] sm:$0xf0] }
 0x31e   :  { %v17063_v8 = vld [vmem:[#allocation5 + $0xa1c] sm:$0xf]  ;;  %v12157_v43 = vor.u32 %v16999_v29, %v12154_v30  ;;  %4059 = vmatpush.bf16.msrb.mxu3 %v12957_v36  ;;  %v13569_v29 = vor.u32 %v17360_v23, %v13568_v21  ;;  %v13825_v30 = vor.u32 %v17424_v26, %v13824_v24  ;;  %v13280_v31 = vld [vmem:[#allocation8 + $0x100] sm:$0xf]  ;;  %v3830_v21 = vpop.f32.mrf.mxu1 }
 0x31f   :  { %v12410_v33 = vld [vmem:[#allocation5 + $0xa38] sm:$0xf0]  ;;  %v13536_v32 = vld [vmem:[#allocation8 + $0x300] sm:$0xf] }
 0x320   :  { %v17127_v47 = vld [vmem:[#allocation5 + $0xc1c] sm:$0xf]  ;;  %v12413_v51 = vor.u32 %v17063_v8, %v12410_v33  ;;  %4021 = vmatpush.bf16.msrb.mxu0 %v12157_v43  ;;  %v14081_v8 = vor.u32 %v17488_v63, %v14080_v27  ;;  %v17352_v33 = vld [vmem:[#allocation8 + $0x31c] sm:$0xf0]  ;;  %v663_v27 = vperm.slane %v18563_v19, 5  ;;  %v3856_v19 = vpop.f32.mrf.mxu3 }
 0x321   :  { %v12666_v7 = vld [vmem:[#allocation5 + $0xc38] sm:$0xf0]  ;;  %v17344_v43 = vld [vmem:[#allocation8 + $0x2dc] sm:$0xf0] }
 0x322   :  { %v17191_v9 = vld [vmem:[#allocation5 + $0xe1c] sm:$0xf]  ;;  %v12669_v53 = vor.u32 %v17127_v47, %v12666_v7  ;;  %4034 = vmatpush.bf16.msrb.mxu1 %v12413_v51  ;;  %v13792_v47 = vld [vmem:[#allocation8 + $0x500] sm:$0xf]  ;;  %v18591_v7 = vpop.f32.mrf.mxu0  ;;  %v13505_v54 = vor.u32 %v17344_v43, %v13504_v39 }
 0x323   :  { %v12922_v15 = vld [vmem:[#allocation5 + $0xe38] sm:$0xf0]  ;;  %4022 = vmatmul.bf16.vlgmr.msrb.gmra.mxu0 %v18481_v37  ;;  %v17288_v37 = vld [vmem:[#allocation8 + $0x11c] sm:$0xf0] }
 0x324   :  { %v12925_v57 = vor.u32 %v17191_v9, %v12922_v15  ;;  %4047 = vmatpush.bf16.msrb.mxu2 %v12669_v53  ;;  %7172 = vmatpush.bf16.msra.mxu0 %v13377_v58  ;;  %v13281_v36 = vor.u32 %v17288_v37, %v13280_v31  ;;  %v13248_v15 = vld [vmem:[#allocation8 + $0xc0] sm:$0xf] }
 0x325   :  { %4035 = vmatmul.bf16.vlgmr.msrb.gmra.mxu1 %v18485_v40  ;;  %v17416_v40 = vld [vmem:[#allocation8 + $0x51c] sm:$0xf0]  ;;  %v13249_v53 = vor.u32 %v17280_v25, %v13248_v15 }
 0x326   :  { %4060 = vmatpush.bf16.msrb.mxu3 %v12925_v57  ;;  %7185 = vmatpush.bf16.msra.mxu1 %v13633_v60  ;;  %v13793_v9 = vor.u32 %v17416_v40, %v13792_v47  ;;  %v14016_v50 = vld [vmem:[#allocation8 + $0x6c0] sm:$0xf] }
 0x327   :  { %4048 = vmatmul.bf16.vlgmr.msrb.gmra.mxu2 %v18479_v34  ;;  %v17480_v34 = vld [vmem:[#allocation8 + $0x71c] sm:$0xf0] }
 0x328   :  { %7198 = vmatpush.bf16.msra.mxu2 %v13889_v61  ;;  %7173 = vmatpush.bf16.msra.mxu0 %v13345_v16  ;;  %v14049_v42 = vor.u32 %v17480_v34, %v14048_v35  ;;  %v17472_v51 = vld [vmem:[#allocation8 + $0x6dc] sm:$0xf0]  ;;  %v18595_v61 = vpop.f32.mrf.mxu2 }
 0x329   :  { %4061 = vmatmul.bf16.vlgmr.msrb.gmra.mxu3 %v18483_v38  ;;  %v13537_v38 = vor.u32 %v17352_v33, %v13536_v32  ;;  %v13216_v57 = vld [vmem:[#allocation8 + $0x80] sm:$0xf]  ;;  %v14017_v62 = vor.u32 %v17472_v51, %v14016_v50  ;;  %v4066_v50 = vmax.f32 %v18513_v48, 0.0  ;;  %v4067_v51 = vmax.f32 %v18527_v45, 0.0 }
 0x32a   :  { %7211 = vmatpush.bf16.msra.mxu3 %v14145_v3  ;;  %7186 = vmatpush.bf16.msra.mxu1 %v13601_v17  ;;  %v17272_v58 = vld [vmem:[#allocation8 + $0x9c] sm:$0xf0]  ;;  %v3817_v14 = vpop.f32.mrf.mxu0 }
 0x32b   :  { %v13472_v60 = vld [vmem:[#allocation8 + $0x280] sm:$0xf]  ;;  %v13217_v12 = vor.u32 %v17272_v58, %v13216_v57  ;;  %v18608_v14 = vpack.c.bf16 %v4067_v51, %v4067_v51 }
 0x32c   :  { %7199 = vmatpush.bf16.msra.mxu2 %v13857_v18  ;;  %7174 = vmatpush.bf16.msra.mxu0 %v13313_v28  ;;  %v17336_v0 = vld [vmem:[#allocation8 + $0x29c] sm:$0xf0] }
 0x32d   :  { %v13728_v1 = vld [vmem:[#allocation8 + $0x480] sm:$0xf]  ;;  %v13473_v16 = vor.u32 %v17336_v0, %v13472_v60 }
 0x32e   :  { %7212 = vmatpush.bf16.msra.mxu3 %v14113_v22  ;;  %7187 = vmatpush.bf16.msra.mxu1 %v13569_v29  ;;  %v17400_v3 = vld [vmem:[#allocation8 + $0x49c] sm:$0xf0] }
 0x32f   :  { %v13984_v10 = vld [vmem:[#allocation8 + $0x680] sm:$0xf]  ;;  %v13729_v17 = vor.u32 %v17400_v3, %v13728_v1 }
 0x330   :  { %7200 = vmatpush.bf16.msra.mxu2 %v13825_v30  ;;  %7175 = vmatpush.bf16.msra.mxu0 %v13281_v36  ;;  %v17464_v11 = vld [vmem:[#allocation8 + $0x69c] sm:$0xf0]  ;;  %v3843_v40 = vpop.f32.mrf.mxu2 }
 0x331   :  { %v13184_v18 = vld [vmem:[#allocation8 + $0x40] sm:$0xf]  ;;  %v13985_v22 = vor.u32 %v17464_v11, %v13984_v10 }
 0x332   :  { %7213 = vmatpush.bf16.msra.mxu3 %v14081_v8  ;;  %7188 = vmatpush.bf16.msra.mxu1 %v13537_v38  ;;  %v17264_v20 = vld [vmem:[#allocation8 + $0x5c] sm:$0xf0] }
 0x333   :  { %v13440_v6 = vld [vmem:[#allocation8 + $0x240] sm:$0xf]  ;;  %v13185_v29 = vor.u32 %v17264_v20, %v13184_v18 }
 0x334   :  { %7201 = vmatpush.bf16.msra.mxu2 %v13793_v9  ;;  %7176 = vmatpush.bf16.msra.mxu0 %v13249_v53  ;;  %v17328_v23 = vld [vmem:[#allocation8 + $0x25c] sm:$0xf0]  ;;  %v3764_v9 = vadd.f32 %v18579_v49, %v663_v27  ;;  %v4069_v49 = vmax.f32 %v18557_v59, 0.0 }
 0x335   :  { %v13696_v24 = vld [vmem:[#allocation8 + $0x440] sm:$0xf]  ;;  %v13441_v37 = vor.u32 %v17328_v23, %v13440_v6 }
 0x336   :  { %7214 = vmatpush.bf16.msra.mxu3 %v14049_v42  ;;  %7189 = vmatpush.bf16.msra.mxu1 %v13505_v54  ;;  %v17392_v26 = vld [vmem:[#allocation8 + $0x45c] sm:$0xf0]  ;;  %v3777_v60 = vadd.f32 %v18581_v44, %v3764_v9  ;;  %v18612_v59 = vpack.c.bf16 %v4069_v49, %v4069_v49 }
 0x337   :  { %v13952_v63 = vld [vmem:[#allocation8 + $0x640] sm:$0xf]  ;;  %v13697_v32 = vor.u32 %v17392_v26, %v13696_v24 }
 0x338   :  { %7202 = vmatpush.bf16.msra.mxu2 %v13761_v55  ;;  %v17456_v28 = vld [vmem:[#allocation8 + $0x65c] sm:$0xf0]  ;;  %7177 = vmatpush.bf16.msra.mxu0 %v13217_v12  ;;  %v4068_v55 = vmax.f32 %v18543_v52, 0.0  ;;  %v18606_v12 = vpack.c.bf16 %v4066_v50, %v4066_v50  ;;  %v18626_v50 = vpop.f32.mrf.mxu2 }
 0x339   :  { %v13152_v30 = vld [vmem:[#allocation8] sm:$0xf]  ;;  %v13953_v35 = vor.u32 %v17456_v28, %v13952_v63 }
 0x33a   :  { %7215 = vmatpush.bf16.msra.mxu3 %v14017_v62  ;;  %v17256_v31 = vld [vmem:[#allocation8 + $0x1c] sm:$0xf0]  ;;  %7190 = vmatpush.bf16.msra.mxu1 %v13473_v16  ;;  %v18610_v52 = vpack.c.bf16 %v4068_v55, %v4068_v55  ;;  %v3790_v16 = vadd.f32 %v18583_v2, %v3777_v60  ;;  %v18628_v55 = vpop.f32.mrf.mxu3 }
 0x33b   :  { %v13408_v8 = vld [vmem:[#allocation8 + $0x200] sm:$0xf]  ;;  %v13153_v42 = vor.u32 %v17256_v31, %v13152_v30 }
 0x33c   :  { %7203 = vmatpush.bf16.msra.mxu2 %v13729_v17  ;;  %v17320_v33 = vld [vmem:[#allocation8 + $0x21c] sm:$0xf0]  ;;  %7178 = vmatpush.bf16.msra.mxu0 %v13185_v29  ;;  %v3803_v26 = vadd.f32 %v18585_v5, %v3790_v16 }
 0x33d   :  { %v13664_v47 = vld [vmem:[#allocation8 + $0x400] sm:$0xf]  ;;  %v13409_v53 = vor.u32 %v17320_v33, %v13408_v8  ;;  %v18620_v33 = vpop.f32.mrf.mxu0 }
 0x33e   :  { %7216 = vmatpush.bf16.msra.mxu3 %v13985_v22  ;;  %v17384_v34 = vld [vmem:[#allocation8 + $0x41c] sm:$0xf0]  ;;  %7191 = vmatpush.bf16.msra.mxu1 %v13441_v37 }
 0x33f   :  { %v13920_v36 = vld [vmem:[#allocation8 + $0x600] sm:$0xf]  ;;  %v13665_v54 = vor.u32 %v17384_v34, %v13664_v47  ;;  %v3816_v47 = vadd.f32 %v18591_v7, %v3803_v26  ;;  %v17308_v26 = vld [vmem:[#allocation8 + $0x1c4] sm:$0xf] }
 0x340   :  { %v17448_v38 = vld [vmem:[#allocation8 + $0x61c] sm:$0xf0]  ;;  %7204 = vmatpush.bf16.msra.mxu2 %v13697_v32  ;;  %7179 = vmatpush.bf16.msra.mxu0 %v13153_v42 }
 0x341   :  { %v14400_v15 = vld [vmem:[#allocation8 + $0x9c0] sm:$0xf]  ;;  %v13921_v57 = vor.u32 %v17448_v38, %v13920_v36  ;;  %v18623_v38 = vpop.f32.mrf.mxu1 }
 0x342   :  { %v17568_v25 = vld [vmem:[#allocation8 + $0x9dc] sm:$0xf0]  ;;  %7217 = vmatpush.bf16.msra.mxu3 %v13953_v35  ;;  %7192 = vmatpush.bf16.msra.mxu1 %v13409_v53 }
 0x343   :  { %v14656_v39 = vld [vmem:[#allocation8 + $0xbc0] sm:$0xf]  ;;  %v14401_v58 = vor.u32 %v17568_v25, %v14400_v15  ;;  %7180 = vmatmul.bf16.vlgmr.msra.gmra.mxu0 %v18606_v12 }
 0x344   :  { %v17632_v43 = vld [vmem:[#allocation8 + $0xbdc] sm:$0xf0]  ;;  %7205 = vmatpush.bf16.msra.mxu2 %v13665_v54 }
 0x345   :  { %v14912_v56 = vld [vmem:[#allocation8 + $0xdc0] sm:$0xf]  ;;  %v14657_v62 = vor.u32 %v17632_v43, %v14656_v39  ;;  %7224 = vmatpush.bf16.msrb.mxu0 %v14401_v58  ;;  %7193 = vmatmul.bf16.vlgmr.msra.gmra.mxu1 %v18608_v14  ;;  %v3829_v39 = vadd.f32 %v18593_v41, %v3816_v47  ;;  %v13890_v47 = vld [vmem:[#allocation8 + $0x5e0] sm:$0xf0] }
 0x346   :  { %v17696_v46 = vld [vmem:[#allocation8 + $0xddc] sm:$0xf0]  ;;  %7218 = vmatpush.bf16.msra.mxu3 %v13921_v57  ;;  %v3869_v57 = vpop.f32.mrf.mxu0 }
 0x347   :  { %v14913_v0 = vor.u32 %v17696_v46, %v14912_v56  ;;  %v14368_v1 = vld [vmem:[#allocation8 + $0x980] sm:$0xf]  ;;  %7237 = vmatpush.bf16.msrb.mxu1 %v14657_v62  ;;  %7206 = vmatmul.bf16.vlgmr.msra.gmra.mxu2 %v18610_v52  ;;  %v3842_v58 = vadd.f32 %v18595_v61, %v3829_v39  ;;  %v17292_v57 = vld [vmem:[#allocation8 + $0x144] sm:$0xf] }
 0x348   :  { %v17560_v3 = vld [vmem:[#allocation8 + $0x99c] sm:$0xf0] }
 0x349   :  { %v14624_v48 = vld [vmem:[#allocation8 + $0xb80] sm:$0xf]  ;;  %v14369_v44 = vor.u32 %v17560_v3, %v14368_v1  ;;  %7250 = vmatpush.bf16.msrb.mxu2 %v14913_v0  ;;  %7219 = vmatmul.bf16.vlgmr.msra.gmra.mxu3 %v18612_v59  ;;  %v3882_v3 = vpop.f32.mrf.mxu1 }
 0x34a   :  { %v17624_v45 = vld [vmem:[#allocation8 + $0xb9c] sm:$0xf0]  ;;  %v17420_v3 = vld [vmem:[#allocation8 + $0x544] sm:$0xf] }
 0x34b   :  { %v14880_v10 = vld [vmem:[#allocation8 + $0xd80] sm:$0xf]  ;;  %v14625_v17 = vor.u32 %v17624_v45, %v14624_v48  ;;  %7225 = vmatpush.bf16.msrb.mxu0 %v14369_v44 }
 0x34c   :  { %v17688_v11 = vld [vmem:[#allocation8 + $0xd9c] sm:$0xf0] }
 0x34d   :  { %v14881_v18 = vor.u32 %v17688_v11, %v14880_v10  ;;  %v14336_v20 = vld [vmem:[#allocation8 + $0x940] sm:$0xf]  ;;  %7238 = vmatpush.bf16.msrb.mxu1 %v14625_v17  ;;  %v18631_v11 = vld [vmem:[#allocation7] sm:$0xff] }
 0x34e   :  { %v17552_v6 = vld [vmem:[#allocation8 + $0x95c] sm:$0xf0]  ;;  %v664_v44 = vperm.slane %v18631_v11, 6 }
 0x34f   :  { %v14592_v21 = vld [vmem:[#allocation8 + $0xb40] sm:$0xf]  ;;  %v14337_v2 = vor.u32 %v17552_v6, %v14336_v20  ;;  %7251 = vmatpush.bf16.msrb.mxu2 %v14881_v18  ;;  %v3855_v20 = vadd.f32 %v18597_v4, %v3842_v58  ;;  %v17356_v58 = vld [vmem:[#allocation8 + $0x344] sm:$0xf] }
 0x350   :  { %v17616_v22 = vld [vmem:[#allocation8 + $0xb5c] sm:$0xf0] }
 0x351   :  { %v14848_v23 = vld [vmem:[#allocation8 + $0xd40] sm:$0xf]  ;;  %v14593_v27 = vor.u32 %v17616_v22, %v14592_v21  ;;  %7226 = vmatpush.bf16.msrb.mxu0 %v14337_v2  ;;  %v3895_v2 = vpop.f32.mrf.mxu2 }
 0x352   :  { %v17680_v24 = vld [vmem:[#allocation8 + $0xd5c] sm:$0xf0] }
 0x353   :  { %v14849_v63 = vor.u32 %v17680_v24, %v14848_v23  ;;  %v14304_v28 = vld [vmem:[#allocation8 + $0x900] sm:$0xf]  ;;  %7239 = vmatpush.bf16.msrb.mxu1 %v14593_v27  ;;  %v3908_v27 = vpop.f32.mrf.mxu3 }
 0x354   :  { %v17544_v29 = vld [vmem:[#allocation8 + $0x91c] sm:$0xf0]  ;;  %v3919_v27 = vpop.f32.mrf.mxu0 }
 0x355   :  { %v14560_v30 = vld [vmem:[#allocation8 + $0xb00] sm:$0xf]  ;;  %v14305_v8 = vor.u32 %v17544_v29, %v14304_v28  ;;  %7252 = vmatpush.bf16.msrb.mxu2 %v14849_v63  ;;  %v3868_v29 = vadd.f32 %v18620_v33, %v664_v44  ;;  %v17364_v33 = vld [vmem:[#allocation8 + $0x384] sm:$0xf] }
 0x356   :  { %v17608_v31 = vld [vmem:[#allocation8 + $0xb1c] sm:$0xf0] }
 0x357   :  { %v14816_v37 = vld [vmem:[#allocation8 + $0xd00] sm:$0xf]  ;;  %v14561_v40 = vor.u32 %v17608_v31, %v14560_v30  ;;  %7227 = vmatpush.bf16.msrb.mxu0 %v14305_v8  ;;  %v13378_v30 = vld [vmem:[#allocation8 + $0x1e0] sm:$0xf0] }
 0x358   :  { %v17672_v32 = vld [vmem:[#allocation8 + $0xd1c] sm:$0xf0]  ;;  %v17372_v31 = vld [vmem:[#allocation8 + $0x3c4] sm:$0xf] }
 0x359   :  { %v14817_v5 = vor.u32 %v17672_v32, %v14816_v37  ;;  %v14272_v35 = vld [vmem:[#allocation8 + $0x8c0] sm:$0xf]  ;;  %7240 = vmatpush.bf16.msrb.mxu1 %v14561_v40  ;;  %v13634_v37 = vld [vmem:[#allocation8 + $0x3e0] sm:$0xf0]  ;;  %v4070_v40 = vmax.f32 %v18573_v13, 0.0 }
 0x35a   :  { %v17536_v34 = vld [vmem:[#allocation8 + $0x8dc] sm:$0xf0]  ;;  %v17436_v8 = vld [vmem:[#allocation8 + $0x5c4] sm:$0xf] }
 0x35b   :  { %v14528_v36 = vld [vmem:[#allocation8 + $0xac0] sm:$0xf]  ;;  %v14273_v25 = vor.u32 %v17536_v34, %v14272_v35  ;;  %7253 = vmatpush.bf16.msrb.mxu2 %v14817_v5  ;;  %v4071_v5 = vmax.f32 %v3855_v20, 0.0  ;;  %v13893_v39 = vor.u32 %v17436_v8, %v13890_v47  ;;  %v13858_v13 = vld [vmem:[#allocation8 + $0x5a0] sm:$0xf0] }
 0x35c   :  { %v17600_v19 = vld [vmem:[#allocation8 + $0xadc] sm:$0xf0]  ;;  %v13282_v20 = vld [vmem:[#allocation8 + $0x120] sm:$0xf0] }
 0x35d   :  { %v14784_v9 = vld [vmem:[#allocation8 + $0xcc0] sm:$0xf]  ;;  %v14529_v42 = vor.u32 %v17600_v19, %v14528_v36  ;;  %7228 = vmatpush.bf16.msrb.mxu0 %v14273_v25  ;;  %v13381_v36 = vor.u32 %v17308_v26, %v13378_v30  ;;  %v13637_v19 = vor.u32 %v17372_v31, %v13634_v37  ;;  %v3881_v25 = vadd.f32 %v18623_v38, %v3868_v29  ;;  %v13314_v38 = vld [vmem:[#allocation8 + $0x160] sm:$0xf0]  ;;  %v3932_v31 = vpop.f32.mrf.mxu1 }
 0x35e   :  { %v17664_v15 = vld [vmem:[#allocation8 + $0xcdc] sm:$0xf0]  ;;  %v13250_v37 = vld [vmem:[#allocation8 + $0xe0] sm:$0xf0] }
 0x35f   :  { %v14785_v7 = vor.u32 %v17664_v15, %v14784_v9  ;;  %v14240_v43 = vld [vmem:[#allocation8 + $0x880] sm:$0xf]  ;;  %7241 = vmatpush.bf16.msrb.mxu1 %v14529_v42  ;;  %v17300_v9 = vld [vmem:[#allocation8 + $0x184] sm:$0xf] }
 0x360   :  { %v17528_v56 = vld [vmem:[#allocation8 + $0x89c] sm:$0xf0]  ;;  %v13346_v15 = vld [vmem:[#allocation8 + $0x1a0] sm:$0xf0] }
 0x361   :  { %v14496_v46 = vld [vmem:[#allocation8 + $0xa80] sm:$0xf]  ;;  %v14241_v49 = vor.u32 %v17528_v56, %v14240_v43  ;;  %7254 = vmatpush.bf16.msrb.mxu2 %v14785_v7  ;;  %v13602_v42 = vld [vmem:[#allocation8 + $0x3a0] sm:$0xf0] }
 0x362   :  { %v17592_v51 = vld [vmem:[#allocation8 + $0xa9c] sm:$0xf0]  ;;  %v17428_v56 = vld [vmem:[#allocation8 + $0x584] sm:$0xf] }
 0x363   :  { %v14752_v53 = vld [vmem:[#allocation8 + $0xc80] sm:$0xf]  ;;  %v14497_v41 = vor.u32 %v17592_v51, %v14496_v46  ;;  %7229 = vmatpush.bf16.msrb.mxu0 %v14241_v49  ;;  %v18638_v51 = vpack.c.bf16 %v4070_v40, %v4070_v40  ;;  %v13605_v49 = vor.u32 %v17364_v33, %v13602_v42  ;;  %v17404_v8 = vld [vmem:[#allocation8 + $0x4c4] sm:$0xf]  ;;  %v3945_v33 = vpop.f32.mrf.mxu2 }
 0x364   :  { %v17656_v54 = vld [vmem:[#allocation8 + $0xc9c] sm:$0xf0]  ;;  %v13762_v47 = vld [vmem:[#allocation8 + $0x4e0] sm:$0xf0] }
 0x365   :  { %v14753_v60 = vor.u32 %v17656_v54, %v14752_v53  ;;  %v14208_v62 = vld [vmem:[#allocation8 + $0x840] sm:$0xf]  ;;  %7242 = vmatpush.bf16.msrb.mxu1 %v14497_v41  ;;  %v18640_v53 = vpack.c.bf16 %v4071_v5, %v4071_v5  ;;  %v13349_v54 = vor.u32 %v17300_v9, %v13346_v15  ;;  %v3894_v41 = vadd.f32 %v18626_v50, %v3881_v25  ;;  %v13218_v25 = vld [vmem:[#allocation8 + $0xa0] sm:$0xf0] }
 0x366   :  { %v17520_v0 = vld [vmem:[#allocation8 + $0x85c] sm:$0xf0]  ;;  %v13765_v15 = vor.u32 %v17404_v8, %v13762_v47  ;;  %v13474_v42 = vld [vmem:[#allocation8 + $0x2a0] sm:$0xf0] }
 0x367   :  { %v14464_v1 = vld [vmem:[#allocation8 + $0xa40] sm:$0xf]  ;;  %v14209_v16 = vor.u32 %v17520_v0, %v14208_v62  ;;  %7255 = vmatpush.bf16.msrb.mxu2 %v14753_v60  ;;  %v13861_v60 = vor.u32 %v17428_v56, %v13858_v13  ;;  %v13570_v62 = vld [vmem:[#allocation8 + $0x360] sm:$0xf0]  ;;  %v3907_v50 = vadd.f32 %v18628_v55, %v3894_v41 }
 0x368   :  { %v17584_v48 = vld [vmem:[#allocation8 + $0xa5c] sm:$0xf0]  ;;  %v13573_v44 = vor.u32 %v17356_v58, %v13570_v62  ;;  %v17396_v56 = vld [vmem:[#allocation8 + $0x484] sm:$0xf]  ;;  %v3921_v58 = vpop.f32.mrf.mxu0 }
 0x369   :  { %v14720_v45 = vld [vmem:[#allocation8 + $0xc40] sm:$0xf]  ;;  %v14465_v6 = vor.u32 %v17584_v48, %v14464_v1  ;;  %7230 = vmatpush.bf16.msrb.mxu0 %v14209_v16  ;;  %v13826_v48 = vld [vmem:[#allocation8 + $0x560] sm:$0xf0]  ;;  %v3920_v55 = vadd.f32 %v3919_v27, %v3907_v50 }
 0x36a   :  { %v17648_v10 = vld [vmem:[#allocation8 + $0xc5c] sm:$0xf0]  ;;  %v17284_v16 = vld [vmem:[#allocation8 + $0x104] sm:$0xf] }
 0x36b   :  { %v14176_v17 = vld [vmem:[#allocation8 + $0x800] sm:$0xf]  ;;  %v14721_v21 = vor.u32 %v17648_v10, %v14720_v45  ;;  %7243 = vmatpush.bf16.msrb.mxu1 %v14465_v6  ;;  %v13317_v10 = vor.u32 %v17292_v57, %v13314_v38  ;;  %v17348_v6 = vld [vmem:[#allocation8 + $0x304] sm:$0xf]  ;;  %v13285_v2 = vor.u32 %v17284_v16, %v13282_v20  ;;  %v3933_v5 = vadd.f32 %v3932_v31, %v3920_v55  ;;  %v3947_v27 = vpop.f32.mrf.mxu2 }
 0x36c   :  { %v17512_v18 = vld [vmem:[#allocation8 + $0x81c] sm:$0xf0]  ;;  %v13730_v13 = vld [vmem:[#allocation8 + $0x4a0] sm:$0xf0] }
 0x36d   :  { %v14432_v61 = vld [vmem:[#allocation8 + $0xa00] sm:$0xf]  ;;  %v14177_v4 = vor.u32 %v17512_v18, %v14176_v17  ;;  %7256 = vmatpush.bf16.msrb.mxu2 %v14721_v21  ;;  %v13538_v21 = vld [vmem:[#allocation8 + $0x320] sm:$0xf0]  ;;  %v13733_v62 = vor.u32 %v17396_v56, %v13730_v13 }
 0x36e   :  { %v17576_v22 = vld [vmem:[#allocation8 + $0xa1c] sm:$0xf0]  ;;  %v13541_v26 = vor.u32 %v17348_v6, %v13538_v21  ;;  %v17260_v38 = vld [vmem:[#allocation8 + $0x44] sm:$0xf] }
 0x36f   :  { %v14688_v23 = vld [vmem:[#allocation8 + $0xc00] sm:$0xf]  ;;  %v14433_v35 = vor.u32 %v17576_v22, %v14432_v61  ;;  %7231 = vmatpush.bf16.msrb.mxu0 %v14177_v4  ;;  %v13829_v61 = vor.u32 %v17420_v3, %v13826_v48  ;;  %v17412_v22 = vld [vmem:[#allocation8 + $0x504] sm:$0xf]  ;;  %v3934_v48 = vpop.f32.mrf.mxu1 }
 0x370   :  { %v17640_v24 = vld [vmem:[#allocation8 + $0xc1c] sm:$0xf0]  ;;  %v13506_v4 = vld [vmem:[#allocation8 + $0x2e0] sm:$0xf0] }
 0x371   :  { %v15168_v63 = vld [vmem:[#allocation8 + $0xfc0] sm:$0xf]  ;;  %v14689_v34 = vor.u32 %v17640_v24, %v14688_v23  ;;  %7244 = vmatpush.bf16.msrb.mxu1 %v14433_v35  ;;  %v13794_v23 = vld [vmem:[#allocation8 + $0x520] sm:$0xf0] }
 0x372   :  { %v17760_v28 = vld [vmem:[#allocation8 + $0xfdc] sm:$0xf0]  ;;  %7232 = vmatmul.bf16.vlgmr.msrb.gmra.mxu0 %v18638_v51  ;;  %v13797_v30 = vor.u32 %v17412_v22, %v13794_v23  ;;  %v13442_v3 = vld [vmem:[#allocation8 + $0x260] sm:$0xf0] }
 0x373   :  { %v15169_v32 = vor.u32 %v17760_v28, %v15168_v63  ;;  %v15136_v7 = vld [vmem:[#allocation8 + $0xf80] sm:$0xf]  ;;  %7257 = vmatpush.bf16.msrb.mxu2 %v14689_v34  ;;  %7276 = vmatpush.bf16.msra.mxu0 %v13381_v36  ;;  %v17276_v63 = vld [vmem:[#allocation8 + $0xc4] sm:$0xf] }
 0x374   :  { %v17752_v43 = vld [vmem:[#allocation8 + $0xf9c] sm:$0xf0]  ;;  %7245 = vmatmul.bf16.vlgmr.msrb.gmra.mxu1 %v18640_v53  ;;  %v13253_v35 = vor.u32 %v17276_v63, %v13250_v37  ;;  %v17268_v36 = vld [vmem:[#allocation8 + $0x84] sm:$0xf] }
 0x375   :  { %7263 = vmatpush.bf16.msrb.mxu3 %v15169_v32  ;;  %v15137_v46 = vor.u32 %v17752_v43, %v15136_v7  ;;  %7289 = vmatpush.bf16.msra.mxu1 %v13637_v19  ;;  %v15104_v0 = vld [vmem:[#allocation8 + $0xf40] sm:$0xf]  ;;  %v17340_v32 = vld [vmem:[#allocation8 + $0x2c4] sm:$0xf]  ;;  %v3946_v7 = vadd.f32 %v3945_v33, %v3933_v5  ;;  %v3958_v43 = vpop.f32.mrf.mxu3 }
 0x376   :  { %v17744_v1 = vld [vmem:[#allocation8 + $0xf5c] sm:$0xf0]  ;;  %v13509_v34 = vor.u32 %v17340_v32, %v13506_v4  ;;  %v17316_v50 = vld [vmem:[#allocation8 + $0x204] sm:$0xf] }
 0x377   :  { %7302 = vmatpush.bf16.msra.mxu2 %v13893_v39  ;;  %v15105_v45 = vor.u32 %v17744_v1, %v15104_v0  ;;  %7277 = vmatpush.bf16.msra.mxu0 %v13349_v54  ;;  %v15072_v17 = vld [vmem:[#allocation8 + $0xf00] sm:$0xf]  ;;  %v17332_v39 = vld [vmem:[#allocation8 + $0x284] sm:$0xf]  ;;  %v3959_v54 = vadd.f32 %v3958_v43, %v3946_v7 }
 0x378   :  { %v17736_v18 = vld [vmem:[#allocation8 + $0xf1c] sm:$0xf0]  ;;  %v13477_v57 = vor.u32 %v17332_v39, %v13474_v42  ;;  %v13186_v0 = vld [vmem:[#allocation8 + $0x60] sm:$0xf0] }
 0x379   :  { %7264 = vmatpush.bf16.msrb.mxu3 %v15137_v46  ;;  %7290 = vmatpush.bf16.msra.mxu1 %v13605_v49  ;;  %v15073_v24 = vor.u32 %v17736_v18, %v15072_v17  ;;  %v15040_v28 = vld [vmem:[#allocation8 + $0xec0] sm:$0xf]  ;;  %v13221_v49 = vor.u32 %v17268_v36, %v13218_v25  ;;  %v17324_v1 = vld [vmem:[#allocation8 + $0x244] sm:$0xf]  ;;  %v13189_v6 = vor.u32 %v17260_v38, %v13186_v0 }
 0x37a   :  { %v17728_v29 = vld [vmem:[#allocation8 + $0xedc] sm:$0xf0]  ;;  %v17252_v17 = vld [vmem:[#allocation8 + $0x4] sm:$0xf]  ;;  %v13445_v21 = vor.u32 %v17324_v1, %v13442_v3 }
 0x37b   :  { %7303 = vmatpush.bf16.msra.mxu2 %v13861_v60  ;;  %7278 = vmatpush.bf16.msra.mxu0 %v13317_v10  ;;  %v15041_v40 = vor.u32 %v17728_v29, %v15040_v28  ;;  %v15008_v19 = vld [vmem:[#allocation8 + $0xe80] sm:$0xf]  ;;  %v17388_v10 = vld [vmem:[#allocation8 + $0x444] sm:$0xf] }
 0x37c   :  { %v17720_v9 = vld [vmem:[#allocation8 + $0xe9c] sm:$0xf0]  ;;  %v13154_v18 = vld [vmem:[#allocation8 + $0x20] sm:$0xf0] }
 0x37d   :  { %7265 = vmatpush.bf16.msrb.mxu3 %v15105_v45  ;;  %7291 = vmatpush.bf16.msra.mxu1 %v13573_v44  ;;  %v15009_v46 = vor.u32 %v17720_v9, %v15008_v19  ;;  %v14976_v41 = vld [vmem:[#allocation8 + $0xe40] sm:$0xf]  ;;  %v4072_v45 = vmax.f32 %v3959_v54, 0.0  ;;  %v13698_v44 = vld [vmem:[#allocation8 + $0x460] sm:$0xf0]  ;;  %v3960_v31 = vpop.f32.mrf.mxu3 }
 0x37e   :  { %v17712_v60 = vld [vmem:[#allocation8 + $0xe5c] sm:$0xf0]  ;;  %v17380_v22 = vld [vmem:[#allocation8 + $0x404] sm:$0xf] }
 0x37f   :  { %7304 = vmatpush.bf16.msra.mxu2 %v13829_v61  ;;  %7279 = vmatpush.bf16.msra.mxu0 %v13285_v2  ;;  %v14977_v16 = vor.u32 %v17712_v60, %v14976_v41  ;;  %v13410_v61 = vld [vmem:[#allocation8 + $0x220] sm:$0xf0]  ;;  %v18646_v20 = vpack.c.bf16 %v4072_v45, %v4072_v45  ;;  %v14944_v23 = vld [vmem:[#allocation8 + $0xe00] sm:$0xf]  ;;  %v13701_v2 = vor.u32 %v17388_v10, %v13698_v44 }
 0x380   :  { %v17500_v63 = vld [vmem:[#allocation8 + $0x7c4] sm:$0xf]  ;;  %v13413_v5 = vor.u32 %v17316_v50, %v13410_v61 }
 0x381   :  { %7266 = vmatpush.bf16.msrb.mxu3 %v15073_v24  ;;  %7292 = vmatpush.bf16.msra.mxu1 %v13541_v26  ;;  %v17704_v24 = vld [vmem:[#allocation8 + $0xe1c] sm:$0xf0]  ;;  %v13666_v26 = vld [vmem:[#allocation8 + $0x420] sm:$0xf0] }
 0x382   :  { %v14146_v28 = vld [vmem:[#allocation8 + $0x7e0] sm:$0xf0]  ;;  %7258 = vmatmul.bf16.vlgmr.msrb.gmra.mxu2 %v18646_v20  ;;  %v14945_v37 = vor.u32 %v17704_v24, %v14944_v23 }
 0x383   :  { %7305 = vmatpush.bf16.msra.mxu2 %v13797_v30  ;;  %7280 = vmatpush.bf16.msra.mxu0 %v13253_v35  ;;  %v17564_v29 = vld [vmem:[#allocation8 + $0x9c4] sm:$0xf]  ;;  %v14149_v47 = vor.u32 %v17500_v63, %v14146_v28  ;;  %v13669_v35 = vor.u32 %v17380_v22, %v13666_v26 }
 0x384   :  { %v14402_v30 = vld [vmem:[#allocation8 + $0x9e0] sm:$0xf0] }
 0x385   :  { %7267 = vmatpush.bf16.msrb.mxu3 %v15041_v40  ;;  %7293 = vmatpush.bf16.msra.mxu1 %v13509_v34  ;;  %v17628_v55 = vld [vmem:[#allocation8 + $0xbc4] sm:$0xf]  ;;  %v13157_v40 = vor.u32 %v17252_v17, %v13154_v18  ;;  %v14405_v34 = vor.u32 %v17564_v29, %v14402_v30  ;;  %v18651_v29 = vpop.f32.mrf.mxu0 }
 0x386   :  { %v14658_v32 = vld [vmem:[#allocation8 + $0xbe0] sm:$0xf0] }
 0x387   :  { %7306 = vmatpush.bf16.msra.mxu2 %v13765_v15  ;;  %7281 = vmatpush.bf16.msra.mxu0 %v13221_v49  ;;  %v17692_v4 = vld [vmem:[#allocation8 + $0xdc4] sm:$0xf]  ;;  %v14661_v9 = vor.u32 %v17628_v55, %v14658_v32  ;;  %v18654_v55 = vpop.f32.mrf.mxu1 }
 0x388   :  { %v14914_v8 = vld [vmem:[#allocation8 + $0xde0] sm:$0xf0] }
 0x389   :  { %7268 = vmatpush.bf16.msrb.mxu3 %v15009_v46  ;;  %7294 = vmatpush.bf16.msra.mxu1 %v13477_v57  ;;  %v17556_v36 = vld [vmem:[#allocation8 + $0x984] sm:$0xf]  ;;  %v14917_v15 = vor.u32 %v17692_v4, %v14914_v8 }
 0x38a   :  { %v14370_v19 = vld [vmem:[#allocation8 + $0x9a0] sm:$0xf0] }
 0x38b   :  { %7307 = vmatpush.bf16.msra.mxu2 %v13733_v62  ;;  %7282 = vmatpush.bf16.msra.mxu0 %v13189_v6  ;;  %v17620_v33 = vld [vmem:[#allocation8 + $0xb84] sm:$0xf]  ;;  %v14373_v13 = vor.u32 %v17556_v36, %v14370_v19 }
 0x38c   :  { %v17492_v25 = vld [vmem:[#allocation8 + $0x784] sm:$0xf] }
 0x38d   :  { %7269 = vmatpush.bf16.msrb.mxu3 %v14977_v16  ;;  %7295 = vmatpush.bf16.msra.mxu1 %v13445_v21  ;;  %v14114_v39 = vld [vmem:[#allocation8 + $0x7a0] sm:$0xf0] }
 0x38e   :  { %v14626_v42 = vld [vmem:[#allocation8 + $0xba0] sm:$0xf0]  ;;  %v14117_v56 = vor.u32 %v17492_v25, %v14114_v39  ;;  %v18658_v25 = vpop.f32.mrf.mxu3 }
 0x38f   :  { %7308 = vmatpush.bf16.msra.mxu2 %v13701_v2  ;;  %v17684_v7 = vld [vmem:[#allocation8 + $0xd84] sm:$0xf]  ;;  %7283 = vmatpush.bf16.msra.mxu0 %v13157_v40  ;;  %v14629_v49 = vor.u32 %v17620_v33, %v14626_v42  ;;  %v18656_v33 = vpop.f32.mrf.mxu2 }
 0x390   :  { %v14882_v43 = vld [vmem:[#allocation8 + $0xda0] sm:$0xf0] }
 0x391   :  { %7270 = vmatpush.bf16.msrb.mxu3 %v14945_v37  ;;  %7296 = vmatpush.bf16.msra.mxu1 %v13413_v5  ;;  %v17548_v46 = vld [vmem:[#allocation8 + $0x944] sm:$0xf]  ;;  %v14885_v57 = vor.u32 %v17684_v7, %v14882_v43 }
 0x392   :  { %v14338_v54 = vld [vmem:[#allocation8 + $0x960] sm:$0xf0]  ;;  %7284 = vmatmul.bf16.vlgmr.msra.gmra.mxu0 %v18606_v12 }
 0x393   :  { %7309 = vmatpush.bf16.msra.mxu2 %v13669_v35  ;;  %7328 = vmatpush.bf16.msrb.mxu0 %v14405_v34  ;;  %v17612_v38 = vld [vmem:[#allocation8 + $0xb44] sm:$0xf]  ;;  %v14341_v3 = vor.u32 %v17548_v46, %v14338_v54 }
 0x394   :  { %v14594_v58 = vld [vmem:[#allocation8 + $0xb60] sm:$0xf0]  ;;  %7297 = vmatmul.bf16.vlgmr.msra.gmra.mxu1 %v18608_v14 }
 0x395   :  { %7315 = vmatpush.bf16.msra.mxu3 %v14149_v47  ;;  %7341 = vmatpush.bf16.msrb.mxu1 %v14661_v9  ;;  %v17676_v41 = vld [vmem:[#allocation8 + $0xd44] sm:$0xf]  ;;  %v14597_v10 = vor.u32 %v17612_v38, %v14594_v58  ;;  %v3986_v58 = vpop.f32.mrf.mxu1 }
 0x396   :  { %v14850_v60 = vld [vmem:[#allocation8 + $0xd60] sm:$0xf0]  ;;  %7310 = vmatmul.bf16.vlgmr.msra.gmra.mxu2 %v18610_v52  ;;  %v17353_v58 = vld [vmem:[#allocation8 + $0x324] sm:$0xf0] }
 0x397   :  { %7354 = vmatpush.bf16.msrb.mxu2 %v14917_v15  ;;  %v17484_v62 = vld [vmem:[#allocation8 + $0x744] sm:$0xf]  ;;  %7329 = vmatpush.bf16.msrb.mxu0 %v14373_v13  ;;  %v14853_v44 = vor.u32 %v17676_v41, %v14850_v60 }
 0x398   :  { %v14082_v0 = vld [vmem:[#allocation8 + $0x760] sm:$0xf0] }
 0x399   :  { %7316 = vmatpush.bf16.msra.mxu3 %v14117_v56  ;;  %v14085_v1 = vor.u32 %v17484_v62, %v14082_v0  ;;  %v17540_v48 = vld [vmem:[#allocation8 + $0x904] sm:$0xf]  ;;  %7342 = vmatpush.bf16.msrb.mxu1 %v14629_v49  ;;  %v665_v62 = vperm.slane %v18631_v11, 7  ;;  %v13640_v11 = vld [vmem:[#allocation8 + $0x3c8] sm:$0xf] }
 0x39a   :  { %v14306_v45 = vld [vmem:[#allocation8 + $0x920] sm:$0xf0] }
 0x39b   :  { %7355 = vmatpush.bf16.msrb.mxu2 %v14885_v57  ;;  %v17604_v16 = vld [vmem:[#allocation8 + $0xb04] sm:$0xf]  ;;  %7330 = vmatpush.bf16.msrb.mxu0 %v14341_v3  ;;  %v14309_v22 = vor.u32 %v17540_v48, %v14306_v45  ;;  %v3973_v57 = vpop.f32.mrf.mxu0 }
 0x39c   :  { %v17476_v17 = vld [vmem:[#allocation8 + $0x704] sm:$0xf]  ;;  %v17289_v57 = vld [vmem:[#allocation8 + $0x124] sm:$0xf0] }
 0x39d   :  { %v14050_v18 = vld [vmem:[#allocation8 + $0x720] sm:$0xf0]  ;;  %7317 = vmatpush.bf16.msra.mxu3 %v14085_v1  ;;  %7343 = vmatpush.bf16.msrb.mxu1 %v14597_v10 }
 0x39e   :  { %v14562_v50 = vld [vmem:[#allocation8 + $0xb20] sm:$0xf0]  ;;  %v14053_v21 = vor.u32 %v17476_v17, %v14050_v18 }
 0x39f   :  { %v17668_v61 = vld [vmem:[#allocation8 + $0xd04] sm:$0xf]  ;;  %7356 = vmatpush.bf16.msrb.mxu2 %v14853_v44  ;;  %v14565_v2 = vor.u32 %v17604_v16, %v14562_v50  ;;  %7331 = vmatpush.bf16.msrb.mxu0 %v14309_v22  ;;  %v13384_v50 = vld [vmem:[#allocation8 + $0x1c8] sm:$0xf] }
 0x3a0   :  { %v14818_v6 = vld [vmem:[#allocation8 + $0xd20] sm:$0xf0]  ;;  %v17313_v22 = vld [vmem:[#allocation8 + $0x1e4] sm:$0xf0] }
 0x3a1   :  { %v17532_v23 = vld [vmem:[#allocation8 + $0x8c4] sm:$0xf]  ;;  %v14821_v26 = vor.u32 %v17668_v61, %v14818_v6  ;;  %7318 = vmatpush.bf16.msra.mxu3 %v14053_v21  ;;  %7344 = vmatpush.bf16.msrb.mxu1 %v14565_v2  ;;  %v3999_v61 = vpop.f32.mrf.mxu2 }
 0x3a2   :  { %v14274_v24 = vld [vmem:[#allocation8 + $0x8e0] sm:$0xf0] }
 0x3a3   :  { %v17596_v27 = vld [vmem:[#allocation8 + $0xac4] sm:$0xf]  ;;  %v14277_v4 = vor.u32 %v17532_v23, %v14274_v24  ;;  %7357 = vmatpush.bf16.msrb.mxu2 %v14821_v26  ;;  %v17377_v23 = vld [vmem:[#allocation8 + $0x3e4] sm:$0xf0]  ;;  %v4012_v24 = vpop.f32.mrf.mxu3 }
 0x3a4   :  { %v14530_v63 = vld [vmem:[#allocation8 + $0xae0] sm:$0xf0] }
 0x3a5   :  { %v17660_v28 = vld [vmem:[#allocation8 + $0xcc4] sm:$0xf]  ;;  %v14533_v40 = vor.u32 %v17596_v27, %v14530_v63  ;;  %7332 = vmatpush.bf16.msrb.mxu0 %v14277_v4  ;;  %v13896_v27 = vld [vmem:[#allocation8 + $0x5c8] sm:$0xf] }
 0x3a6   :  { %v14786_v30 = vld [vmem:[#allocation8 + $0xce0] sm:$0xf0]  ;;  %v17441_v63 = vld [vmem:[#allocation8 + $0x5e4] sm:$0xf0] }
 0x3a7   :  { %v17468_v31 = vld [vmem:[#allocation8 + $0x6c4] sm:$0xf]  ;;  %v14789_v5 = vor.u32 %v17660_v28, %v14786_v30  ;;  %7345 = vmatpush.bf16.msrb.mxu1 %v14533_v40  ;;  %v13352_v4 = vld [vmem:[#allocation8 + $0x188] sm:$0xf] }
 0x3a8   :  { %v14018_v37 = vld [vmem:[#allocation8 + $0x6e0] sm:$0xf0]  ;;  %v13608_v40 = vld [vmem:[#allocation8 + $0x388] sm:$0xf] }
 0x3a9   :  { %v14021_v32 = vor.u32 %v17468_v31, %v14018_v37  ;;  %v17524_v8 = vld [vmem:[#allocation8 + $0x884] sm:$0xf]  ;;  %7358 = vmatpush.bf16.msrb.mxu2 %v14789_v5  ;;  %v3972_v31 = vadd.f32 %v18651_v29, %v665_v62  ;;  %v13385_v37 = vor.u32 %v17313_v22, %v13384_v50  ;;  %v17369_v5 = vld [vmem:[#allocation8 + $0x3a4] sm:$0xf0] }
 0x3aa   :  { %v14242_v47 = vld [vmem:[#allocation8 + $0x8a0] sm:$0xf0]  ;;  %v13320_v29 = vld [vmem:[#allocation8 + $0x148] sm:$0xf] }
 0x3ab   :  { %v17588_v35 = vld [vmem:[#allocation8 + $0xa84] sm:$0xf]  ;;  %7319 = vmatpush.bf16.msra.mxu3 %v14021_v32  ;;  %v14245_v42 = vor.u32 %v17524_v8, %v14242_v47  ;;  %v13641_v32 = vor.u32 %v17377_v23, %v13640_v11  ;;  %v13897_v8 = vor.u32 %v17441_v63, %v13896_v27  ;;  %v17305_v47 = vld [vmem:[#allocation8 + $0x1a4] sm:$0xf0]  ;;  %v4049_v27 = vpop.f32.mrf.mxu2 }
 0x3ac   :  { %v17460_v34 = vld [vmem:[#allocation8 + $0x684] sm:$0xf]  ;;  %v17409_v50 = vld [vmem:[#allocation8 + $0x4e4] sm:$0xf0] }
 0x3ad   :  { %v13986_v36 = vld [vmem:[#allocation8 + $0x6a0] sm:$0xf0]  ;;  %7333 = vmatpush.bf16.msrb.mxu0 %v14245_v42  ;;  %v13576_v42 = vld [vmem:[#allocation8 + $0x348] sm:$0xf] }
 0x3ae   :  { %v14498_v19 = vld [vmem:[#allocation8 + $0xaa0] sm:$0xf0]  ;;  %v13989_v39 = vor.u32 %v17460_v34, %v13986_v36  ;;  %v17433_v34 = vld [vmem:[#allocation8 + $0x5a4] sm:$0xf0]  ;;  %v3985_v36 = vadd.f32 %v18654_v55, %v3972_v31 }
 0x3af   :  { %v17652_v9 = vld [vmem:[#allocation8 + $0xc84] sm:$0xf]  ;;  %v14501_v56 = vor.u32 %v17588_v35, %v14498_v19  ;;  %v13864_v35 = vld [vmem:[#allocation8 + $0x588] sm:$0xf]  ;;  %v13353_v19 = vor.u32 %v17305_v47, %v13352_v4 }
 0x3b0   :  { %v14754_v15 = vld [vmem:[#allocation8 + $0xca0] sm:$0xf0]  ;;  %7320 = vmatpush.bf16.msra.mxu3 %v13989_v39  ;;  %v17297_v39 = vld [vmem:[#allocation8 + $0x164] sm:$0xf0]  ;;  %v3998_v55 = vadd.f32 %v18656_v33, %v3985_v36 }
 0x3b1   :  { %v17516_v7 = vld [vmem:[#allocation8 + $0x844] sm:$0xf]  ;;  %v14757_v13 = vor.u32 %v17652_v9, %v14754_v15  ;;  %7346 = vmatpush.bf16.msrb.mxu1 %v14501_v56  ;;  %v13609_v9 = vor.u32 %v17369_v5, %v13608_v40  ;;  %v13865_v15 = vor.u32 %v17433_v34, %v13864_v35  ;;  %v17425_v56 = vld [vmem:[#allocation8 + $0x564] sm:$0xf0] }
 0x3b2   :  { %v14210_v43 = vld [vmem:[#allocation8 + $0x860] sm:$0xf0]  ;;  %v4011_v62 = vadd.f32 %v18658_v25, %v3998_v55  ;;  %v13256_v33 = vld [vmem:[#allocation8 + $0xc8] sm:$0xf] }
 0x3b3   :  { %v17580_v46 = vld [vmem:[#allocation8 + $0xa44] sm:$0xf]  ;;  %v14213_v1 = vor.u32 %v17516_v7, %v14210_v43  ;;  %7359 = vmatpush.bf16.msrb.mxu2 %v14757_v13  ;;  %v17361_v7 = vld [vmem:[#allocation8 + $0x364] sm:$0xf0]  ;;  %v13321_v13 = vor.u32 %v17297_v39, %v13320_v29 }
 0x3b4   :  { %v14466_v54 = vld [vmem:[#allocation8 + $0xa60] sm:$0xf0]  ;;  %v13832_v43 = vld [vmem:[#allocation8 + $0x548] sm:$0xf] }
 0x3b5   :  { %v17644_v49 = vld [vmem:[#allocation8 + $0xc44] sm:$0xf]  ;;  %v14469_v10 = vor.u32 %v17580_v46, %v14466_v54  ;;  %7334 = vmatpush.bf16.msrb.mxu0 %v14213_v1  ;;  %v13577_v46 = vor.u32 %v17361_v7, %v13576_v42  ;;  %v13288_v54 = vld [vmem:[#allocation8 + $0x108] sm:$0xf] }
 0x3b6   :  { %v14722_v38 = vld [vmem:[#allocation8 + $0xc60] sm:$0xf0]  ;;  %v13289_v1 = vor.u32 %v17289_v57, %v13288_v54  ;;  %v13224_v25 = vld [vmem:[#allocation8 + $0x88] sm:$0xf] }
 0x3b7   :  { %v17452_v41 = vld [vmem:[#allocation8 + $0x644] sm:$0xf]  ;;  %v14725_v44 = vor.u32 %v17644_v49, %v14722_v38  ;;  %7347 = vmatpush.bf16.msrb.mxu1 %v14469_v10  ;;  %v13833_v49 = vor.u32 %v17425_v56, %v13832_v43  ;;  %v13544_v38 = vld [vmem:[#allocation8 + $0x308] sm:$0xf] }
 0x3b8   :  { %v13954_v60 = vld [vmem:[#allocation8 + $0x660] sm:$0xf0]  ;;  %v17281_v10 = vld [vmem:[#allocation8 + $0xe4] sm:$0xf0] }
 0x3b9   :  { %v13957_v0 = vor.u32 %v17452_v41, %v13954_v60  ;;  %v17508_v3 = vld [vmem:[#allocation8 + $0x804] sm:$0xf]  ;;  %7360 = vmatpush.bf16.msrb.mxu2 %v14725_v44  ;;  %v13800_v41 = vld [vmem:[#allocation8 + $0x508] sm:$0xf]  ;;  %v13257_v61 = vor.u32 %v17281_v10, %v13256_v33 }
 0x3ba   :  { %v14178_v48 = vld [vmem:[#allocation8 + $0x820] sm:$0xf0]  ;;  %v17417_v60 = vld [vmem:[#allocation8 + $0x524] sm:$0xf0] }
 0x3bb   :  { %v17572_v45 = vld [vmem:[#allocation8 + $0xa04] sm:$0xf]  ;;  %7321 = vmatpush.bf16.msra.mxu3 %v13957_v0  ;;  %v14181_v26 = vor.u32 %v17508_v3, %v14178_v48  ;;  %v4023_v0 = vpop.f32.mrf.mxu0  ;;  %v13545_v3 = vor.u32 %v17353_v58, %v13544_v38  ;;  %v4036_v48 = vpop.f32.mrf.mxu1  ;;  %v13512_v44 = vld [vmem:[#allocation8 + $0x2c8] sm:$0xf] }
 0x3bc   :  { %v14434_v16 = vld [vmem:[#allocation8 + $0xa20] sm:$0xf0]  ;;  %v17273_v22 = vld [vmem:[#allocation8 + $0xa4] sm:$0xf0] }
 0x3bd   :  { %v17636_v17 = vld [vmem:[#allocation8 + $0xc04] sm:$0xf]  ;;  %v14437_v28 = vor.u32 %v17572_v45, %v14434_v16  ;;  %7335 = vmatpush.bf16.msrb.mxu0 %v14181_v26  ;;  %v13801_v45 = vor.u32 %v17417_v60, %v13800_v41  ;;  %v17345_v16 = vld [vmem:[#allocation8 + $0x2e4] sm:$0xf0]  ;;  %v13225_v31 = vor.u32 %v17273_v22, %v13224_v25  ;;  %v4051_v41 = vpop.f32.mrf.mxu2 }
 0x3be   :  { %v14690_v18 = vld [vmem:[#allocation8 + $0xc20] sm:$0xf0]  ;;  %v13480_v11 = vld [vmem:[#allocation8 + $0x288] sm:$0xf] }
 0x3bf   :  { %v17444_v6 = vld [vmem:[#allocation8 + $0x604] sm:$0xf]  ;;  %v14693_v30 = vor.u32 %v17636_v17, %v14690_v18  ;;  %7348 = vmatpush.bf16.msrb.mxu1 %v14437_v28  ;;  %v4024_v17 = vadd.f32 %v4023_v0, %v4011_v62  ;;  %v13768_v18 = vld [vmem:[#allocation8 + $0x4c8] sm:$0xf]  ;;  %v4062_v28 = vpop.f32.mrf.mxu3 }
 0x3c0   :  { %v13922_v21 = vld [vmem:[#allocation8 + $0x620] sm:$0xf0]  ;;  %7336 = vmatmul.bf16.vlgmr.msrb.gmra.mxu0 %v18638_v51  ;;  %v17337_v23 = vld [vmem:[#allocation8 + $0x2a4] sm:$0xf0] }
 0x3c1   :  { %v13925_v2 = vor.u32 %v17444_v6, %v13922_v21  ;;  %7361 = vmatpush.bf16.msrb.mxu2 %v14693_v30  ;;  %7380 = vmatpush.bf16.msra.mxu0 %v13385_v37  ;;  %v13513_v6 = vor.u32 %v17345_v16, %v13512_v44  ;;  %v13769_v21 = vor.u32 %v17409_v50, %v13768_v18  ;;  %v17401_v26 = vld [vmem:[#allocation8 + $0x4a4] sm:$0xf0] }
 0x3c2   :  { %7349 = vmatmul.bf16.vlgmr.msrb.gmra.mxu1 %v18640_v53  ;;  %v4037_v24 = vadd.f32 %v4036_v48, %v4024_v17  ;;  %v13481_v37 = vor.u32 %v17337_v23, %v13480_v11  ;;  %v17265_v47 = vld [vmem:[#allocation8 + $0x64] sm:$0xf0]  ;;  %v17748_v48 = vld [vmem:[#allocation8 + $0xf84] sm:$0xf] }
 0x3c3   :  { %7322 = vmatpush.bf16.msra.mxu3 %v13925_v2  ;;  %7393 = vmatpush.bf16.msra.mxu1 %v13641_v32  ;;  %v13736_v2 = vld [vmem:[#allocation8 + $0x488] sm:$0xf]  ;;  %v4025_v30 = vpop.f32.mrf.mxu0  ;;  %v4038_v4 = vpop.f32.mrf.mxu1  ;;  %v17740_v11 = vld [vmem:[#allocation8 + $0xf44] sm:$0xf] }
 0x3c4   :  { %7362 = vmatmul.bf16.vlgmr.msrb.gmra.mxu2 %v18646_v20  ;;  %v4050_v63 = vadd.f32 %v4049_v27, %v4037_v24  ;;  %v13192_v32 = vld [vmem:[#allocation8 + $0x48] sm:$0xf]  ;;  %v15106_v23 = vld [vmem:[#allocation8 + $0xf60] sm:$0xf0] }
 0x3c5   :  { %7406 = vmatpush.bf16.msra.mxu2 %v13897_v8  ;;  %7381 = vmatpush.bf16.msra.mxu0 %v13353_v19  ;;  %v13737_v8 = vor.u32 %v17401_v26, %v13736_v2  ;;  %v13448_v40 = vld [vmem:[#allocation8 + $0x248] sm:$0xf]  ;;  %v17756_v19 = vld [vmem:[#allocation8 + $0xfc4] sm:$0xf]  ;;  %v13193_v39 = vor.u32 %v17265_v47, %v13192_v32 }
 0x3c6   :  { %v17329_v5 = vld [vmem:[#allocation8 + $0x264] sm:$0xf0]  ;;  %v4063_v35 = vadd.f32 %v4062_v28, %v4050_v63  ;;  %v18672_v4 = vld [vmem:[#allocation10] sm:$0xff] }
 0x3c7   :  { %7394 = vmatpush.bf16.msra.mxu1 %v13609_v9  ;;  %v13704_v34 = vld [vmem:[#allocation8 + $0x448] sm:$0xf]  ;;  %v15170_v9 = vld [vmem:[#allocation8 + $0xfe0] sm:$0xf0]  ;;  %v13449_v42 = vor.u32 %v17329_v5, %v13448_v40 }
 0x3c8   :  { %v17393_v36 = vld [vmem:[#allocation8 + $0x464] sm:$0xf0]  ;;  %v15074_v47 = vld [vmem:[#allocation8 + $0xf20] sm:$0xf0] }
 0x3c9   :  { %7407 = vmatpush.bf16.msra.mxu2 %v13865_v15  ;;  %7382 = vmatpush.bf16.msra.mxu0 %v13321_v13  ;;  %v13160_v29 = vld [vmem:[#allocation8 + $0x8] sm:$0xf]  ;;  %v4073_v15 = vmax.f32 %v4063_v35, 0.0  ;;  %v13705_v56 = vor.u32 %v17393_v36, %v13704_v34  ;;  %v4596_v36 = vperm.slane %v18672_v4, 0 }
 0x3ca   :  { %v17257_v7 = vld [vmem:[#allocation8 + $0x24] sm:$0xf0] }
 0x3cb   :  { %7395 = vmatpush.bf16.msra.mxu1 %v13577_v46  ;;  %v13416_v43 = vld [vmem:[#allocation8 + $0x208] sm:$0xf]  ;;  %v18668_v54 = vpack.c.bf16 %v4073_v15, %v4073_v15 }
 0x3cc   :  { %v17321_v55 = vld [vmem:[#allocation8 + $0x224] sm:$0xf0] }
 0x3cd   :  { %7408 = vmatpush.bf16.msra.mxu2 %v13833_v49  ;;  %7383 = vmatpush.bf16.msra.mxu0 %v13289_v1  ;;  %v13672_v13 = vld [vmem:[#allocation8 + $0x408] sm:$0xf]  ;;  %v15173_v49 = vor.u32 %v17756_v19, %v15170_v9  ;;  %v4064_v1 = vpop.f32.mrf.mxu3  ;;  %v13417_v33 = vor.u32 %v17321_v55, %v13416_v43  ;;  %v15042_v43 = vld [vmem:[#allocation8 + $0xee0] sm:$0xf0]  ;;  %v7181_v55 = vpop.f32.mrf.mxu0 }
 0x3ce   :  { %v17385_v46 = vld [vmem:[#allocation8 + $0x424] sm:$0xf0]  ;;  %7271 = vmatmul.bf16.vlgmr.msrb.gmra.mxu3 %v18668_v54  ;;  %v7182_v41 = vadd.f32 %v7181_v55, %v4596_v36 }
 0x3cf   :  { %7396 = vmatpush.bf16.msra.mxu1 %v13545_v3  ;;  %v14408_v57 = vld [vmem:[#allocation8 + $0x9c8] sm:$0xf]  ;;  %v13161_v3 = vor.u32 %v17257_v7, %v13160_v29  ;;  %v13673_v10 = vor.u32 %v17385_v46, %v13672_v13  ;;  %7367 = vmatpush.bf16.msrb.mxu3 %v15173_v49  ;;  %v17724_v7 = vld [vmem:[#allocation8 + $0xec4] sm:$0xf]  ;;  %v7194_v13 = vpop.f32.mrf.mxu1 }
 0x3d0   :  { %v17569_v38 = vld [vmem:[#allocation8 + $0x9e4] sm:$0xf0] }
 0x3d1   :  { %7409 = vmatpush.bf16.msra.mxu2 %v13801_v45  ;;  %7384 = vmatpush.bf16.msra.mxu0 %v13257_v61  ;;  %v14664_v58 = vld [vmem:[#allocation8 + $0xbc8] sm:$0xf]  ;;  %v15138_v45 = vld [vmem:[#allocation8 + $0xfa0] sm:$0xf0]  ;;  %v14409_v44 = vor.u32 %v17569_v38, %v14408_v57 }
 0x3d2   :  { %v17633_v60 = vld [vmem:[#allocation8 + $0xbe4] sm:$0xf0] }
 0x3d3   :  { %7397 = vmatpush.bf16.msra.mxu1 %v13513_v6  ;;  %v14920_v62 = vld [vmem:[#allocation8 + $0xdc8] sm:$0xf]  ;;  %v14665_v16 = vor.u32 %v17633_v60, %v14664_v58  ;;  %v15141_v6 = vor.u32 %v17748_v48, %v15138_v45  ;;  %v15045_v60 = vor.u32 %v17724_v7, %v15042_v43  ;;  %v7195_v48 = vadd.f32 %v7194_v13, %v7182_v41 }
 0x3d4   :  { %v17697_v0 = vld [vmem:[#allocation8 + $0xde4] sm:$0xf0] }
 0x3d5   :  { %7410 = vmatpush.bf16.msra.mxu2 %v13769_v21  ;;  %7385 = vmatpush.bf16.msra.mxu0 %v13225_v31  ;;  %v14921_v17 = vor.u32 %v17697_v0, %v14920_v62  ;;  %v14376_v18 = vld [vmem:[#allocation8 + $0x988] sm:$0xf]  ;;  %v15109_v31 = vor.u32 %v17740_v11, %v15106_v23  ;;  %v7207_v11 = vpop.f32.mrf.mxu2  ;;  %v7220_v23 = vpop.f32.mrf.mxu3 }
 0x3d6   :  { %v17561_v50 = vld [vmem:[#allocation8 + $0x9a4] sm:$0xf0]  ;;  %7368 = vmatpush.bf16.msrb.mxu3 %v15141_v6 }
 0x3d7   :  { %7398 = vmatpush.bf16.msra.mxu1 %v13481_v37  ;;  %v14632_v61 = vld [vmem:[#allocation8 + $0xb88] sm:$0xf]  ;;  %v14377_v24 = vor.u32 %v17561_v50, %v14376_v18 }
 0x3d8   :  { %v17625_v25 = vld [vmem:[#allocation8 + $0xba4] sm:$0xf0] }
 0x3d9   :  { %7411 = vmatpush.bf16.msra.mxu2 %v13737_v8  ;;  %7386 = vmatpush.bf16.msra.mxu0 %v13193_v39  ;;  %v14888_v21 = vld [vmem:[#allocation8 + $0xd88] sm:$0xf]  ;;  %v14633_v26 = vor.u32 %v17625_v25, %v14632_v61  ;;  %v17732_v8 = vld [vmem:[#allocation8 + $0xf04] sm:$0xf] }
 0x3da   :  { %v17689_v22 = vld [vmem:[#allocation8 + $0xda4] sm:$0xf0]  ;;  %7369 = vmatpush.bf16.msrb.mxu3 %v15109_v31  ;;  %v15077_v29 = vor.u32 %v17732_v8, %v15074_v47 }
 0x3db   :  { %7399 = vmatpush.bf16.msra.mxu1 %v13449_v42  ;;  %v14344_v2 = vld [vmem:[#allocation8 + $0x948] sm:$0xf]  ;;  %v14889_v27 = vor.u32 %v17689_v22, %v14888_v21  ;;  %v17708_v21 = vld [vmem:[#allocation8 + $0xe44] sm:$0xf] }
 0x3dc   :  { %v17553_v63 = vld [vmem:[#allocation8 + $0x964] sm:$0xf0]  ;;  %v14978_v22 = vld [vmem:[#allocation8 + $0xe60] sm:$0xf0] }
 0x3dd   :  { %7412 = vmatpush.bf16.msra.mxu2 %v13705_v56  ;;  %7387 = vmatpush.bf16.msra.mxu0 %v13161_v3  ;;  %v14600_v28 = vld [vmem:[#allocation8 + $0xb48] sm:$0xf]  ;;  %v14345_v40 = vor.u32 %v17553_v63, %v14344_v2  ;;  %v17716_v3 = vld [vmem:[#allocation8 + $0xe84] sm:$0xf]  ;;  %v7208_v2 = vadd.f32 %v7207_v11, %v7195_v48  ;;  %v7222_v41 = vpop.f32.mrf.mxu3 }
 0x3de   :  { %v17617_v30 = vld [vmem:[#allocation8 + $0xb64] sm:$0xf0]  ;;  %7370 = vmatpush.bf16.msrb.mxu3 %v15077_v29 }
 0x3df   :  { %7400 = vmatpush.bf16.msra.mxu1 %v13417_v33  ;;  %v14856_v37 = vld [vmem:[#allocation8 + $0xd48] sm:$0xf]  ;;  %v14601_v35 = vor.u32 %v17617_v30, %v14600_v28  ;;  %v15010_v33 = vld [vmem:[#allocation8 + $0xea0] sm:$0xf0]  ;;  %7323 = vmatmul.bf16.vlgmr.msra.gmra.mxu3 %v18612_v59 }
 0x3e0   :  { %7388 = vmatmul.bf16.vlgmr.msra.gmra.mxu0 %v18606_v12  ;;  %v17681_v32 = vld [vmem:[#allocation8 + $0xd64] sm:$0xf0]  ;;  %v15013_v50 = vor.u32 %v17716_v3, %v15010_v33 }
 0x3e1   :  { %7413 = vmatpush.bf16.msra.mxu2 %v13673_v10  ;;  %7432 = vmatpush.bf16.msrb.mxu0 %v14409_v44  ;;  %v14312_v5 = vld [vmem:[#allocation8 + $0x908] sm:$0xf]  ;;  %v14857_v34 = vor.u32 %v17681_v32, %v14856_v37  ;;  %v14981_v32 = vor.u32 %v17708_v21, %v14978_v22  ;;  %v13866_v21 = vld [vmem:[#allocation8 + $0x5a8] sm:$0xf0] }
 0x3e2   :  { %7401 = vmatmul.bf16.vlgmr.msra.gmra.mxu1 %v18608_v14  ;;  %v17545_v19 = vld [vmem:[#allocation8 + $0x924] sm:$0xf0]  ;;  %7371 = vmatpush.bf16.msrb.mxu3 %v15045_v60 }
 0x3e3   :  { %7445 = vmatpush.bf16.msrb.mxu1 %v14665_v16  ;;  %v14568_v9 = vld [vmem:[#allocation8 + $0xb08] sm:$0xf]  ;;  %v14313_v56 = vor.u32 %v17545_v19, %v14312_v5  ;;  %v18678_v5 = vadd.f32 %v7220_v23, %v7208_v2 }
 0x3e4   :  { %7414 = vmatmul.bf16.vlgmr.msra.gmra.mxu2 %v18610_v52  ;;  %v17609_v15 = vld [vmem:[#allocation8 + $0xb24] sm:$0xf0] }
 0x3e5   :  { %7458 = vmatpush.bf16.msrb.mxu2 %v14921_v17  ;;  %7433 = vmatpush.bf16.msrb.mxu0 %v14377_v24  ;;  %v14824_v39 = vld [vmem:[#allocation8 + $0xd08] sm:$0xf]  ;;  %v14569_v46 = vor.u32 %v17609_v15, %v14568_v9 }
 0x3e6   :  { %v17673_v42 = vld [vmem:[#allocation8 + $0xd24] sm:$0xf0]  ;;  %7372 = vmatpush.bf16.msrb.mxu3 %v15013_v50  ;;  %v17365_v50 = vld [vmem:[#allocation8 + $0x38c] sm:$0xf] }
 0x3e7   :  { %7446 = vmatpush.bf16.msrb.mxu1 %v14633_v26  ;;  %v14825_v49 = vor.u32 %v17673_v42, %v14824_v39  ;;  %v14280_v57 = vld [vmem:[#allocation8 + $0x8c8] sm:$0xf]  ;;  %v7183_v26 = vpop.f32.mrf.mxu0 }
 0x3e8   :  { %v17537_v38 = vld [vmem:[#allocation8 + $0x8e4] sm:$0xf0]  ;;  %v17293_v26 = vld [vmem:[#allocation8 + $0x14c] sm:$0xf] }
 0x3e9   :  { %7459 = vmatpush.bf16.msrb.mxu2 %v14889_v27  ;;  %7434 = vmatpush.bf16.msrb.mxu0 %v14345_v40  ;;  %v14536_v58 = vld [vmem:[#allocation8 + $0xac8] sm:$0xf]  ;;  %v14281_v45 = vor.u32 %v17537_v38, %v14280_v57  ;;  %v7196_v27 = vpop.f32.mrf.mxu1  ;;  %v13386_v57 = vld [vmem:[#allocation8 + $0x1e8] sm:$0xf0] }
 0x3ea   :  { %v17601_v62 = vld [vmem:[#allocation8 + $0xae4] sm:$0xf0]  ;;  %7373 = vmatpush.bf16.msrb.mxu3 %v14981_v32  ;;  %v17373_v38 = vld [vmem:[#allocation8 + $0x3cc] sm:$0xf] }
 0x3eb   :  { %7447 = vmatpush.bf16.msrb.mxu1 %v14601_v35  ;;  %v14792_v0 = vld [vmem:[#allocation8 + $0xcc8] sm:$0xf]  ;;  %v14537_v10 = vor.u32 %v17601_v62, %v14536_v58  ;;  %v17700_v35 = vld [vmem:[#allocation8 + $0xe04] sm:$0xf]  ;;  %v7209_v58 = vpop.f32.mrf.mxu2  ;;  %v13642_v62 = vld [vmem:[#allocation8 + $0x3e8] sm:$0xf0] }
 0x3ec   :  { %v17665_v1 = vld [vmem:[#allocation8 + $0xce4] sm:$0xf0]  ;;  %v13322_v27 = vld [vmem:[#allocation8 + $0x168] sm:$0xf0] }
 0x3ed   :  { %7460 = vmatpush.bf16.msrb.mxu2 %v14857_v34  ;;  %7435 = vmatpush.bf16.msrb.mxu0 %v14313_v56  ;;  %v14793_v44 = vor.u32 %v17665_v1, %v14792_v0  ;;  %v14248_v16 = vld [vmem:[#allocation8 + $0x888] sm:$0xf]  ;;  %v14946_v34 = vld [vmem:[#allocation8 + $0xe20] sm:$0xf0]  ;;  %v17437_v0 = vld [vmem:[#allocation8 + $0x5cc] sm:$0xf] }
 0x3ee   :  { %v17529_v17 = vld [vmem:[#allocation8 + $0x8a4] sm:$0xf0]  ;;  %v14949_v43 = vor.u32 %v17700_v35, %v14946_v34  ;;  %v13898_v1 = vld [vmem:[#allocation8 + $0x5e8] sm:$0xf0] }
 0x3ef   :  { %7448 = vmatpush.bf16.msrb.mxu1 %v14569_v46  ;;  %v14504_v18 = vld [vmem:[#allocation8 + $0xa88] sm:$0xf]  ;;  %v14249_v24 = vor.u32 %v17529_v17, %v14248_v16  ;;  %v13901_v16 = vor.u32 %v17437_v0, %v13898_v1  ;;  %v17301_v17 = vld [vmem:[#allocation8 + $0x18c] sm:$0xf] }
 0x3f0   :  { %v17593_v61 = vld [vmem:[#allocation8 + $0xaa4] sm:$0xf0]  ;;  %7374 = vmatpush.bf16.msrb.mxu3 %v14949_v43  ;;  %v17285_v34 = vld [vmem:[#allocation8 + $0x10c] sm:$0xf]  ;;  %v7233_v43 = vpop.f32.mrf.mxu0 }
 0x3f1   :  { %7461 = vmatpush.bf16.msrb.mxu2 %v14825_v49  ;;  %v14760_v6 = vld [vmem:[#allocation8 + $0xc88] sm:$0xf]  ;;  %7436 = vmatpush.bf16.msrb.mxu0 %v14281_v45  ;;  %v14505_v63 = vor.u32 %v17593_v61, %v14504_v18  ;;  %v17309_v49 = vld [vmem:[#allocation8 + $0x1cc] sm:$0xf] }
 0x3f2   :  { %v17657_v25 = vld [vmem:[#allocation8 + $0xca4] sm:$0xf0]  ;;  %v13354_v18 = vld [vmem:[#allocation8 + $0x1a8] sm:$0xf0] }
 0x3f3   :  { %7449 = vmatpush.bf16.msrb.mxu1 %v14537_v10  ;;  %v14761_v28 = vor.u32 %v17657_v25, %v14760_v6  ;;  %v14216_v30 = vld [vmem:[#allocation8 + $0x848] sm:$0xf]  ;;  %v13389_v10 = vor.u32 %v17309_v49, %v13386_v57  ;;  %v13610_v6 = vld [vmem:[#allocation8 + $0x3a8] sm:$0xf0]  ;;  %7375 = vmatmul.bf16.vlgmr.msrb.gmra.mxu3 %v18668_v54  ;;  %v13357_v23 = vor.u32 %v17301_v17, %v13354_v18 }
 0x3f4   :  { %v17521_v31 = vld [vmem:[#allocation8 + $0x864] sm:$0xf0]  ;;  %v17429_v25 = vld [vmem:[#allocation8 + $0x58c] sm:$0xf] }
 0x3f5   :  { %7462 = vmatpush.bf16.msrb.mxu2 %v14793_v44  ;;  %v14472_v37 = vld [vmem:[#allocation8 + $0xa48] sm:$0xf]  ;;  %7437 = vmatpush.bf16.msrb.mxu0 %v14249_v24  ;;  %v14217_v36 = vor.u32 %v17521_v31, %v14216_v30  ;;  %v13645_v44 = vor.u32 %v17373_v38, %v13642_v62  ;;  %v13613_v24 = vor.u32 %v17365_v50, %v13610_v6  ;;  %v13578_v30 = vld [vmem:[#allocation8 + $0x368] sm:$0xf0] }
 0x3f6   :  { %v17585_v8 = vld [vmem:[#allocation8 + $0xa64] sm:$0xf0]  ;;  %v13869_v2 = vor.u32 %v17429_v25, %v13866_v21  ;;  %v17421_v31 = vld [vmem:[#allocation8 + $0x54c] sm:$0xf] }
 0x3f7   :  { %v14728_v47 = vld [vmem:[#allocation8 + $0xc48] sm:$0xf]  ;;  %7450 = vmatpush.bf16.msrb.mxu1 %v14505_v63  ;;  %v14473_v29 = vor.u32 %v17585_v8, %v14472_v37  ;;  %v17357_v63 = vld [vmem:[#allocation8 + $0x34c] sm:$0xf] }
 0x3f8   :  { %v17649_v40 = vld [vmem:[#allocation8 + $0xc64] sm:$0xf0]  ;;  %v13834_v37 = vld [vmem:[#allocation8 + $0x568] sm:$0xf0]  ;;  %v7235_v21 = vpop.f32.mrf.mxu0 }
 0x3f9   :  { %v14152_v19 = vld [vmem:[#allocation8 + $0x7c8] sm:$0xf]  ;;  %7463 = vmatpush.bf16.msrb.mxu2 %v14761_v28  ;;  %v14729_v15 = vor.u32 %v17649_v40, %v14728_v47  ;;  %7438 = vmatpush.bf16.msrb.mxu0 %v14217_v36  ;;  %v13325_v47 = vor.u32 %v17293_v26, %v13322_v27  ;;  %v13581_v40 = vor.u32 %v17357_v63, %v13578_v30  ;;  %v13290_v36 = vld [vmem:[#allocation8 + $0x128] sm:$0xf0] }
 0x3fa   :  { %v17505_v9 = vld [vmem:[#allocation8 + $0x7e4] sm:$0xf0]  ;;  %v13837_v35 = vor.u32 %v17421_v31, %v13834_v37  ;;  %v17277_v57 = vld [vmem:[#allocation8 + $0xcc] sm:$0xf] }
 0x3fb   :  { %v14184_v39 = vld [vmem:[#allocation8 + $0x808] sm:$0xf]  ;;  %v14153_v46 = vor.u32 %v17505_v9, %v14152_v19  ;;  %7451 = vmatpush.bf16.msrb.mxu1 %v14473_v29  ;;  %v17349_v19 = vld [vmem:[#allocation8 + $0x30c] sm:$0xf] }
 0x3fc   :  { %v17513_v42 = vld [vmem:[#allocation8 + $0x824] sm:$0xf0]  ;;  %v13546_v29 = vld [vmem:[#allocation8 + $0x328] sm:$0xf0] }
 0x3fd   :  { %v14440_v7 = vld [vmem:[#allocation8 + $0xa08] sm:$0xf]  ;;  %v14185_v60 = vor.u32 %v17513_v42, %v14184_v39  ;;  %7464 = vmatpush.bf16.msrb.mxu2 %v14729_v15  ;;  %7419 = vmatpush.bf16.msra.mxu3 %v14153_v46  ;;  %v17413_v15 = vld [vmem:[#allocation8 + $0x50c] sm:$0xf]  ;;  %v13549_v46 = vor.u32 %v17349_v19, %v13546_v29 }
 0x3fe   :  { %v17577_v56 = vld [vmem:[#allocation8 + $0xa24] sm:$0xf0]  ;;  %v13802_v39 = vld [vmem:[#allocation8 + $0x528] sm:$0xf0] }
 0x3ff   :  { %v14696_v55 = vld [vmem:[#allocation8 + $0xc08] sm:$0xf]  ;;  %v14441_v3 = vor.u32 %v17577_v56, %v14440_v7  ;;  %7439 = vmatpush.bf16.msrb.mxu0 %v14185_v60  ;;  %v13293_v56 = vor.u32 %v17285_v34, %v13290_v36  ;;  %v13805_v49 = vor.u32 %v17413_v15, %v13802_v39  ;;  %v13258_v38 = vld [vmem:[#allocation8 + $0xe8] sm:$0xf0] }
 0x400   :  { %v17641_v13 = vld [vmem:[#allocation8 + $0xc24] sm:$0xf0]  ;;  %v17341_v58 = vld [vmem:[#allocation8 + $0x2cc] sm:$0xf] }
 0x401   :  { %v14697_v33 = vor.u32 %v17641_v13, %v14696_v55  ;;  %v14120_v48 = vld [vmem:[#allocation8 + $0x788] sm:$0xf]  ;;  %7452 = vmatpush.bf16.msrb.mxu1 %v14441_v3  ;;  %v7234_v55 = vadd.f32 %v7233_v43, %v18678_v5  ;;  %v7246_v13 = vpop.f32.mrf.mxu1  ;;  %v13514_v60 = vld [vmem:[#allocation8 + $0x2e8] sm:$0xf0] }
 0x402   :  { %v17497_v45 = vld [vmem:[#allocation8 + $0x7a4] sm:$0xf0]  ;;  %7440 = vmatmul.bf16.vlgmr.msrb.gmra.mxu0 %v18638_v51  ;;  %v17405_v62 = vld [vmem:[#allocation8 + $0x4cc] sm:$0xf]  ;;  %v13517_v5 = vor.u32 %v17341_v58, %v13514_v60 }
 0x403   :  { %v14121_v61 = vor.u32 %v17497_v45, %v14120_v48  ;;  %7465 = vmatpush.bf16.msrb.mxu2 %v14697_v33  ;;  %v14088_v22 = vld [vmem:[#allocation8 + $0x748] sm:$0xf]  ;;  %7484 = vmatpush.bf16.msra.mxu0 %v13389_v10  ;;  %v13770_v0 = vld [vmem:[#allocation8 + $0x4e8] sm:$0xf0]  ;;  %v18685_v1 = vadd.f32 %v7246_v13, %v7234_v55  ;;  %v13261_v48 = vor.u32 %v17277_v57, %v13258_v38 }
 0x404   :  { %v17489_v11 = vld [vmem:[#allocation8 + $0x764] sm:$0xf0]  ;;  %7453 = vmatmul.bf16.vlgmr.msrb.gmra.mxu1 %v18640_v53  ;;  %v13773_v45 = vor.u32 %v17405_v62, %v13770_v0  ;;  %v17269_v10 = vld [vmem:[#allocation8 + $0x8c] sm:$0xf] }
 0x405   :  { %7497 = vmatpush.bf16.msra.mxu1 %v13645_v44  ;;  %7420 = vmatpush.bf16.msra.mxu3 %v14121_v61  ;;  %v14089_v28 = vor.u32 %v17489_v11, %v14088_v22  ;;  %v14056_v32 = vld [vmem:[#allocation8 + $0x708] sm:$0xf]  ;;  %v13226_v44 = vld [vmem:[#allocation8 + $0xa8] sm:$0xf0] }
 0x406   :  { %7466 = vmatmul.bf16.vlgmr.msrb.gmra.mxu2 %v18646_v20  ;;  %v17481_v8 = vld [vmem:[#allocation8 + $0x724] sm:$0xf0]  ;;  %v13482_v18 = vld [vmem:[#allocation8 + $0x2a8] sm:$0xf0]  ;;  %v13229_v22 = vor.u32 %v17269_v10, %v13226_v44 }
 0x407   :  { %7510 = vmatpush.bf16.msra.mxu2 %v13901_v16  ;;  %7485 = vmatpush.bf16.msra.mxu0 %v13357_v23  ;;  %v14057_v9 = vor.u32 %v17481_v8, %v14056_v32  ;;  %v14024_v42 = vld [vmem:[#allocation8 + $0x6c8] sm:$0xf]  ;;  %v17333_v16 = vld [vmem:[#allocation8 + $0x28c] sm:$0xf] }
 0x408   :  { %v17473_v7 = vld [vmem:[#allocation8 + $0x6e4] sm:$0xf0]  ;;  %v17397_v50 = vld [vmem:[#allocation8 + $0x48c] sm:$0xf]  ;;  %v13485_v23 = vor.u32 %v17333_v16, %v13482_v18 }
 0x409   :  { %7498 = vmatpush.bf16.msra.mxu1 %v13613_v24  ;;  %7421 = vmatpush.bf16.msra.mxu3 %v14089_v28  ;;  %v14025_v41 = vor.u32 %v17473_v7, %v14024_v42  ;;  %v13992_v3 = vld [vmem:[#allocation8 + $0x688] sm:$0xf]  ;;  %v13738_v61 = vld [vmem:[#allocation8 + $0x4a8] sm:$0xf0]  ;;  %v7248_v11 = vpop.f32.mrf.mxu1 }
 0x40a   :  { %v17465_v33 = vld [vmem:[#allocation8 + $0x6a4] sm:$0xf0]  ;;  %v13741_v24 = vor.u32 %v17397_v50, %v13738_v61  ;;  %v13194_v26 = vld [vmem:[#allocation8 + $0x68] sm:$0xf0] }
 0x40b   :  { %7511 = vmatpush.bf16.msra.mxu2 %v13869_v2  ;;  %7486 = vmatpush.bf16.msra.mxu0 %v13325_v47  ;;  %v13993_v17 = vor.u32 %v17465_v33, %v13992_v3  ;;  %v13960_v6 = vld [vmem:[#allocation8 + $0x648] sm:$0xf]  ;;  %v17261_v2 = vld [vmem:[#allocation8 + $0x4c] sm:$0xf] }
 0x40c   :  { %v17457_v25 = vld [vmem:[#allocation8 + $0x664] sm:$0xf0]  ;;  %v17325_v27 = vld [vmem:[#allocation8 + $0x24c] sm:$0xf]  ;;  %v13197_v8 = vor.u32 %v17261_v2, %v13194_v26 }
 0x40d   :  { %7499 = vmatpush.bf16.msra.mxu1 %v13581_v40  ;;  %7422 = vmatpush.bf16.msra.mxu3 %v14057_v9  ;;  %v13961_v63 = vor.u32 %v17457_v25, %v13960_v6  ;;  %v13450_v28 = vld [vmem:[#allocation8 + $0x268] sm:$0xf0]  ;;  %v13928_v37 = vld [vmem:[#allocation8 + $0x608] sm:$0xf] }
 0x40e   :  { %v17389_v30 = vld [vmem:[#allocation8 + $0x44c] sm:$0xf]  ;;  %v17449_v32 = vld [vmem:[#allocation8 + $0x624] sm:$0xf0] }
 0x40f   :  { %7512 = vmatpush.bf16.msra.mxu2 %v13837_v35  ;;  %7487 = vmatpush.bf16.msra.mxu0 %v13293_v56  ;;  %v13706_v31 = vld [vmem:[#allocation8 + $0x468] sm:$0xf0]  ;;  %v15176_v47 = vld [vmem:[#allocation8 + $0xfc8] sm:$0xf]  ;;  %v13453_v35 = vor.u32 %v17325_v27, %v13450_v28  ;;  %v13929_v29 = vor.u32 %v17449_v32, %v13928_v37  ;;  %v4597_v28 = vperm.slane %v18672_v4, 1  ;;  %v7259_v37 = vpop.f32.mrf.mxu2  ;;  %v7285_v4 = vpop.f32.mrf.mxu0 }
 0x410   :  { %v17761_v40 = vld [vmem:[#allocation8 + $0xfe4] sm:$0xf0]  ;;  %v13709_v34 = vor.u32 %v17389_v30, %v13706_v31  ;;  %v17253_v36 = vld [vmem:[#allocation8 + $0xc] sm:$0xf] }
 0x411   :  { %7500 = vmatpush.bf16.msra.mxu1 %v13549_v46  ;;  %7423 = vmatpush.bf16.msra.mxu3 %v14025_v41  ;;  %v13162_v19 = vld [vmem:[#allocation8 + $0x28] sm:$0xf0]  ;;  %v15177_v7 = vor.u32 %v17761_v40, %v15176_v47  ;;  %v15144_v58 = vld [vmem:[#allocation8 + $0xf88] sm:$0xf] }
 0x412   :  { %v17317_v9 = vld [vmem:[#allocation8 + $0x20c] sm:$0xf]  ;;  %v13165_v13 = vor.u32 %v17253_v36, %v13162_v19  ;;  %v17753_v41 = vld [vmem:[#allocation8 + $0xfa4] sm:$0xf0] }
 0x413   :  { %7513 = vmatpush.bf16.msra.mxu2 %v13805_v49  ;;  %7488 = vmatpush.bf16.msra.mxu0 %v13261_v48  ;;  %v13418_v15 = vld [vmem:[#allocation8 + $0x228] sm:$0xf0]  ;;  %v17745_v18 = vld [vmem:[#allocation8 + $0xf64] sm:$0xf0] }
 0x414   :  { %v17381_v39 = vld [vmem:[#allocation8 + $0x40c] sm:$0xf]  ;;  %v13421_v38 = vor.u32 %v17317_v9, %v13418_v15  ;;  %v15080_v26 = vld [vmem:[#allocation8 + $0xf08] sm:$0xf]  ;;  %v7298_v15 = vpop.f32.mrf.mxu1 }
 0x415   :  { %7501 = vmatpush.bf16.msra.mxu1 %v13517_v5  ;;  %7424 = vmatpush.bf16.msra.mxu3 %v13993_v17  ;;  %v13674_v42 = vld [vmem:[#allocation8 + $0x428] sm:$0xf0]  ;;  %v15112_v17 = vld [vmem:[#allocation8 + $0xf48] sm:$0xf] }
 0x416   :  { %v17565_v43 = vld [vmem:[#allocation8 + $0x9cc] sm:$0xf]  ;;  %v13677_v60 = vor.u32 %v17381_v39, %v13674_v42  ;;  %v15113_v11 = vor.u32 %v17745_v18, %v15112_v17  ;;  %v17737_v27 = vld [vmem:[#allocation8 + $0xf24] sm:$0xf0]  ;;  %v7286_v42 = vadd.f32 %v7285_v4, %v4597_v28 }
 0x417   :  { %7514 = vmatpush.bf16.msra.mxu2 %v13773_v45  ;;  %7489 = vmatpush.bf16.msra.mxu0 %v13229_v22  ;;  %v14410_v56 = vld [vmem:[#allocation8 + $0x9e8] sm:$0xf0]  ;;  %v15145_v45 = vor.u32 %v17753_v41, %v15144_v58  ;;  %v15081_v40 = vor.u32 %v17737_v27, %v15080_v26  ;;  %v15048_v9 = vld [vmem:[#allocation8 + $0xec8] sm:$0xf] }
 0x418   :  { %v17629_v55 = vld [vmem:[#allocation8 + $0xbcc] sm:$0xf]  ;;  %v14413_v62 = vor.u32 %v17565_v43, %v14410_v56  ;;  %v15016_v58 = vld [vmem:[#allocation8 + $0xe88] sm:$0xf] }
 0x419   :  { %7502 = vmatpush.bf16.msra.mxu1 %v13485_v23  ;;  %7425 = vmatpush.bf16.msra.mxu3 %v13961_v63  ;;  %v14666_v46 = vld [vmem:[#allocation8 + $0xbe8] sm:$0xf0]  ;;  %v17721_v41 = vld [vmem:[#allocation8 + $0xea4] sm:$0xf0] }
 0x41a   :  { %v17693_v49 = vld [vmem:[#allocation8 + $0xdcc] sm:$0xf]  ;;  %v14669_v0 = vor.u32 %v17629_v55, %v14666_v46  ;;  %v14984_v17 = vld [vmem:[#allocation8 + $0xe48] sm:$0xf] }
 0x41b   :  { %7515 = vmatpush.bf16.msra.mxu2 %v13741_v24  ;;  %7490 = vmatpush.bf16.msra.mxu0 %v13197_v8  ;;  %v14922_v57 = vld [vmem:[#allocation8 + $0xde8] sm:$0xf0]  ;;  %v17713_v18 = vld [vmem:[#allocation8 + $0xe64] sm:$0xf0] }
 0x41c   :  { %v14925_v3 = vor.u32 %v17693_v49, %v14922_v57  ;;  %v17557_v33 = vld [vmem:[#allocation8 + $0x98c] sm:$0xf]  ;;  %v17705_v28 = vld [vmem:[#allocation8 + $0xe24] sm:$0xf0] }
 0x41d   :  { %7503 = vmatpush.bf16.msra.mxu1 %v13453_v35  ;;  %7426 = vmatpush.bf16.msra.mxu3 %v13929_v29  ;;  %v14378_v48 = vld [vmem:[#allocation8 + $0x9a8] sm:$0xf0]  ;;  %v18693_v35 = vadd.f32 %v7259_v37, %v18685_v1  ;;  %v17729_v29 = vld [vmem:[#allocation8 + $0xee4] sm:$0xf0] }
 0x41e   :  { %v17621_v5 = vld [vmem:[#allocation8 + $0xb8c] sm:$0xf]  ;;  %v14381_v50 = vor.u32 %v17557_v33, %v14378_v48  ;;  %v15049_v1 = vor.u32 %v17729_v29, %v15048_v9 }
 0x41f   :  { %7516 = vmatpush.bf16.msra.mxu2 %v13709_v34  ;;  %7491 = vmatpush.bf16.msra.mxu0 %v13165_v13  ;;  %v14634_v10 = vld [vmem:[#allocation8 + $0xba8] sm:$0xf0] }
 0x420   :  { %v17685_v44 = vld [vmem:[#allocation8 + $0xd8c] sm:$0xf]  ;;  %7427 = vmatmul.bf16.vlgmr.msra.gmra.mxu3 %v18612_v59  ;;  %v14637_v61 = vor.u32 %v17621_v5, %v14634_v10 }
 0x421   :  { %7471 = vmatpush.bf16.msrb.mxu3 %v15177_v7  ;;  %v14890_v16 = vld [vmem:[#allocation8 + $0xda8] sm:$0xf0]  ;;  %7504 = vmatpush.bf16.msra.mxu1 %v13421_v38  ;;  %v7299_v38 = vadd.f32 %v7298_v15, %v7286_v42  ;;  %v13392_v42 = vld [vmem:[#allocation8 + $0x1d0] sm:$0xf] }
 0x422   :  { %v14893_v6 = vor.u32 %v17685_v44, %v14890_v16  ;;  %v17549_v25 = vld [vmem:[#allocation8 + $0x94c] sm:$0xf]  ;;  %7492 = vmatmul.bf16.vlgmr.msra.gmra.mxu0 %v18606_v12 }
 0x423   :  { %7517 = vmatpush.bf16.msra.mxu2 %v13677_v60  ;;  %7536 = vmatpush.bf16.msrb.mxu0 %v14413_v62  ;;  %v14346_v21 = vld [vmem:[#allocation8 + $0x968] sm:$0xf0] }
 0x424   :  { %v17613_v22 = vld [vmem:[#allocation8 + $0xb4c] sm:$0xf]  ;;  %7505 = vmatmul.bf16.vlgmr.msra.gmra.mxu1 %v18608_v14  ;;  %v14349_v63 = vor.u32 %v17549_v25, %v14346_v21 }
 0x425   :  { %7549 = vmatpush.bf16.msrb.mxu1 %v14669_v0  ;;  %7472 = vmatpush.bf16.msrb.mxu3 %v15145_v45  ;;  %v14602_v23 = vld [vmem:[#allocation8 + $0xb68] sm:$0xf0]  ;;  %v15017_v45 = vor.u32 %v17721_v41, %v15016_v58 }
 0x426   :  { %v17677_v24 = vld [vmem:[#allocation8 + $0xd4c] sm:$0xf]  ;;  %7518 = vmatmul.bf16.vlgmr.msra.gmra.mxu2 %v18610_v52  ;;  %v14605_v30 = vor.u32 %v17613_v22, %v14602_v23 }
 0x427   :  { %7562 = vmatpush.bf16.msrb.mxu2 %v14925_v3  ;;  %v14858_v2 = vld [vmem:[#allocation8 + $0xd68] sm:$0xf0]  ;;  %7537 = vmatpush.bf16.msrb.mxu0 %v14381_v50  ;;  %v7261_v3 = vpop.f32.mrf.mxu2  ;;  %v7287_v50 = vpop.f32.mrf.mxu0 }
 0x428   :  { %v14861_v31 = vor.u32 %v17677_v24, %v14858_v2  ;;  %v17541_v32 = vld [vmem:[#allocation8 + $0x90c] sm:$0xf]  ;;  %v14985_v24 = vor.u32 %v17713_v18, %v14984_v17  ;;  %v13616_v3 = vld [vmem:[#allocation8 + $0x390] sm:$0xf] }
 0x429   :  { %7550 = vmatpush.bf16.msrb.mxu1 %v14637_v61  ;;  %v14314_v8 = vld [vmem:[#allocation8 + $0x928] sm:$0xf0]  ;;  %7473 = vmatpush.bf16.msrb.mxu3 %v15113_v11  ;;  %v7300_v61 = vpop.f32.mrf.mxu1 }
 0x42a   :  { %v17605_v47 = vld [vmem:[#allocation8 + $0xb0c] sm:$0xf]  ;;  %v14317_v39 = vor.u32 %v17541_v32, %v14314_v8  ;;  %v13328_v61 = vld [vmem:[#allocation8 + $0x150] sm:$0xf] }
 0x42b   :  { %7563 = vmatpush.bf16.msrb.mxu2 %v14893_v6  ;;  %v14570_v34 = vld [vmem:[#allocation8 + $0xb28] sm:$0xf0]  ;;  %7538 = vmatpush.bf16.msrb.mxu0 %v14349_v63  ;;  %v14952_v63 = vld [vmem:[#allocation8 + $0xe08] sm:$0xf] }
 0x42c   :  { %v17669_v36 = vld [vmem:[#allocation8 + $0xd0c] sm:$0xf]  ;;  %v14573_v7 = vor.u32 %v17605_v47, %v14570_v34 }
 0x42d   :  { %v14826_v19 = vld [vmem:[#allocation8 + $0xd28] sm:$0xf0]  ;;  %7551 = vmatpush.bf16.msrb.mxu1 %v14605_v30  ;;  %7474 = vmatpush.bf16.msrb.mxu3 %v15081_v40 }
 0x42e   :  { %v14829_v43 = vor.u32 %v17669_v36, %v14826_v19  ;;  %v17533_v56 = vld [vmem:[#allocation8 + $0x8cc] sm:$0xf]  ;;  %v14953_v36 = vor.u32 %v17705_v28, %v14952_v63  ;;  %v13296_v28 = vld [vmem:[#allocation8 + $0x110] sm:$0xf] }
 0x42f   :  { %7564 = vmatpush.bf16.msrb.mxu2 %v14861_v31  ;;  %v14282_v55 = vld [vmem:[#allocation8 + $0x8e8] sm:$0xf0]  ;;  %7539 = vmatpush.bf16.msrb.mxu0 %v14317_v39  ;;  %v7311_v19 = vpop.f32.mrf.mxu2 }
 0x430   :  { %v17597_v13 = vld [vmem:[#allocation8 + $0xacc] sm:$0xf]  ;;  %v14285_v60 = vor.u32 %v17533_v56, %v14282_v55  ;;  %v18695_v39 = vadd.f32 %v7311_v19, %v7299_v38  ;;  %v17378_v55 = vld [vmem:[#allocation8 + $0x3ec] sm:$0xf0] }
 0x431   :  { %v14538_v46 = vld [vmem:[#allocation8 + $0xae8] sm:$0xf0]  ;;  %7552 = vmatpush.bf16.msrb.mxu1 %v14573_v7  ;;  %7475 = vmatpush.bf16.msrb.mxu3 %v15049_v1  ;;  %v17314_v7 = vld [vmem:[#allocation8 + $0x1ec] sm:$0xf0] }
 0x432   :  { %v17661_v49 = vld [vmem:[#allocation8 + $0xccc] sm:$0xf]  ;;  %v14541_v62 = vor.u32 %v17597_v13, %v14538_v46  ;;  %v13904_v13 = vld [vmem:[#allocation8 + $0x5d0] sm:$0xf]  ;;  %v13393_v41 = vor.u32 %v17314_v7, %v13392_v42 }
 0x433   :  { %v14794_v57 = vld [vmem:[#allocation8 + $0xce8] sm:$0xf0]  ;;  %7565 = vmatpush.bf16.msrb.mxu2 %v14829_v43  ;;  %7540 = vmatpush.bf16.msrb.mxu0 %v14285_v60  ;;  %v13648_v43 = vld [vmem:[#allocation8 + $0x3d0] sm:$0xf] }
 0x434   :  { %v14797_v0 = vor.u32 %v17661_v49, %v14794_v57  ;;  %v17525_v33 = vld [vmem:[#allocation8 + $0x88c] sm:$0xf]  ;;  %v17442_v1 = vld [vmem:[#allocation8 + $0x5ec] sm:$0xf0]  ;;  %v13649_v60 = vor.u32 %v17378_v55, %v13648_v43 }
 0x435   :  { %v14250_v48 = vld [vmem:[#allocation8 + $0x8a8] sm:$0xf0]  ;;  %7553 = vmatpush.bf16.msrb.mxu1 %v14541_v62  ;;  %7476 = vmatpush.bf16.msrb.mxu3 %v15017_v45  ;;  %v13905_v38 = vor.u32 %v17442_v1, %v13904_v13  ;;  %v13360_v62 = vld [vmem:[#allocation8 + $0x190] sm:$0xf] }
 0x436   :  { %v17589_v5 = vld [vmem:[#allocation8 + $0xa8c] sm:$0xf]  ;;  %v14253_v6 = vor.u32 %v17525_v33, %v14250_v48  ;;  %v17370_v48 = vld [vmem:[#allocation8 + $0x3ac] sm:$0xf0] }
 0x437   :  { %v14506_v10 = vld [vmem:[#allocation8 + $0xaa8] sm:$0xf0]  ;;  %7566 = vmatpush.bf16.msrb.mxu2 %v14797_v0  ;;  %v17306_v0 = vld [vmem:[#allocation8 + $0x1ac] sm:$0xf0]  ;;  %v7313_v17 = vpop.f32.mrf.mxu2  ;;  %v13617_v18 = vor.u32 %v17370_v48, %v13616_v3 }
 0x438   :  { %v17653_v44 = vld [vmem:[#allocation8 + $0xc8c] sm:$0xf]  ;;  %v14509_v25 = vor.u32 %v17589_v5, %v14506_v10  ;;  %7541 = vmatpush.bf16.msrb.mxu0 %v14253_v6  ;;  %v13872_v5 = vld [vmem:[#allocation8 + $0x590] sm:$0xf] }
 0x439   :  { %v14762_v16 = vld [vmem:[#allocation8 + $0xca8] sm:$0xf0]  ;;  %7477 = vmatpush.bf16.msrb.mxu3 %v14985_v24  ;;  %v17434_v45 = vld [vmem:[#allocation8 + $0x5ac] sm:$0xf0] }
 0x43a   :  { %v14765_v21 = vor.u32 %v17653_v44, %v14762_v16  ;;  %v17517_v22 = vld [vmem:[#allocation8 + $0x84c] sm:$0xf]  ;;  %7554 = vmatpush.bf16.msrb.mxu1 %v14509_v25  ;;  %v13361_v16 = vor.u32 %v17306_v0, %v13360_v62  ;;  %v13873_v50 = vor.u32 %v17434_v45, %v13872_v5  ;;  %v17298_v6 = vld [vmem:[#allocation8 + $0x16c] sm:$0xf0] }
 0x43b   :  { %v14218_v11 = vld [vmem:[#allocation8 + $0x868] sm:$0xf0]  ;;  %v13584_v25 = vld [vmem:[#allocation8 + $0x350] sm:$0xf] }
 0x43c   :  { %v17581_v23 = vld [vmem:[#allocation8 + $0xa4c] sm:$0xf]  ;;  %v14221_v30 = vor.u32 %v17517_v22, %v14218_v11  ;;  %7567 = vmatpush.bf16.msrb.mxu2 %v14765_v21  ;;  %v17362_v22 = vld [vmem:[#allocation8 + $0x36c] sm:$0xf0] }
 0x43d   :  { %v14474_v2 = vld [vmem:[#allocation8 + $0xa68] sm:$0xf0]  ;;  %7478 = vmatpush.bf16.msrb.mxu3 %v14953_v36  ;;  %v13840_v11 = vld [vmem:[#allocation8 + $0x550] sm:$0xf] }
 0x43e   :  { %v17645_v26 = vld [vmem:[#allocation8 + $0xc4c] sm:$0xf]  ;;  %v14477_v32 = vor.u32 %v17581_v23, %v14474_v2  ;;  %7542 = vmatpush.bf16.msrb.mxu0 %v14221_v30  ;;  %v17426_v23 = vld [vmem:[#allocation8 + $0x56c] sm:$0xf0] }
 0x43f   :  { %v14730_v27 = vld [vmem:[#allocation8 + $0xc68] sm:$0xf0]  ;;  %v13841_v63 = vor.u32 %v17426_v23, %v13840_v11  ;;  %v17290_v30 = vld [vmem:[#allocation8 + $0x12c] sm:$0xf0]  ;;  %v18703_v19 = vpop.f32.mrf.mxu1 }
 0x440   :  { %v17501_v31 = vld [vmem:[#allocation8 + $0x7cc] sm:$0xf]  ;;  %v14733_v8 = vor.u32 %v17645_v26, %v14730_v27  ;;  %7555 = vmatpush.bf16.msrb.mxu1 %v14477_v32  ;;  %7479 = vmatmul.bf16.vlgmr.msrb.gmra.mxu3 %v18668_v54  ;;  %v13329_v26 = vor.u32 %v17298_v6, %v13328_v61  ;;  %v13585_v27 = vor.u32 %v17362_v22, %v13584_v25  ;;  %v17354_v32 = vld [vmem:[#allocation8 + $0x32c] sm:$0xf0] }
 0x441   :  { %v14154_v37 = vld [vmem:[#allocation8 + $0x7e8] sm:$0xf0]  ;;  %v17282_v42 = vld [vmem:[#allocation8 + $0xec] sm:$0xf0] }
 0x442   :  { %v17509_v47 = vld [vmem:[#allocation8 + $0x80c] sm:$0xf]  ;;  %v14157_v15 = vor.u32 %v17501_v31, %v14154_v37  ;;  %7568 = vmatpush.bf16.msrb.mxu2 %v14733_v8  ;;  %v13552_v31 = vld [vmem:[#allocation8 + $0x310] sm:$0xf] }
 0x443   :  { %v14186_v40 = vld [vmem:[#allocation8 + $0x828] sm:$0xf0]  ;;  %v13808_v8 = vld [vmem:[#allocation8 + $0x510] sm:$0xf] }
 0x444   :  { %v17573_v34 = vld [vmem:[#allocation8 + $0xa0c] sm:$0xf]  ;;  %v14189_v56 = vor.u32 %v17509_v47, %v14186_v40  ;;  %7523 = vmatpush.bf16.msra.mxu3 %v14157_v15  ;;  %v17418_v47 = vld [vmem:[#allocation8 + $0x52c] sm:$0xf0]  ;;  %v18701_v40 = vpop.f32.mrf.mxu0 }
 0x445   :  { %v14442_v9 = vld [vmem:[#allocation8 + $0xa28] sm:$0xf0]  ;;  %v13264_v15 = vld [vmem:[#allocation8 + $0xd0] sm:$0xf] }
 0x446   :  { %v17637_v29 = vld [vmem:[#allocation8 + $0xc0c] sm:$0xf]  ;;  %v14445_v46 = vor.u32 %v17573_v34, %v14442_v9  ;;  %7543 = vmatpush.bf16.msrb.mxu0 %v14189_v56  ;;  %v13297_v9 = vor.u32 %v17290_v30, %v13296_v28  ;;  %v13520_v7 = vld [vmem:[#allocation8 + $0x2d0] sm:$0xf] }
 0x447   :  { %v14698_v4 = vld [vmem:[#allocation8 + $0xc28] sm:$0xf0]  ;;  %v17346_v56 = vld [vmem:[#allocation8 + $0x2ec] sm:$0xf0]  ;;  %v18705_v62 = vpop.f32.mrf.mxu2 }
 0x448   :  { %v17493_v49 = vld [vmem:[#allocation8 + $0x78c] sm:$0xf]  ;;  %v14701_v58 = vor.u32 %v17637_v29, %v14698_v4  ;;  %7556 = vmatpush.bf16.msrb.mxu1 %v14445_v46  ;;  %v13553_v29 = vor.u32 %v17354_v32, %v13552_v31  ;;  %v13809_v4 = vor.u32 %v17418_v47, %v13808_v8  ;;  %v13776_v55 = vld [vmem:[#allocation8 + $0x4d0] sm:$0xf] }
 0x449   :  { %v14122_v57 = vld [vmem:[#allocation8 + $0x7a8] sm:$0xf0]  ;;  %7544 = vmatmul.bf16.vlgmr.msrb.gmra.mxu0 %v18638_v51  ;;  %v17410_v13 = vld [vmem:[#allocation8 + $0x4ec] sm:$0xf0] }
 0x44a   :  { %v14125_v33 = vor.u32 %v17493_v49, %v14122_v57  ;;  %v17485_v10 = vld [vmem:[#allocation8 + $0x74c] sm:$0xf]  ;;  %7569 = vmatpush.bf16.msrb.mxu2 %v14701_v58  ;;  %7588 = vmatpush.bf16.msra.mxu0 %v13393_v41  ;;  %v13265_v49 = vor.u32 %v17282_v42, %v13264_v15  ;;  %v13521_v57 = vor.u32 %v17346_v56, %v13520_v7  ;;  %v13232_v41 = vld [vmem:[#allocation8 + $0x90] sm:$0xf] }
 0x44b   :  { %v14090_v44 = vld [vmem:[#allocation8 + $0x768] sm:$0xf0]  ;;  %7557 = vmatmul.bf16.vlgmr.msrb.gmra.mxu1 %v18640_v53  ;;  %v13777_v58 = vor.u32 %v17410_v13, %v13776_v55  ;;  %v17338_v3 = vld [vmem:[#allocation8 + $0x2ac] sm:$0xf0] }
 0x44c   :  { %7601 = vmatpush.bf16.msra.mxu1 %v13649_v60  ;;  %7524 = vmatpush.bf16.msra.mxu3 %v14125_v33  ;;  %v14093_v21 = vor.u32 %v17485_v10, %v14090_v44  ;;  %v17477_v24 = vld [vmem:[#allocation8 + $0x70c] sm:$0xf]  ;;  %v17274_v60 = vld [vmem:[#allocation8 + $0xac] sm:$0xf0]  ;;  %v7339_v5 = vpop.f32.mrf.mxu0  ;;  %v7352_v44 = vpop.f32.mrf.mxu1 }
 0x44d   :  { %7570 = vmatmul.bf16.vlgmr.msrb.gmra.mxu2 %v18646_v20  ;;  %v14058_v2 = vld [vmem:[#allocation8 + $0x728] sm:$0xf0]  ;;  %v13744_v33 = vld [vmem:[#allocation8 + $0x490] sm:$0xf] }
 0x44e   :  { %7614 = vmatpush.bf16.msra.mxu2 %v13905_v38  ;;  %7589 = vmatpush.bf16.msra.mxu0 %v13361_v16  ;;  %v14061_v37 = vor.u32 %v17477_v24, %v14058_v2  ;;  %v17469_v34 = vld [vmem:[#allocation8 + $0x6cc] sm:$0xf]  ;;  %v13488_v38 = vld [vmem:[#allocation8 + $0x290] sm:$0xf]  ;;  %v13233_v16 = vor.u32 %v17274_v60, %v13232_v41 }
 0x44f   :  { %v14026_v36 = vld [vmem:[#allocation8 + $0x6e8] sm:$0xf0]  ;;  %v17402_v48 = vld [vmem:[#allocation8 + $0x4ac] sm:$0xf0]  ;;  %v13489_v17 = vor.u32 %v17338_v3, %v13488_v38  ;;  %v7365_v32 = vpop.f32.mrf.mxu2 }
 0x450   :  { %7602 = vmatpush.bf16.msra.mxu1 %v13617_v18  ;;  %7525 = vmatpush.bf16.msra.mxu3 %v14093_v21  ;;  %v14029_v43 = vor.u32 %v17469_v34, %v14026_v36  ;;  %v17461_v1 = vld [vmem:[#allocation8 + $0x68c] sm:$0xf]  ;;  %v13745_v18 = vor.u32 %v17402_v48, %v13744_v33  ;;  %v17266_v61 = vld [vmem:[#allocation8 + $0x6c] sm:$0xf0] }
 0x451   :  { %v13994_v46 = vld [vmem:[#allocation8 + $0x6a8] sm:$0xf0]  ;;  %v13456_v6 = vld [vmem:[#allocation8 + $0x250] sm:$0xf] }
 0x452   :  { %7615 = vmatpush.bf16.msra.mxu2 %v13873_v50  ;;  %7590 = vmatpush.bf16.msra.mxu0 %v13329_v26  ;;  %v13997_v0 = vor.u32 %v17461_v1, %v13994_v46  ;;  %v17453_v45 = vld [vmem:[#allocation8 + $0x64c] sm:$0xf]  ;;  %v13200_v50 = vld [vmem:[#allocation8 + $0x50] sm:$0xf] }
 0x453   :  { %v13962_v10 = vld [vmem:[#allocation8 + $0x668] sm:$0xf0]  ;;  %v17330_v21 = vld [vmem:[#allocation8 + $0x26c] sm:$0xf0]  ;;  %v13201_v2 = vor.u32 %v17266_v61, %v13200_v50 }
 0x454   :  { %7603 = vmatpush.bf16.msra.mxu1 %v13585_v27  ;;  %7526 = vmatpush.bf16.msra.mxu3 %v14061_v37  ;;  %v13965_v25 = vor.u32 %v17453_v45, %v13962_v10  ;;  %v13712_v22 = vld [vmem:[#allocation8 + $0x450] sm:$0xf]  ;;  %v17445_v23 = vld [vmem:[#allocation8 + $0x60c] sm:$0xf] }
 0x455   :  { %v17394_v11 = vld [vmem:[#allocation8 + $0x46c] sm:$0xf0]  ;;  %v13930_v24 = vld [vmem:[#allocation8 + $0x628] sm:$0xf0] }
 0x456   :  { %7616 = vmatpush.bf16.msra.mxu2 %v13841_v63  ;;  %7591 = vmatpush.bf16.msra.mxu0 %v13297_v9  ;;  %v17757_v26 = vld [vmem:[#allocation8 + $0xfcc] sm:$0xf]  ;;  %v13457_v63 = vor.u32 %v17330_v21, %v13456_v6  ;;  %v13713_v28 = vor.u32 %v17394_v11, %v13712_v22  ;;  %v13168_v30 = vld [vmem:[#allocation8 + $0x10] sm:$0xf]  ;;  %v13933_v8 = vor.u32 %v17445_v23, %v13930_v24  ;;  %v18711_v24 = vld [vmem:[#allocation10] sm:$0xff] }
 0x457   :  { %v15178_v27 = vld [vmem:[#allocation8 + $0xfe8] sm:$0xf0]  ;;  %v17258_v31 = vld [vmem:[#allocation8 + $0x2c] sm:$0xf0] }
 0x458   :  { %7604 = vmatpush.bf16.msra.mxu1 %v13553_v29  ;;  %7527 = vmatpush.bf16.msra.mxu3 %v14029_v43  ;;  %v13424_v37 = vld [vmem:[#allocation8 + $0x210] sm:$0xf]  ;;  %v15181_v9 = vor.u32 %v17757_v26, %v15178_v27  ;;  %v13169_v42 = vor.u32 %v17258_v31, %v13168_v30  ;;  %v17749_v13 = vld [vmem:[#allocation8 + $0xf8c] sm:$0xf] }
 0x459   :  { %v17322_v47 = vld [vmem:[#allocation8 + $0x22c] sm:$0xf0]  ;;  %v15146_v1 = vld [vmem:[#allocation8 + $0xfa8] sm:$0xf0] }
 0x45a   :  { %7617 = vmatpush.bf16.msra.mxu2 %v13809_v4  ;;  %7592 = vmatpush.bf16.msra.mxu0 %v13265_v49  ;;  %v13680_v34 = vld [vmem:[#allocation8 + $0x410] sm:$0xf]  ;;  %v13425_v55 = vor.u32 %v17322_v47, %v13424_v37  ;;  %v17741_v5 = vld [vmem:[#allocation8 + $0xf4c] sm:$0xf] }
 0x45b   :  { %v17386_v36 = vld [vmem:[#allocation8 + $0x42c] sm:$0xf0]  ;;  %v15114_v45 = vld [vmem:[#allocation8 + $0xf68] sm:$0xf0] }
 0x45c   :  { %7605 = vmatpush.bf16.msra.mxu1 %v13521_v57  ;;  %7528 = vmatpush.bf16.msra.mxu3 %v13997_v0  ;;  %v14416_v29 = vld [vmem:[#allocation8 + $0x9d0] sm:$0xf]  ;;  %v13681_v46 = vor.u32 %v17386_v36, %v13680_v34  ;;  %v15149_v0 = vor.u32 %v17749_v13, %v15146_v1  ;;  %v15117_v61 = vor.u32 %v17741_v5, %v15114_v45  ;;  %v17733_v22 = vld [vmem:[#allocation8 + $0xf0c] sm:$0xf]  ;;  %v7272_v34 = vpop.f32.mrf.mxu3 }
 0x45d   :  { %v17570_v4 = vld [vmem:[#allocation8 + $0x9ec] sm:$0xf0]  ;;  %v15082_v11 = vld [vmem:[#allocation8 + $0xf28] sm:$0xf0]  ;;  %v7389_v47 = vpop.f32.mrf.mxu0 }
 0x45e   :  { %7618 = vmatpush.bf16.msra.mxu2 %v13777_v58  ;;  %7593 = vmatpush.bf16.msra.mxu0 %v13233_v16  ;;  %v14672_v15 = vld [vmem:[#allocation8 + $0xbd0] sm:$0xf]  ;;  %v14417_v49 = vor.u32 %v17570_v4, %v14416_v29  ;;  %v15085_v31 = vor.u32 %v17733_v22, %v15082_v11  ;;  %v17725_v36 = vld [vmem:[#allocation8 + $0xecc] sm:$0xf] }
 0x45f   :  { %v17634_v7 = vld [vmem:[#allocation8 + $0xbec] sm:$0xf0]  ;;  %v7402_v4 = vpop.f32.mrf.mxu1 }
 0x460   :  { %7606 = vmatpush.bf16.msra.mxu1 %v13489_v17  ;;  %7529 = vmatpush.bf16.msra.mxu3 %v13965_v25  ;;  %v14928_v43 = vld [vmem:[#allocation8 + $0xdd0] sm:$0xf]  ;;  %v14673_v57 = vor.u32 %v17634_v7, %v14672_v15  ;;  %v18715_v15 = vadd.f32 %v7272_v34, %v18693_v35 }
 0x461   :  { %v17698_v56 = vld [vmem:[#allocation8 + $0xdec] sm:$0xf0] }
 0x462   :  { %7619 = vmatpush.bf16.msra.mxu2 %v13745_v18  ;;  %7594 = vmatpush.bf16.msra.mxu0 %v13201_v2  ;;  %v14929_v58 = vor.u32 %v17698_v56, %v14928_v43  ;;  %v14384_v41 = vld [vmem:[#allocation8 + $0x990] sm:$0xf]  ;;  %v4598_v2 = vperm.slane %v18711_v24, 2 }
 0x463   :  { %v17562_v60 = vld [vmem:[#allocation8 + $0x9ac] sm:$0xf0] }
 0x464   :  { %7607 = vmatpush.bf16.msra.mxu1 %v13457_v63  ;;  %7530 = vmatpush.bf16.msra.mxu3 %v13933_v8  ;;  %v14640_v38 = vld [vmem:[#allocation8 + $0xb90] sm:$0xf]  ;;  %v14385_v10 = vor.u32 %v17562_v60, %v14384_v41  ;;  %v7390_v29 = vadd.f32 %v7389_v47, %v4598_v2  ;;  %v17717_v41 = vld [vmem:[#allocation8 + $0xe8c] sm:$0xf] }
 0x465   :  { %v17626_v3 = vld [vmem:[#allocation8 + $0xbac] sm:$0xf0]  ;;  %v15018_v60 = vld [vmem:[#allocation8 + $0xea8] sm:$0xf0] }
 0x466   :  { %7620 = vmatpush.bf16.msra.mxu2 %v13713_v28  ;;  %7595 = vmatpush.bf16.msra.mxu0 %v13169_v42  ;;  %v14896_v33 = vld [vmem:[#allocation8 + $0xd90] sm:$0xf]  ;;  %v14641_v44 = vor.u32 %v17626_v3, %v14640_v38  ;;  %v7403_v1 = vadd.f32 %v7402_v4, %v7390_v29  ;;  %v15021_v45 = vor.u32 %v17717_v41, %v15018_v60  ;;  %v13650_v60 = vld [vmem:[#allocation8 + $0x3f0] sm:$0xf0] }
 0x467   :  { %v17690_v48 = vld [vmem:[#allocation8 + $0xdac] sm:$0xf0]  ;;  %7531 = vmatmul.bf16.vlgmr.msra.gmra.mxu3 %v18612_v59  ;;  %v7415_v5 = vpop.f32.mrf.mxu2 }
 0x468   :  { %7575 = vmatpush.bf16.msrb.mxu3 %v15181_v9  ;;  %7608 = vmatpush.bf16.msra.mxu1 %v13425_v55  ;;  %v14897_v16 = vor.u32 %v17690_v48, %v14896_v33  ;;  %v14352_v17 = vld [vmem:[#allocation8 + $0x950] sm:$0xf]  ;;  %v15050_v9 = vld [vmem:[#allocation8 + $0xee8] sm:$0xf0] }
 0x469   :  { %v17554_v18 = vld [vmem:[#allocation8 + $0x96c] sm:$0xf0]  ;;  %7596 = vmatmul.bf16.vlgmr.msra.gmra.mxu0 %v18606_v12 }
 0x46a   :  { %7621 = vmatpush.bf16.msra.mxu2 %v13681_v46  ;;  %7640 = vmatpush.bf16.msrb.mxu0 %v14417_v49  ;;  %v14608_v50 = vld [vmem:[#allocation8 + $0xb50] sm:$0xf]  ;;  %v14353_v23 = vor.u32 %v17554_v18, %v14352_v17  ;;  %v15053_v46 = vor.u32 %v17725_v36, %v15050_v9  ;;  %v18717_v17 = vadd.f32 %v7415_v5, %v7403_v1  ;;  %v7391_v18 = vpop.f32.mrf.mxu0 }
 0x46b   :  { %v17618_v6 = vld [vmem:[#allocation8 + $0xb6c] sm:$0xf0]  ;;  %7609 = vmatmul.bf16.vlgmr.msra.gmra.mxu1 %v18608_v14  ;;  %v13362_v18 = vld [vmem:[#allocation8 + $0x1b0] sm:$0xf0] }
 0x46c   :  { %7653 = vmatpush.bf16.msrb.mxu1 %v14673_v57  ;;  %7576 = vmatpush.bf16.msrb.mxu3 %v15149_v0  ;;  %v14864_v25 = vld [vmem:[#allocation8 + $0xd50] sm:$0xf]  ;;  %v14609_v26 = vor.u32 %v17618_v6, %v14608_v50  ;;  %v7274_v50 = vpop.f32.mrf.mxu3  ;;  %v14986_v6 = vld [vmem:[#allocation8 + $0xe68] sm:$0xf0] }
 0x46d   :  { %v17682_v21 = vld [vmem:[#allocation8 + $0xd6c] sm:$0xf0]  ;;  %7622 = vmatmul.bf16.vlgmr.msra.gmra.mxu2 %v18610_v52 }
 0x46e   :  { %7666 = vmatpush.bf16.msrb.mxu2 %v14929_v58  ;;  %7641 = vmatpush.bf16.msrb.mxu0 %v14385_v10  ;;  %v14865_v27 = vor.u32 %v17682_v21, %v14864_v25  ;;  %v14320_v63 = vld [vmem:[#allocation8 + $0x910] sm:$0xf]  ;;  %v7404_v25 = vpop.f32.mrf.mxu1 }
 0x46f   :  { %v17546_v28 = vld [vmem:[#allocation8 + $0x92c] sm:$0xf0]  ;;  %v13874_v25 = vld [vmem:[#allocation8 + $0x5b0] sm:$0xf0] }
 0x470   :  { %7654 = vmatpush.bf16.msrb.mxu1 %v14641_v44  ;;  %v14576_v30 = vld [vmem:[#allocation8 + $0xb10] sm:$0xf]  ;;  %7577 = vmatpush.bf16.msrb.mxu3 %v15117_v61  ;;  %v14321_v42 = vor.u32 %v17546_v28, %v14320_v63  ;;  %v17709_v61 = vld [vmem:[#allocation8 + $0xe4c] sm:$0xf] }
 0x471   :  { %v17610_v37 = vld [vmem:[#allocation8 + $0xb2c] sm:$0xf0] }
 0x472   :  { %7667 = vmatpush.bf16.msrb.mxu2 %v14897_v16  ;;  %v14832_v32 = vld [vmem:[#allocation8 + $0xd10] sm:$0xf]  ;;  %7642 = vmatpush.bf16.msrb.mxu0 %v14353_v23  ;;  %v14577_v7 = vor.u32 %v17610_v37, %v14576_v30  ;;  %v14954_v37 = vld [vmem:[#allocation8 + $0xe28] sm:$0xf0] }
 0x473   :  { %v17674_v8 = vld [vmem:[#allocation8 + $0xd2c] sm:$0xf0] }
 0x474   :  { %7655 = vmatpush.bf16.msrb.mxu1 %v14609_v26  ;;  %v14833_v43 = vor.u32 %v17674_v8, %v14832_v32  ;;  %v14288_v56 = vld [vmem:[#allocation8 + $0x8d0] sm:$0xf]  ;;  %7578 = vmatpush.bf16.msrb.mxu3 %v15085_v31  ;;  %v17701_v31 = vld [vmem:[#allocation8 + $0xe0c] sm:$0xf]  ;;  %v7324_v1 = vpop.f32.mrf.mxu3 }
 0x475   :  { %v17538_v55 = vld [vmem:[#allocation8 + $0x8ec] sm:$0xf0] }
 0x476   :  { %7668 = vmatpush.bf16.msrb.mxu2 %v14865_v27  ;;  %v14544_v13 = vld [vmem:[#allocation8 + $0xad0] sm:$0xf]  ;;  %7643 = vmatpush.bf16.msrb.mxu0 %v14321_v42  ;;  %v14289_v38 = vor.u32 %v17538_v55, %v14288_v56  ;;  %v14989_v27 = vor.u32 %v17709_v61, %v14986_v6  ;;  %v7417_v42 = vpop.f32.mrf.mxu2  ;;  %v13618_v61 = vld [vmem:[#allocation8 + $0x3b0] sm:$0xf0] }
 0x477   :  { %v17602_v49 = vld [vmem:[#allocation8 + $0xaec] sm:$0xf0]  ;;  %v17430_v6 = vld [vmem:[#allocation8 + $0x594] sm:$0xf] }
 0x478   :  { %v14800_v57 = vld [vmem:[#allocation8 + $0xcd0] sm:$0xf]  ;;  %7656 = vmatpush.bf16.msrb.mxu1 %v14577_v7  ;;  %v14545_v35 = vor.u32 %v17602_v49, %v14544_v13  ;;  %7579 = vmatpush.bf16.msrb.mxu3 %v15053_v46  ;;  %v14957_v7 = vor.u32 %v17701_v31, %v14954_v37  ;;  %v17310_v46 = vld [vmem:[#allocation8 + $0x1d4] sm:$0xf] }
 0x479   :  { %v17666_v58 = vld [vmem:[#allocation8 + $0xcec] sm:$0xf0]  ;;  %v13394_v49 = vld [vmem:[#allocation8 + $0x1f0] sm:$0xf0] }
 0x47a   :  { %7669 = vmatpush.bf16.msrb.mxu2 %v14833_v43  ;;  %v14801_v0 = vor.u32 %v17666_v58, %v14800_v57  ;;  %v14256_v3 = vld [vmem:[#allocation8 + $0x890] sm:$0xf]  ;;  %7644 = vmatpush.bf16.msrb.mxu0 %v14289_v38  ;;  %v17374_v57 = vld [vmem:[#allocation8 + $0x3d4] sm:$0xf]  ;;  %v7325_v58 = vadd.f32 %v7324_v1, %v18695_v39 }
 0x47b   :  { %v17530_v33 = vld [vmem:[#allocation8 + $0x8ac] sm:$0xf0]  ;;  %v17438_v38 = vld [vmem:[#allocation8 + $0x5d4] sm:$0xf] }
 0x47c   :  { %v14512_v48 = vld [vmem:[#allocation8 + $0xa90] sm:$0xf]  ;;  %v14257_v21 = vor.u32 %v17530_v33, %v14256_v3  ;;  %7657 = vmatpush.bf16.msrb.mxu1 %v14545_v35  ;;  %7580 = vmatpush.bf16.msrb.mxu3 %v15021_v45  ;;  %v13906_v35 = vld [vmem:[#allocation8 + $0x5f0] sm:$0xf0]  ;;  %v13397_v45 = vor.u32 %v17310_v46, %v13394_v49 }
 0x47d   :  { %v17594_v10 = vld [vmem:[#allocation8 + $0xaac] sm:$0xf0]  ;;  %v17366_v39 = vld [vmem:[#allocation8 + $0x394] sm:$0xf] }
 0x47e   :  { %v14768_v44 = vld [vmem:[#allocation8 + $0xc90] sm:$0xf]  ;;  %7670 = vmatpush.bf16.msrb.mxu2 %v14801_v0  ;;  %v14513_v22 = vor.u32 %v17594_v10, %v14512_v48  ;;  %7645 = vmatpush.bf16.msrb.mxu0 %v14257_v21  ;;  %v7338_v48 = vadd.f32 %v18701_v40, %v7325_v58  ;;  %v13653_v10 = vor.u32 %v17374_v57, %v13650_v60  ;;  %v13586_v31 = vld [vmem:[#allocation8 + $0x370] sm:$0xf0] }
 0x47f   :  { %v17658_v16 = vld [vmem:[#allocation8 + $0xcac] sm:$0xf0]  ;;  %v17422_v37 = vld [vmem:[#allocation8 + $0x554] sm:$0xf] }
 0x480   :  { %v14769_v11 = vor.u32 %v17658_v16, %v14768_v44  ;;  %v14224_v23 = vld [vmem:[#allocation8 + $0x850] sm:$0xf]  ;;  %7658 = vmatpush.bf16.msrb.mxu1 %v14513_v22  ;;  %7581 = vmatpush.bf16.msrb.mxu3 %v14989_v27  ;;  %v13909_v44 = vor.u32 %v17438_v38, %v13906_v35  ;;  %v17302_v16 = vld [vmem:[#allocation8 + $0x194] sm:$0xf]  ;;  %v7351_v21 = vadd.f32 %v18703_v19, %v7338_v48  ;;  %v7326_v27 = vpop.f32.mrf.mxu3 }
 0x481   :  { %v17522_v2 = vld [vmem:[#allocation8 + $0x86c] sm:$0xf0]  ;;  %v18729_v46 = vpop.f32.mrf.mxu1  ;;  %v13266_v60 = vld [vmem:[#allocation8 + $0xf0] sm:$0xf0] }
 0x482   :  { %v14480_v26 = vld [vmem:[#allocation8 + $0xa50] sm:$0xf]  ;;  %v14225_v32 = vor.u32 %v17522_v2, %v14224_v23  ;;  %7671 = vmatpush.bf16.msrb.mxu2 %v14769_v11  ;;  %v13365_v11 = vor.u32 %v17302_v16, %v13362_v18  ;;  %v7364_v23 = vadd.f32 %v18705_v62, %v7351_v21  ;;  %v13621_v2 = vor.u32 %v17366_v39, %v13618_v61  ;;  %v17342_v38 = vld [vmem:[#allocation8 + $0x2d4] sm:$0xf] }
 0x483   :  { %v17586_v63 = vld [vmem:[#allocation8 + $0xa6c] sm:$0xf0]  ;;  %v17270_v39 = vld [vmem:[#allocation8 + $0x94] sm:$0xf] }
 0x484   :  { %v14736_v28 = vld [vmem:[#allocation8 + $0xc50] sm:$0xf]  ;;  %v14481_v34 = vor.u32 %v17586_v63, %v14480_v26  ;;  %7646 = vmatpush.bf16.msrb.mxu0 %v14225_v32  ;;  %7582 = vmatpush.bf16.msrb.mxu3 %v14957_v7  ;;  %v13877_v26 = vor.u32 %v17430_v6, %v13874_v25  ;;  %v17294_v63 = vld [vmem:[#allocation8 + $0x154] sm:$0xf] }
 0x485   :  { %v17650_v30 = vld [vmem:[#allocation8 + $0xc6c] sm:$0xf0]  ;;  %v13842_v32 = vld [vmem:[#allocation8 + $0x570] sm:$0xf0] }
 0x486   :  { %v14160_v8 = vld [vmem:[#allocation8 + $0x7d0] sm:$0xf]  ;;  %v14737_v36 = vor.u32 %v17650_v30, %v14736_v28  ;;  %7659 = vmatpush.bf16.msrb.mxu1 %v14481_v34  ;;  %v13330_v28 = vld [vmem:[#allocation8 + $0x170] sm:$0xf0] }
 0x487   :  { %v17506_v47 = vld [vmem:[#allocation8 + $0x7ec] sm:$0xf0]  ;;  %7583 = vmatmul.bf16.vlgmr.msrb.gmra.mxu3 %v18668_v54  ;;  %v17358_v30 = vld [vmem:[#allocation8 + $0x354] sm:$0xf] }
 0x488   :  { %v14192_v9 = vld [vmem:[#allocation8 + $0x810] sm:$0xf]  ;;  %v14161_v13 = vor.u32 %v17506_v47, %v14160_v8  ;;  %7672 = vmatpush.bf16.msrb.mxu2 %v14737_v36  ;;  %v13333_v47 = vor.u32 %v17294_v63, %v13330_v28  ;;  %v13589_v34 = vor.u32 %v17358_v30, %v13586_v31  ;;  %v13845_v36 = vor.u32 %v17422_v37, %v13842_v32  ;;  %v13554_v7 = vld [vmem:[#allocation8 + $0x330] sm:$0xf0]  ;;  %v7376_v48 = vpop.f32.mrf.mxu3 }
 0x489   :  { %v17514_v29 = vld [vmem:[#allocation8 + $0x82c] sm:$0xf0]  ;;  %v17334_v61 = vld [vmem:[#allocation8 + $0x294] sm:$0xf]  ;;  %v18733_v6 = vpop.f32.mrf.mxu2 }
 0x48a   :  { %v14448_v4 = vld [vmem:[#allocation8 + $0xa10] sm:$0xf]  ;;  %v14193_v41 = vor.u32 %v17514_v29, %v14192_v9  ;;  %7627 = vmatpush.bf16.msra.mxu3 %v14161_v13  ;;  %v17286_v9 = vld [vmem:[#allocation8 + $0x114] sm:$0xf] }
 0x48b   :  { %v17578_v43 = vld [vmem:[#allocation8 + $0xa2c] sm:$0xf0]  ;;  %v13298_v29 = vld [vmem:[#allocation8 + $0x130] sm:$0xf0] }
 0x48c   :  { %v14704_v56 = vld [vmem:[#allocation8 + $0xc10] sm:$0xf]  ;;  %v14449_v0 = vor.u32 %v17578_v43, %v14448_v4  ;;  %7647 = vmatpush.bf16.msrb.mxu0 %v14193_v41  ;;  %v17350_v4 = vld [vmem:[#allocation8 + $0x314] sm:$0xf]  ;;  %v13301_v49 = vor.u32 %v17286_v9, %v13298_v29 }
 0x48d   :  { %v17642_v55 = vld [vmem:[#allocation8 + $0xc2c] sm:$0xf0]  ;;  %v17414_v43 = vld [vmem:[#allocation8 + $0x514] sm:$0xf]  ;;  %v13557_v57 = vor.u32 %v17350_v4, %v13554_v7 }
 0x48e   :  { %v14128_v3 = vld [vmem:[#allocation8 + $0x790] sm:$0xf]  ;;  %v14705_v5 = vor.u32 %v17642_v55, %v14704_v56  ;;  %7660 = vmatpush.bf16.msrb.mxu1 %v14449_v0  ;;  %v13810_v56 = vld [vmem:[#allocation8 + $0x530] sm:$0xf0]  ;;  %v18727_v55 = vpop.f32.mrf.mxu0 }
 0x48f   :  { %v17498_v33 = vld [vmem:[#allocation8 + $0x7ac] sm:$0xf0]  ;;  %7648 = vmatmul.bf16.vlgmr.msrb.gmra.mxu0 %v18638_v51  ;;  %v13813_v58 = vor.u32 %v17414_v43, %v13810_v56  ;;  %v17278_v41 = vld [vmem:[#allocation8 + $0xd4] sm:$0xf] }
 0x490   :  { %v14129_v50 = vor.u32 %v17498_v33, %v14128_v3  ;;  %v14096_v22 = vld [vmem:[#allocation8 + $0x750] sm:$0xf]  ;;  %7673 = vmatpush.bf16.msrb.mxu2 %v14705_v5  ;;  %7692 = vmatpush.bf16.msra.mxu0 %v13397_v45  ;;  %v13522_v0 = vld [vmem:[#allocation8 + $0x2f0] sm:$0xf0] }
 0x491   :  { %v17490_v40 = vld [vmem:[#allocation8 + $0x76c] sm:$0xf0]  ;;  %7661 = vmatmul.bf16.vlgmr.msrb.gmra.mxu1 %v18640_v53  ;;  %v17406_v3 = vld [vmem:[#allocation8 + $0x4d4] sm:$0xf]  ;;  %v13525_v16 = vor.u32 %v17342_v38, %v13522_v0 }
 0x492   :  { %7705 = vmatpush.bf16.msra.mxu1 %v13653_v10  ;;  %7628 = vmatpush.bf16.msra.mxu3 %v14129_v50  ;;  %v14097_v19 = vor.u32 %v17490_v40, %v14096_v22  ;;  %v14064_v62 = vld [vmem:[#allocation8 + $0x710] sm:$0xf]  ;;  %v13778_v33 = vld [vmem:[#allocation8 + $0x4f0] sm:$0xf0]  ;;  %v18731_v10 = vadd.f32 %v7376_v48, %v7364_v23  ;;  %v7456_v23 = vpop.f32.mrf.mxu1 }
 0x493   :  { %7674 = vmatmul.bf16.vlgmr.msrb.gmra.mxu2 %v18646_v20  ;;  %v17482_v8 = vld [vmem:[#allocation8 + $0x72c] sm:$0xf0]  ;;  %v13781_v18 = vor.u32 %v17406_v3, %v13778_v33  ;;  %v13234_v50 = vld [vmem:[#allocation8 + $0xb0] sm:$0xf0] }
 0x494   :  { %7718 = vmatpush.bf16.msra.mxu2 %v13909_v44  ;;  %7693 = vmatpush.bf16.msra.mxu0 %v13365_v11  ;;  %v14065_v42 = vor.u32 %v17482_v8, %v14064_v62  ;;  %v14032_v13 = vld [vmem:[#allocation8 + $0x6d0] sm:$0xf]  ;;  %v13269_v44 = vor.u32 %v17278_v41, %v13266_v60  ;;  %v13490_v21 = vld [vmem:[#allocation8 + $0x2b0] sm:$0xf0]  ;;  %v13237_v27 = vor.u32 %v17270_v39, %v13234_v50 }
 0x495   :  { %v17474_v1 = vld [vmem:[#allocation8 + $0x6ec] sm:$0xf0]  ;;  %v17398_v22 = vld [vmem:[#allocation8 + $0x494] sm:$0xf]  ;;  %v13493_v63 = vor.u32 %v17334_v61, %v13490_v21 }
 0x496   :  { %7706 = vmatpush.bf16.msra.mxu1 %v13621_v2  ;;  %7629 = vmatpush.bf16.msra.mxu3 %v14097_v19  ;;  %v14033_v35 = vor.u32 %v17474_v1, %v14032_v13  ;;  %v14000_v5 = vld [vmem:[#allocation8 + $0x690] sm:$0xf]  ;;  %v13746_v40 = vld [vmem:[#allocation8 + $0x4b0] sm:$0xf0]  ;;  %v7443_v11 = vpop.f32.mrf.mxu0  ;;  %v7469_v1 = vpop.f32.mrf.mxu2 }
 0x497   :  { %v17466_v45 = vld [vmem:[#allocation8 + $0x6ac] sm:$0xf0]  ;;  %v13749_v28 = vor.u32 %v17398_v22, %v13746_v40  ;;  %v17262_v30 = vld [vmem:[#allocation8 + $0x54] sm:$0xf] }
 0x498   :  { %7719 = vmatpush.bf16.msra.mxu2 %v13877_v26  ;;  %7694 = vmatpush.bf16.msra.mxu0 %v13333_v47  ;;  %v14001_v25 = vor.u32 %v17466_v45, %v14000_v5  ;;  %v13968_v2 = vld [vmem:[#allocation8 + $0x650] sm:$0xf]  ;;  %v13202_v19 = vld [vmem:[#allocation8 + $0x70] sm:$0xf0]  ;;  %v7378_v47 = vpop.f32.mrf.mxu3 }
 0x499   :  { %v17458_v26 = vld [vmem:[#allocation8 + $0x66c] sm:$0xf0]  ;;  %v17326_v31 = vld [vmem:[#allocation8 + $0x254] sm:$0xf]  ;;  %v13205_v9 = vor.u32 %v17262_v30, %v13202_v19 }
 0x49a   :  { %7707 = vmatpush.bf16.msra.mxu1 %v13589_v34  ;;  %7630 = vmatpush.bf16.msra.mxu3 %v14065_v42  ;;  %v13969_v37 = vor.u32 %v17458_v26, %v13968_v2  ;;  %v13458_v32 = vld [vmem:[#allocation8 + $0x270] sm:$0xf0]  ;;  %v13936_v34 = vld [vmem:[#allocation8 + $0x610] sm:$0xf] }
 0x49b   :  { %v17390_v62 = vld [vmem:[#allocation8 + $0x454] sm:$0xf]  ;;  %v15184_v29 = vld [vmem:[#allocation8 + $0xfd0] sm:$0xf]  ;;  %v13461_v42 = vor.u32 %v17326_v31, %v13458_v32 }
 0x49c   :  { %7720 = vmatpush.bf16.msra.mxu2 %v13845_v36  ;;  %7695 = vmatpush.bf16.msra.mxu0 %v13301_v49  ;;  %v13714_v8 = vld [vmem:[#allocation8 + $0x470] sm:$0xf0]  ;;  %v17450_v36 = vld [vmem:[#allocation8 + $0x62c] sm:$0xf0] }
 0x49d   :  { %v17762_v4 = vld [vmem:[#allocation8 + $0xfec] sm:$0xf0]  ;;  %v13717_v7 = vor.u32 %v17390_v62, %v13714_v8  ;;  %v17254_v43 = vld [vmem:[#allocation8 + $0x14] sm:$0xf]  ;;  %v13937_v49 = vor.u32 %v17450_v36, %v13936_v34 }
 0x49e   :  { %7708 = vmatpush.bf16.msra.mxu1 %v13557_v57  ;;  %7631 = vmatpush.bf16.msra.mxu3 %v14033_v35  ;;  %v13170_v56 = vld [vmem:[#allocation8 + $0x30] sm:$0xf0]  ;;  %v15185_v60 = vor.u32 %v17762_v4, %v15184_v29  ;;  %v15120_v23 = vld [vmem:[#allocation8 + $0xf50] sm:$0xf]  ;;  %v4599_v29 = vperm.slane %v18711_v24, 3 }
 0x49f   :  { %v17318_v13 = vld [vmem:[#allocation8 + $0x214] sm:$0xf]  ;;  %v13173_v3 = vor.u32 %v17254_v43, %v13170_v56  ;;  %v15088_v34 = vld [vmem:[#allocation8 + $0xf10] sm:$0xf] }
 0x4a0   :  { %7721 = vmatpush.bf16.msra.mxu2 %v13813_v58  ;;  %7696 = vmatpush.bf16.msra.mxu0 %v13269_v44  ;;  %v13426_v57 = vld [vmem:[#allocation8 + $0x230] sm:$0xf0]  ;;  %v15152_v44 = vld [vmem:[#allocation8 + $0xf90] sm:$0xf] }
 0x4a1   :  { %v17382_v58 = vld [vmem:[#allocation8 + $0x414] sm:$0xf]  ;;  %v13429_v45 = vor.u32 %v17318_v13, %v13426_v57  ;;  %v17738_v36 = vld [vmem:[#allocation8 + $0xf2c] sm:$0xf0] }
 0x4a2   :  { %7709 = vmatpush.bf16.msra.mxu1 %v13525_v16  ;;  %7632 = vmatpush.bf16.msra.mxu3 %v14001_v25  ;;  %v13682_v41 = vld [vmem:[#allocation8 + $0x430] sm:$0xf0]  ;;  %v17754_v16 = vld [vmem:[#allocation8 + $0xfac] sm:$0xf0]  ;;  %v15089_v13 = vor.u32 %v17738_v36, %v15088_v34 }
 0x4a3   :  { %v17566_v38 = vld [vmem:[#allocation8 + $0x9d4] sm:$0xf]  ;;  %v15153_v40 = vor.u32 %v17754_v16, %v15152_v44  ;;  %v7428_v16 = vpop.f32.mrf.mxu3 }
 0x4a4   :  { %7722 = vmatpush.bf16.msra.mxu2 %v13781_v18  ;;  %7697 = vmatpush.bf16.msra.mxu0 %v13237_v27  ;;  %v14418_v35 = vld [vmem:[#allocation8 + $0x9f0] sm:$0xf0]  ;;  %v13685_v18 = vor.u32 %v17382_v58, %v13682_v41  ;;  %v17746_v27 = vld [vmem:[#allocation8 + $0xf6c] sm:$0xf0]  ;;  %v7493_v58 = vpop.f32.mrf.mxu0 }
 0x4a5   :  { %v17630_v0 = vld [vmem:[#allocation8 + $0xbd4] sm:$0xf]  ;;  %v14421_v39 = vor.u32 %v17566_v38, %v14418_v35  ;;  %v15121_v32 = vor.u32 %v17746_v27, %v15120_v23  ;;  %v15056_v41 = vld [vmem:[#allocation8 + $0xed0] sm:$0xf]  ;;  %v7494_v38 = vadd.f32 %v7493_v58, %v4599_v29  ;;  %v7506_v35 = vpop.f32.mrf.mxu1 }
 0x4a6   :  { %7710 = vmatpush.bf16.msra.mxu1 %v13493_v63  ;;  %7633 = vmatpush.bf16.msra.mxu3 %v13969_v37  ;;  %v14674_v33 = vld [vmem:[#allocation8 + $0xbf0] sm:$0xf0] }
 0x4a7   :  { %v17694_v48 = vld [vmem:[#allocation8 + $0xdd4] sm:$0xf]  ;;  %v14677_v50 = vor.u32 %v17630_v0, %v14674_v33 }
 0x4a8   :  { %7723 = vmatpush.bf16.msra.mxu2 %v13749_v28  ;;  %7698 = vmatpush.bf16.msra.mxu0 %v13205_v9  ;;  %v14930_v5 = vld [vmem:[#allocation8 + $0xdf0] sm:$0xf0] }
 0x4a9   :  { %v14933_v61 = vor.u32 %v17694_v48, %v14930_v5  ;;  %v17558_v25 = vld [vmem:[#allocation8 + $0x994] sm:$0xf] }
 0x4aa   :  { %7711 = vmatpush.bf16.msra.mxu1 %v13461_v42  ;;  %7634 = vmatpush.bf16.msra.mxu3 %v13937_v49  ;;  %v14386_v21 = vld [vmem:[#allocation8 + $0x9b0] sm:$0xf0] }
 0x4ab   :  { %v17622_v22 = vld [vmem:[#allocation8 + $0xb94] sm:$0xf]  ;;  %v14389_v63 = vor.u32 %v17558_v25, %v14386_v21  ;;  %v15024_v25 = vld [vmem:[#allocation8 + $0xe90] sm:$0xf] }
 0x4ac   :  { %7724 = vmatpush.bf16.msra.mxu2 %v13717_v7  ;;  %7699 = vmatpush.bf16.msra.mxu0 %v13173_v3  ;;  %v14642_v11 = vld [vmem:[#allocation8 + $0xbb0] sm:$0xf0]  ;;  %v17722_v21 = vld [vmem:[#allocation8 + $0xeac] sm:$0xf0] }
 0x4ad   :  { %v17686_v2 = vld [vmem:[#allocation8 + $0xd94] sm:$0xf]  ;;  %7635 = vmatmul.bf16.vlgmr.msra.gmra.mxu3 %v18612_v59  ;;  %v14645_v28 = vor.u32 %v17622_v22, %v14642_v11 }
 0x4ae   :  { %7679 = vmatpush.bf16.msrb.mxu3 %v15185_v60  ;;  %v14898_v26 = vld [vmem:[#allocation8 + $0xdb0] sm:$0xf0]  ;;  %7712 = vmatpush.bf16.msra.mxu1 %v13429_v45  ;;  %v17730_v60 = vld [vmem:[#allocation8 + $0xeec] sm:$0xf0]  ;;  %v7507_v45 = vadd.f32 %v7506_v35, %v7494_v38 }
 0x4af   :  { %v14901_v30 = vor.u32 %v17686_v2, %v14898_v26  ;;  %v17550_v19 = vld [vmem:[#allocation8 + $0x954] sm:$0xf]  ;;  %7700 = vmatmul.bf16.vlgmr.msra.gmra.mxu0 %v18606_v12  ;;  %v15057_v44 = vor.u32 %v17730_v60, %v15056_v41 }
 0x4b0   :  { %7725 = vmatpush.bf16.msra.mxu2 %v13685_v18  ;;  %7744 = vmatpush.bf16.msrb.mxu0 %v14421_v39  ;;  %v14354_v31 = vld [vmem:[#allocation8 + $0x970] sm:$0xf0] }
 0x4b1   :  { %v17614_v37 = vld [vmem:[#allocation8 + $0xb54] sm:$0xf]  ;;  %7713 = vmatmul.bf16.vlgmr.msra.gmra.mxu1 %v18608_v14  ;;  %v14357_v9 = vor.u32 %v17550_v19, %v14354_v31 }
 0x4b2   :  { %7757 = vmatpush.bf16.msrb.mxu1 %v14677_v50  ;;  %7680 = vmatpush.bf16.msrb.mxu3 %v15153_v40  ;;  %v14610_v62 = vld [vmem:[#allocation8 + $0xb70] sm:$0xf0] }
 0x4b3   :  { %v17678_v8 = vld [vmem:[#allocation8 + $0xd54] sm:$0xf]  ;;  %7726 = vmatmul.bf16.vlgmr.msra.gmra.mxu2 %v18610_v52  ;;  %v14613_v4 = vor.u32 %v17614_v37, %v14610_v62  ;;  %v7495_v37 = vpop.f32.mrf.mxu0  ;;  %v17714_v62 = vld [vmem:[#allocation8 + $0xe6c] sm:$0xf0] }
 0x4b4   :  { %7770 = vmatpush.bf16.msrb.mxu2 %v14933_v61  ;;  %v14866_v47 = vld [vmem:[#allocation8 + $0xd70] sm:$0xf0]  ;;  %7745 = vmatpush.bf16.msrb.mxu0 %v14389_v63  ;;  %v7429_v61 = vadd.f32 %v7428_v16, %v18717_v17  ;;  %v7519_v63 = vpop.f32.mrf.mxu2  ;;  %v17315_v16 = vld [vmem:[#allocation8 + $0x1f4] sm:$0xf0] }
 0x4b5   :  { %v14869_v42 = vor.u32 %v17678_v8, %v14866_v47  ;;  %v17542_v7 = vld [vmem:[#allocation8 + $0x914] sm:$0xf]  ;;  %v18742_v17 = vadd.f32 %v7519_v63, %v7507_v45  ;;  %v17307_v63 = vld [vmem:[#allocation8 + $0x1b4] sm:$0xf0] }
 0x4b6   :  { %7758 = vmatpush.bf16.msrb.mxu1 %v14645_v28  ;;  %v14322_v43 = vld [vmem:[#allocation8 + $0x930] sm:$0xf0]  ;;  %7681 = vmatpush.bf16.msrb.mxu3 %v15121_v32  ;;  %v7442_v40 = vadd.f32 %v18727_v55, %v7429_v61  ;;  %v15025_v28 = vor.u32 %v17722_v21, %v15024_v25  ;;  %v14992_v32 = vld [vmem:[#allocation8 + $0xe50] sm:$0xf]  ;;  %v7508_v55 = vpop.f32.mrf.mxu1  ;;  %v13912_v61 = vld [vmem:[#allocation8 + $0x5d8] sm:$0xf] }
 0x4b7   :  { %v17606_v56 = vld [vmem:[#allocation8 + $0xb14] sm:$0xf]  ;;  %v14325_v0 = vor.u32 %v17542_v7, %v14322_v43  ;;  %v14993_v7 = vor.u32 %v17714_v62, %v14992_v32  ;;  %v7430_v43 = vpop.f32.mrf.mxu3  ;;  %v17443_v25 = vld [vmem:[#allocation8 + $0x5f4] sm:$0xf0] }
 0x4b8   :  { %7771 = vmatpush.bf16.msrb.mxu2 %v14901_v30  ;;  %v14578_v1 = vld [vmem:[#allocation8 + $0xb30] sm:$0xf0]  ;;  %7746 = vmatpush.bf16.msrb.mxu0 %v14357_v9  ;;  %v7455_v8 = vadd.f32 %v18729_v46, %v7442_v40  ;;  %v14960_v46 = vld [vmem:[#allocation8 + $0xe10] sm:$0xf]  ;;  %v17435_v37 = vld [vmem:[#allocation8 + $0x5b4] sm:$0xf0] }
 0x4b9   :  { %v17670_v49 = vld [vmem:[#allocation8 + $0xd14] sm:$0xf]  ;;  %v14581_v24 = vor.u32 %v17606_v56, %v14578_v1  ;;  %v17427_v43 = vld [vmem:[#allocation8 + $0x574] sm:$0xf0] }
 0x4ba   :  { %v14834_v57 = vld [vmem:[#allocation8 + $0xd30] sm:$0xf0]  ;;  %7759 = vmatpush.bf16.msrb.mxu1 %v14613_v4  ;;  %7682 = vmatpush.bf16.msrb.mxu3 %v15089_v13 }
 0x4bb   :  { %v14837_v3 = vor.u32 %v17670_v49, %v14834_v57  ;;  %v17534_v33 = vld [vmem:[#allocation8 + $0x8d4] sm:$0xf]  ;;  %v17706_v49 = vld [vmem:[#allocation8 + $0xe2c] sm:$0xf0] }
 0x4bc   :  { %7772 = vmatpush.bf16.msrb.mxu2 %v14869_v42  ;;  %v14290_v48 = vld [vmem:[#allocation8 + $0x8f0] sm:$0xf0]  ;;  %7747 = vmatpush.bf16.msrb.mxu0 %v14325_v0  ;;  %v18746_v42 = vadd.f32 %v18733_v6, %v7455_v8 }
 0x4bd   :  { %v17598_v5 = vld [vmem:[#allocation8 + $0xad4] sm:$0xf]  ;;  %v14293_v22 = vor.u32 %v17534_v33, %v14290_v48 }
 0x4be   :  { %v14546_v18 = vld [vmem:[#allocation8 + $0xaf0] sm:$0xf0]  ;;  %7760 = vmatpush.bf16.msrb.mxu1 %v14581_v24  ;;  %7683 = vmatpush.bf16.msrb.mxu3 %v15057_v44  ;;  %v7521_v24 = vpop.f32.mrf.mxu2  ;;  %v13400_v44 = vld [vmem:[#allocation8 + $0x1d8] sm:$0xf] }
 0x4bf   :  { %v17662_v39 = vld [vmem:[#allocation8 + $0xcd4] sm:$0xf]  ;;  %v14549_v11 = vor.u32 %v17598_v5, %v14546_v18  ;;  %v13656_v18 = vld [vmem:[#allocation8 + $0x3d8] sm:$0xf] }
 0x4c0   :  { %v14802_v50 = vld [vmem:[#allocation8 + $0xcf0] sm:$0xf0]  ;;  %7773 = vmatpush.bf16.msrb.mxu2 %v14837_v3  ;;  %7748 = vmatpush.bf16.msrb.mxu0 %v14293_v22  ;;  %v14961_v3 = vor.u32 %v17706_v49, %v14960_v46 }
 0x4c1   :  { %v14805_v2 = vor.u32 %v17662_v39, %v14802_v50  ;;  %v17526_v26 = vld [vmem:[#allocation8 + $0x894] sm:$0xf]  ;;  %v17379_v50 = vld [vmem:[#allocation8 + $0x3f4] sm:$0xf0] }
 0x4c2   :  { %v14258_v23 = vld [vmem:[#allocation8 + $0x8b0] sm:$0xf0]  ;;  %7761 = vmatpush.bf16.msrb.mxu1 %v14549_v11  ;;  %7684 = vmatpush.bf16.msrb.mxu3 %v15025_v28  ;;  %v13624_v28 = vld [vmem:[#allocation8 + $0x398] sm:$0xf] }
 0x4c3   :  { %v17590_v27 = vld [vmem:[#allocation8 + $0xa94] sm:$0xf]  ;;  %v14261_v47 = vor.u32 %v17526_v26, %v14258_v23  ;;  %v13657_v26 = vor.u32 %v17379_v50, %v13656_v18  ;;  %v13913_v23 = vor.u32 %v17443_v25, %v13912_v61  ;;  %v13528_v18 = vld [vmem:[#allocation8 + $0x2d8] sm:$0xf]  ;;  %v7480_v50 = vpop.f32.mrf.mxu3 }
 0x4c4   :  { %v14514_v30 = vld [vmem:[#allocation8 + $0xab0] sm:$0xf0]  ;;  %7774 = vmatpush.bf16.msrb.mxu2 %v14805_v2  ;;  %v13401_v2 = vor.u32 %v17315_v16, %v13400_v44  ;;  %v13272_v44 = vld [vmem:[#allocation8 + $0xd8] sm:$0xf] }
 0x4c5   :  { %v17654_v19 = vld [vmem:[#allocation8 + $0xc94] sm:$0xf]  ;;  %v14517_v34 = vor.u32 %v17590_v27, %v14514_v30  ;;  %7749 = vmatpush.bf16.msrb.mxu0 %v14261_v47  ;;  %v13368_v27 = vld [vmem:[#allocation8 + $0x198] sm:$0xf] }
 0x4c6   :  { %v14770_v31 = vld [vmem:[#allocation8 + $0xcb0] sm:$0xf0]  ;;  %7685 = vmatpush.bf16.msrb.mxu3 %v14993_v7  ;;  %v13369_v8 = vor.u32 %v17307_v63, %v13368_v27  ;;  %v13848_v7 = vld [vmem:[#allocation8 + $0x558] sm:$0xf] }
 0x4c7   :  { %v14773_v36 = vor.u32 %v17654_v19, %v14770_v31  ;;  %v17518_v9 = vld [vmem:[#allocation8 + $0x854] sm:$0xf]  ;;  %7762 = vmatpush.bf16.msrb.mxu1 %v14517_v34  ;;  %v17371_v19 = vld [vmem:[#allocation8 + $0x3b4] sm:$0xf0]  ;;  %v13849_v49 = vor.u32 %v17427_v43, %v13848_v7 }
 0x4c8   :  { %v14226_v29 = vld [vmem:[#allocation8 + $0x870] sm:$0xf0]  ;;  %v13880_v31 = vld [vmem:[#allocation8 + $0x598] sm:$0xf]  ;;  %v13625_v55 = vor.u32 %v17371_v19, %v13624_v28 }
 0x4c9   :  { %v17582_v4 = vld [vmem:[#allocation8 + $0xa54] sm:$0xf]  ;;  %v14229_v57 = vor.u32 %v17518_v9, %v14226_v29  ;;  %7775 = vmatpush.bf16.msrb.mxu2 %v14773_v36  ;;  %v13881_v47 = vor.u32 %v17435_v37, %v13880_v31  ;;  %v13336_v34 = vld [vmem:[#allocation8 + $0x158] sm:$0xf] }
 0x4ca   :  { %v14482_v56 = vld [vmem:[#allocation8 + $0xa70] sm:$0xf0]  ;;  %7686 = vmatpush.bf16.msrb.mxu3 %v14961_v3  ;;  %v17299_v36 = vld [vmem:[#allocation8 + $0x174] sm:$0xf0] }
 0x4cb   :  { %v17646_v13 = vld [vmem:[#allocation8 + $0xc54] sm:$0xf]  ;;  %v14485_v60 = vor.u32 %v17582_v4, %v14482_v56  ;;  %7750 = vmatpush.bf16.msrb.mxu0 %v14229_v57  ;;  %v13592_v9 = vld [vmem:[#allocation8 + $0x358] sm:$0xf]  ;;  %v7482_v43 = vpop.f32.mrf.mxu3 }
 0x4cc   :  { %v14738_v1 = vld [vmem:[#allocation8 + $0xc70] sm:$0xf0]  ;;  %v17363_v4 = vld [vmem:[#allocation8 + $0x374] sm:$0xf0] }
 0x4cd   :  { %v17502_v58 = vld [vmem:[#allocation8 + $0x7d4] sm:$0xf]  ;;  %v14741_v38 = vor.u32 %v17646_v13, %v14738_v1  ;;  %7763 = vmatpush.bf16.msrb.mxu1 %v14485_v60  ;;  %7687 = vmatmul.bf16.vlgmr.msrb.gmra.mxu3 %v18668_v54  ;;  %v13337_v1 = vor.u32 %v17299_v36, %v13336_v34  ;;  %v13593_v46 = vor.u32 %v17363_v4, %v13592_v9  ;;  %v13304_v57 = vld [vmem:[#allocation8 + $0x118] sm:$0xf] }
 0x4ce   :  { %v14162_v41 = vld [vmem:[#allocation8 + $0x7f0] sm:$0xf0]  ;;  %v17283_v16 = vld [vmem:[#allocation8 + $0xf4] sm:$0xf0] }
 0x4cf   :  { %v17510_v35 = vld [vmem:[#allocation8 + $0x814] sm:$0xf]  ;;  %v14165_v45 = vor.u32 %v17502_v58, %v14162_v41  ;;  %7776 = vmatpush.bf16.msrb.mxu2 %v14741_v38  ;;  %v17291_v58 = vld [vmem:[#allocation8 + $0x134] sm:$0xf0] }
 0x4d0   :  { %v14194_v0 = vld [vmem:[#allocation8 + $0x830] sm:$0xf0]  ;;  %v13560_v41 = vld [vmem:[#allocation8 + $0x318] sm:$0xf] }
 0x4d1   :  { %v17574_v6 = vld [vmem:[#allocation8 + $0xa14] sm:$0xf]  ;;  %v14197_v39 = vor.u32 %v17510_v35, %v14194_v0  ;;  %7731 = vmatpush.bf16.msra.mxu3 %v14165_v45  ;;  %v17355_v38 = vld [vmem:[#allocation8 + $0x334] sm:$0xf0] }
 0x4d2   :  { %v14450_v33 = vld [vmem:[#allocation8 + $0xa30] sm:$0xf0]  ;;  %v13816_v35 = vld [vmem:[#allocation8 + $0x518] sm:$0xf] }
 0x4d3   :  { %v17638_v48 = vld [vmem:[#allocation8 + $0xc14] sm:$0xf]  ;;  %v14453_v21 = vor.u32 %v17574_v6, %v14450_v33  ;;  %7751 = vmatpush.bf16.msrb.mxu0 %v14197_v39  ;;  %v17419_v0 = vld [vmem:[#allocation8 + $0x534] sm:$0xf0]  ;;  %v18752_v6 = vpop.f32.mrf.mxu0  ;;  %v18754_v33 = vpop.f32.mrf.mxu1 }
 0x4d4   :  { %v14706_v5 = vld [vmem:[#allocation8 + $0xc30] sm:$0xf0]  ;;  %v13817_v45 = vor.u32 %v17419_v0, %v13816_v35  ;;  %v17347_v61 = vld [vmem:[#allocation8 + $0x2f4] sm:$0xf0] }
 0x4d5   :  { %v17494_v22 = vld [vmem:[#allocation8 + $0x794] sm:$0xf]  ;;  %v14709_v11 = vor.u32 %v17638_v48, %v14706_v5  ;;  %7764 = vmatpush.bf16.msrb.mxu1 %v14453_v21  ;;  %v13305_v48 = vor.u32 %v17291_v58, %v13304_v57  ;;  %v13561_v5 = vor.u32 %v17355_v38, %v13560_v41  ;;  %v13784_v25 = vld [vmem:[#allocation8 + $0x4d8] sm:$0xf] }
 0x4d6   :  { %v14130_v40 = vld [vmem:[#allocation8 + $0x7b0] sm:$0xf0]  ;;  %7752 = vmatmul.bf16.vlgmr.msrb.gmra.mxu0 %v18638_v51  ;;  %v17411_v21 = vld [vmem:[#allocation8 + $0x4f4] sm:$0xf0] }
 0x4d7   :  { %v14133_v30 = vor.u32 %v17494_v22, %v14130_v40  ;;  %v17486_v32 = vld [vmem:[#allocation8 + $0x754] sm:$0xf]  ;;  %7777 = vmatpush.bf16.msrb.mxu2 %v14709_v11  ;;  %7796 = vmatpush.bf16.msra.mxu0 %v13401_v2  ;;  %v18757_v22 = vadd.f32 %v7480_v50, %v18746_v42  ;;  %v13273_v2 = vor.u32 %v17283_v16, %v13272_v44  ;;  %v13240_v27 = vld [vmem:[#allocation8 + $0x98] sm:$0xf] }
 0x4d8   :  { %v14098_v62 = vld [vmem:[#allocation8 + $0x770] sm:$0xf0]  ;;  %7765 = vmatmul.bf16.vlgmr.msrb.gmra.mxu1 %v18640_v53  ;;  %v17275_v63 = vld [vmem:[#allocation8 + $0xb4] sm:$0xf0] }
 0x4d9   :  { %7809 = vmatpush.bf16.msra.mxu1 %v13657_v26  ;;  %7732 = vmatpush.bf16.msra.mxu3 %v14133_v30  ;;  %v14101_v29 = vor.u32 %v17486_v32, %v14098_v62  ;;  %v17478_v56 = vld [vmem:[#allocation8 + $0x714] sm:$0xf]  ;;  %v13529_v26 = vor.u32 %v17347_v61, %v13528_v18  ;;  %v13496_v28 = vld [vmem:[#allocation8 + $0x298] sm:$0xf]  ;;  %v18759_v30 = vpop.f32.mrf.mxu2 }
 0x4da   :  { %7778 = vmatmul.bf16.vlgmr.msrb.gmra.mxu2 %v18646_v20  ;;  %v14066_v13 = vld [vmem:[#allocation8 + $0x730] sm:$0xf0]  ;;  %v17339_v31 = vld [vmem:[#allocation8 + $0x2b4] sm:$0xf0] }
 0x4db   :  { %7822 = vmatpush.bf16.msra.mxu2 %v13913_v23  ;;  %7797 = vmatpush.bf16.msra.mxu0 %v13369_v8  ;;  %v14069_v60 = vor.u32 %v17478_v56, %v14066_v13  ;;  %v17470_v24 = vld [vmem:[#allocation8 + $0x6d4] sm:$0xf]  ;;  %v13785_v23 = vor.u32 %v17411_v21, %v13784_v25  ;;  %v13752_v37 = vld [vmem:[#allocation8 + $0x498] sm:$0xf]  ;;  %v7547_v42 = vpop.f32.mrf.mxu0  ;;  %v13497_v34 = vor.u32 %v17339_v31, %v13496_v28 }
 0x4dc   :  { %v14034_v3 = vld [vmem:[#allocation8 + $0x6f0] sm:$0xf0]  ;;  %v17403_v32 = vld [vmem:[#allocation8 + $0x4b4] sm:$0xf0] }
 0x4dd   :  { %7810 = vmatpush.bf16.msra.mxu1 %v13625_v55  ;;  %7733 = vmatpush.bf16.msra.mxu3 %v14101_v29  ;;  %v14037_v39 = vor.u32 %v17470_v24, %v14034_v3  ;;  %v17462_v40 = vld [vmem:[#allocation8 + $0x694] sm:$0xf]  ;;  %v7560_v55 = vpop.f32.mrf.mxu1  ;;  %v13753_v36 = vor.u32 %v17403_v32, %v13752_v37  ;;  %v13208_v9 = vld [vmem:[#allocation8 + $0x58] sm:$0xf] }
 0x4de   :  { %v14002_v11 = vld [vmem:[#allocation8 + $0x6b0] sm:$0xf0]  ;;  %v17267_v29 = vld [vmem:[#allocation8 + $0x74] sm:$0xf0] }
 0x4df   :  { %7823 = vmatpush.bf16.msra.mxu2 %v13881_v47  ;;  %7798 = vmatpush.bf16.msra.mxu0 %v13337_v1  ;;  %v14005_v19 = vor.u32 %v17462_v40, %v14002_v11  ;;  %v17454_v62 = vld [vmem:[#allocation8 + $0x654] sm:$0xf]  ;;  %v13241_v47 = vor.u32 %v17275_v63, %v13240_v27  ;;  %v13464_v4 = vld [vmem:[#allocation8 + $0x258] sm:$0xf]  ;;  %v13209_v57 = vor.u32 %v17267_v29, %v13208_v9 }
 0x4e0   :  { %v13970_v8 = vld [vmem:[#allocation8 + $0x670] sm:$0xf0]  ;;  %v17331_v56 = vld [vmem:[#allocation8 + $0x274] sm:$0xf0] }
 0x4e1   :  { %7811 = vmatpush.bf16.msra.mxu1 %v13593_v46  ;;  %7734 = vmatpush.bf16.msra.mxu3 %v14069_v60  ;;  %v13973_v7 = vor.u32 %v17454_v62, %v13970_v8  ;;  %v13720_v13 = vld [vmem:[#allocation8 + $0x458] sm:$0xf]  ;;  %v17446_v46 = vld [vmem:[#allocation8 + $0x614] sm:$0xf]  ;;  %v13465_v60 = vor.u32 %v17331_v56, %v13464_v4  ;;  %v7573_v3 = vpop.f32.mrf.mxu2 }
 0x4e2   :  { %v17395_v1 = vld [vmem:[#allocation8 + $0x474] sm:$0xf0]  ;;  %v17758_v58 = vld [vmem:[#allocation8 + $0xfd4] sm:$0xf] }
 0x4e3   :  { %7824 = vmatpush.bf16.msra.mxu2 %v13849_v49  ;;  %7799 = vmatpush.bf16.msra.mxu0 %v13305_v48  ;;  %v13938_v49 = vld [vmem:[#allocation8 + $0x630] sm:$0xf0]  ;;  %v13721_v38 = vor.u32 %v17395_v1, %v13720_v13  ;;  %v13176_v35 = vld [vmem:[#allocation8 + $0x18] sm:$0xf] }
 0x4e4   :  { %v15186_v41 = vld [vmem:[#allocation8 + $0xff0] sm:$0xf0]  ;;  %v17259_v0 = vld [vmem:[#allocation8 + $0x34] sm:$0xf0]  ;;  %v13941_v48 = vor.u32 %v17446_v46, %v13938_v49 }
 0x4e5   :  { %7812 = vmatpush.bf16.msra.mxu1 %v13561_v5  ;;  %7735 = vmatpush.bf16.msra.mxu3 %v14037_v39  ;;  %v13432_v24 = vld [vmem:[#allocation8 + $0x218] sm:$0xf]  ;;  %v15189_v16 = vor.u32 %v17758_v58, %v15186_v41  ;;  %v13177_v61 = vor.u32 %v17259_v0, %v13176_v35  ;;  %v17742_v55 = vld [vmem:[#allocation8 + $0xf54] sm:$0xf]  ;;  %v18765_v58 = vld [vmem:[#allocation10] sm:$0xff] }
 0x4e6   :  { %v17323_v5 = vld [vmem:[#allocation8 + $0x234] sm:$0xf0]  ;;  %v17734_v46 = vld [vmem:[#allocation8 + $0xf14] sm:$0xf]  ;;  %v4600_v41 = vperm.slane %v18765_v58, 4 }
 0x4e7   :  { %7825 = vmatpush.bf16.msra.mxu2 %v13817_v45  ;;  %7800 = vmatpush.bf16.msra.mxu0 %v13273_v2  ;;  %v13688_v45 = vld [vmem:[#allocation8 + $0x418] sm:$0xf]  ;;  %v13433_v11 = vor.u32 %v17323_v5, %v13432_v24  ;;  %v17750_v2 = vld [vmem:[#allocation8 + $0xf94] sm:$0xf] }
 0x4e8   :  { %v17387_v44 = vld [vmem:[#allocation8 + $0x434] sm:$0xf0]  ;;  %v15090_v49 = vld [vmem:[#allocation8 + $0xf30] sm:$0xf0] }
 0x4e9   :  { %7813 = vmatpush.bf16.msra.mxu1 %v13529_v26  ;;  %7736 = vmatpush.bf16.msra.mxu3 %v14005_v19  ;;  %v14424_v18 = vld [vmem:[#allocation8 + $0x9d8] sm:$0xf]  ;;  %v15154_v26 = vld [vmem:[#allocation8 + $0xfb0] sm:$0xf0]  ;;  %v15093_v3 = vor.u32 %v17734_v46, %v15090_v49 }
 0x4ea   :  { %v17571_v39 = vld [vmem:[#allocation8 + $0x9f4] sm:$0xf0]  ;;  %v15157_v32 = vor.u32 %v17750_v2, %v15154_v26 }
 0x4eb   :  { %7826 = vmatpush.bf16.msra.mxu2 %v13785_v23  ;;  %7801 = vmatpush.bf16.msra.mxu0 %v13241_v47  ;;  %v14680_v50 = vld [vmem:[#allocation8 + $0xbd8] sm:$0xf]  ;;  %v13689_v23 = vor.u32 %v17387_v44, %v13688_v45  ;;  %v14425_v27 = vor.u32 %v17571_v39, %v14424_v18  ;;  %v15122_v47 = vld [vmem:[#allocation8 + $0xf70] sm:$0xf0]  ;;  %v7597_v44 = vpop.f32.mrf.mxu0 }
 0x4ec   :  { %v17635_v25 = vld [vmem:[#allocation8 + $0xbf4] sm:$0xf0]  ;;  %v15125_v43 = vor.u32 %v17742_v55, %v15122_v47  ;;  %v15058_v18 = vld [vmem:[#allocation8 + $0xef0] sm:$0xf0]  ;;  %v7598_v39 = vadd.f32 %v7597_v44, %v4600_v41 }
 0x4ed   :  { %7814 = vmatpush.bf16.msra.mxu1 %v13497_v34  ;;  %7737 = vmatpush.bf16.msra.mxu3 %v13973_v7  ;;  %v14936_v21 = vld [vmem:[#allocation8 + $0xdd8] sm:$0xf]  ;;  %v14681_v63 = vor.u32 %v17635_v25, %v14680_v50  ;;  %v7610_v50 = vpop.f32.mrf.mxu1  ;;  %v14962_v44 = vld [vmem:[#allocation8 + $0xe30] sm:$0xf0] }
 0x4ee   :  { %v17699_v40 = vld [vmem:[#allocation8 + $0xdf4] sm:$0xf0]  ;;  %v7611_v26 = vadd.f32 %v7610_v50, %v7598_v39 }
 0x4ef   :  { %7827 = vmatpush.bf16.msra.mxu2 %v13753_v36  ;;  %7802 = vmatpush.bf16.msra.mxu0 %v13209_v57  ;;  %v14937_v28 = vor.u32 %v17699_v40, %v14936_v21  ;;  %v14392_v19 = vld [vmem:[#allocation8 + $0x998] sm:$0xf] }
 0x4f0   :  { %v17563_v31 = vld [vmem:[#allocation8 + $0x9b4] sm:$0xf0] }
 0x4f1   :  { %7815 = vmatpush.bf16.msra.mxu1 %v13465_v60  ;;  %7738 = vmatpush.bf16.msra.mxu3 %v13941_v48  ;;  %v14648_v37 = vld [vmem:[#allocation8 + $0xb98] sm:$0xf]  ;;  %v14393_v34 = vor.u32 %v17563_v31, %v14392_v19 }
 0x4f2   :  { %v17627_v42 = vld [vmem:[#allocation8 + $0xbb4] sm:$0xf0] }
 0x4f3   :  { %7828 = vmatpush.bf16.msra.mxu2 %v13721_v38  ;;  %7803 = vmatpush.bf16.msra.mxu0 %v13177_v61  ;;  %v14904_v62 = vld [vmem:[#allocation8 + $0xd98] sm:$0xf]  ;;  %v14649_v36 = vor.u32 %v17627_v42, %v14648_v37  ;;  %v17718_v37 = vld [vmem:[#allocation8 + $0xe94] sm:$0xf] }
 0x4f4   :  { %v17691_v8 = vld [vmem:[#allocation8 + $0xdb4] sm:$0xf0]  ;;  %7739 = vmatmul.bf16.vlgmr.msra.gmra.mxu3 %v18612_v59 }
 0x4f5   :  { %7783 = vmatpush.bf16.msrb.mxu3 %v15189_v16  ;;  %7816 = vmatpush.bf16.msra.mxu1 %v13433_v11  ;;  %v14905_v9 = vor.u32 %v17691_v8, %v14904_v62  ;;  %v14360_v29 = vld [vmem:[#allocation8 + $0x958] sm:$0xf]  ;;  %v17726_v16 = vld [vmem:[#allocation8 + $0xed4] sm:$0xf] }
 0x4f6   :  { %v17555_v4 = vld [vmem:[#allocation8 + $0x974] sm:$0xf0]  ;;  %7804 = vmatmul.bf16.vlgmr.msra.gmra.mxu0 %v18606_v12 }
 0x4f7   :  { %7829 = vmatpush.bf16.msra.mxu2 %v13689_v23  ;;  %7848 = vmatpush.bf16.msrb.mxu0 %v14425_v27  ;;  %v14616_v7 = vld [vmem:[#allocation8 + $0xb58] sm:$0xf]  ;;  %v14361_v57 = vor.u32 %v17555_v4, %v14360_v29  ;;  %v15061_v23 = vor.u32 %v17726_v16, %v15058_v18  ;;  %v7532_v27 = vpop.f32.mrf.mxu3 }
 0x4f8   :  { %v17619_v56 = vld [vmem:[#allocation8 + $0xb74] sm:$0xf0]  ;;  %7817 = vmatmul.bf16.vlgmr.msra.gmra.mxu1 %v18608_v14  ;;  %v7533_v31 = vadd.f32 %v7532_v27, %v18742_v17 }
 0x4f9   :  { %7861 = vmatpush.bf16.msrb.mxu1 %v14681_v63  ;;  %7784 = vmatpush.bf16.msrb.mxu3 %v15157_v32  ;;  %v14872_v13 = vld [vmem:[#allocation8 + $0xd58] sm:$0xf]  ;;  %v14617_v60 = vor.u32 %v17619_v56, %v14616_v7  ;;  %v15026_v32 = vld [vmem:[#allocation8 + $0xeb0] sm:$0xf0]  ;;  %v7599_v56 = vpop.f32.mrf.mxu0 }
 0x4fa   :  { %v17683_v1 = vld [vmem:[#allocation8 + $0xd74] sm:$0xf0]  ;;  %7830 = vmatmul.bf16.vlgmr.msra.gmra.mxu2 %v18610_v52  ;;  %v7546_v62 = vadd.f32 %v18752_v6, %v7533_v31  ;;  %v15029_v29 = vor.u32 %v17718_v37, %v15026_v32  ;;  %v7612_v6 = vpop.f32.mrf.mxu1  ;;  %v13658_v37 = vld [vmem:[#allocation8 + $0x3f8] sm:$0xf0] }
 0x4fb   :  { %7874 = vmatpush.bf16.msrb.mxu2 %v14937_v28  ;;  %7849 = vmatpush.bf16.msrb.mxu0 %v14393_v34  ;;  %v14873_v38 = vor.u32 %v17683_v1, %v14872_v13  ;;  %v14328_v35 = vld [vmem:[#allocation8 + $0x918] sm:$0xf]  ;;  %v17710_v13 = vld [vmem:[#allocation8 + $0xe54] sm:$0xf]  ;;  %v17439_v32 = vld [vmem:[#allocation8 + $0x5dc] sm:$0xf] }
 0x4fc   :  { %v17547_v0 = vld [vmem:[#allocation8 + $0x934] sm:$0xf0]  ;;  %v14994_v1 = vld [vmem:[#allocation8 + $0xe70] sm:$0xf0]  ;;  %v7559_v46 = vadd.f32 %v18754_v33, %v7546_v62  ;;  %v13626_v56 = vld [vmem:[#allocation8 + $0x3b8] sm:$0xf0] }
 0x4fd   :  { %7862 = vmatpush.bf16.msrb.mxu1 %v14649_v36  ;;  %v14584_v24 = vld [vmem:[#allocation8 + $0xb18] sm:$0xf]  ;;  %7785 = vmatpush.bf16.msrb.mxu3 %v15125_v43  ;;  %v14329_v61 = vor.u32 %v17547_v0, %v14328_v35  ;;  %v17702_v33 = vld [vmem:[#allocation8 + $0xe14] sm:$0xf] }
 0x4fe   :  { %v17611_v48 = vld [vmem:[#allocation8 + $0xb34] sm:$0xf0]  ;;  %v18774_v0 = vadd.f32 %v18759_v30, %v7559_v46 }
 0x4ff   :  { %7875 = vmatpush.bf16.msrb.mxu2 %v14905_v9  ;;  %v14840_v5 = vld [vmem:[#allocation8 + $0xd18] sm:$0xf]  ;;  %7850 = vmatpush.bf16.msrb.mxu0 %v14361_v57  ;;  %v14585_v25 = vor.u32 %v17611_v48, %v14584_v24  ;;  %v7623_v9 = vpop.f32.mrf.mxu2  ;;  %v14997_v24 = vor.u32 %v17710_v13, %v14994_v1  ;;  %v17431_v13 = vld [vmem:[#allocation8 + $0x59c] sm:$0xf] }
 0x500   :  { %v17675_v45 = vld [vmem:[#allocation8 + $0xd34] sm:$0xf0]  ;;  %v18770_v17 = vadd.f32 %v7623_v9, %v7611_v26  ;;  %v13882_v1 = vld [vmem:[#allocation8 + $0x5b8] sm:$0xf0] }
 0x501   :  { %7863 = vmatpush.bf16.msrb.mxu1 %v14617_v60  ;;  %v14841_v21 = vor.u32 %v17675_v45, %v14840_v5  ;;  %v14296_v40 = vld [vmem:[#allocation8 + $0x8d8] sm:$0xf]  ;;  %7786 = vmatpush.bf16.msrb.mxu3 %v15093_v3  ;;  %v7534_v3 = vpop.f32.mrf.mxu3 }
 0x502   :  { %v17539_v11 = vld [vmem:[#allocation8 + $0x8f4] sm:$0xf0]  ;;  %v13594_v3 = vld [vmem:[#allocation8 + $0x378] sm:$0xf0] }
 0x503   :  { %7876 = vmatpush.bf16.msrb.mxu2 %v14873_v38  ;;  %v14552_v2 = vld [vmem:[#allocation8 + $0xad8] sm:$0xf]  ;;  %7851 = vmatpush.bf16.msrb.mxu0 %v14329_v61  ;;  %v14297_v42 = vor.u32 %v17539_v11, %v14296_v40  ;;  %v14965_v11 = vor.u32 %v17702_v33, %v14962_v44 }
 0x504   :  { %v17603_v63 = vld [vmem:[#allocation8 + $0xaf4] sm:$0xf0] }
 0x505   :  { %v14808_v28 = vld [vmem:[#allocation8 + $0xcd8] sm:$0xf]  ;;  %7864 = vmatpush.bf16.msrb.mxu1 %v14585_v25  ;;  %v14553_v8 = vor.u32 %v17603_v63, %v14552_v2  ;;  %7787 = vmatpush.bf16.msrb.mxu3 %v15061_v23  ;;  %v17311_v63 = vld [vmem:[#allocation8 + $0x1dc] sm:$0xf] }
 0x506   :  { %v17667_v19 = vld [vmem:[#allocation8 + $0xcf4] sm:$0xf0] }
 0x507   :  { %7877 = vmatpush.bf16.msrb.mxu2 %v14841_v21  ;;  %v14809_v55 = vor.u32 %v17667_v19, %v14808_v28  ;;  %v14264_v47 = vld [vmem:[#allocation8 + $0x898] sm:$0xf]  ;;  %7852 = vmatpush.bf16.msrb.mxu0 %v14297_v42  ;;  %v7625_v40 = vpop.f32.mrf.mxu2  ;;  %v13402_v28 = vld [vmem:[#allocation8 + $0x1f8] sm:$0xf0] }
 0x508   :  { %v17531_v34 = vld [vmem:[#allocation8 + $0x8b4] sm:$0xf0]  ;;  %v17375_v19 = vld [vmem:[#allocation8 + $0x3dc] sm:$0xf] }
 0x509   :  { %v14520_v36 = vld [vmem:[#allocation8 + $0xa98] sm:$0xf]  ;;  %v14265_v49 = vor.u32 %v17531_v34, %v14264_v47  ;;  %7865 = vmatpush.bf16.msrb.mxu1 %v14553_v8  ;;  %7788 = vmatpush.bf16.msrb.mxu3 %v15029_v29  ;;  %v13914_v42 = vld [vmem:[#allocation8 + $0x5f8] sm:$0xf0]  ;;  %v13405_v34 = vor.u32 %v17311_v63, %v13402_v28 }
 0x50a   :  { %v17595_v4 = vld [vmem:[#allocation8 + $0xab4] sm:$0xf0]  ;;  %v13917_v9 = vor.u32 %v17439_v32, %v13914_v42  ;;  %v17303_v29 = vld [vmem:[#allocation8 + $0x19c] sm:$0xf]  ;;  %v7584_v42 = vpop.f32.mrf.mxu3 }
 0x50b   :  { %v14776_v7 = vld [vmem:[#allocation8 + $0xc98] sm:$0xf]  ;;  %7878 = vmatpush.bf16.msrb.mxu2 %v14809_v55  ;;  %v14521_v57 = vor.u32 %v17595_v4, %v14520_v36  ;;  %7853 = vmatpush.bf16.msrb.mxu0 %v14265_v49  ;;  %v13661_v36 = vor.u32 %v17375_v19, %v13658_v37  ;;  %v13370_v4 = vld [vmem:[#allocation8 + $0x1b8] sm:$0xf0] }
 0x50c   :  { %v17659_v43 = vld [vmem:[#allocation8 + $0xcb4] sm:$0xf0]  ;;  %v13373_v49 = vor.u32 %v17303_v29, %v13370_v4  ;;  %v13818_v40 = vld [vmem:[#allocation8 + $0x538] sm:$0xf0] }
 0x50d   :  { %v14777_v41 = vor.u32 %v17659_v43, %v14776_v7  ;;  %v14232_v60 = vld [vmem:[#allocation8 + $0x858] sm:$0xf]  ;;  %7866 = vmatpush.bf16.msrb.mxu1 %v14521_v57  ;;  %7789 = vmatpush.bf16.msrb.mxu3 %v14997_v24  ;;  %v17367_v7 = vld [vmem:[#allocation8 + $0x39c] sm:$0xf] }
 0x50e   :  { %v17523_v38 = vld [vmem:[#allocation8 + $0x874] sm:$0xf0]  ;;  %v13629_v57 = vor.u32 %v17367_v7, %v13626_v56  ;;  %v17279_v19 = vld [vmem:[#allocation8 + $0xdc] sm:$0xf] }
 0x50f   :  { %v14488_v35 = vld [vmem:[#allocation8 + $0xa58] sm:$0xf]  ;;  %v14233_v16 = vor.u32 %v17523_v38, %v14232_v60  ;;  %7879 = vmatpush.bf16.msrb.mxu2 %v14777_v41  ;;  %v13885_v41 = vor.u32 %v17431_v13, %v13882_v1  ;;  %v17295_v60 = vld [vmem:[#allocation8 + $0x15c] sm:$0xf] }
 0x510   :  { %v17587_v48 = vld [vmem:[#allocation8 + $0xa74] sm:$0xf0]  ;;  %v13338_v38 = vld [vmem:[#allocation8 + $0x178] sm:$0xf0] }
 0x511   :  { %v14744_v5 = vld [vmem:[#allocation8 + $0xc58] sm:$0xf]  ;;  %v14489_v50 = vor.u32 %v17587_v48, %v14488_v35  ;;  %7854 = vmatpush.bf16.msrb.mxu0 %v14233_v16  ;;  %7790 = vmatpush.bf16.msrb.mxu3 %v14965_v11  ;;  %v17359_v35 = vld [vmem:[#allocation8 + $0x35c] sm:$0xf]  ;;  %v13341_v44 = vor.u32 %v17295_v60, %v13338_v38  ;;  %v18780_v11 = vpop.f32.mrf.mxu0 }
 0x512   :  { %v17651_v45 = vld [vmem:[#allocation8 + $0xc74] sm:$0xf0]  ;;  %v17423_v48 = vld [vmem:[#allocation8 + $0x55c] sm:$0xf]  ;;  %v13597_v16 = vor.u32 %v17359_v35, %v13594_v3 }
 0x513   :  { %v14168_v18 = vld [vmem:[#allocation8 + $0x7d8] sm:$0xf]  ;;  %v14745_v61 = vor.u32 %v17651_v45, %v14744_v5  ;;  %7867 = vmatpush.bf16.msrb.mxu1 %v14489_v50  ;;  %v13850_v5 = vld [vmem:[#allocation8 + $0x578] sm:$0xf0] }
 0x514   :  { %v17507_v39 = vld [vmem:[#allocation8 + $0x7f4] sm:$0xf0]  ;;  %7791 = vmatmul.bf16.vlgmr.msrb.gmra.mxu3 %v18668_v54  ;;  %v13306_v50 = vld [vmem:[#allocation8 + $0x138] sm:$0xf0] }
 0x515   :  { %v14200_v25 = vld [vmem:[#allocation8 + $0x818] sm:$0xf]  ;;  %v14169_v27 = vor.u32 %v17507_v39, %v14168_v18  ;;  %7880 = vmatpush.bf16.msrb.mxu2 %v14745_v61  ;;  %v13853_v18 = vor.u32 %v17423_v48, %v13850_v5  ;;  %v17287_v39 = vld [vmem:[#allocation8 + $0x11c] sm:$0xf] }
 0x516   :  { %v17515_v21 = vld [vmem:[#allocation8 + $0x834] sm:$0xf0]  ;;  %v17351_v61 = vld [vmem:[#allocation8 + $0x31c] sm:$0xf]  ;;  %v18787_v13 = vpop.f32.mrf.mxu2 }
 0x517   :  { %v14456_v30 = vld [vmem:[#allocation8 + $0xa18] sm:$0xf]  ;;  %v14201_v31 = vor.u32 %v17515_v21, %v14200_v25  ;;  %7835 = vmatpush.bf16.msra.mxu3 %v14169_v27  ;;  %v13562_v21 = vld [vmem:[#allocation8 + $0x338] sm:$0xf0]  ;;  %v13309_v27 = vor.u32 %v17287_v39, %v13306_v50 }
 0x518   :  { %v17579_v2 = vld [vmem:[#allocation8 + $0xa34] sm:$0xf0]  ;;  %v13565_v63 = vor.u32 %v17351_v61, %v13562_v21  ;;  %v17343_v37 = vld [vmem:[#allocation8 + $0x2dc] sm:$0xf] }
 0x519   :  { %v14712_v26 = vld [vmem:[#allocation8 + $0xc18] sm:$0xf]  ;;  %v14457_v62 = vor.u32 %v17579_v2, %v14456_v30  ;;  %7855 = vmatpush.bf16.msrb.mxu0 %v14201_v31  ;;  %v17415_v30 = vld [vmem:[#allocation8 + $0x51c] sm:$0xf] }
 0x51a   :  { %v17643_v23 = vld [vmem:[#allocation8 + $0xc34] sm:$0xf0]  ;;  %v13821_v28 = vor.u32 %v17415_v30, %v13818_v40  ;;  %v13274_v31 = vld [vmem:[#allocation8 + $0xf8] sm:$0xf0] }
 0x51b   :  { %v14136_v8 = vld [vmem:[#allocation8 + $0x798] sm:$0xf]  ;;  %v14713_v47 = vor.u32 %v17643_v23, %v14712_v26  ;;  %7868 = vmatpush.bf16.msrb.mxu1 %v14457_v62  ;;  %v18782_v23 = vpop.f32.mrf.mxu1  ;;  %v13530_v62 = vld [vmem:[#allocation8 + $0x2f8] sm:$0xf0] }
 0x51c   :  { %v17499_v55 = vld [vmem:[#allocation8 + $0x7b4] sm:$0xf0]  ;;  %7856 = vmatmul.bf16.vlgmr.msrb.gmra.mxu0 %v18638_v51  ;;  %v13533_v29 = vor.u32 %v17343_v37, %v13530_v62  ;;  %v17271_v7 = vld [vmem:[#allocation8 + $0x9c] sm:$0xf] }
 0x51d   :  { %v14137_v43 = vor.u32 %v17499_v55, %v14136_v8  ;;  %v14104_v46 = vld [vmem:[#allocation8 + $0x758] sm:$0xf]  ;;  %7881 = vmatpush.bf16.msrb.mxu2 %v14713_v47  ;;  %7900 = vmatpush.bf16.msra.mxu0 %v13405_v34  ;;  %v17407_v8 = vld [vmem:[#allocation8 + $0x4dc] sm:$0xf]  ;;  %v18785_v47 = vadd.f32 %v7584_v42, %v18774_v0  ;;  %v7651_v0 = vpop.f32.mrf.mxu0 }
 0x51e   :  { %v17491_v6 = vld [vmem:[#allocation8 + $0x774] sm:$0xf0]  ;;  %7869 = vmatmul.bf16.vlgmr.msrb.gmra.mxu1 %v18640_v53  ;;  %v13786_v55 = vld [vmem:[#allocation8 + $0x4f8] sm:$0xf0] }
 0x51f   :  { %7913 = vmatpush.bf16.msra.mxu1 %v13661_v36  ;;  %7836 = vmatpush.bf16.msra.mxu3 %v14137_v43  ;;  %v14105_v24 = vor.u32 %v17491_v6, %v14104_v46  ;;  %v14072_v45 = vld [vmem:[#allocation8 + $0x718] sm:$0xf]  ;;  %v13789_v4 = vor.u32 %v17407_v8, %v13786_v55  ;;  %v13242_v43 = vld [vmem:[#allocation8 + $0xb8] sm:$0xf0] }
 0x520   :  { %7882 = vmatmul.bf16.vlgmr.msrb.gmra.mxu2 %v18646_v20  ;;  %v17483_v33 = vld [vmem:[#allocation8 + $0x734] sm:$0xf0]  ;;  %v17335_v56 = vld [vmem:[#allocation8 + $0x29c] sm:$0xf]  ;;  %v13245_v38 = vor.u32 %v17271_v7, %v13242_v43 }
 0x521   :  { %7926 = vmatpush.bf16.msra.mxu2 %v13917_v9  ;;  %7901 = vmatpush.bf16.msra.mxu0 %v13373_v49  ;;  %v14073_v25 = vor.u32 %v17483_v33, %v14072_v45  ;;  %v14040_v2 = vld [vmem:[#allocation8 + $0x6d8] sm:$0xf]  ;;  %v13277_v9 = vor.u32 %v17279_v19, %v13274_v31  ;;  %v13498_v46 = vld [vmem:[#allocation8 + $0x2b8] sm:$0xf0]  ;;  %v7586_v33 = vpop.f32.mrf.mxu3 }
 0x522   :  { %v17475_v26 = vld [vmem:[#allocation8 + $0x6f4] sm:$0xf0]  ;;  %v17399_v6 = vld [vmem:[#allocation8 + $0x49c] sm:$0xf]  ;;  %v13501_v35 = vor.u32 %v17335_v56, %v13498_v46 }
 0x523   :  { %7914 = vmatpush.bf16.msra.mxu1 %v13629_v57  ;;  %7837 = vmatpush.bf16.msra.mxu3 %v14105_v24  ;;  %v14041_v32 = vor.u32 %v17475_v26, %v14040_v2  ;;  %v14008_v34 = vld [vmem:[#allocation8 + $0x698] sm:$0xf]  ;;  %v13754_v49 = vld [vmem:[#allocation8 + $0x4b8] sm:$0xf0]  ;;  %v7664_v60 = vpop.f32.mrf.mxu1 }
 0x524   :  { %v17467_v36 = vld [vmem:[#allocation8 + $0x6b4] sm:$0xf0]  ;;  %v13757_v24 = vor.u32 %v17399_v6, %v13754_v49  ;;  %v17263_v3 = vld [vmem:[#allocation8 + $0x5c] sm:$0xf] }
 0x525   :  { %7927 = vmatpush.bf16.msra.mxu2 %v13885_v41  ;;  %7902 = vmatpush.bf16.msra.mxu0 %v13341_v44  ;;  %v14009_v1 = vor.u32 %v17467_v36, %v14008_v34  ;;  %v13976_v57 = vld [vmem:[#allocation8 + $0x658] sm:$0xf]  ;;  %v13210_v48 = vld [vmem:[#allocation8 + $0x78] sm:$0xf0] }
 0x526   :  { %v17459_v41 = vld [vmem:[#allocation8 + $0x674] sm:$0xf0]  ;;  %v17327_v5 = vld [vmem:[#allocation8 + $0x25c] sm:$0xf]  ;;  %v13213_v61 = vor.u32 %v17263_v3, %v13210_v48 }
 0x527   :  { %7915 = vmatpush.bf16.msra.mxu1 %v13597_v16  ;;  %7838 = vmatpush.bf16.msra.mxu3 %v14073_v25  ;;  %v13977_v45 = vor.u32 %v17459_v41, %v13976_v57  ;;  %v13466_v44 = vld [vmem:[#allocation8 + $0x278] sm:$0xf0]  ;;  %v13944_v39 = vld [vmem:[#allocation8 + $0x618] sm:$0xf] }
 0x528   :  { %v17391_v16 = vld [vmem:[#allocation8 + $0x45c] sm:$0xf]  ;;  %v17451_v50 = vld [vmem:[#allocation8 + $0x634] sm:$0xf0]  ;;  %v13469_v30 = vor.u32 %v17327_v5, %v13466_v44 }
 0x529   :  { %7928 = vmatpush.bf16.msra.mxu2 %v13853_v18  ;;  %7903 = vmatpush.bf16.msra.mxu0 %v13309_v27  ;;  %v13722_v18 = vld [vmem:[#allocation8 + $0x478] sm:$0xf0]  ;;  %v15192_v25 = vld [vmem:[#allocation8 + $0xfd8] sm:$0xf] }
 0x52a   :  { %v17763_v21 = vld [vmem:[#allocation8 + $0xff4] sm:$0xf0]  ;;  %v13725_v40 = vor.u32 %v17391_v16, %v13722_v18  ;;  %v17255_v2 = vld [vmem:[#allocation8 + $0x1c] sm:$0xf] }
 0x52b   :  { %7916 = vmatpush.bf16.msra.mxu1 %v13565_v63  ;;  %7839 = vmatpush.bf16.msra.mxu3 %v14041_v32  ;;  %v13178_v26 = vld [vmem:[#allocation8 + $0x38] sm:$0xf0]  ;;  %v7677_v63 = vpop.f32.mrf.mxu2  ;;  %v15193_v32 = vor.u32 %v17763_v21, %v15192_v25  ;;  %v17755_v7 = vld [vmem:[#allocation8 + $0xfb4] sm:$0xf0] }
 0x52c   :  { %v17319_v27 = vld [vmem:[#allocation8 + $0x21c] sm:$0xf]  ;;  %v13181_v55 = vor.u32 %v17255_v2, %v13178_v26  ;;  %v17739_v25 = vld [vmem:[#allocation8 + $0xf34] sm:$0xf0] }
 0x52d   :  { %7929 = vmatpush.bf16.msra.mxu2 %v13821_v28  ;;  %7904 = vmatpush.bf16.msra.mxu0 %v13277_v9  ;;  %v13945_v28 = vor.u32 %v17451_v50, %v13944_v39  ;;  %v13434_v19 = vld [vmem:[#allocation8 + $0x238] sm:$0xf0] }
 0x52e   :  { %v17383_v31 = vld [vmem:[#allocation8 + $0x41c] sm:$0xf] }
 0x52f   :  { %7917 = vmatpush.bf16.msra.mxu1 %v13533_v29  ;;  %7840 = vmatpush.bf16.msra.mxu3 %v14009_v1  ;;  %v13690_v37 = vld [vmem:[#allocation8 + $0x438] sm:$0xf0]  ;;  %v13437_v29 = vor.u32 %v17319_v27, %v13434_v19 }
 0x530   :  { %v17567_v42 = vld [vmem:[#allocation8 + $0x9dc] sm:$0xf]  ;;  %v13693_v43 = vor.u32 %v17383_v31, %v13690_v37  ;;  %v7701_v31 = vpop.f32.mrf.mxu0  ;;  %v17731_v37 = vld [vmem:[#allocation8 + $0xef4] sm:$0xf0] }
 0x531   :  { %7930 = vmatpush.bf16.msra.mxu2 %v13789_v4  ;;  %7905 = vmatpush.bf16.msra.mxu0 %v13245_v38  ;;  %v14426_v62 = vld [vmem:[#allocation8 + $0x9f8] sm:$0xf0]  ;;  %v15160_v4 = vld [vmem:[#allocation8 + $0xf98] sm:$0xf] }
 0x532   :  { %v17631_v8 = vld [vmem:[#allocation8 + $0xbdc] sm:$0xf]  ;;  %v14429_v56 = vor.u32 %v17567_v42, %v14426_v62  ;;  %v15161_v57 = vor.u32 %v17755_v7, %v15160_v4  ;;  %v7714_v42 = vpop.f32.mrf.mxu1  ;;  %v7636_v4 = vpop.f32.mrf.mxu3 }
 0x533   :  { %7918 = vmatpush.bf16.msra.mxu1 %v13501_v35  ;;  %7841 = vmatpush.bf16.msra.mxu3 %v13977_v45  ;;  %v14682_v34 = vld [vmem:[#allocation8 + $0xbf8] sm:$0xf0]  ;;  %v15128_v35 = vld [vmem:[#allocation8 + $0xf58] sm:$0xf] }
 0x534   :  { %v17695_v36 = vld [vmem:[#allocation8 + $0xddc] sm:$0xf]  ;;  %v14685_v1 = vor.u32 %v17631_v8, %v14682_v34 }
 0x535   :  { %7931 = vmatpush.bf16.msra.mxu2 %v13757_v24  ;;  %7906 = vmatpush.bf16.msra.mxu0 %v13213_v61  ;;  %v14938_v9 = vld [vmem:[#allocation8 + $0xdf8] sm:$0xf0]  ;;  %v17747_v24 = vld [vmem:[#allocation8 + $0xf74] sm:$0xf0] }
 0x536   :  { %v14941_v46 = vor.u32 %v17695_v36, %v14938_v9  ;;  %v17559_v6 = vld [vmem:[#allocation8 + $0x99c] sm:$0xf]  ;;  %v15129_v16 = vor.u32 %v17747_v24, %v15128_v35  ;;  %v15096_v61 = vld [vmem:[#allocation8 + $0xf18] sm:$0xf]  ;;  %v7727_v24 = vpop.f32.mrf.mxu2 }
 0x537   :  { %7919 = vmatpush.bf16.msra.mxu1 %v13469_v30  ;;  %7842 = vmatpush.bf16.msra.mxu3 %v13945_v28  ;;  %v14394_v49 = vld [vmem:[#allocation8 + $0x9b8] sm:$0xf0]  ;;  %v4601_v30 = vperm.slane %v18765_v58, 5  ;;  %v15097_v63 = vor.u32 %v17739_v25, %v15096_v61 }
 0x538   :  { %v17623_v0 = vld [vmem:[#allocation8 + $0xb9c] sm:$0xf]  ;;  %v14397_v3 = vor.u32 %v17559_v6, %v14394_v49  ;;  %v17723_v6 = vld [vmem:[#allocation8 + $0xeb4] sm:$0xf0] }
 0x539   :  { %7932 = vmatpush.bf16.msra.mxu2 %v13725_v40  ;;  %7907 = vmatpush.bf16.msra.mxu0 %v13181_v55  ;;  %v14650_v41 = vld [vmem:[#allocation8 + $0xbb8] sm:$0xf0] }
 0x53a   :  { %v17687_v60 = vld [vmem:[#allocation8 + $0xd9c] sm:$0xf]  ;;  %7843 = vmatmul.bf16.vlgmr.msra.gmra.mxu3 %v18612_v59  ;;  %v14653_v48 = vor.u32 %v17623_v0, %v14650_v41 }
 0x53b   :  { %7887 = vmatpush.bf16.msrb.mxu3 %v15193_v32  ;;  %v14906_v38 = vld [vmem:[#allocation8 + $0xdb8] sm:$0xf0]  ;;  %7920 = vmatpush.bf16.msra.mxu1 %v13437_v29  ;;  %v7702_v32 = vadd.f32 %v7701_v31, %v4601_v30 }
 0x53c   :  { %v14909_v5 = vor.u32 %v17687_v60, %v14906_v38  ;;  %v17551_v45 = vld [vmem:[#allocation8 + $0x95c] sm:$0xf]  ;;  %7908 = vmatmul.bf16.vlgmr.msra.gmra.mxu0 %v18606_v12 }
 0x53d   :  { %7933 = vmatpush.bf16.msra.mxu2 %v13693_v43  ;;  %7952 = vmatpush.bf16.msrb.mxu0 %v14429_v56  ;;  %v14362_v33 = vld [vmem:[#allocation8 + $0x978] sm:$0xf0]  ;;  %v7715_v9 = vadd.f32 %v7714_v42, %v7702_v32 }
 0x53e   :  { %v17615_v44 = vld [vmem:[#allocation8 + $0xb5c] sm:$0xf]  ;;  %7921 = vmatmul.bf16.vlgmr.msra.gmra.mxu1 %v18608_v14  ;;  %v14365_v21 = vor.u32 %v17551_v45, %v14362_v33  ;;  %v7703_v33 = vpop.f32.mrf.mxu0 }
 0x53f   :  { %7965 = vmatpush.bf16.msrb.mxu1 %v14685_v1  ;;  %7888 = vmatpush.bf16.msrb.mxu3 %v15161_v57  ;;  %v14618_v18 = vld [vmem:[#allocation8 + $0xb78] sm:$0xf0]  ;;  %v7637_v1 = vadd.f32 %v7636_v4, %v18770_v17  ;;  %v18796_v17 = vadd.f32 %v7727_v24, %v7715_v9  ;;  %v15368_v9 = vld [vmem:[#allocation11 + $0x150] sm:$0xf]  ;;  %v15536_v24 = vld [vmem:[#allocation11 + $0x2a0] sm:$0xf] }
 0x540   :  { %v17679_v39 = vld [vmem:[#allocation8 + $0xd5c] sm:$0xf]  ;;  %7934 = vmatmul.bf16.vlgmr.msra.gmra.mxu2 %v18610_v52  ;;  %v14621_v40 = vor.u32 %v17615_v44, %v14618_v18  ;;  %v15064_v52 = vld [vmem:[#allocation8 + $0xed8] sm:$0xf] }
 0x541   :  { %7978 = vmatpush.bf16.msrb.mxu2 %v14941_v46  ;;  %v14874_v50 = vld [vmem:[#allocation8 + $0xd78] sm:$0xf0]  ;;  %7953 = vmatpush.bf16.msrb.mxu0 %v14397_v3  ;;  %v15065_v29 = vor.u32 %v17731_v37, %v15064_v52  ;;  %v15032_v46 = vld [vmem:[#allocation8 + $0xe98] sm:$0xf]  ;;  %v7650_v0 = vadd.f32 %v18780_v11, %v7637_v1  ;;  %v7716_v11 = vpop.f32.mrf.mxu1  ;;  %v17905_v1 = vld [vmem:[#allocation11 + $0x464] sm:$0xf0] }
 0x542   :  { %v14877_v2 = vor.u32 %v17679_v39, %v14874_v50  ;;  %v17543_v26 = vld [vmem:[#allocation8 + $0x91c] sm:$0xf]  ;;  %v15033_v3 = vor.u32 %v17723_v6, %v15032_v46  ;;  %v15000_v44 = vld [vmem:[#allocation8 + $0xe58] sm:$0xf] }
 0x543   :  { %7966 = vmatpush.bf16.msrb.mxu1 %v14653_v48  ;;  %v14330_v12 = vld [vmem:[#allocation8 + $0x938] sm:$0xf0]  ;;  %7889 = vmatpush.bf16.msrb.mxu3 %v15129_v16  ;;  %v17715_v16 = vld [vmem:[#allocation8 + $0xe74] sm:$0xf0]  ;;  %v7663_v18 = vadd.f32 %v18782_v23, %v7650_v0 }
 0x544   :  { %v17607_v27 = vld [vmem:[#allocation8 + $0xb1c] sm:$0xf]  ;;  %v14333_v62 = vor.u32 %v17543_v26, %v14330_v12  ;;  %v7638_v26 = vpop.f32.mrf.mxu3  ;;  %v14968_v23 = vld [vmem:[#allocation8 + $0xe18] sm:$0xf] }
 0x545   :  { %7979 = vmatpush.bf16.msrb.mxu2 %v14909_v5  ;;  %v14586_v28 = vld [vmem:[#allocation8 + $0xb38] sm:$0xf0]  ;;  %7954 = vmatpush.bf16.msrb.mxu0 %v14365_v21  ;;  %v15560_v4 = vld [vmem:[#allocation11 + $0x2d0] sm:$0xf] }
 0x546   :  { %v17671_v19 = vld [vmem:[#allocation8 + $0xd1c] sm:$0xf]  ;;  %v14589_v58 = vor.u32 %v17607_v27, %v14586_v28  ;;  %v17707_v28 = vld [vmem:[#allocation8 + $0xe34] sm:$0xf0] }
 0x547   :  { %v14842_v14 = vld [vmem:[#allocation8 + $0xd38] sm:$0xf0]  ;;  %7967 = vmatpush.bf16.msrb.mxu1 %v14621_v40  ;;  %7890 = vmatpush.bf16.msrb.mxu3 %v15097_v63  ;;  %v18800_v40 = vadd.f32 %v18787_v13, %v7663_v18 }
 0x548   :  { %v14845_v8 = vor.u32 %v17671_v19, %v14842_v14  ;;  %v17535_v55 = vld [vmem:[#allocation8 + $0x8dc] sm:$0xf] }
 0x549   :  { %7980 = vmatpush.bf16.msrb.mxu2 %v14877_v2  ;;  %v14298_v34 = vld [vmem:[#allocation8 + $0x8f8] sm:$0xf0]  ;;  %7955 = vmatpush.bf16.msrb.mxu0 %v14333_v62  ;;  %v15001_v2 = vor.u32 %v17715_v16, %v15000_v44  ;;  %v7729_v62 = vpop.f32.mrf.mxu2 }
 0x54a   :  { %v17599_v36 = vld [vmem:[#allocation8 + $0xadc] sm:$0xf]  ;;  %v14301_v49 = vor.u32 %v17535_v55, %v14298_v34 }
 0x54b   :  { %v14554_v7 = vld [vmem:[#allocation8 + $0xaf8] sm:$0xf0]  ;;  %7968 = vmatpush.bf16.msrb.mxu1 %v14589_v58  ;;  %7891 = vmatpush.bf16.msrb.mxu3 %v15065_v29  ;;  %v14969_v58 = vor.u32 %v17707_v28, %v14968_v23  ;;  %v17809_v29 = vld [vmem:[#allocation11 + $0x164] sm:$0xf0]  ;;  %v15296_v28 = vld [vmem:[#allocation11 + $0xc0] sm:$0xf] }
 0x54c   :  { %v17663_v43 = vld [vmem:[#allocation8 + $0xcdc] sm:$0xf]  ;;  %v14557_v57 = vor.u32 %v17599_v36, %v14554_v7 }
 0x54d   :  { %v14810_v56 = vld [vmem:[#allocation8 + $0xcf8] sm:$0xf0]  ;;  %7981 = vmatpush.bf16.msrb.mxu2 %v14845_v8  ;;  %7956 = vmatpush.bf16.msrb.mxu0 %v14301_v49 }
 0x54e   :  { %v14813_v41 = vor.u32 %v17663_v43, %v14810_v56  ;;  %v17527_v60 = vld [vmem:[#allocation8 + $0x89c] sm:$0xf]  ;;  %v17857_v43 = vld [vmem:[#allocation11 + $0x2e4] sm:$0xf0]  ;;  %v15752_v56 = vld [vmem:[#allocation11 + $0x450] sm:$0xf] }
 0x54f   :  { %v14266_v38 = vld [vmem:[#allocation8 + $0x8b8] sm:$0xf0]  ;;  %7969 = vmatpush.bf16.msrb.mxu1 %v14557_v57  ;;  %7892 = vmatpush.bf16.msrb.mxu3 %v15033_v3  ;;  %v15369_v57 = vor.u32 %v17809_v29, %v15368_v9  ;;  %v17833_v29 = vld [vmem:[#allocation11 + $0x224] sm:$0xf0] }
 0x550   :  { %v17591_v35 = vld [vmem:[#allocation8 + $0xa9c] sm:$0xf]  ;;  %v14269_v39 = vor.u32 %v17527_v60, %v14266_v38  ;;  %v15753_v60 = vor.u32 %v17905_v1, %v15752_v56  ;;  %v15344_v38 = vld [vmem:[#allocation11 + $0x120] sm:$0xf]  ;;  %v18810_v9 = vpop.f32.mrf.mxu3 }
 0x551   :  { %v14522_v48 = vld [vmem:[#allocation8 + $0xab8] sm:$0xf0]  ;;  %7982 = vmatpush.bf16.msrb.mxu2 %v14813_v41  ;;  %v15561_v41 = vor.u32 %v17857_v43, %v15560_v4  ;;  %v15656_v4 = vld [vmem:[#allocation11 + $0x390] sm:$0xf] }
 0x552   :  { %v17655_v5 = vld [vmem:[#allocation8 + $0xc9c] sm:$0xf]  ;;  %v14525_v50 = vor.u32 %v17591_v35, %v14522_v48  ;;  %7957 = vmatpush.bf16.msrb.mxu0 %v14269_v39  ;;  %v17803_v35 = vld [vmem:[#allocation11 + $0x134] sm:$0xf0]  ;;  %v15320_v39 = vld [vmem:[#allocation11 + $0xf0] sm:$0xf] }
 0x553   :  { %v14778_v45 = vld [vmem:[#allocation8 + $0xcb8] sm:$0xf0]  ;;  %7893 = vmatpush.bf16.msrb.mxu3 %v15001_v2  ;;  %v17851_v48 = vld [vmem:[#allocation11 + $0x2b4] sm:$0xf0]  ;;  %v15345_v16 = vor.u32 %v17803_v35, %v15344_v38  ;;  %v17893_v2 = vld [vmem:[#allocation11 + $0x404] sm:$0xf0] }
 0x554   :  { %v14781_v61 = vor.u32 %v17655_v5, %v14778_v45  ;;  %v17519_v25 = vld [vmem:[#allocation8 + $0x85c] sm:$0xf]  ;;  %7970 = vmatpush.bf16.msrb.mxu1 %v14525_v50  ;;  %v15728_v5 = vld [vmem:[#allocation11 + $0x420] sm:$0xf]  ;;  %v17899_v45 = vld [vmem:[#allocation11 + $0x434] sm:$0xf0]  ;;  %v15537_v18 = vor.u32 %v17851_v48, %v15536_v24 }
 0x555   :  { %v14234_v21 = vld [vmem:[#allocation8 + $0x878] sm:$0xf0]  ;;  %v15729_v11 = vor.u32 %v17899_v45, %v15728_v5  ;;  %v17797_v50 = vld [vmem:[#allocation11 + $0x104] sm:$0xf0]  ;;  %v17827_v38 = vld [vmem:[#allocation11 + $0x1f4] sm:$0xf0] }
 0x556   :  { %v17583_v30 = vld [vmem:[#allocation8 + $0xa5c] sm:$0xf]  ;;  %v14237_v19 = vor.u32 %v17519_v25, %v14234_v21  ;;  %7983 = vmatpush.bf16.msrb.mxu2 %v14781_v61  ;;  %v15512_v61 = vld [vmem:[#allocation11 + $0x270] sm:$0xf]  ;;  %v17845_v21 = vld [vmem:[#allocation11 + $0x284] sm:$0xf0] }
 0x557   :  { %v14490_v12 = vld [vmem:[#allocation8 + $0xa78] sm:$0xf0]  ;;  %7894 = vmatpush.bf16.msrb.mxu3 %v14969_v58  ;;  %v15632_v35 = vld [vmem:[#allocation11 + $0x360] sm:$0xf]  ;;  %v17875_v24 = vld [vmem:[#allocation11 + $0x374] sm:$0xf0] }
 0x558   :  { %v17647_v27 = vld [vmem:[#allocation8 + $0xc5c] sm:$0xf]  ;;  %v14493_v52 = vor.u32 %v17583_v30, %v14490_v12  ;;  %7958 = vmatpush.bf16.msrb.mxu0 %v14237_v19  ;;  %v15704_v30 = vld [vmem:[#allocation11 + $0x3f0] sm:$0xf]  ;;  %v17791_v19 = vld [vmem:[#allocation11 + $0xd4] sm:$0xf0] }
 0x559   :  { %v14746_v63 = vld [vmem:[#allocation8 + $0xc78] sm:$0xf0]  ;;  %v15705_v23 = vor.u32 %v17893_v2, %v15704_v30  ;;  %v17869_v30 = vld [vmem:[#allocation11 + $0x344] sm:$0xf0] }
 0x55a   :  { %v17503_v14 = vld [vmem:[#allocation8 + $0x7dc] sm:$0xf]  ;;  %v14749_v37 = vor.u32 %v17647_v27, %v14746_v63  ;;  %7971 = vmatpush.bf16.msrb.mxu1 %v14493_v52  ;;  %7895 = vmatmul.bf16.vlgmr.msrb.gmra.mxu3 %v18668_v54  ;;  %v15321_v27 = vor.u32 %v17797_v50, %v15320_v39  ;;  %v15513_v63 = vor.u32 %v17845_v21, %v15512_v61  ;;  %v15680_v52 = vld [vmem:[#allocation11 + $0x3c0] sm:$0xf]  ;;  %v15416_v39 = vld [vmem:[#allocation11 + $0x1b0] sm:$0xf]  ;;  %v7690_v61 = vpop.f32.mrf.mxu3 }
 0x55b   :  { %v14170_v31 = vld [vmem:[#allocation8 + $0x7f8] sm:$0xf0]  ;;  %v15608_v21 = vld [vmem:[#allocation11 + $0x330] sm:$0xf] }
 0x55c   :  { %v17511_v32 = vld [vmem:[#allocation8 + $0x81c] sm:$0xf]  ;;  %v14173_v36 = vor.u32 %v17503_v14, %v14170_v31  ;;  %7984 = vmatpush.bf16.msrb.mxu2 %v14749_v37  ;;  %v15488_v14 = vld [vmem:[#allocation11 + $0x240] sm:$0xf]  ;;  %v17839_v31 = vld [vmem:[#allocation11 + $0x254] sm:$0xf0] }
 0x55d   :  { %v14202_v42 = vld [vmem:[#allocation8 + $0x838] sm:$0xf0]  ;;  %v17887_v37 = vld [vmem:[#allocation11 + $0x3d4] sm:$0xf0]  ;;  %v15489_v62 = vor.u32 %v17839_v31, %v15488_v14 }
 0x55e   :  { %v17575_v13 = vld [vmem:[#allocation8 + $0xa1c] sm:$0xf]  ;;  %v14205_v7 = vor.u32 %v17511_v32, %v14202_v42  ;;  %7939 = vmatpush.bf16.msra.mxu3 %v14173_v36  ;;  %v18806_v32 = vpop.f32.mrf.mxu0  ;;  %v18808_v42 = vpop.f32.mrf.mxu1  ;;  %v15681_v58 = vor.u32 %v17887_v37, %v15680_v52  ;;  %v17767_v14 = vld [vmem:[#allocation11 + $0x14] sm:$0xf0] }
 0x55f   :  { %v14458_v8 = vld [vmem:[#allocation8 + $0xa38] sm:$0xf0]  ;;  %v17815_v37 = vld [vmem:[#allocation11 + $0x194] sm:$0xf0] }
 0x560   :  { %v17639_v55 = vld [vmem:[#allocation8 + $0xc1c] sm:$0xf]  ;;  %v14461_v46 = vor.u32 %v17575_v13, %v14458_v8  ;;  %7959 = vmatpush.bf16.msrb.mxu0 %v14205_v7  ;;  %v15297_v13 = vor.u32 %v17791_v19, %v15296_v28  ;;  %v15272_v8 = vld [vmem:[#allocation11 + $0x90] sm:$0xf]  ;;  %v17881_v7 = vld [vmem:[#allocation11 + $0x3a4] sm:$0xf0]  ;;  %v15609_v28 = vor.u32 %v17869_v30, %v15608_v21 }
 0x561   :  { %v14714_v34 = vld [vmem:[#allocation8 + $0xc38] sm:$0xf0]  ;;  %v15200_v19 = vld [vmem:[#allocation11] sm:$0xf]  ;;  %v17983_v30 = vld [vmem:[#allocation11 + $0x6d4] sm:$0xf0] }
 0x562   :  { %v17495_v6 = vld [vmem:[#allocation8 + $0x79c] sm:$0xf]  ;;  %v14717_v0 = vor.u32 %v17639_v55, %v14714_v34  ;;  %7972 = vmatpush.bf16.msrb.mxu1 %v14461_v46  ;;  %v17785_v55 = vld [vmem:[#allocation11 + $0xa4] sm:$0xf0]  ;;  %v15464_v34 = vld [vmem:[#allocation11 + $0x210] sm:$0xf] }
 0x563   :  { %v14138_v49 = vld [vmem:[#allocation8 + $0x7b8] sm:$0xf0]  ;;  %7960 = vmatmul.bf16.vlgmr.msrb.gmra.mxu0 %v18638_v51  ;;  %v15273_v1 = vor.u32 %v17785_v55, %v15272_v8  ;;  %v15465_v46 = vor.u32 %v17833_v29, %v15464_v34  ;;  %v16328_v8 = vld [vmem:[#allocation11 + $0x8d0] sm:$0xf]  ;;  %v15201_v55 = vor.u32 %v17767_v14, %v15200_v19  ;;  %v18049_v34 = vld [vmem:[#allocation11 + $0x8e4] sm:$0xf0] }
 0x564   :  { %v14141_v3 = vor.u32 %v17495_v6, %v14138_v49  ;;  %v17487_v33 = vld [vmem:[#allocation8 + $0x75c] sm:$0xf]  ;;  %7985 = vmatpush.bf16.msrb.mxu2 %v14717_v0  ;;  %10338 = vmatpush.bf16.msra.mxu0 %v15369_v57  ;;  %v15657_v6 = vor.u32 %v17881_v7, %v15656_v4  ;;  %v15248_v49 = vld [vmem:[#allocation11 + $0x60] sm:$0xf]  ;;  %v17779_v0 = vld [vmem:[#allocation11 + $0x74] sm:$0xf0] }
 0x565   :  { %v14106_v44 = vld [vmem:[#allocation8 + $0x778] sm:$0xf0]  ;;  %7973 = vmatmul.bf16.vlgmr.msrb.gmra.mxu1 %v18640_v53  ;;  %v15440_v57 = vld [vmem:[#allocation11 + $0x1e0] sm:$0xf]  ;;  %v8004_v4 = vmax.f32 %v18715_v15, 0.0 }
 0x566   :  { %10351 = vmatpush.bf16.msra.mxu1 %v15561_v41  ;;  %7940 = vmatpush.bf16.msra.mxu3 %v14141_v3  ;;  %v14109_v25 = vor.u32 %v17487_v33, %v14106_v44  ;;  %v17479_v26 = vld [vmem:[#allocation8 + $0x71c] sm:$0xf]  ;;  %v18812_v41 = vpop.f32.mrf.mxu2  ;;  %v7755_v3 = vpop.f32.mrf.mxu0  ;;  %v15249_v33 = vor.u32 %v17779_v0, %v15248_v49  ;;  %v15441_v44 = vor.u32 %v17827_v38, %v15440_v57  ;;  %v16112_v0 = vld [vmem:[#allocation11 + $0x720] sm:$0xf]  ;;  %v17995_v57 = vld [vmem:[#allocation11 + $0x734] sm:$0xf0] }
 0x567   :  { %7986 = vmatmul.bf16.vlgmr.msrb.gmra.mxu2 %v18646_v20  ;;  %v14074_v12 = vld [vmem:[#allocation8 + $0x738] sm:$0xf0]  ;;  %v7768_v45 = vpop.f32.mrf.mxu1  ;;  %v18043_v38 = vld [vmem:[#allocation11 + $0x8b4] sm:$0xf0]  ;;  %v16064_v21 = vld [vmem:[#allocation11 + $0x6c0] sm:$0xf] }
 0x568   :  { %10364 = vmatpush.bf16.msra.mxu2 %v15753_v60  ;;  %10339 = vmatpush.bf16.msra.mxu0 %v15345_v16  ;;  %v14077_v51 = vor.u32 %v17479_v26, %v14074_v12  ;;  %v17471_v53 = vld [vmem:[#allocation8 + $0x6dc] sm:$0xf]  ;;  %v15633_v16 = vor.u32 %v17875_v24, %v15632_v35  ;;  %v18818_v24 = vpack.c.bf16 %v8004_v4, %v8004_v4  ;;  %v16088_v45 = vld [vmem:[#allocation11 + $0x6f0] sm:$0xf]  ;;  %v16208_v4 = vld [vmem:[#allocation11 + $0x7e0] sm:$0xf] }
 0x569   :  { %v14042_v20 = vld [vmem:[#allocation8 + $0x6f8] sm:$0xf0]  ;;  %v16065_v19 = vor.u32 %v17983_v30, %v16064_v21  ;;  %v7689_v21 = vadd.f32 %v18810_v9, %v18800_v40  ;;  %v16472_v40 = vld [vmem:[#allocation11 + $0x9f0] sm:$0xf]  ;;  %v18085_v9 = vld [vmem:[#allocation11 + $0xa04] sm:$0xf0] }
 0x56a   :  { %10352 = vmatpush.bf16.msra.mxu1 %v15537_v18  ;;  %7941 = vmatpush.bf16.msra.mxu3 %v14109_v25  ;;  %v14045_v36 = vor.u32 %v17471_v53, %v14042_v20  ;;  %v17463_v43 = vld [vmem:[#allocation8 + $0x69c] sm:$0xf]  ;;  %v15224_v18 = vld [vmem:[#allocation11 + $0x30] sm:$0xf]  ;;  %v17821_v25 = vld [vmem:[#allocation11 + $0x1c4] sm:$0xf0] }
 0x56b   :  { %v14010_v56 = vld [vmem:[#allocation8 + $0x6b8] sm:$0xf0]  ;;  %v15584_v53 = vld [vmem:[#allocation11 + $0x300] sm:$0xf]  ;;  %v17863_v20 = vld [vmem:[#allocation11 + $0x314] sm:$0xf0] }
 0x56c   :  { %10365 = vmatpush.bf16.msra.mxu2 %v15729_v11  ;;  %10340 = vmatpush.bf16.msra.mxu0 %v15321_v27  ;;  %v14013_v60 = vor.u32 %v17463_v43, %v14010_v56  ;;  %v17455_v48 = vld [vmem:[#allocation8 + $0x65c] sm:$0xf]  ;;  %v17773_v11 = vld [vmem:[#allocation11 + $0x44] sm:$0xf0]  ;;  %v8005_v43 = vmax.f32 %v18731_v10, 0.0  ;;  %v8006_v56 = vmax.f32 %v18757_v22, 0.0  ;;  %v16113_v22 = vor.u32 %v17995_v57, %v16112_v0 }
 0x56d   :  { %v13978_v5 = vld [vmem:[#allocation8 + $0x678] sm:$0xf0]  ;;  %v15225_v12 = vor.u32 %v17773_v11, %v15224_v18  ;;  %v15992_v57 = vld [vmem:[#allocation11 + $0x630] sm:$0xf] }
 0x56e   :  { %10353 = vmatpush.bf16.msra.mxu1 %v15513_v63  ;;  %7942 = vmatpush.bf16.msra.mxu3 %v14077_v51  ;;  %v13981_v50 = vor.u32 %v17455_v48, %v13978_v5  ;;  %v17447_v2 = vld [vmem:[#allocation8 + $0x61c] sm:$0xf]  ;;  %v15392_v51 = vld [vmem:[#allocation11 + $0x180] sm:$0xf]  ;;  %v7781_v31 = vpop.f32.mrf.mxu2  ;;  %v18820_v10 = vpack.c.bf16 %v8005_v43, %v8005_v43  ;;  %v18822_v3 = vpack.c.bf16 %v8006_v56, %v8006_v56  ;;  %v18019_v43 = vld [vmem:[#allocation11 + $0x7f4] sm:$0xf0] }
 0x56f   :  { %v13946_v26 = vld [vmem:[#allocation8 + $0x638] sm:$0xf0]  ;;  %v15393_v7 = vor.u32 %v17815_v37, %v15392_v51  ;;  %v16040_v31 = vld [vmem:[#allocation11 + $0x690] sm:$0xf] }
 0x570   :  { %10366 = vmatpush.bf16.msra.mxu2 %v15705_v23  ;;  %10341 = vmatpush.bf16.msra.mxu0 %v15297_v13  ;;  %v17759_v27 = vld [vmem:[#allocation8 + $0xfdc] sm:$0xf]  ;;  %v15417_v23 = vor.u32 %v17821_v25, %v15416_v39  ;;  %v13949_v52 = vor.u32 %v17447_v2, %v13946_v26  ;;  %v18827_v39 = vld [vmem:[#allocation10] sm:$0xff]  ;;  %v16256_v2 = vld [vmem:[#allocation11 + $0x840] sm:$0xf] }
 0x571   :  { %v15194_v63 = vld [vmem:[#allocation8 + $0xff8] sm:$0xf0]  ;;  %v18031_v26 = vld [vmem:[#allocation11 + $0x854] sm:$0xf0]  ;;  %v16232_v37 = vld [vmem:[#allocation11 + $0x810] sm:$0xf] }
 0x572   :  { %10354 = vmatpush.bf16.msra.mxu1 %v15489_v62  ;;  %7943 = vmatpush.bf16.msra.mxu3 %v14045_v36  ;;  %v15197_v13 = vor.u32 %v17759_v27, %v15194_v63  ;;  %v16136_v62 = vld [vmem:[#allocation11 + $0x750] sm:$0xf]  ;;  %v17751_v36 = vld [vmem:[#allocation8 + $0xf9c] sm:$0xf]  ;;  %v16257_v14 = vor.u32 %v18031_v26, %v16256_v2  ;;  %v16160_v26 = vld [vmem:[#allocation11 + $0x780] sm:$0xf] }
 0x573   :  { %v15162_v29 = vld [vmem:[#allocation8 + $0xfb8] sm:$0xf0]  ;;  %v7805_v63 = vpop.f32.mrf.mxu0 }
 0x574   :  { %10367 = vmatpush.bf16.msra.mxu2 %v15681_v58  ;;  %10342 = vmatpush.bf16.msra.mxu0 %v15273_v1  ;;  %v18001_v58 = vld [vmem:[#allocation11 + $0x764] sm:$0xf0]  ;;  %v15585_v1 = vor.u32 %v17863_v20, %v15584_v53  ;;  %v15165_v49 = vor.u32 %v17751_v36, %v15162_v29  ;;  %v17743_v35 = vld [vmem:[#allocation8 + $0xf5c] sm:$0xf]  ;;  %v16016_v36 = vld [vmem:[#allocation11 + $0x660] sm:$0xf] }
 0x575   :  { %v15130_v15 = vld [vmem:[#allocation8 + $0xf78] sm:$0xf0]  ;;  %v17971_v29 = vld [vmem:[#allocation11 + $0x674] sm:$0xf0] }
 0x576   :  { %10355 = vmatpush.bf16.msra.mxu1 %v15465_v46  ;;  %7944 = vmatpush.bf16.msra.mxu3 %v14013_v60  ;;  %v16137_v46 = vor.u32 %v18001_v58, %v16136_v62  ;;  %v16304_v60 = vld [vmem:[#allocation11 + $0x8a0] sm:$0xf]  ;;  %v15133_v5 = vor.u32 %v17743_v35, %v15130_v15  ;;  %v15098_v18 = vld [vmem:[#allocation8 + $0xf38] sm:$0xf0]  ;;  %v16017_v0 = vor.u32 %v17971_v29, %v16016_v36  ;;  %v17965_v15 = vld [vmem:[#allocation11 + $0x644] sm:$0xf0] }
 0x577   :  { %v16305_v48 = vor.u32 %v18043_v38, %v16304_v60  ;;  %v15066_v27 = vld [vmem:[#allocation8 + $0xef8] sm:$0xf0]  ;;  %v18830_v20 = vpop.f32.mrf.mxu3  ;;  %v16520_v60 = vld [vmem:[#allocation11 + $0xa50] sm:$0xf]  ;;  %v16209_v38 = vor.u32 %v18019_v43, %v16208_v4  ;;  %v15346_v36 = vld [vmem:[#allocation11 + $0x138] sm:$0xf0] }
 0x578   :  { %10368 = vmatpush.bf16.msra.mxu2 %v15657_v6  ;;  %10343 = vmatpush.bf16.msra.mxu0 %v15249_v33  ;;  %v16329_v6 = vor.u32 %v18049_v34, %v16328_v8  ;;  %v17989_v33 = vld [vmem:[#allocation11 + $0x704] sm:$0xf0]  ;;  %v17719_v62 = vld [vmem:[#allocation8 + $0xe9c] sm:$0xf]  ;;  %v17848_v29 = vld [vmem:[#allocation11 + $0x2a4] sm:$0xf]  ;;  %v7741_v4 = vadd.f32 %v18830_v20, %v18796_v17 }
 0x579   :  { %v16089_v11 = vor.u32 %v17989_v33, %v16088_v45  ;;  %v15034_v58 = vld [vmem:[#allocation8 + $0xeb8] sm:$0xf0]  ;;  %v18013_v45 = vld [vmem:[#allocation11 + $0x7c4] sm:$0xf0]  ;;  %v15896_v43 = vld [vmem:[#allocation11 + $0x570] sm:$0xf] }
 0x57a   :  { %10356 = vmatpush.bf16.msra.mxu1 %v15441_v44  ;;  %7945 = vmatpush.bf16.msra.mxu3 %v13981_v50  ;;  %v16280_v44 = vld [vmem:[#allocation11 + $0x870] sm:$0xf]  ;;  %v4602_v50 = vperm.slane %v18827_v39, 6  ;;  %v15037_v34 = vor.u32 %v17719_v62, %v15034_v58  ;;  %v17711_v56 = vld [vmem:[#allocation8 + $0xe5c] sm:$0xf] }
 0x57b   :  { %v17703_v33 = vld [vmem:[#allocation8 + $0xe1c] sm:$0xf]  ;;  %v15322_v17 = vld [vmem:[#allocation11 + $0x108] sm:$0xf0] }
 0x57c   :  { %10369 = vmatpush.bf16.msra.mxu2 %v15633_v16  ;;  %10344 = vmatpush.bf16.msra.mxu0 %v15225_v12  ;;  %v17735_v16 = vld [vmem:[#allocation8 + $0xf1c] sm:$0xf] }
 0x57d   :  { %v15101_v25 = vor.u32 %v17735_v16, %v15098_v18  ;;  %v17727_v12 = vld [vmem:[#allocation8 + $0xedc] sm:$0xf]  ;;  %v15944_v16 = vld [vmem:[#allocation11 + $0x5d0] sm:$0xf]  ;;  %v17953_v18 = vld [vmem:[#allocation11 + $0x5e4] sm:$0xf0] }
 0x57e   :  { %10357 = vmatpush.bf16.msra.mxu1 %v15417_v23  ;;  %7946 = vmatpush.bf16.msra.mxu3 %v13949_v52  ;;  %v7806_v23 = vadd.f32 %v7805_v63, %v4602_v50  ;;  %v15069_v51 = vor.u32 %v17727_v12, %v15066_v27  ;;  %v17977_v52 = vld [vmem:[#allocation11 + $0x6a4] sm:$0xf0]  ;;  %v15968_v50 = vld [vmem:[#allocation11 + $0x600] sm:$0xf]  ;;  %v18007_v12 = vld [vmem:[#allocation11 + $0x794] sm:$0xf0] }
 0x57f   :  { %v16041_v8 = vor.u32 %v17977_v52, %v16040_v31  ;;  %v18091_v27 = vld [vmem:[#allocation11 + $0xa34] sm:$0xf0]  ;;  %v15562_v31 = vld [vmem:[#allocation11 + $0x2e8] sm:$0xf0]  ;;  %v15920_v52 = vld [vmem:[#allocation11 + $0x5a0] sm:$0xf]  ;;  %v16161_v62 = vor.u32 %v18007_v12, %v16160_v26 }
 0x580   :  { %10370 = vmatpush.bf16.msra.mxu2 %v15609_v28  ;;  %10345 = vmatpush.bf16.msra.mxu0 %v15201_v55  ;;  %v7818_v28 = vpop.f32.mrf.mxu1  ;;  %v17842_v20 = vld [vmem:[#allocation11 + $0x274] sm:$0xf]  ;;  %v18067_v26 = vld [vmem:[#allocation11 + $0x974] sm:$0xf0] }
 0x581   :  { %7947 = vmatmul.bf16.vlgmr.msra.gmra.mxu3 %v18612_v59  ;;  %v18037_v59 = vld [vmem:[#allocation11 + $0x884] sm:$0xf0]  ;;  %v7819_v53 = vadd.f32 %v7818_v28, %v7806_v23  ;;  %v15945_v23 = vor.u32 %v17953_v18, %v15944_v16  ;;  %v17806_v28 = vld [vmem:[#allocation11 + $0x154] sm:$0xf]  ;;  %v17788_v18 = vld [vmem:[#allocation11 + $0xc4] sm:$0xf] }
 0x582   :  { %7991 = vmatpush.bf16.msrb.mxu3 %v15197_v13  ;;  %10358 = vmatpush.bf16.msra.mxu1 %v15393_v7  ;;  %v16281_v61 = vor.u32 %v18037_v59, %v16280_v44  ;;  %v18025_v13 = vld [vmem:[#allocation11 + $0x824] sm:$0xf0]  ;;  %v7831_v7 = vpop.f32.mrf.mxu2  ;;  %v14970_v44 = vld [vmem:[#allocation8 + $0xe38] sm:$0xf0] }
 0x583   :  { %10346 = vmatmul.bf16.vlgmr.msra.gmra.mxu0 %v18818_v24  ;;  %v16233_v55 = vor.u32 %v18025_v13, %v16232_v37  ;;  %v14973_v2 = vor.u32 %v17703_v33, %v14970_v44  ;;  %v17947_v37 = vld [vmem:[#allocation11 + $0x5b4] sm:$0xf0]  ;;  %v8008_v13 = vmax.f32 %v7689_v21, 0.0  ;;  %v18073_v33 = vld [vmem:[#allocation11 + $0x9a4] sm:$0xf0] }
 0x584   :  { %10371 = vmatpush.bf16.msra.mxu2 %v15585_v1  ;;  %10390 = vmatpush.bf16.msrb.mxu0 %v16137_v46  ;;  %v15002_v1 = vld [vmem:[#allocation8 + $0xe78] sm:$0xf0]  ;;  %v18832_v46 = vadd.f32 %v7831_v7, %v7819_v53  ;;  %v15538_v7 = vld [vmem:[#allocation11 + $0x2b8] sm:$0xf0] }
 0x585   :  { %10359 = vmatmul.bf16.vlgmr.msra.gmra.mxu1 %v18820_v10  ;;  %v15005_v35 = vor.u32 %v17711_v56, %v15002_v1  ;;  %v17941_v56 = vld [vmem:[#allocation11 + $0x584] sm:$0xf0]  ;;  %v16473_v1 = vor.u32 %v18085_v9, %v16472_v40  ;;  %v16376_v9 = vld [vmem:[#allocation11 + $0x930] sm:$0xf] }
 0x586   :  { %10403 = vmatpush.bf16.msrb.mxu1 %v16329_v6  ;;  %7992 = vmatpush.bf16.msrb.mxu3 %v15165_v49  ;;  %v7807_v6 = vpop.f32.mrf.mxu0 }
 0x587   :  { %10372 = vmatmul.bf16.vlgmr.msra.gmra.mxu2 %v18822_v3  ;;  %v16448_v6 = vld [vmem:[#allocation11 + $0x9c0] sm:$0xf] }
 0x588   :  { %10391 = vmatpush.bf16.msrb.mxu0 %v16113_v22  ;;  %v7820_v49 = vpop.f32.mrf.mxu1  ;;  %v16184_v22 = vld [vmem:[#allocation11 + $0x7b0] sm:$0xf] }
 0x589   :  { %v16185_v30 = vor.u32 %v18013_v45, %v16184_v22  ;;  %v18079_v49 = vld [vmem:[#allocation11 + $0x9d4] sm:$0xf0]  ;;  %v15872_v22 = vld [vmem:[#allocation11 + $0x540] sm:$0xf]  ;;  %v16424_v45 = vld [vmem:[#allocation11 + $0x990] sm:$0xf] }
 0x58a   :  { %10404 = vmatpush.bf16.msrb.mxu1 %v16305_v48  ;;  %7993 = vmatpush.bf16.msrb.mxu3 %v15133_v5  ;;  %v18097_v48 = vld [vmem:[#allocation11 + $0xa64] sm:$0xf0]  ;;  %v7742_v5 = vpop.f32.mrf.mxu3  ;;  %v7833_v63 = vpop.f32.mrf.mxu2 }
 0x58b   :  { %v16521_v59 = vor.u32 %v18097_v48, %v16520_v60  ;;  %v15541_v60 = vor.u32 %v17848_v29, %v15538_v7  ;;  %v17935_v48 = vld [vmem:[#allocation11 + $0x554] sm:$0xf0]  ;;  %v16449_v5 = vor.u32 %v18079_v49, %v16448_v6  ;;  %v17824_v29 = vld [vmem:[#allocation11 + $0x1e4] sm:$0xf]  ;;  %v15800_v7 = vld [vmem:[#allocation11 + $0x4b0] sm:$0xf] }
 0x58c   :  { %10392 = vmatpush.bf16.msrb.mxu0 %v16089_v11  ;;  %v15993_v11 = vor.u32 %v17965_v15, %v15992_v57  ;;  %v7754_v15 = vadd.f32 %v18806_v32, %v7741_v4  ;;  %v15873_v16 = vor.u32 %v17935_v48, %v15872_v22  ;;  %v15848_v32 = vld [vmem:[#allocation11 + $0x510] sm:$0xf]  ;;  %v15442_v4 = vld [vmem:[#allocation11 + $0x1f8] sm:$0xf0]  ;;  %v16352_v6 = vld [vmem:[#allocation11 + $0x900] sm:$0xf] }
 0x58d   :  { %10416 = vmatpush.bf16.msrb.mxu2 %v16521_v59  ;;  %v18055_v49 = vld [vmem:[#allocation11 + $0x914] sm:$0xf0]  ;;  %v17818_v22 = vld [vmem:[#allocation11 + $0x1b4] sm:$0xf] }
 0x58e   :  { %10405 = vmatpush.bf16.msrb.mxu1 %v16281_v61  ;;  %7994 = vmatpush.bf16.msrb.mxu3 %v15101_v25  ;;  %v17959_v61 = vld [vmem:[#allocation11 + $0x614] sm:$0xf0]  ;;  %v16496_v25 = vld [vmem:[#allocation11 + $0xa20] sm:$0xf]  ;;  %v7767_v21 = vadd.f32 %v18808_v42, %v7754_v15  ;;  %v15466_v42 = vld [vmem:[#allocation11 + $0x228] sm:$0xf0]  ;;  %v15445_v15 = vor.u32 %v17824_v29, %v15442_v4 }
 0x58f   :  { %v15969_v53 = vor.u32 %v17959_v61, %v15968_v50  ;;  %v17836_v50 = vld [vmem:[#allocation11 + $0x244] sm:$0xf]  ;;  %v15490_v61 = vld [vmem:[#allocation11 + $0x258] sm:$0xf0]  ;;  %v17902_v48 = vld [vmem:[#allocation11 + $0x454] sm:$0xf] }
 0x590   :  { %10393 = vmatpush.bf16.msrb.mxu0 %v16065_v19  ;;  %v15370_v19 = vld [vmem:[#allocation11 + $0x168] sm:$0xf0] }
 0x591   :  { %v15373_v58 = vor.u32 %v17806_v28, %v15370_v19  ;;  %v17782_v19 = vld [vmem:[#allocation11 + $0x94] sm:$0xf] }
 0x592   :  { %10406 = vmatpush.bf16.msrb.mxu1 %v16257_v14  ;;  %7995 = vmatpush.bf16.msrb.mxu3 %v15069_v51  ;;  %v17854_v14 = vld [vmem:[#allocation11 + $0x2d4] sm:$0xf]  ;;  %v16497_v51 = vor.u32 %v18091_v27, %v16496_v25  ;;  %v17929_v25 = vld [vmem:[#allocation11 + $0x524] sm:$0xf0] }
 0x593   :  { %v15849_v28 = vor.u32 %v17929_v25, %v15848_v32  ;;  %v15730_v32 = vld [vmem:[#allocation11 + $0x438] sm:$0xf0] }
 0x594   :  { %10394 = vmatpush.bf16.msrb.mxu0 %v16041_v8  ;;  %10417 = vmatpush.bf16.msrb.mxu2 %v16497_v51  ;;  %v15565_v8 = vor.u32 %v17854_v14, %v15562_v31  ;;  %v15274_v14 = vld [vmem:[#allocation11 + $0xa8] sm:$0xf0]  ;;  %v17830_v51 = vld [vmem:[#allocation11 + $0x214] sm:$0xf]  ;;  %v7780_v31 = vadd.f32 %v18812_v41, %v7767_v21 }
 0x596   :  { %10407 = vmatpush.bf16.msrb.mxu1 %v16233_v55  ;;  %7996 = vmatpush.bf16.msrb.mxu3 %v15037_v34  ;;  %v15921_v55 = vor.u32 %v17947_v37, %v15920_v52  ;;  %v17800_v34 = vld [vmem:[#allocation11 + $0x124] sm:$0xf]  ;;  %v15824_v52 = vld [vmem:[#allocation11 + $0x4e0] sm:$0xf]  ;;  %v17923_v37 = vld [vmem:[#allocation11 + $0x4f4] sm:$0xf0] }
 0x597   :  { %v15349_v57 = vor.u32 %v17800_v34, %v15346_v36  ;;  %v7792_v40 = vpop.f32.mrf.mxu3  ;;  %v15825_v34 = vor.u32 %v17923_v37, %v15824_v52  ;;  %v15250_v36 = vld [vmem:[#allocation11 + $0x78] sm:$0xf0]  ;;  %v15706_v52 = vld [vmem:[#allocation11 + $0x408] sm:$0xf0] }
 0x598   :  { %10395 = vmatpush.bf16.msrb.mxu0 %v16017_v0  ;;  %v18839_v0 = vpack.c.bf16 %v8008_v13, %v8008_v13  ;;  %10418 = vmatpush.bf16.msrb.mxu2 %v16473_v1  ;;  %v18061_v13 = vld [vmem:[#allocation11 + $0x944] sm:$0xf0] }
 0x599   :  { %v18844_v12 = vpop.f32.mrf.mxu0 }
 0x59a   :  { %10408 = vmatpush.bf16.msrb.mxu1 %v16209_v38  ;;  %7997 = vmatpush.bf16.msrb.mxu3 %v15005_v35  ;;  %v15897_v38 = vor.u32 %v17941_v56, %v15896_v43  ;;  %v17794_v35 = vld [vmem:[#allocation11 + $0xf4] sm:$0xf]  ;;  %v17917_v43 = vld [vmem:[#allocation11 + $0x4c4] sm:$0xf0]  ;;  %v16377_v56 = vor.u32 %v18061_v13, %v16376_v9  ;;  %v17992_v13 = vld [vmem:[#allocation11 + $0x724] sm:$0xf] }
 0x59b   :  { %v15325_v44 = vor.u32 %v17794_v35, %v15322_v17  ;;  %v18846_v63 = vpop.f32.mrf.mxu1  ;;  %v17770_v35 = vld [vmem:[#allocation11 + $0x34] sm:$0xf]  ;;  %v15226_v17 = vld [vmem:[#allocation11 + $0x48] sm:$0xf0] }
 0x59c   :  { %10396 = vmatpush.bf16.msrb.mxu0 %v15993_v11  ;;  %v15298_v11 = vld [vmem:[#allocation11 + $0xd8] sm:$0xf0]  ;;  %10419 = vmatpush.bf16.msrb.mxu2 %v16449_v5  ;;  %v15754_v5 = vld [vmem:[#allocation11 + $0x468] sm:$0xf0] }
 0x59d   :  { %v15301_v27 = vor.u32 %v17788_v18, %v15298_v11  ;;  %v15757_v18 = vor.u32 %v17902_v48, %v15754_v5  ;;  %v8007_v11 = vmax.f32 %v18785_v47, 0.0  ;;  %v17872_v5 = vld [vmem:[#allocation11 + $0x364] sm:$0xf] }
 0x59e   :  { %10409 = vmatpush.bf16.msrb.mxu1 %v16185_v30  ;;  %7998 = vmatpush.bf16.msrb.mxu3 %v14973_v2  ;;  %v16425_v30 = vor.u32 %v18073_v33, %v16424_v45  ;;  %v16400_v2 = vld [vmem:[#allocation11 + $0x960] sm:$0xf]  ;;  %v15418_v45 = vld [vmem:[#allocation11 + $0x1c8] sm:$0xf0] }
 0x59f   :  { %v15776_v33 = vld [vmem:[#allocation11 + $0x480] sm:$0xf]  ;;  %v15421_v25 = vor.u32 %v17818_v22, %v15418_v45  ;;  %v16258_v22 = vld [vmem:[#allocation11 + $0x858] sm:$0xf0] }
 0x5a0   :  { %10397 = vmatpush.bf16.msrb.mxu0 %v15969_v53  ;;  %10420 = vmatpush.bf16.msrb.mxu2 %v16425_v30  ;;  %v16401_v53 = vor.u32 %v18067_v26, %v16400_v2  ;;  %v17764_v30 = vld [vmem:[#allocation11 + $0x4] sm:$0xf]  ;;  %v15202_v2 = vld [vmem:[#allocation11 + $0x18] sm:$0xf0] }
 0x5a1   :  { %7999 = vmatmul.bf16.vlgmr.msrb.gmra.mxu3 %v18668_v54  ;;  %v15514_v54 = vld [vmem:[#allocation11 + $0x288] sm:$0xf0]  ;;  %v17812_v26 = vld [vmem:[#allocation11 + $0x184] sm:$0xf]  ;;  %v15634_v45 = vld [vmem:[#allocation11 + $0x378] sm:$0xf0] }
 0x5a2   :  { %10377 = vmatpush.bf16.msra.mxu3 %v15945_v23  ;;  %10410 = vmatpush.bf16.msrb.mxu1 %v16161_v62  ;;  %v15517_v59 = vor.u32 %v17842_v20, %v15514_v54  ;;  %v15493_v23 = vor.u32 %v17836_v50, %v15490_v61  ;;  %v7793_v62 = vadd.f32 %v7792_v40, %v7780_v31  ;;  %v17896_v61 = vld [vmem:[#allocation11 + $0x424] sm:$0xf] }
 0x5a3   :  { %10398 = vmatmul.bf16.vlgmr.msrb.gmra.mxu0 %v18839_v0  ;;  %v18849_v1 = vpop.f32.mrf.mxu2  ;;  %v7872_v20 = vpop.f32.mrf.mxu1  ;;  %v15801_v54 = vor.u32 %v17917_v43, %v15800_v7  ;;  %v15229_v50 = vor.u32 %v17770_v35, %v15226_v17  ;;  %v15733_v47 = vor.u32 %v17896_v61, %v15730_v32  ;;  %v15205_v31 = vor.u32 %v17764_v30, %v15202_v2  ;;  %v16090_v7 = vld [vmem:[#allocation11 + $0x708] sm:$0xf0]  ;;  %v18034_v43 = vld [vmem:[#allocation11 + $0x874] sm:$0xf]  ;;  %v17980_v17 = vld [vmem:[#allocation11 + $0x6c4] sm:$0xf] }
 0x5a4   :  { %10442 = vmatpush.bf16.msra.mxu0 %v15373_v58  ;;  %v15277_v58 = vor.u32 %v17782_v19, %v15274_v14  ;;  %v8009_v41 = vmax.f32 %v7793_v62, 0.0  ;;  %10421 = vmatpush.bf16.msrb.mxu2 %v16401_v53  ;;  %v18046_v14 = vld [vmem:[#allocation11 + $0x8d4] sm:$0xf]  ;;  %v18855_v40 = vpack.c.bf16 %v8007_v11, %v8007_v11  ;;  %v16114_v62 = vld [vmem:[#allocation11 + $0x738] sm:$0xf0] }
 0x5a5   :  { %v16117_v29 = vor.u32 %v17992_v13, %v16114_v62  ;;  %v16066_v20 = vld [vmem:[#allocation11 + $0x6d8] sm:$0xf0]  ;;  %v18022_v61 = vld [vmem:[#allocation11 + $0x814] sm:$0xf]  ;;  %v16234_v32 = vld [vmem:[#allocation11 + $0x828] sm:$0xf0] }
 0x5a6   :  { %10455 = vmatpush.bf16.msra.mxu1 %v15565_v8  ;;  %10378 = vmatpush.bf16.msra.mxu3 %v15921_v55  ;;  %v17776_v8 = vld [vmem:[#allocation11 + $0x64] sm:$0xf]  ;;  %v15469_v55 = vor.u32 %v17830_v51, %v15466_v42  ;;  %v16330_v51 = vld [vmem:[#allocation11 + $0x8e8] sm:$0xf0]  ;;  %v17890_v42 = vld [vmem:[#allocation11 + $0x3f4] sm:$0xf] }
 0x5a7   :  { %v16333_v9 = vor.u32 %v18046_v14, %v16330_v51  ;;  %v16210_v14 = vld [vmem:[#allocation11 + $0x7f8] sm:$0xf0]  ;;  %v15994_v62 = vld [vmem:[#allocation11 + $0x648] sm:$0xf0] }
 0x5a8   :  { %10443 = vmatpush.bf16.msra.mxu0 %v15349_v57  ;;  %v18851_v57 = vpack.c.bf16 %v8009_v41, %v8009_v41  ;;  %10422 = vmatpush.bf16.msrb.mxu2 %v16377_v56  ;;  %v17986_v41 = vld [vmem:[#allocation11 + $0x6f4] sm:$0xf]  ;;  %v16282_v56 = vld [vmem:[#allocation11 + $0x888] sm:$0xf0] }
 0x5a9   :  { %v16285_v35 = vor.u32 %v18034_v43, %v16282_v56  ;;  %v16688_v43 = vld [vmem:[#allocation11 + $0xba0] sm:$0xf]  ;;  %v18139_v56 = vld [vmem:[#allocation11 + $0xbb4] sm:$0xf0] }
 0x5aa   :  { %10456 = vmatpush.bf16.msra.mxu1 %v15541_v60  ;;  %10379 = vmatpush.bf16.msra.mxu3 %v15897_v38  ;;  %v7859_v60 = vpop.f32.mrf.mxu0  ;;  %v15253_v38 = vor.u32 %v17776_v8, %v15250_v36  ;;  %v16306_v8 = vld [vmem:[#allocation11 + $0x8b8] sm:$0xf0] }
 0x5ab   :  { %10411 = vmatmul.bf16.vlgmr.msrb.gmra.mxu1 %v18851_v57  ;;  %v7885_v19 = vpop.f32.mrf.mxu2  ;;  %v15682_v36 = vld [vmem:[#allocation11 + $0x3d8] sm:$0xf0]  ;;  %v15658_v60 = vld [vmem:[#allocation11 + $0x3a8] sm:$0xf0] }
 0x5ac   :  { %10444 = vmatpush.bf16.msra.mxu0 %v15325_v44  ;;  %v17911_v44 = vld [vmem:[#allocation11 + $0x494] sm:$0xf0]  ;;  %v18016_v19 = vld [vmem:[#allocation11 + $0x7e4] sm:$0xf] }
 0x5ad   :  { %v15777_v21 = vor.u32 %v17911_v44, %v15776_v33  ;;  %v16069_v33 = vor.u32 %v17980_v17, %v16066_v20  ;;  %v16213_v13 = vor.u32 %v18016_v19, %v16210_v14  ;;  %v16162_v17 = vld [vmem:[#allocation11 + $0x798] sm:$0xf0]  ;;  %v15376_v20 = vld [vmem:[#allocation11 + $0x158] sm:$0xf]  ;;  %v17846_v14 = vld [vmem:[#allocation11 + $0x28c] sm:$0xf0] }
 0x5ae   :  { %10457 = vmatpush.bf16.msra.mxu1 %v15517_v59  ;;  %10380 = vmatpush.bf16.msra.mxu3 %v15873_v16  ;;  %v16353_v59 = vor.u32 %v18055_v49, %v16352_v6  ;;  %v7794_v16 = vpop.f32.mrf.mxu3  ;;  %v17878_v49 = vld [vmem:[#allocation11 + $0x394] sm:$0xf]  ;;  %v15520_v19 = vld [vmem:[#allocation11 + $0x278] sm:$0xf] }
 0x5af   :  { %v15661_v48 = vor.u32 %v17878_v49, %v15658_v60  ;;  %v17974_v16 = vld [vmem:[#allocation11 + $0x694] sm:$0xf]  ;;  %v17956_v49 = vld [vmem:[#allocation11 + $0x604] sm:$0xf]  ;;  %v15970_v60 = vld [vmem:[#allocation11 + $0x618] sm:$0xf0] }
 0x5b0   :  { %10445 = vmatpush.bf16.msra.mxu0 %v15301_v27  ;;  %v15394_v27 = vld [vmem:[#allocation11 + $0x198] sm:$0xf0]  ;;  %10423 = vmatpush.bf16.msrb.mxu2 %v16353_v59 }
 0x5b1   :  { %v15397_v37 = vor.u32 %v17812_v26, %v15394_v27  ;;  %v16237_v27 = vor.u32 %v18022_v61, %v16234_v32  ;;  %v15544_v61 = vld [vmem:[#allocation11 + $0x2a8] sm:$0xf]  ;;  %v17852_v32 = vld [vmem:[#allocation11 + $0x2bc] sm:$0xf0] }
 0x5b2   :  { %10458 = vmatpush.bf16.msra.mxu1 %v15493_v23  ;;  %10381 = vmatpush.bf16.msra.mxu3 %v15849_v28  ;;  %v17998_v23 = vld [vmem:[#allocation11 + $0x754] sm:$0xf]  ;;  %v16138_v28 = vld [vmem:[#allocation11 + $0x768] sm:$0xf0] }
 0x5b3   :  { %v16141_v53 = vor.u32 %v17998_v23, %v16138_v28  ;;  %v17968_v23 = vld [vmem:[#allocation11 + $0x664] sm:$0xf]  ;;  %v16018_v28 = vld [vmem:[#allocation11 + $0x678] sm:$0xf0] }
 0x5b4   :  { %10446 = vmatpush.bf16.msra.mxu0 %v15277_v58  ;;  %10468 = vmatpush.bf16.msra.mxu2 %v15757_v18  ;;  %v18040_v58 = vld [vmem:[#allocation11 + $0x8a4] sm:$0xf]  ;;  %v16042_v18 = vld [vmem:[#allocation11 + $0x6a8] sm:$0xf0] }
 0x5b5   :  { %v16309_v4 = vor.u32 %v18040_v58, %v16306_v8  ;;  %v16045_v26 = vor.u32 %v17974_v16, %v16042_v18  ;;  %v16712_v58 = vld [vmem:[#allocation11 + $0xbd0] sm:$0xf]  ;;  %v18145_v8 = vld [vmem:[#allocation11 + $0xbe4] sm:$0xf0] }
 0x5b6   :  { %10459 = vmatpush.bf16.msra.mxu1 %v15469_v55  ;;  %10382 = vmatpush.bf16.msra.mxu3 %v15825_v34  ;;  %v15709_v55 = vor.u32 %v17890_v42, %v15706_v52  ;;  %v17884_v34 = vld [vmem:[#allocation11 + $0x3c4] sm:$0xf]  ;;  %v16021_v52 = vor.u32 %v17968_v23, %v16018_v28  ;;  %v15328_v23 = vld [vmem:[#allocation11 + $0xf8] sm:$0xf]  ;;  %v17798_v28 = vld [vmem:[#allocation11 + $0x10c] sm:$0xf0] }
 0x5b7   :  { %v15685_v6 = vor.u32 %v17884_v34, %v15682_v36  ;;  %v18010_v34 = vld [vmem:[#allocation11 + $0x7b4] sm:$0xf]  ;;  %v16186_v36 = vld [vmem:[#allocation11 + $0x7c8] sm:$0xf0] }
 0x5b8   :  { %10447 = vmatpush.bf16.msra.mxu0 %v15253_v38  ;;  %10469 = vmatpush.bf16.msra.mxu2 %v15733_v47  ;;  %v16093_v38 = vor.u32 %v17986_v41, %v16090_v7  ;;  %v17860_v47 = vld [vmem:[#allocation11 + $0x304] sm:$0xf] }
 0x5b9   :  { %v7909_v44 = vpop.f32.mrf.mxu0 }
 0x5ba   :  { %10460 = vmatpush.bf16.msra.mxu1 %v15445_v15  ;;  %10383 = vmatpush.bf16.msra.mxu3 %v15801_v54  ;;  %v4603_v15 = vperm.slane %v18827_v39, 7  ;;  %v18028_v54 = vld [vmem:[#allocation11 + $0x844] sm:$0xf]  ;;  %v17866_v39 = vld [vmem:[#allocation11 + $0x334] sm:$0xf] }
 0x5bb   :  { %v16261_v59 = vor.u32 %v18028_v54, %v16258_v22  ;;  %v15568_v54 = vld [vmem:[#allocation11 + $0x2d8] sm:$0xf]  ;;  %v17858_v22 = vld [vmem:[#allocation11 + $0x2ec] sm:$0xf0] }
 0x5bc   :  { %10448 = vmatpush.bf16.msra.mxu0 %v15229_v50  ;;  %10470 = vmatpush.bf16.msra.mxu2 %v15709_v55  ;;  %v7910_v11 = vadd.f32 %v7909_v44, %v4603_v15  ;;  %v7922_v50 = vpop.f32.mrf.mxu1  ;;  %v17810_v15 = vld [vmem:[#allocation11 + $0x16c] sm:$0xf0]  ;;  %v15569_v18 = vor.u32 %v17858_v22, %v15568_v54  ;;  %v17828_v22 = vld [vmem:[#allocation11 + $0x1fc] sm:$0xf0] }
 0x5bd   :  { %v18861_v2 = vpop.f32.mrf.mxu3 }
 0x5be   :  { %10461 = vmatpush.bf16.msra.mxu1 %v15421_v25  ;;  %10384 = vmatpush.bf16.msra.mxu3 %v15777_v21  ;;  %v15637_v25 = vor.u32 %v17872_v5, %v15634_v45  ;;  %v15610_v21 = vld [vmem:[#allocation11 + $0x348] sm:$0xf0]  ;;  %v7923_v30 = vadd.f32 %v7922_v50, %v7910_v11  ;;  %v15973_v5 = vor.u32 %v17956_v49, %v15970_v60  ;;  %v16664_v45 = vld [vmem:[#allocation11 + $0xb70] sm:$0xf]  ;;  %v15352_v11 = vld [vmem:[#allocation11 + $0x128] sm:$0xf] }
 0x5bf   :  { %v15613_v51 = vor.u32 %v17866_v39, %v15610_v21  ;;  %v17804_v50 = vld [vmem:[#allocation11 + $0x13c] sm:$0xf0]  ;;  %v18127_v39 = vld [vmem:[#allocation11 + $0xb54] sm:$0xf0]  ;;  %v7845_v21 = vadd.f32 %v18861_v2, %v18832_v46  ;;  %v15329_v2 = vor.u32 %v17798_v28, %v15328_v23  ;;  %v15946_v23 = vld [vmem:[#allocation11 + $0x5e8] sm:$0xf0] }
 0x5c0   :  { %10449 = vmatpush.bf16.msra.mxu0 %v15205_v31  ;;  %10471 = vmatpush.bf16.msra.mxu2 %v15685_v6  ;;  %v15586_v31 = vld [vmem:[#allocation11 + $0x318] sm:$0xf0]  ;;  %v16189_v6 = vor.u32 %v18010_v34, %v16186_v36 }
 0x5c1   :  { %10385 = vmatmul.bf16.vlgmr.msra.gmra.mxu3 %v18855_v40  ;;  %v7858_v46 = vadd.f32 %v18844_v12, %v7845_v21  ;;  %v17786_v12 = vld [vmem:[#allocation11 + $0xac] sm:$0xf0] }
 0x5c2   :  { %10462 = vmatpush.bf16.msra.mxu1 %v15397_v37  ;;  %v17962_v37 = vld [vmem:[#allocation11 + $0x634] sm:$0xf] }
 0x5c3   :  { %10450 = vmatmul.bf16.vlgmr.msra.gmra.mxu0 %v18818_v24  ;;  %v7935_v42 = vpop.f32.mrf.mxu2  ;;  %v15997_v7 = vor.u32 %v17962_v37, %v15994_v62  ;;  %v17792_v37 = vld [vmem:[#allocation11 + $0xdc] sm:$0xf0] }
 0x5c4   :  { %10494 = vmatpush.bf16.msrb.mxu0 %v16141_v53  ;;  %10472 = vmatpush.bf16.msra.mxu2 %v15661_v48  ;;  %v18863_v53 = vadd.f32 %v7935_v42, %v7923_v30  ;;  %v7924_v55 = vpop.f32.mrf.mxu1  ;;  %v15353_v30 = vor.u32 %v17804_v50, %v15352_v11  ;;  %v15521_v42 = vor.u32 %v17846_v14, %v15520_v19  ;;  %v16592_v62 = vld [vmem:[#allocation11 + $0xae0] sm:$0xf] }
 0x5c5   :  { %10463 = vmatmul.bf16.vlgmr.msra.gmra.mxu1 %v18820_v10  ;;  %v7846_v41 = vpop.f32.mrf.mxu3  ;;  %v7871_v55 = vadd.f32 %v18846_v63, %v7858_v46 }
 0x5c6   :  { %10507 = vmatpush.bf16.msrb.mxu1 %v16333_v9  ;;  %v7911_v9 = vpop.f32.mrf.mxu0  ;;  %v15472_v41 = vld [vmem:[#allocation11 + $0x218] sm:$0xf] }
 0x5c7   :  { %v15496_v9 = vld [vmem:[#allocation11 + $0x248] sm:$0xf]  ;;  %v7884_v49 = vadd.f32 %v18849_v1, %v7871_v55  ;;  %v17774_v1 = vld [vmem:[#allocation11 + $0x4c] sm:$0xf0] }
 0x5c8   :  { %10495 = vmatpush.bf16.msrb.mxu0 %v16117_v29  ;;  %10473 = vmatpush.bf16.msra.mxu2 %v15637_v25  ;;  %v15589_v29 = vor.u32 %v17860_v47, %v15586_v31  ;;  %v16640_v25 = vld [vmem:[#allocation11 + $0xb40] sm:$0xf]  ;;  %v18121_v47 = vld [vmem:[#allocation11 + $0xb24] sm:$0xf0]  ;;  %v18002_v55 = vld [vmem:[#allocation11 + $0x76c] sm:$0xf0] }
 0x5ca   :  { %10508 = vmatpush.bf16.msrb.mxu1 %v16309_v4  ;;  %v16713_v4 = vor.u32 %v18145_v8, %v16712_v58  ;;  %v18115_v58 = vld [vmem:[#allocation11 + $0xaf4] sm:$0xf0] }
 0x5cb   :  { %v7937_v48 = vpop.f32.mrf.mxu2  ;;  %v16593_v34 = vor.u32 %v18115_v58, %v16592_v62  ;;  %v16474_v62 = vld [vmem:[#allocation11 + $0xa08] sm:$0xf0]  ;;  %v16144_v58 = vld [vmem:[#allocation11 + $0x758] sm:$0xf] }
 0x5cc   :  { %10496 = vmatpush.bf16.msrb.mxu0 %v16093_v38  ;;  %10474 = vmatpush.bf16.msra.mxu2 %v15613_v51  ;;  %v18004_v38 = vld [vmem:[#allocation11 + $0x784] sm:$0xf]  ;;  %v16616_v51 = vld [vmem:[#allocation11 + $0xb10] sm:$0xf]  ;;  %v18094_v48 = vld [vmem:[#allocation11 + $0xa54] sm:$0xf] }
 0x5cd   :  { %10429 = vmatpush.bf16.msrb.mxu3 %v16713_v4  ;;  %v16165_v44 = vor.u32 %v18004_v38, %v16162_v17  ;;  %v16617_v31 = vor.u32 %v18121_v47, %v16616_v51  ;;  %v15256_v17 = vld [vmem:[#allocation11 + $0x68] sm:$0xf]  ;;  %v17768_v47 = vld [vmem:[#allocation11 + $0x1c] sm:$0xf0] }
 0x5ce   :  { %10509 = vmatpush.bf16.msrb.mxu1 %v16285_v35  ;;  %v16689_v35 = vor.u32 %v18139_v56, %v16688_v43  ;;  %v16568_v56 = vld [vmem:[#allocation11 + $0xab0] sm:$0xf]  ;;  %v15208_v51 = vld [vmem:[#allocation11 + $0x8] sm:$0xf] }
 0x5d0   :  { %10497 = vmatpush.bf16.msrb.mxu0 %v16069_v33  ;;  %10475 = vmatpush.bf16.msra.mxu2 %v15589_v29  ;;  %v18133_v33 = vld [vmem:[#allocation11 + $0xb84] sm:$0xf0]  ;;  %v15280_v29 = vld [vmem:[#allocation11 + $0x98] sm:$0xf] }
 0x5d1   :  { %10430 = vmatpush.bf16.msrb.mxu3 %v16689_v35  ;;  %v16665_v16 = vor.u32 %v18133_v33, %v16664_v45  ;;  %v15281_v60 = vor.u32 %v17786_v12, %v15280_v29  ;;  %v16544_v45 = vld [vmem:[#allocation11 + $0xa80] sm:$0xf]  ;;  %v18103_v33 = vld [vmem:[#allocation11 + $0xa94] sm:$0xf0]  ;;  %v15209_v29 = vor.u32 %v17768_v47, %v15208_v51  ;;  %v17938_v12 = vld [vmem:[#allocation11 + $0x574] sm:$0xf] }
 0x5d2   :  { %10510 = vmatpush.bf16.msrb.mxu1 %v16261_v59  ;;  %v15377_v59 = vor.u32 %v17810_v15, %v15376_v20  ;;  %v17780_v20 = vld [vmem:[#allocation11 + $0x7c] sm:$0xf0]  ;;  %v15448_v15 = vld [vmem:[#allocation11 + $0x1e8] sm:$0xf] }
 0x5d3   :  { %v15449_v50 = vor.u32 %v17828_v22, %v15448_v15  ;;  %v18044_v15 = vld [vmem:[#allocation11 + $0x8bc] sm:$0xf0]  ;;  %v16264_v51 = vld [vmem:[#allocation11 + $0x848] sm:$0xf] }
 0x5d4   :  { %10498 = vmatpush.bf16.msrb.mxu0 %v16045_v26  ;;  %v16641_v26 = vor.u32 %v18127_v39, %v16640_v25  ;;  %v17822_v25 = vld [vmem:[#allocation11 + $0x1cc] sm:$0xf0]  ;;  %v18088_v39 = vld [vmem:[#allocation11 + $0xa24] sm:$0xf]  ;;  %v18032_v47 = vld [vmem:[#allocation11 + $0x85c] sm:$0xf0] }
 0x5d5   :  { %10431 = vmatpush.bf16.msrb.mxu3 %v16665_v16  ;;  %v15232_v16 = vld [vmem:[#allocation11 + $0x38] sm:$0xf] }
 0x5d6   :  { %10511 = vmatpush.bf16.msrb.mxu1 %v16237_v27  ;;  %v15545_v27 = vor.u32 %v17852_v32, %v15544_v61  ;;  %v15424_v32 = vld [vmem:[#allocation11 + $0x1b8] sm:$0xf]  ;;  %v15233_v14 = vor.u32 %v17774_v1, %v15232_v16  ;;  %v17990_v1 = vld [vmem:[#allocation11 + $0x70c] sm:$0xf0] }
 0x5d7   :  { %v16096_v16 = vld [vmem:[#allocation11 + $0x6f8] sm:$0xf] }
 0x5d8   :  { %10499 = vmatpush.bf16.msrb.mxu0 %v16021_v52  ;;  %v15304_v52 = vld [vmem:[#allocation11 + $0xc8] sm:$0xf] }
 0x5d9   :  { %10432 = vmatpush.bf16.msrb.mxu3 %v16641_v26  ;;  %v15305_v8 = vor.u32 %v17792_v37, %v15304_v52  ;;  %v16498_v26 = vld [vmem:[#allocation11 + $0xa38] sm:$0xf0]  ;;  %v15400_v52 = vld [vmem:[#allocation11 + $0x188] sm:$0xf]  ;;  %v17816_v37 = vld [vmem:[#allocation11 + $0x19c] sm:$0xf0] }
 0x5da   :  { %10512 = vmatpush.bf16.msrb.mxu1 %v16213_v13  ;;  %v17840_v13 = vld [vmem:[#allocation11 + $0x25c] sm:$0xf0] }
 0x5db   :  { %v15497_v36 = vor.u32 %v17840_v13, %v15496_v9  ;;  %v15922_v9 = vld [vmem:[#allocation11 + $0x5b8] sm:$0xf0]  ;;  %v18082_v13 = vld [vmem:[#allocation11 + $0x9f4] sm:$0xf] }
 0x5dc   :  { %10500 = vmatpush.bf16.msrb.mxu0 %v15997_v7  ;;  %v17834_v7 = vld [vmem:[#allocation11 + $0x22c] sm:$0xf0] }
 0x5dd   :  { %10433 = vmatpush.bf16.msrb.mxu3 %v16617_v31  ;;  %v7896_v63 = vpop.f32.mrf.mxu3  ;;  %v15473_v35 = vor.u32 %v17834_v7, %v15472_v41  ;;  %v17944_v31 = vld [vmem:[#allocation11 + $0x5a4] sm:$0xf]  ;;  %v15898_v41 = vld [vmem:[#allocation11 + $0x588] sm:$0xf0] }
 0x5de   :  { %10513 = vmatpush.bf16.msrb.mxu1 %v16189_v6  ;;  %v18109_v6 = vld [vmem:[#allocation11 + $0xac4] sm:$0xf0]  ;;  %v7897_v54 = vadd.f32 %v7896_v63, %v7884_v49  ;;  %v16145_v49 = vor.u32 %v18002_v55, %v16144_v58  ;;  %v16450_v63 = vld [vmem:[#allocation11 + $0x9d8] sm:$0xf0]  ;;  %v16048_v58 = vld [vmem:[#allocation11 + $0x698] sm:$0xf] }
 0x5df   :  { %v16569_v38 = vor.u32 %v18109_v6, %v16568_v56  ;;  %v15401_v56 = vor.u32 %v17816_v37, %v15400_v52  ;;  %v16477_v6 = vor.u32 %v18082_v13, %v16474_v62  ;;  %v15826_v52 = vld [vmem:[#allocation11 + $0x4f8] sm:$0xf0]  ;;  %v18058_v13 = vld [vmem:[#allocation11 + $0x934] sm:$0xf]  ;;  %v16378_v62 = vld [vmem:[#allocation11 + $0x948] sm:$0xf0] }
 0x5e0   :  { %10501 = vmatpush.bf16.msrb.mxu0 %v15973_v5  ;;  %v18871_v4 = vpop.f32.mrf.mxu0  ;;  %v16522_v5 = vld [vmem:[#allocation11 + $0xa68] sm:$0xf0]  ;;  %v16240_v55 = vld [vmem:[#allocation11 + $0x818] sm:$0xf] }
 0x5e1   :  { %10434 = vmatpush.bf16.msrb.mxu3 %v16593_v34  ;;  %v16525_v61 = vor.u32 %v18094_v48, %v16522_v5  ;;  %v16336_v34 = vld [vmem:[#allocation11 + $0x8d8] sm:$0xf]  ;;  %v17932_v48 = vld [vmem:[#allocation11 + $0x544] sm:$0xf]  ;;  %v15874_v5 = vld [vmem:[#allocation11 + $0x558] sm:$0xf0] }
 0x5e2   :  { %10514 = vmatpush.bf16.msrb.mxu1 %v16165_v44  ;;  %v18873_v43 = vpop.f32.mrf.mxu1  ;;  %v8010_v44 = vmax.f32 %v7897_v54, 0.0  ;;  %v15901_v54 = vor.u32 %v17938_v12, %v15898_v41 }
 0x5e3   :  { %10502 = vmatmul.bf16.vlgmr.msrb.gmra.mxu0 %v18839_v0 }
 0x5e4   :  { %10546 = vmatpush.bf16.msra.mxu0 %v15377_v59  ;;  %v15257_v59 = vor.u32 %v17780_v20, %v15256_v17  ;;  %v18878_v21 = vpack.c.bf16 %v8010_v44, %v8010_v44  ;;  %v17996_v17 = vld [vmem:[#allocation11 + $0x73c] sm:$0xf0]  ;;  %v16312_v20 = vld [vmem:[#allocation11 + $0x8a8] sm:$0xf]  ;;  %v18070_v44 = vld [vmem:[#allocation11 + $0x994] sm:$0xf] }
 0x5e5   :  { %10515 = vmatmul.bf16.vlgmr.msrb.gmra.mxu1 %v18851_v57  ;;  %10435 = vmatpush.bf16.msrb.mxu3 %v16569_v38  ;;  %v7898_v46 = vpop.f32.mrf.mxu3  ;;  %v18076_v38 = vld [vmem:[#allocation11 + $0x9c4] sm:$0xf] }
 0x5e6   :  { %10559 = vmatpush.bf16.msra.mxu1 %v15569_v18  ;;  %v16545_v18 = vor.u32 %v18103_v33, %v16544_v45  ;;  %10424 = vmatmul.bf16.vlgmr.msrb.gmra.mxu2 %v18878_v21  ;;  %v16453_v22 = vor.u32 %v18076_v38, %v16450_v63  ;;  %v16313_v33 = vor.u32 %v18044_v15, %v16312_v20  ;;  %v18052_v38 = vld [vmem:[#allocation11 + $0x904] sm:$0xf]  ;;  %v16354_v63 = vld [vmem:[#allocation11 + $0x918] sm:$0xf0]  ;;  %v17972_v15 = vld [vmem:[#allocation11 + $0x67c] sm:$0xf0] }
 0x5e7   :  { %10520 = vmatpush.bf16.msrb.mxu2 %v16525_v61  ;;  %v15877_v61 = vor.u32 %v17932_v48, %v15874_v5  ;;  %v15760_v5 = vld [vmem:[#allocation11 + $0x458] sm:$0xf] }
 0x5e8   :  { %10547 = vmatpush.bf16.msra.mxu0 %v15353_v30  ;;  %v7963_v30 = vpop.f32.mrf.mxu0 }
 0x5e9   :  { %10436 = vmatpush.bf16.msrb.mxu3 %v16545_v18  ;;  %v16288_v18 = vld [vmem:[#allocation11 + $0x878] sm:$0xf]  ;;  %v18883_v30 = vld [vmem:[#allocation13] sm:$0x3f] }
 0x5ea   :  { %10560 = vmatpush.bf16.msra.mxu1 %v15545_v27  ;;  %v18876_v11 = vpop.f32.mrf.mxu2  ;;  %v17950_v27 = vld [vmem:[#allocation11 + $0x5d4] sm:$0xf]  ;;  %v7976_v28 = vpop.f32.mrf.mxu1  ;;  %v8406_v46 = vperm.slane %v18883_v30, 0 }
 0x5eb   :  { %v15949_v19 = vor.u32 %v17950_v27, %v15946_v23  ;;  %v18064_v23 = vld [vmem:[#allocation11 + $0x964] sm:$0xf]  ;;  %v16402_v28 = vld [vmem:[#allocation11 + $0x978] sm:$0xf0] }
 0x5ec   :  { %10548 = vmatpush.bf16.msra.mxu0 %v15329_v2  ;;  %v15425_v2 = vor.u32 %v17822_v25, %v15424_v32  ;;  %v17926_v32 = vld [vmem:[#allocation11 + $0x514] sm:$0xf]  ;;  %v15850_v25 = vld [vmem:[#allocation11 + $0x528] sm:$0xf0] }
 0x5ed   :  { %10481 = vmatpush.bf16.msra.mxu3 %v15949_v19  ;;  %v16072_v19 = vld [vmem:[#allocation11 + $0x6c8] sm:$0xf] }
 0x5ee   :  { %10561 = vmatpush.bf16.msra.mxu1 %v15521_v42  ;;  %v16501_v42 = vor.u32 %v18088_v39, %v16498_v26  ;;  %v16097_v26 = vor.u32 %v17990_v1, %v16096_v16 }
 0x5f0   :  { %10549 = vmatpush.bf16.msra.mxu0 %v15305_v8  ;;  %v15925_v8 = vor.u32 %v17944_v31, %v15922_v9  ;;  %10521 = vmatpush.bf16.msrb.mxu2 %v16501_v42  ;;  %v15853_v31 = vor.u32 %v17926_v32, %v15850_v25  ;;  %v17920_v42 = vld [vmem:[#allocation11 + $0x4e4] sm:$0xf]  ;;  %v16265_v9 = vor.u32 %v18032_v47, %v16264_v51  ;;  %v17966_v32 = vld [vmem:[#allocation11 + $0x64c] sm:$0xf0]  ;;  %v16192_v25 = vld [vmem:[#allocation11 + $0x7b8] sm:$0xf] }
 0x5f2   :  { %10562 = vmatpush.bf16.msra.mxu1 %v15497_v36  ;;  %v18050_v36 = vld [vmem:[#allocation11 + $0x8ec] sm:$0xf0]  ;;  %v7989_v7 = vpop.f32.mrf.mxu2  ;;  %10482 = vmatpush.bf16.msra.mxu3 %v15925_v8 }
 0x5f3   :  { %v17978_v8 = vld [vmem:[#allocation11 + $0x6ac] sm:$0xf0]  ;;  %v16381_v7 = vor.u32 %v18058_v13, %v16378_v62  ;;  %v17807_v62 = vld [vmem:[#allocation11 + $0x15c] sm:$0xf] }
 0x5f4   :  { %10550 = vmatpush.bf16.msra.mxu0 %v15281_v60  ;;  %v16337_v60 = vor.u32 %v18050_v36, %v16336_v34  ;;  %10522 = vmatpush.bf16.msrb.mxu2 %v16477_v6  ;;  %v18026_v34 = vld [vmem:[#allocation11 + $0x82c] sm:$0xf0]  ;;  %v15829_v36 = vor.u32 %v17920_v42, %v15826_v52  ;;  %v15802_v6 = vld [vmem:[#allocation11 + $0x4c8] sm:$0xf0]  ;;  %v16168_v52 = vld [vmem:[#allocation11 + $0x788] sm:$0xf] }
 0x5f5   :  { %v17894_v13 = vld [vmem:[#allocation11 + $0x40c] sm:$0xf0] }
 0x5f6   :  { %10563 = vmatpush.bf16.msra.mxu1 %v15473_v35  ;;  %v16120_v35 = vld [vmem:[#allocation11 + $0x728] sm:$0xf]  ;;  %10483 = vmatpush.bf16.msra.mxu3 %v15901_v54 }
 0x5f7   :  { %v16121_v45 = vor.u32 %v17996_v17, %v16120_v35  ;;  %10476 = vmatmul.bf16.vlgmr.msra.gmra.mxu2 %v18822_v3  ;;  %v16024_v35 = vld [vmem:[#allocation11 + $0x668] sm:$0xf] }
 0x5f8   :  { %10551 = vmatpush.bf16.msra.mxu0 %v15257_v59  ;;  %v16426_v59 = vld [vmem:[#allocation11 + $0x9a8] sm:$0xf0]  ;;  %10523 = vmatpush.bf16.msrb.mxu2 %v16453_v22  ;;  %v16216_v54 = vld [vmem:[#allocation11 + $0x7e8] sm:$0xf]  ;;  %v18020_v22 = vld [vmem:[#allocation11 + $0x7fc] sm:$0xf0]  ;;  %v16025_v16 = vor.u32 %v17972_v15, %v16024_v35 }
 0x5f9   :  { %v16429_v39 = vor.u32 %v18070_v44, %v16426_v59  ;;  %v17908_v44 = vld [vmem:[#allocation11 + $0x484] sm:$0xf]  ;;  %v15778_v59 = vld [vmem:[#allocation11 + $0x498] sm:$0xf0]  ;;  %v16217_v1 = vor.u32 %v18020_v22, %v16216_v54  ;;  %v15664_v54 = vld [vmem:[#allocation11 + $0x398] sm:$0xf] }
 0x5fa   :  { %10564 = vmatpush.bf16.msra.mxu1 %v15449_v50  ;;  %v18038_v50 = vld [vmem:[#allocation11 + $0x88c] sm:$0xf0]  ;;  %10484 = vmatpush.bf16.msra.mxu3 %v15877_v61 }
 0x5fb   :  { %v16289_v27 = vor.u32 %v18038_v50, %v16288_v18  ;;  %v16000_v18 = vld [vmem:[#allocation11 + $0x638] sm:$0xf] }
 0x5fc   :  { %10552 = vmatpush.bf16.msra.mxu0 %v15233_v14  ;;  %v17984_v14 = vld [vmem:[#allocation11 + $0x6dc] sm:$0xf0]  ;;  %10524 = vmatpush.bf16.msrb.mxu2 %v16429_v39  ;;  %v18014_v39 = vld [vmem:[#allocation11 + $0x7cc] sm:$0xf0]  ;;  %v16001_v51 = vor.u32 %v17966_v32, %v16000_v18  ;;  %v17837_v32 = vld [vmem:[#allocation11 + $0x24c] sm:$0xf] }
 0x5fd   :  { %v16073_v37 = vor.u32 %v17984_v14, %v16072_v19  ;;  %v15736_v19 = vld [vmem:[#allocation11 + $0x428] sm:$0xf]  ;;  %v17900_v14 = vld [vmem:[#allocation11 + $0x43c] sm:$0xf0]  ;;  %v16193_v47 = vor.u32 %v18014_v39, %v16192_v25  ;;  %v15498_v25 = vld [vmem:[#allocation11 + $0x260] sm:$0xf0] }
 0x5fe   :  { %10565 = vmatpush.bf16.msra.mxu1 %v15425_v2  ;;  %v16405_v2 = vor.u32 %v18064_v23, %v16402_v28  ;;  %10485 = vmatpush.bf16.msra.mxu3 %v15853_v31  ;;  %v15976_v31 = vld [vmem:[#allocation11 + $0x608] sm:$0xf]  ;;  %v15737_v42 = vor.u32 %v17900_v14, %v15736_v19  ;;  %v17876_v18 = vld [vmem:[#allocation11 + $0x37c] sm:$0xf0]  ;;  %v17870_v19 = vld [vmem:[#allocation11 + $0x34c] sm:$0xf0] }
 0x5ff   :  { %v17783_v14 = vld [vmem:[#allocation11 + $0x9c] sm:$0xf] }
 0x600   :  { %10553 = vmatpush.bf16.msra.mxu0 %v15209_v29  ;;  %v10347_v29 = vpop.f32.mrf.mxu0  ;;  %10525 = vmatpush.bf16.msrb.mxu2 %v16405_v2 }
 0x601   :  { %v10348_v41 = vadd.f32 %v10347_v29, %v8406_v46  ;;  %v17960_v46 = vld [vmem:[#allocation11 + $0x61c] sm:$0xf0] }
 0x602   :  { %10566 = vmatpush.bf16.msra.mxu1 %v15401_v56  ;;  %v10360_v12 = vpop.f32.mrf.mxu1  ;;  %v17914_v56 = vld [vmem:[#allocation11 + $0x4b4] sm:$0xf]  ;;  %10486 = vmatpush.bf16.msra.mxu3 %v15829_v36 }
 0x603   :  { %10554 = vmatmul.bf16.vlgmr.msra.gmra.mxu0 %v18818_v24  ;;  %v10361_v17 = vadd.f32 %v10360_v12, %v10348_v41  ;;  %v15805_v48 = vor.u32 %v17914_v56, %v15802_v6  ;;  %v17888_v6 = vld [vmem:[#allocation11 + $0x3dc] sm:$0xf0] }
 0x604   :  { %10598 = vmatpush.bf16.msrb.mxu0 %v16145_v49  ;;  %v16049_v49 = vor.u32 %v17978_v8, %v16048_v58  ;;  %v18887_v20 = vpop.f32.mrf.mxu3  ;;  %10526 = vmatpush.bf16.msrb.mxu2 %v16381_v7  ;;  %v15378_v58 = vld [vmem:[#allocation11 + $0x170] sm:$0xf0]  ;;  %v17855_v8 = vld [vmem:[#allocation11 + $0x2dc] sm:$0xf]  ;;  %v15688_v7 = vld [vmem:[#allocation11 + $0x3c8] sm:$0xf] }
 0x605   :  { %10567 = vmatmul.bf16.vlgmr.msra.gmra.mxu1 %v18820_v10  ;;  %v15381_v41 = vor.u32 %v17807_v62, %v15378_v58  ;;  %v7949_v35 = vadd.f32 %v18887_v20, %v18863_v53  ;;  %v17777_v62 = vld [vmem:[#allocation11 + $0x6c] sm:$0xf]  ;;  %v15258_v58 = vld [vmem:[#allocation11 + $0x80] sm:$0xf0] }
 0x606   :  { %10611 = vmatpush.bf16.msrb.mxu1 %v16337_v60  ;;  %v16241_v60 = vor.u32 %v18026_v34, %v16240_v55  ;;  %10487 = vmatpush.bf16.msra.mxu3 %v15805_v48  ;;  %v15570_v55 = vld [vmem:[#allocation11 + $0x2f0] sm:$0xf0]  ;;  %v15977_v34 = vor.u32 %v17960_v46, %v15976_v31  ;;  %v17882_v48 = vld [vmem:[#allocation11 + $0x3ac] sm:$0xf0]  ;;  %v17831_v31 = vld [vmem:[#allocation11 + $0x21c] sm:$0xf] }
 0x607   :  { %v15573_v56 = vor.u32 %v17855_v8, %v15570_v55  ;;  %v15665_v53 = vor.u32 %v17882_v48, %v15664_v54  ;;  %v15474_v46 = vld [vmem:[#allocation11 + $0x230] sm:$0xf0]  ;;  %v17825_v55 = vld [vmem:[#allocation11 + $0x1ec] sm:$0xf]  ;;  %v16690_v48 = vld [vmem:[#allocation11 + $0xbb8] sm:$0xf0] }
 0x608   :  { %10599 = vmatpush.bf16.msrb.mxu0 %v16121_v45  ;;  %v17906_v45 = vld [vmem:[#allocation11 + $0x46c] sm:$0xf0]  ;;  %v10349_v23 = vpop.f32.mrf.mxu0  ;;  %v15426_v54 = vld [vmem:[#allocation11 + $0x1d0] sm:$0xf0] }
 0x609   :  { %v15761_v61 = vor.u32 %v17906_v45, %v15760_v5  ;;  %v17795_v5 = vld [vmem:[#allocation11 + $0xfc] sm:$0xf]  ;;  %v15330_v45 = vld [vmem:[#allocation11 + $0x110] sm:$0xf0] }
 0x60a   :  { %10612 = vmatpush.bf16.msrb.mxu1 %v16313_v33  ;;  %v16357_v33 = vor.u32 %v18052_v38, %v16354_v63  ;;  %v10373_v50 = vpop.f32.mrf.mxu2  ;;  %v10362_v28 = vpop.f32.mrf.mxu1  ;;  %v17849_v38 = vld [vmem:[#allocation11 + $0x2ac] sm:$0xf]  ;;  %v15546_v63 = vld [vmem:[#allocation11 + $0x2c0] sm:$0xf0]  ;;  %v15333_v20 = vor.u32 %v17795_v5, %v15330_v45  ;;  %v16504_v5 = vld [vmem:[#allocation11 + $0xa28] sm:$0xf] }
 0x60b   :  { %v15549_v22 = vor.u32 %v17849_v38, %v15546_v63  ;;  %v15616_v28 = vld [vmem:[#allocation11 + $0x338] sm:$0xf]  ;;  %v18092_v45 = vld [vmem:[#allocation11 + $0xa3c] sm:$0xf0] }
 0x60c   :  { %10600 = vmatpush.bf16.msrb.mxu0 %v16097_v26  ;;  %v15781_v26 = vor.u32 %v17908_v44, %v15778_v59  ;;  %10527 = vmatpush.bf16.msrb.mxu2 %v16357_v33  ;;  %v7950_v2 = vpop.f32.mrf.mxu3  ;;  %v17843_v33 = vld [vmem:[#allocation11 + $0x27c] sm:$0xf]  ;;  %v15522_v44 = vld [vmem:[#allocation11 + $0x290] sm:$0xf0]  ;;  %v7962_v59 = vadd.f32 %v18871_v4, %v7949_v35  ;;  %v15501_v4 = vor.u32 %v17837_v32, %v15498_v25 }
 0x60d   :  { %v17999_v32 = vld [vmem:[#allocation11 + $0x75c] sm:$0xf]  ;;  %v16146_v25 = vld [vmem:[#allocation11 + $0x770] sm:$0xf0] }
 0x60e   :  { %10613 = vmatpush.bf16.msrb.mxu1 %v16289_v27  ;;  %v18889_v27 = vadd.f32 %v10373_v50, %v10361_v17  ;;  %10488 = vmatpush.bf16.msra.mxu3 %v15781_v26  ;;  %v15689_v17 = vor.u32 %v17888_v6, %v15688_v7  ;;  %v17789_v50 = vld [vmem:[#allocation11 + $0xcc] sm:$0xf]  ;;  %v7975_v23 = vadd.f32 %v18873_v43, %v7962_v59 }
 0x60f   :  { %10528 = vmatmul.bf16.vlgmr.msrb.gmra.mxu2 %v18878_v21  ;;  %v15477_v43 = vor.u32 %v17831_v31, %v15474_v46 }
 0x610   :  { %10601 = vmatpush.bf16.msrb.mxu0 %v16073_v37  ;;  %10572 = vmatpush.bf16.msra.mxu2 %v15761_v61  ;;  %v18008_v37 = vld [vmem:[#allocation11 + $0x79c] sm:$0xf0]  ;;  %v15306_v61 = vld [vmem:[#allocation11 + $0xe0] sm:$0xf0]  ;;  %v7988_v2 = vadd.f32 %v18876_v11, %v7975_v23  ;;  %v18086_v23 = vld [vmem:[#allocation11 + $0xa0c] sm:$0xf0] }
 0x611   :  { %v16169_v36 = vor.u32 %v18008_v37, %v16168_v52  ;;  %v15309_v26 = vor.u32 %v17789_v50, %v15306_v61  ;;  %v15592_v37 = vld [vmem:[#allocation11 + $0x308] sm:$0xf]  ;;  %v16505_v50 = vor.u32 %v18092_v45, %v16504_v5  ;;  %v18130_v61 = vld [vmem:[#allocation11 + $0xb74] sm:$0xf]  ;;  %v16594_v45 = vld [vmem:[#allocation11 + $0xaf8] sm:$0xf0] }
 0x612   :  { %10614 = vmatpush.bf16.msrb.mxu1 %v16265_v9  ;;  %v15712_v9 = vld [vmem:[#allocation11 + $0x3f8] sm:$0xf]  ;;  %v10375_v29 = vpop.f32.mrf.mxu2 }
 0x613   :  { %v15713_v12 = vor.u32 %v17894_v13, %v15712_v9  ;;  %v17864_v13 = vld [vmem:[#allocation11 + $0x31c] sm:$0xf0]  ;;  %v16714_v29 = vld [vmem:[#allocation11 + $0xbe8] sm:$0xf0] }
 0x614   :  { %10602 = vmatpush.bf16.msrb.mxu0 %v16049_v49  ;;  %10573 = vmatpush.bf16.msra.mxu2 %v15737_v42  ;;  %v17801_v49 = vld [vmem:[#allocation11 + $0x12c] sm:$0xf]  ;;  %v15617_v42 = vor.u32 %v17870_v19, %v15616_v28  ;;  %v15593_v11 = vor.u32 %v17864_v13, %v15592_v37  ;;  %v16338_v19 = vld [vmem:[#allocation11 + $0x8f0] sm:$0xf0]  ;;  %v16122_v37 = vld [vmem:[#allocation11 + $0x740] sm:$0xf0] }
 0x615   :  { %v16456_v13 = vld [vmem:[#allocation11 + $0x9c8] sm:$0xf] }
 0x616   :  { %10615 = vmatpush.bf16.msrb.mxu1 %v16241_v60  ;;  %v15354_v60 = vld [vmem:[#allocation11 + $0x140] sm:$0xf0] }
 0x617   :  { %v15357_v15 = vor.u32 %v17801_v49, %v15354_v60  ;;  %v17771_v49 = vld [vmem:[#allocation11 + $0x3c] sm:$0xf]  ;;  %v15234_v60 = vld [vmem:[#allocation11 + $0x50] sm:$0xf0] }
 0x618   :  { %10603 = vmatpush.bf16.msrb.mxu0 %v16025_v16  ;;  %10574 = vmatpush.bf16.msra.mxu2 %v15713_v12  ;;  %v15640_v16 = vld [vmem:[#allocation11 + $0x368] sm:$0xf]  ;;  %v16528_v12 = vld [vmem:[#allocation11 + $0xa58] sm:$0xf] }
 0x619   :  { %v15641_v39 = vor.u32 %v17876_v18, %v15640_v16  ;;  %v17813_v16 = vld [vmem:[#allocation11 + $0x18c] sm:$0xf] }
 0x61a   :  { %10616 = vmatpush.bf16.msrb.mxu1 %v16217_v1  ;;  %v15525_v1 = vor.u32 %v17843_v33, %v15522_v44  ;;  %v15237_v33 = vor.u32 %v17771_v49, %v15234_v60  ;;  %v17765_v44 = vld [vmem:[#allocation11 + $0xc] sm:$0xf]  ;;  %v18035_v49 = vld [vmem:[#allocation11 + $0x87c] sm:$0xf]  ;;  %v16290_v60 = vld [vmem:[#allocation11 + $0x890] sm:$0xf0] }
 0x61b   :  { %v16293_v5 = vor.u32 %v18035_v49, %v16290_v60 }
 0x61c   :  { %10604 = vmatpush.bf16.msrb.mxu0 %v16001_v51  ;;  %10575 = vmatpush.bf16.msra.mxu2 %v15689_v17  ;;  %v15282_v51 = vld [vmem:[#allocation11 + $0xb0] sm:$0xf0] }
 0x61d   :  { %v15285_v52 = vor.u32 %v17783_v14, %v15282_v51  ;;  %v16149_v51 = vor.u32 %v17999_v32, %v16146_v25  ;;  %v16050_v32 = vld [vmem:[#allocation11 + $0x6b0] sm:$0xf0] }
 0x61e   :  { %10617 = vmatpush.bf16.msrb.mxu1 %v16193_v47 }
 0x620   :  { %10605 = vmatpush.bf16.msrb.mxu0 %v15977_v34  ;;  %10576 = vmatpush.bf16.msra.mxu2 %v15665_v53  ;;  %v18898_v47 = vpop.f32.mrf.mxu0  ;;  %v15450_v34 = vld [vmem:[#allocation11 + $0x200] sm:$0xf0] }
 0x621   :  { %v15453_v6 = vor.u32 %v17825_v55, %v15450_v34 }
 0x622   :  { %10618 = vmatpush.bf16.msrb.mxu1 %v16169_v36  ;;  %v18142_v36 = vld [vmem:[#allocation11 + $0xbd4] sm:$0xf] }
 0x623   :  { %10606 = vmatmul.bf16.vlgmr.msrb.gmra.mxu0 %v18839_v0  ;;  %v16717_v35 = vor.u32 %v18142_v36, %v16714_v29  ;;  %v18118_v29 = vld [vmem:[#allocation11 + $0xb14] sm:$0xf] }
 0x624   :  { %10650 = vmatpush.bf16.msra.mxu0 %v15381_v41  ;;  %10577 = vmatpush.bf16.msra.mxu2 %v15641_v39  ;;  %v8000_v9 = vpop.f32.mrf.mxu3  ;;  %v18098_v41 = vld [vmem:[#allocation11 + $0xa6c] sm:$0xf0]  ;;  %v16666_v39 = vld [vmem:[#allocation11 + $0xb88] sm:$0xf0] }
 0x625   :  { %10619 = vmatmul.bf16.vlgmr.msrb.gmra.mxu1 %v18851_v57  ;;  %v8001_v8 = vadd.f32 %v8000_v9, %v7988_v2  ;;  %v16529_v17 = vor.u32 %v18098_v41, %v16528_v12  ;;  %v16669_v31 = vor.u32 %v18130_v61, %v16666_v39  ;;  %v17987_v12 = vld [vmem:[#allocation11 + $0x6fc] sm:$0xf]  ;;  %v16098_v41 = vld [vmem:[#allocation11 + $0x710] sm:$0xf0] }
 0x626   :  { %10663 = vmatpush.bf16.msra.mxu1 %v15573_v56  ;;  %v15261_v56 = vor.u32 %v17777_v62, %v15258_v58  ;;  %v18080_v62 = vld [vmem:[#allocation11 + $0x9dc] sm:$0xf0]  ;;  %v18041_v58 = vld [vmem:[#allocation11 + $0x8ac] sm:$0xf]  ;;  %v17975_v61 = vld [vmem:[#allocation11 + $0x69c] sm:$0xf] }
 0x627   :  { %v8011_v7 = vmax.f32 %v8001_v8, 0.0  ;;  %v16314_v8 = vld [vmem:[#allocation11 + $0x8c0] sm:$0xf0]  ;;  %v16457_v36 = vor.u32 %v18080_v62, %v16456_v13 }
 0x628   :  { %10651 = vmatpush.bf16.msra.mxu0 %v15357_v15  ;;  %10578 = vmatpush.bf16.msra.mxu2 %v15617_v42  ;;  %v10401_v63 = vpop.f32.mrf.mxu0  ;;  %v17819_v15 = vld [vmem:[#allocation11 + $0x1bc] sm:$0xf]  ;;  %v18905_v2 = vpop.f32.mrf.mxu1  ;;  %v18124_v42 = vld [vmem:[#allocation11 + $0xb44] sm:$0xf] }
 0x629   :  { %v18901_v38 = vpack.c.bf16 %v8011_v7, %v8011_v7  ;;  %v15429_v53 = vor.u32 %v17819_v15, %v15426_v54  ;;  %v16317_v7 = vor.u32 %v18041_v58, %v16314_v8  ;;  %v16101_v63 = vor.u32 %v17987_v12, %v16098_v41  ;;  %v18112_v54 = vld [vmem:[#allocation11 + $0xae4] sm:$0xf]  ;;  %v16360_v58 = vld [vmem:[#allocation11 + $0x908] sm:$0xf]  ;;  %v18056_v8 = vld [vmem:[#allocation11 + $0x91c] sm:$0xf0] }
 0x62a   :  { %10664 = vmatpush.bf16.msra.mxu1 %v15549_v22  ;;  %v18136_v22 = vld [vmem:[#allocation11 + $0xba4] sm:$0xf]  ;;  %v17954_v12 = vld [vmem:[#allocation11 + $0x5ec] sm:$0xf0] }
 0x62b   :  { %10437 = vmatmul.bf16.vlgmr.msrb.gmra.mxu3 %v18901_v38  ;;  %v16693_v18 = vor.u32 %v18136_v22, %v16690_v48  ;;  %v17981_v22 = vld [vmem:[#allocation11 + $0x6cc] sm:$0xf]  ;;  %v16074_v48 = vld [vmem:[#allocation11 + $0x6e0] sm:$0xf0] }
 0x62c   :  { %10652 = vmatpush.bf16.msra.mxu0 %v15333_v20  ;;  %10579 = vmatpush.bf16.msra.mxu2 %v15593_v11  ;;  %v8002_v59 = vpop.f32.mrf.mxu3  ;;  %v15210_v20 = vld [vmem:[#allocation11 + $0x20] sm:$0xf0]  ;;  %v16618_v11 = vld [vmem:[#allocation11 + $0xb28] sm:$0xf0] }
 0x62d   :  { %10533 = vmatpush.bf16.msrb.mxu3 %v16717_v35  ;;  %v15213_v28 = vor.u32 %v17765_v44, %v15210_v20  ;;  %v16621_v35 = vor.u32 %v18118_v29, %v16618_v11  ;;  %v18068_v44 = vld [vmem:[#allocation11 + $0x97c] sm:$0xf0]  ;;  %v18029_v59 = vld [vmem:[#allocation11 + $0x84c] sm:$0xf]  ;;  %v8407_v20 = vperm.slane %v18883_v30, 1 }
 0x62e   :  { %10665 = vmatpush.bf16.msra.mxu1 %v15525_v1  ;;  %v15402_v1 = vld [vmem:[#allocation11 + $0x1a0] sm:$0xf0]  ;;  %v15952_v29 = vld [vmem:[#allocation11 + $0x5d8] sm:$0xf]  ;;  %v17903_v11 = vld [vmem:[#allocation11 + $0x45c] sm:$0xf] }
 0x62f   :  { %10580 = vmatmul.bf16.vlgmr.msra.gmra.mxu2 %v18822_v3  ;;  %v15405_v14 = vor.u32 %v17813_v16, %v15402_v1  ;;  %v16077_v16 = vor.u32 %v17981_v22, %v16074_v48  ;;  %v16597_v1 = vor.u32 %v18112_v54, %v16594_v45  ;;  %v15928_v48 = vld [vmem:[#allocation11 + $0x5a8] sm:$0xf]  ;;  %v17897_v45 = vld [vmem:[#allocation11 + $0x42c] sm:$0xf] }
 0x630   :  { %10653 = vmatpush.bf16.msra.mxu0 %v15309_v26  ;;  %10624 = vmatpush.bf16.msrb.mxu2 %v16529_v17  ;;  %v16480_v26 = vld [vmem:[#allocation11 + $0x9f8] sm:$0xf]  ;;  %v10414_v15 = vpop.f32.mrf.mxu1 }
 0x631   :  { %10534 = vmatpush.bf16.msrb.mxu3 %v16693_v18  ;;  %v16481_v46 = vor.u32 %v18086_v23, %v16480_v26  ;;  %v16570_v26 = vld [vmem:[#allocation11 + $0xac8] sm:$0xf0]  ;;  %v16384_v23 = vld [vmem:[#allocation11 + $0x938] sm:$0xf]  ;;  %v18011_v15 = vld [vmem:[#allocation11 + $0x7bc] sm:$0xf] }
 0x632   :  { %10666 = vmatpush.bf16.msra.mxu1 %v15501_v4  ;;  %v18047_v4 = vld [vmem:[#allocation11 + $0x8dc] sm:$0xf] }
 0x633   :  { %v16341_v9 = vor.u32 %v18047_v4, %v16338_v19  ;;  %v18023_v4 = vld [vmem:[#allocation11 + $0x81c] sm:$0xf]  ;;  %v16242_v19 = vld [vmem:[#allocation11 + $0x830] sm:$0xf0] }
 0x634   :  { %10654 = vmatpush.bf16.msra.mxu0 %v15285_v52  ;;  %10625 = vmatpush.bf16.msrb.mxu2 %v16505_v50  ;;  %v17993_v52 = vld [vmem:[#allocation11 + $0x72c] sm:$0xf]  ;;  %v18106_v50 = vld [vmem:[#allocation11 + $0xab4] sm:$0xf]  ;;  %v16245_v13 = vor.u32 %v18023_v4, %v16242_v19  ;;  %v15576_v19 = vld [vmem:[#allocation11 + $0x2e0] sm:$0xf] }
 0x635   :  { %v16125_v55 = vor.u32 %v17993_v52, %v16122_v37  ;;  %10535 = vmatpush.bf16.msrb.mxu3 %v16669_v31  ;;  %v16546_v52 = vld [vmem:[#allocation11 + $0xa98] sm:$0xf0]  ;;  %v17969_v37 = vld [vmem:[#allocation11 + $0x66c] sm:$0xf] }
 0x636   :  { %10667 = vmatpush.bf16.msra.mxu1 %v15477_v43  ;;  %v16642_v43 = vld [vmem:[#allocation11 + $0xb58] sm:$0xf0] }
 0x637   :  { %v16645_v34 = vor.u32 %v18124_v42, %v16642_v43 }
 0x638   :  { %10655 = vmatpush.bf16.msra.mxu0 %v15261_v56  ;;  %10626 = vmatpush.bf16.msrb.mxu2 %v16481_v46  ;;  %v16432_v56 = vld [vmem:[#allocation11 + $0x998] sm:$0xf]  ;;  %v16573_v46 = vor.u32 %v18106_v50, %v16570_v26  ;;  %v16170_v50 = vld [vmem:[#allocation11 + $0x7a0] sm:$0xf0]  ;;  %v15714_v26 = vld [vmem:[#allocation11 + $0x410] sm:$0xf0] }
 0x639   :  { %10536 = vmatpush.bf16.msrb.mxu3 %v16645_v34 }
 0x63a   :  { %10668 = vmatpush.bf16.msra.mxu1 %v15453_v6  ;;  %v18074_v6 = vld [vmem:[#allocation11 + $0x9ac] sm:$0xf0] }
 0x63b   :  { %v16433_v17 = vor.u32 %v18074_v6, %v16432_v56  ;;  %10489 = vmatmul.bf16.vlgmr.msra.gmra.mxu3 %v18855_v40  ;;  %v15762_v56 = vld [vmem:[#allocation11 + $0x470] sm:$0xf0] }
 0x63c   :  { %10656 = vmatpush.bf16.msra.mxu0 %v15237_v33  ;;  %10627 = vmatpush.bf16.msrb.mxu2 %v16457_v36  ;;  %v16408_v33 = vld [vmem:[#allocation11 + $0x968] sm:$0xf]  ;;  %v16218_v36 = vld [vmem:[#allocation11 + $0x800] sm:$0xf0]  ;;  %v15765_v22 = vor.u32 %v17903_v11, %v15762_v56  ;;  %v15666_v56 = vld [vmem:[#allocation11 + $0x3b0] sm:$0xf0] }
 0x63d   :  { %10537 = vmatpush.bf16.msrb.mxu3 %v16621_v35  ;;  %v16409_v18 = vor.u32 %v18068_v44, %v16408_v33  ;;  %v17963_v35 = vld [vmem:[#allocation11 + $0x63c] sm:$0xf]  ;;  %v15738_v33 = vld [vmem:[#allocation11 + $0x440] sm:$0xf0] }
 0x63e   :  { %10669 = vmatpush.bf16.msra.mxu1 %v15429_v53  ;;  %v16266_v53 = vld [vmem:[#allocation11 + $0x860] sm:$0xf0] }
 0x63f   :  { %v16269_v39 = vor.u32 %v18029_v59, %v16266_v53  ;;  %v17957_v53 = vld [vmem:[#allocation11 + $0x60c] sm:$0xf] }
 0x640   :  { %10657 = vmatpush.bf16.msra.mxu0 %v15213_v28  ;;  %10628 = vmatpush.bf16.msrb.mxu2 %v16433_v17  ;;  %v10451_v25 = vpop.f32.mrf.mxu0  ;;  %v18062_v28 = vld [vmem:[#allocation11 + $0x94c] sm:$0xf0]  ;;  %v16002_v17 = vld [vmem:[#allocation11 + $0x650] sm:$0xf0] }
 0x641   :  { %v10452_v30 = vadd.f32 %v10451_v25, %v8407_v20  ;;  %10538 = vmatpush.bf16.msrb.mxu3 %v16597_v1  ;;  %v16385_v42 = vor.u32 %v18062_v28, %v16384_v23  ;;  %v16005_v59 = vor.u32 %v17963_v35, %v16002_v17  ;;  %v17942_v25 = vld [vmem:[#allocation11 + $0x58c] sm:$0xf0]  ;;  %v15384_v23 = vld [vmem:[#allocation11 + $0x160] sm:$0xf]  ;;  %v17811_v28 = vld [vmem:[#allocation11 + $0x174] sm:$0xf0] }
 0x642   :  { %10670 = vmatpush.bf16.msra.mxu1 %v15405_v14  ;;  %v16053_v14 = vor.u32 %v17975_v61, %v16050_v32  ;;  %v10464_v62 = vpop.f32.mrf.mxu1  ;;  %v15741_v61 = vor.u32 %v17897_v45, %v15738_v33  ;;  %v15904_v32 = vld [vmem:[#allocation11 + $0x578] sm:$0xf]  ;;  %v15312_v45 = vld [vmem:[#allocation11 + $0xd0] sm:$0xf]  ;;  %v17793_v33 = vld [vmem:[#allocation11 + $0xe4] sm:$0xf0] }
 0x643   :  { %10658 = vmatmul.bf16.vlgmr.msra.gmra.mxu0 %v18818_v24  ;;  %v18912_v34 = vadd.f32 %v10464_v62, %v10452_v30  ;;  %v15905_v30 = vor.u32 %v17942_v25, %v15904_v32  ;;  %v17805_v62 = vld [vmem:[#allocation11 + $0x144] sm:$0xf0]  ;;  %v15618_v25 = vld [vmem:[#allocation11 + $0x350] sm:$0xf0] }
 0x644   :  { %10702 = vmatpush.bf16.msrb.mxu0 %v16149_v51  ;;  %v18100_v51 = vld [vmem:[#allocation11 + $0xa84] sm:$0xf]  ;;  %10629 = vmatpush.bf16.msrb.mxu2 %v16409_v18  ;;  %v10386_v31 = vpop.f32.mrf.mxu3 }
 0x645   :  { %10671 = vmatmul.bf16.vlgmr.msra.gmra.mxu1 %v18820_v10  ;;  %v10387_v43 = vadd.f32 %v10386_v31, %v18889_v27  ;;  %10539 = vmatpush.bf16.msrb.mxu3 %v16573_v46  ;;  %v16549_v6 = vor.u32 %v18100_v51, %v16546_v52  ;;  %v16361_v27 = vor.u32 %v18056_v8, %v16360_v58  ;;  %v15978_v18 = vld [vmem:[#allocation11 + $0x620] sm:$0xf0]  ;;  %v17936_v52 = vld [vmem:[#allocation11 + $0x55c] sm:$0xf0]  ;;  %v15552_v58 = vld [vmem:[#allocation11 + $0x2b0] sm:$0xf] }
 0x646   :  { %10715 = vmatpush.bf16.msrb.mxu1 %v16341_v9  ;;  %v16026_v9 = vld [vmem:[#allocation11 + $0x680] sm:$0xf0]  ;;  %v15981_v4 = vor.u32 %v17957_v53, %v15978_v18  ;;  %v15385_v46 = vor.u32 %v17811_v28, %v15384_v23  ;;  %v17853_v8 = vld [vmem:[#allocation11 + $0x2c4] sm:$0xf0]  ;;  %v15808_v18 = vld [vmem:[#allocation11 + $0x4b8] sm:$0xf] }
 0x647   :  { %v10400_v41 = vadd.f32 %v18898_v47, %v10387_v43  ;;  %v16194_v47 = vld [vmem:[#allocation11 + $0x7d0] sm:$0xf0]  ;;  %v15690_v43 = vld [vmem:[#allocation11 + $0x3e0] sm:$0xf0]  ;;  %v15553_v11 = vor.u32 %v17853_v8, %v15552_v58  ;;  %v15480_v23 = vld [vmem:[#allocation11 + $0x220] sm:$0xf] }
 0x648   :  { %10703 = vmatpush.bf16.msrb.mxu0 %v16125_v55  ;;  %v18017_v55 = vld [vmem:[#allocation11 + $0x7ec] sm:$0xf]  ;;  %10630 = vmatpush.bf16.msrb.mxu2 %v16385_v42  ;;  %v10453_v49 = vpop.f32.mrf.mxu0  ;;  %v16197_v20 = vor.u32 %v18011_v15, %v16194_v47  ;;  %v15880_v42 = vld [vmem:[#allocation11 + $0x548] sm:$0xf]  ;;  %v17835_v28 = vld [vmem:[#allocation11 + $0x234] sm:$0xf0] }
 0x649   :  { %v16221_v60 = vor.u32 %v18017_v55, %v16218_v36  ;;  %v18916_v54 = vadd.f32 %v18905_v2, %v10400_v41  ;;  %10540 = vmatpush.bf16.msrb.mxu3 %v16549_v6  ;;  %v18005_v2 = vld [vmem:[#allocation11 + $0x78c] sm:$0xf]  ;;  %v15881_v55 = vor.u32 %v17936_v52, %v15880_v42  ;;  %v17930_v41 = vld [vmem:[#allocation11 + $0x52c] sm:$0xf0]  ;;  %v15336_v6 = vld [vmem:[#allocation11 + $0x100] sm:$0xf]  ;;  %v15481_v42 = vor.u32 %v17835_v28, %v15480_v23 }
 0x64a   :  { %10716 = vmatpush.bf16.msrb.mxu1 %v16317_v7  ;;  %v16029_v7 = vor.u32 %v17969_v37, %v16026_v9  ;;  %v16173_v51 = vor.u32 %v18005_v2, %v16170_v50  ;;  %v17885_v37 = vld [vmem:[#allocation11 + $0x3cc] sm:$0xf]  ;;  %v15528_v49 = vld [vmem:[#allocation11 + $0x280] sm:$0xf]  ;;  %v15832_v15 = vld [vmem:[#allocation11 + $0x4e8] sm:$0xf] }
 0x64b   :  { %v15693_v36 = vor.u32 %v17885_v37, %v15690_v43  ;;  %v17873_v47 = vld [vmem:[#allocation11 + $0x36c] sm:$0xf]  ;;  %v17918_v2 = vld [vmem:[#allocation11 + $0x4cc] sm:$0xf0]  ;;  %v17867_v50 = vld [vmem:[#allocation11 + $0x33c] sm:$0xf] }
 0x64c   :  { %10704 = vmatpush.bf16.msrb.mxu0 %v16101_v63  ;;  %v15953_v63 = vor.u32 %v17954_v12, %v15952_v29  ;;  %10631 = vmatpush.bf16.msrb.mxu2 %v16361_v27  ;;  %v10388_v44 = vpop.f32.mrf.mxu3  ;;  %v15856_v12 = vld [vmem:[#allocation11 + $0x518] sm:$0xf]  ;;  %v15264_v52 = vld [vmem:[#allocation11 + $0x70] sm:$0xf]  ;;  %v17781_v37 = vld [vmem:[#allocation11 + $0x84] sm:$0xf0] }
 0x64d   :  { %10541 = vmatmul.bf16.vlgmr.msrb.gmra.mxu3 %v18901_v38  ;;  %v17799_v27 = vld [vmem:[#allocation11 + $0x114] sm:$0xf0]  ;;  %v15504_v44 = vld [vmem:[#allocation11 + $0x250] sm:$0xf]  ;;  %v17829_v43 = vld [vmem:[#allocation11 + $0x204] sm:$0xf0] }
 0x64e   :  { %10717 = vmatpush.bf16.msrb.mxu1 %v16293_v5  ;;  %v17948_v5 = vld [vmem:[#allocation11 + $0x5bc] sm:$0xf0]  ;;  %10585 = vmatpush.bf16.msra.mxu3 %v15953_v63  ;;  %v15857_v63 = vor.u32 %v17930_v41, %v15856_v12  ;;  %v15337_v17 = vor.u32 %v17799_v27, %v15336_v6  ;;  %v18095_v8 = vld [vmem:[#allocation11 + $0xa5c] sm:$0xf]  ;;  %v15265_v12 = vor.u32 %v17781_v37, %v15264_v52  ;;  %v17775_v6 = vld [vmem:[#allocation11 + $0x54] sm:$0xf0] }
 0x64f   :  { %v15929_v1 = vor.u32 %v17948_v5, %v15928_v48  ;;  %10632 = vmatmul.bf16.vlgmr.msrb.gmra.mxu2 %v18878_v21  ;;  %v15642_v5 = vld [vmem:[#allocation11 + $0x380] sm:$0xf0]  ;;  %v15432_v27 = vld [vmem:[#allocation11 + $0x1c0] sm:$0xf]  ;;  %v16320_v52 = vld [vmem:[#allocation11 + $0x8b0] sm:$0xf] }
 0x650   :  { %10705 = vmatpush.bf16.msrb.mxu0 %v16077_v16  ;;  %v10466_v16 = vpop.f32.mrf.mxu1  ;;  %10676 = vmatpush.bf16.msra.mxu2 %v15765_v22  ;;  %v17924_v22 = vld [vmem:[#allocation11 + $0x4fc] sm:$0xf0]  ;;  %v18045_v37 = vld [vmem:[#allocation11 + $0x8c4] sm:$0xf0] }
 0x651   :  { %v15833_v53 = vor.u32 %v17924_v22, %v15832_v15  ;;  %v15645_v16 = vor.u32 %v17873_v47, %v15642_v5  ;;  %v16506_v15 = vld [vmem:[#allocation11 + $0xa40] sm:$0xf0]  ;;  %v15216_v47 = vld [vmem:[#allocation11 + $0x10] sm:$0xf] }
 0x652   :  { %10718 = vmatpush.bf16.msrb.mxu1 %v16269_v39  ;;  %v17891_v39 = vld [vmem:[#allocation11 + $0x3fc] sm:$0xf]  ;;  %10586 = vmatpush.bf16.msra.mxu3 %v15929_v1  ;;  %v15313_v1 = vor.u32 %v17793_v33, %v15312_v45  ;;  %v17769_v45 = vld [vmem:[#allocation11 + $0x24] sm:$0xf0]  ;;  %v15408_v33 = vld [vmem:[#allocation11 + $0x190] sm:$0xf] }
 0x653   :  { %v15717_v31 = vor.u32 %v17891_v39, %v15714_v26  ;;  %v15288_v39 = vld [vmem:[#allocation11 + $0xa0] sm:$0xf]  ;;  %v17787_v26 = vld [vmem:[#allocation11 + $0xb4] sm:$0xf0] }
 0x654   :  { %10706 = vmatpush.bf16.msrb.mxu0 %v16053_v14  ;;  %v17859_v14 = vld [vmem:[#allocation11 + $0x2f4] sm:$0xf0]  ;;  %10677 = vmatpush.bf16.msra.mxu2 %v15741_v61 }
 0x655   :  { %v15577_v9 = vor.u32 %v17859_v14, %v15576_v19  ;;  %v15784_v19 = vld [vmem:[#allocation11 + $0x488] sm:$0xf]  ;;  %v15621_v14 = vor.u32 %v17867_v50, %v15618_v25  ;;  %v18003_v50 = vld [vmem:[#allocation11 + $0x774] sm:$0xf0]  ;;  %v16344_v25 = vld [vmem:[#allocation11 + $0x8e0] sm:$0xf] }
 0x656   :  { %10719 = vmatpush.bf16.msrb.mxu1 %v16245_v13  ;;  %v15360_v13 = vld [vmem:[#allocation11 + $0x130] sm:$0xf]  ;;  %10587 = vmatpush.bf16.msra.mxu3 %v15905_v30  ;;  %v17912_v30 = vld [vmem:[#allocation11 + $0x49c] sm:$0xf0] }
 0x657   :  { %v15361_v29 = vor.u32 %v17805_v62, %v15360_v13  ;;  %v16720_v13 = vld [vmem:[#allocation11 + $0xbd8] sm:$0xf]  ;;  %v18146_v62 = vld [vmem:[#allocation11 + $0xbec] sm:$0xf0]  ;;  %v15785_v58 = vor.u32 %v17912_v30, %v15784_v19  ;;  %v16648_v19 = vld [vmem:[#allocation11 + $0xb48] sm:$0xf] }
 0x658   :  { %10707 = vmatpush.bf16.msrb.mxu0 %v16029_v7  ;;  %10678 = vmatpush.bf16.msra.mxu2 %v15717_v31  ;;  %v17879_v7 = vld [vmem:[#allocation11 + $0x39c] sm:$0xf]  ;;  %v17861_v31 = vld [vmem:[#allocation11 + $0x30c] sm:$0xf] }
 0x659   :  { %v15669_v35 = vor.u32 %v17879_v7, %v15666_v56  ;;  %v15240_v56 = vld [vmem:[#allocation11 + $0x40] sm:$0xf] }
 0x65a   :  { %10720 = vmatpush.bf16.msrb.mxu1 %v16221_v60  ;;  %v17847_v60 = vld [vmem:[#allocation11 + $0x294] sm:$0xf0]  ;;  %10588 = vmatpush.bf16.msra.mxu3 %v15881_v55  ;;  %v16530_v55 = vld [vmem:[#allocation11 + $0xa70] sm:$0xf0]  ;;  %v15241_v22 = vor.u32 %v17775_v6, %v15240_v56 }
 0x65b   :  { %v15529_v48 = vor.u32 %v17847_v60, %v15528_v49  ;;  %v16533_v49 = vor.u32 %v18095_v8, %v16530_v55  ;;  %v17823_v60 = vld [vmem:[#allocation11 + $0x1d4] sm:$0xf0]  ;;  %v18071_v8 = vld [vmem:[#allocation11 + $0x99c] sm:$0xf]  ;;  %v16321_v55 = vor.u32 %v18045_v37, %v16320_v52  ;;  %v16362_v52 = vld [vmem:[#allocation11 + $0x920] sm:$0xf0] }
 0x65c   :  { %10708 = vmatpush.bf16.msrb.mxu0 %v16005_v59  ;;  %10679 = vmatpush.bf16.msra.mxu2 %v15693_v36  ;;  %v17841_v59 = vld [vmem:[#allocation11 + $0x264] sm:$0xf0] }
 0x65d   :  { %v15505_v32 = vor.u32 %v17841_v59, %v15504_v44  ;;  %v17817_v44 = vld [vmem:[#allocation11 + $0x1a4] sm:$0xf0] }
 0x65e   :  { %10721 = vmatpush.bf16.msrb.mxu1 %v16197_v20  ;;  %10589 = vmatpush.bf16.msra.mxu3 %v15857_v63  ;;  %v16696_v63 = vld [vmem:[#allocation11 + $0xba8] sm:$0xf] }
 0x660   :  { %10709 = vmatpush.bf16.msrb.mxu0 %v15981_v4  ;;  %10680 = vmatpush.bf16.msra.mxu2 %v15669_v35  ;;  %v18922_v20 = vpop.f32.mrf.mxu0  ;;  %v15809_v4 = vor.u32 %v17918_v2, %v15808_v18  ;;  %v18140_v35 = vld [vmem:[#allocation11 + $0xbbc] sm:$0xf0]  ;;  %v16482_v18 = vld [vmem:[#allocation11 + $0xa10] sm:$0xf0] }
 0x661   :  { %v16697_v5 = vor.u32 %v18140_v35, %v16696_v63  ;;  %v16152_v2 = vld [vmem:[#allocation11 + $0x760] sm:$0xf]  ;;  %v16600_v35 = vld [vmem:[#allocation11 + $0xae8] sm:$0xf] }
 0x662   :  { %10722 = vmatpush.bf16.msrb.mxu1 %v16173_v51  ;;  %v18924_v61 = vpop.f32.mrf.mxu1  ;;  %10590 = vmatpush.bf16.msra.mxu3 %v15833_v53  ;;  %v15289_v51 = vor.u32 %v17787_v26, %v15288_v39  ;;  %v16672_v53 = vld [vmem:[#allocation11 + $0xb78] sm:$0xf]  ;;  %v15409_v26 = vor.u32 %v17817_v44, %v15408_v33 }
 0x663   :  { %10710 = vmatmul.bf16.vlgmr.msrb.gmra.mxu0 %v18839_v0  ;;  %v18051_v39 = vld [vmem:[#allocation11 + $0x8f4] sm:$0xf0] }
 0x664   :  { %10754 = vmatpush.bf16.msra.mxu0 %v15385_v46  ;;  %10681 = vmatpush.bf16.msra.mxu2 %v15645_v16  ;;  %v15594_v46 = vld [vmem:[#allocation11 + $0x320] sm:$0xf0]  ;;  %v18134_v16 = vld [vmem:[#allocation11 + $0xb8c] sm:$0xf0]  ;;  %v16345_v30 = vor.u32 %v18051_v39, %v16344_v25  ;;  %v16386_v25 = vld [vmem:[#allocation11 + $0x950] sm:$0xf0] }
 0x665   :  { %10723 = vmatmul.bf16.vlgmr.msrb.gmra.mxu1 %v18851_v57  ;;  %v16673_v23 = vor.u32 %v18134_v16, %v16672_v53  ;;  %v16056_v39 = vld [vmem:[#allocation11 + $0x6a0] sm:$0xf] }
 0x666   :  { %10767 = vmatpush.bf16.msra.mxu1 %v15577_v9  ;;  %v15456_v9 = vld [vmem:[#allocation11 + $0x1f0] sm:$0xf]  ;;  %10591 = vmatpush.bf16.msra.mxu3 %v15809_v4  ;;  %v16153_v4 = vor.u32 %v18003_v50, %v16152_v2  ;;  %v18059_v50 = vld [vmem:[#allocation11 + $0x93c] sm:$0xf] }
 0x667   :  { %v15457_v7 = vor.u32 %v17829_v43, %v15456_v9  ;;  %v18110_v2 = vld [vmem:[#allocation11 + $0xacc] sm:$0xf0] }
 0x668   :  { %10755 = vmatpush.bf16.msra.mxu0 %v15361_v29  ;;  %10682 = vmatpush.bf16.msra.mxu2 %v15621_v14  ;;  %v10505_v36 = vpop.f32.mrf.mxu0  ;;  %v15597_v29 = vor.u32 %v17861_v31, %v15594_v46  ;;  %v18128_v14 = vld [vmem:[#allocation11 + $0xb5c] sm:$0xf0]  ;;  %v16458_v31 = vld [vmem:[#allocation11 + $0x9e0] sm:$0xf0]  ;;  %v16128_v46 = vld [vmem:[#allocation11 + $0x730] sm:$0xf] }
 0x669   :  { %v16649_v9 = vor.u32 %v18128_v14, %v16648_v19  ;;  %v16434_v36 = vld [vmem:[#allocation11 + $0x9b0] sm:$0xf0]  ;;  %v18027_v19 = vld [vmem:[#allocation11 + $0x834] sm:$0xf0] }
 0x66a   :  { %10768 = vmatpush.bf16.msra.mxu1 %v15553_v11  ;;  %v10518_v41 = vpop.f32.mrf.mxu1  ;;  %v16721_v11 = vor.u32 %v18146_v62, %v16720_v13  ;;  %10592 = vmatpush.bf16.msra.mxu3 %v15785_v58  ;;  %v16624_v62 = vld [vmem:[#allocation11 + $0xb18] sm:$0xf]  ;;  %v18122_v58 = vld [vmem:[#allocation11 + $0xb2c] sm:$0xf0] }
 0x66b   :  { %v10425_v41 = vpop.f32.mrf.mxu2  ;;  %v16625_v6 = vor.u32 %v18122_v58, %v16624_v62  ;;  %v18021_v62 = vld [vmem:[#allocation11 + $0x804] sm:$0xf0]  ;;  %v17951_v58 = vld [vmem:[#allocation11 + $0x5dc] sm:$0xf] }
 0x66c   :  { %10756 = vmatpush.bf16.msra.mxu0 %v15337_v17  ;;  %v18089_v17 = vld [vmem:[#allocation11 + $0xa2c] sm:$0xf]  ;;  %10683 = vmatpush.bf16.msra.mxu2 %v15597_v29  ;;  %v16104_v29 = vld [vmem:[#allocation11 + $0x700] sm:$0xf]  ;;  %v18931_v56 = vadd.f32 %v10425_v41, %v18916_v54  ;;  %v18033_v54 = vld [vmem:[#allocation11 + $0x864] sm:$0xf0] }
 0x66d   :  { %10593 = vmatmul.bf16.vlgmr.msra.gmra.mxu3 %v18855_v40  ;;  %v16509_v59 = vor.u32 %v18089_v17, %v16506_v15  ;;  %v18116_v17 = vld [vmem:[#allocation11 + $0xafc] sm:$0xf0]  ;;  %v18065_v15 = vld [vmem:[#allocation11 + $0x96c] sm:$0xf] }
 0x66e   :  { %10769 = vmatpush.bf16.msra.mxu1 %v15529_v48  ;;  %10637 = vmatpush.bf16.msrb.mxu3 %v16721_v11  ;;  %v15433_v48 = vor.u32 %v17823_v60, %v15432_v27  ;;  %v18039_v11 = vld [vmem:[#allocation11 + $0x894] sm:$0xf0]  ;;  %v18933_v27 = vld [vmem:[#allocation13] sm:$0x3f]  ;;  %v16437_v60 = vor.u32 %v18071_v8, %v16434_v36  ;;  %v16601_v44 = vor.u32 %v18116_v17, %v16600_v35  ;;  %v15954_v8 = vld [vmem:[#allocation11 + $0x5f0] sm:$0xf0] }
 0x66f   :  { %10684 = vmatmul.bf16.vlgmr.msra.gmra.mxu2 %v18822_v3  ;;  %v16200_v35 = vld [vmem:[#allocation11 + $0x7c0] sm:$0xf] }
 0x670   :  { %10757 = vmatpush.bf16.msra.mxu0 %v15313_v1  ;;  %10728 = vmatpush.bf16.msrb.mxu2 %v16533_v49  ;;  %v18083_v1 = vld [vmem:[#allocation11 + $0x9fc] sm:$0xf]  ;;  %v8408_v49 = vperm.slane %v18933_v27, 2 }
 0x671   :  { %v16485_v28 = vor.u32 %v18083_v1, %v16482_v18  ;;  %v16576_v18 = vld [vmem:[#allocation11 + $0xab8] sm:$0xf] }
 0x672   :  { %10770 = vmatpush.bf16.msra.mxu1 %v15505_v32  ;;  %v15217_v32 = vor.u32 %v17769_v45, %v15216_v47  ;;  %10638 = vmatpush.bf16.msrb.mxu3 %v16697_v5  ;;  %v16410_v47 = vld [vmem:[#allocation11 + $0x980] sm:$0xf0]  ;;  %v17985_v5 = vld [vmem:[#allocation11 + $0x6e4] sm:$0xf0]  ;;  %v16272_v45 = vld [vmem:[#allocation11 + $0x850] sm:$0xf]  ;;  %v16577_v14 = vor.u32 %v18110_v2, %v16576_v18 }
 0x673   :  { %v16413_v16 = vor.u32 %v18065_v15, %v16410_v47  ;;  %v17945_v47 = vld [vmem:[#allocation11 + $0x5ac] sm:$0xf]  ;;  %v18009_v18 = vld [vmem:[#allocation11 + $0x7a4] sm:$0xf0] }
 0x674   :  { %10758 = vmatpush.bf16.msra.mxu0 %v15289_v51  ;;  %10729 = vmatpush.bf16.msrb.mxu2 %v16509_v59  ;;  %v18077_v51 = vld [vmem:[#allocation11 + $0x9cc] sm:$0xf] }
 0x675   :  { %v16461_v43 = vor.u32 %v18077_v51, %v16458_v31  ;;  %v16552_v51 = vld [vmem:[#allocation11 + $0xa88] sm:$0xf] }
 0x676   :  { %10771 = vmatpush.bf16.msra.mxu1 %v15481_v42  ;;  %v17997_v42 = vld [vmem:[#allocation11 + $0x744] sm:$0xf0]  ;;  %10639 = vmatpush.bf16.msrb.mxu3 %v16673_v23 }
 0x677   :  { %v16129_v13 = vor.u32 %v17997_v42, %v16128_v46  ;;  %v18104_v46 = vld [vmem:[#allocation11 + $0xa9c] sm:$0xf0]  ;;  %v18053_v42 = vld [vmem:[#allocation11 + $0x90c] sm:$0xf] }
 0x678   :  { %10759 = vmatpush.bf16.msra.mxu0 %v15265_v12  ;;  %10730 = vmatpush.bf16.msrb.mxu2 %v16485_v28  ;;  %v17991_v12 = vld [vmem:[#allocation11 + $0x714] sm:$0xf0]  ;;  %v10427_v28 = vpop.f32.mrf.mxu2  ;;  %v16553_v36 = vor.u32 %v18104_v46, %v16552_v51 }
 0x679   :  { %v16105_v63 = vor.u32 %v17991_v12, %v16104_v29  ;;  %v15768_v29 = vld [vmem:[#allocation11 + $0x460] sm:$0xf]  ;;  %v17907_v12 = vld [vmem:[#allocation11 + $0x474] sm:$0xf0] }
 0x67a   :  { %10772 = vmatpush.bf16.msra.mxu1 %v15457_v7  ;;  %v16296_v7 = vld [vmem:[#allocation11 + $0x880] sm:$0xf]  ;;  %10640 = vmatpush.bf16.msrb.mxu3 %v16649_v9  ;;  %v16032_v9 = vld [vmem:[#allocation11 + $0x670] sm:$0xf]  ;;  %v15769_v17 = vor.u32 %v17907_v12, %v15768_v29  ;;  %v17927_v12 = vld [vmem:[#allocation11 + $0x51c] sm:$0xf] }
 0x67c   :  { %10760 = vmatpush.bf16.msra.mxu0 %v15241_v22  ;;  %10731 = vmatpush.bf16.msrb.mxu2 %v16461_v43  ;;  %v16297_v22 = vor.u32 %v18039_v11, %v16296_v7  ;;  %v17973_v43 = vld [vmem:[#allocation11 + $0x684] sm:$0xf0]  ;;  %v16365_v7 = vor.u32 %v18053_v42, %v16362_v52  ;;  %v17933_v42 = vld [vmem:[#allocation11 + $0x54c] sm:$0xf]  ;;  %v15882_v52 = vld [vmem:[#allocation11 + $0x560] sm:$0xf0] }
 0x67d   :  { %v16033_v11 = vor.u32 %v17973_v43, %v16032_v9  ;;  %v17889_v43 = vld [vmem:[#allocation11 + $0x3e4] sm:$0xf0] }
 0x67e   :  { %10773 = vmatpush.bf16.msra.mxu1 %v15433_v48  ;;  %v16080_v48 = vld [vmem:[#allocation11 + $0x6d0] sm:$0xf]  ;;  %10641 = vmatpush.bf16.msrb.mxu3 %v16625_v6 }
 0x67f   :  { %v16081_v1 = vor.u32 %v17985_v5, %v16080_v48  ;;  %v15930_v48 = vld [vmem:[#allocation11 + $0x5c0] sm:$0xf0] }
 0x680   :  { %10761 = vmatpush.bf16.msra.mxu0 %v15217_v32  ;;  %v10555_v33 = vpop.f32.mrf.mxu0  ;;  %10732 = vmatpush.bf16.msrb.mxu2 %v16437_v60  ;;  %v16273_v32 = vor.u32 %v18033_v54, %v16272_v45  ;;  %v16008_v60 = vld [vmem:[#allocation11 + $0x640] sm:$0xf]  ;;  %v10477_v15 = vpop.f32.mrf.mxu2  ;;  %v15744_v45 = vld [vmem:[#allocation11 + $0x430] sm:$0xf]  ;;  %v17901_v54 = vld [vmem:[#allocation11 + $0x444] sm:$0xf0] }
 0x681   :  { %v10556_v59 = vadd.f32 %v10555_v33, %v8408_v49  ;;  %v15957_v49 = vor.u32 %v17951_v58, %v15954_v8  ;;  %v18939_v5 = vadd.f32 %v10477_v15, %v18912_v34  ;;  %v15745_v2 = vor.u32 %v17901_v54, %v15744_v45  ;;  %v15906_v34 = vld [vmem:[#allocation11 + $0x590] sm:$0xf0]  ;;  %v15554_v8 = vld [vmem:[#allocation11 + $0x2c8] sm:$0xf0]  ;;  %v15834_v45 = vld [vmem:[#allocation11 + $0x500] sm:$0xf0] }
 0x682   :  { %10774 = vmatpush.bf16.msra.mxu1 %v15409_v26  ;;  %v10568_v53 = vpop.f32.mrf.mxu1  ;;  %v17979_v26 = vld [vmem:[#allocation11 + $0x6b4] sm:$0xf0]  ;;  %10642 = vmatpush.bf16.msrb.mxu3 %v16601_v44  ;;  %v15984_v44 = vld [vmem:[#allocation11 + $0x610] sm:$0xf]  ;;  %v17850_v58 = vld [vmem:[#allocation11 + $0x2b4] sm:$0xf] }
 0x683   :  { %10762 = vmatmul.bf16.vlgmr.msra.gmra.mxu0 %v18818_v24  ;;  %v18936_v23 = vadd.f32 %v10568_v53, %v10556_v59  ;;  %v16057_v31 = vor.u32 %v17979_v26, %v16056_v39  ;;  %v15933_v53 = vor.u32 %v17945_v47, %v15930_v48  ;;  %v17808_v39 = vld [vmem:[#allocation11 + $0x164] sm:$0xf]  ;;  %v15386_v26 = vld [vmem:[#allocation11 + $0x178] sm:$0xf0]  ;;  %v17921_v48 = vld [vmem:[#allocation11 + $0x4ec] sm:$0xf] }
 0x684   :  { %10806 = vmatpush.bf16.msrb.mxu0 %v16153_v4  ;;  %v16248_v4 = vld [vmem:[#allocation11 + $0x820] sm:$0xf]  ;;  %10733 = vmatpush.bf16.msrb.mxu2 %v16413_v16  ;;  %v17961_v16 = vld [vmem:[#allocation11 + $0x624] sm:$0xf0]  ;;  %v15648_v54 = vld [vmem:[#allocation11 + $0x370] sm:$0xf] }
 0x685   :  { %10775 = vmatmul.bf16.vlgmr.msra.gmra.mxu1 %v18820_v10  ;;  %v16249_v37 = vor.u32 %v18027_v19, %v16248_v4  ;;  %v15985_v28 = vor.u32 %v17961_v16, %v15984_v44  ;;  %v17856_v4 = vld [vmem:[#allocation11 + $0x2e4] sm:$0xf]  ;;  %v15578_v19 = vld [vmem:[#allocation11 + $0x2f8] sm:$0xf0]  ;;  %v17877_v44 = vld [vmem:[#allocation11 + $0x384] sm:$0xf0] }
 0x686   :  { %10819 = vmatpush.bf16.msrb.mxu1 %v16345_v30  ;;  %v16389_v30 = vor.u32 %v18059_v50, %v16386_v25  ;;  %10643 = vmatpush.bf16.msrb.mxu3 %v16577_v14  ;;  %v17939_v50 = vld [vmem:[#allocation11 + $0x57c] sm:$0xf]  ;;  %v17895_v25 = vld [vmem:[#allocation11 + $0x414] sm:$0xf0]  ;;  %v15581_v9 = vor.u32 %v17856_v4, %v15578_v19  ;;  %v17838_v16 = vld [vmem:[#allocation11 + $0x254] sm:$0xf] }
 0x687   :  { %v15909_v51 = vor.u32 %v17939_v50, %v15906_v34  ;;  %v15837_v50 = vor.u32 %v17921_v48, %v15834_v45  ;;  %v15649_v34 = vor.u32 %v17877_v44, %v15648_v54  ;;  %v17871_v4 = vld [vmem:[#allocation11 + $0x354] sm:$0xf0]  ;;  %v17784_v19 = vld [vmem:[#allocation11 + $0xa4] sm:$0xf]  ;;  %v15434_v54 = vld [vmem:[#allocation11 + $0x1d8] sm:$0xf0] }
 0x688   :  { %10807 = vmatpush.bf16.msrb.mxu0 %v16129_v13  ;;  %v16224_v13 = vld [vmem:[#allocation11 + $0x7f0] sm:$0xf]  ;;  %10734 = vmatpush.bf16.msrb.mxu2 %v16389_v30  ;;  %v10479_v46 = vpop.f32.mrf.mxu2  ;;  %v17820_v48 = vld [vmem:[#allocation11 + $0x1c4] sm:$0xf] }
 0x689   :  { %v16225_v6 = vor.u32 %v18021_v62, %v16224_v13  ;;  %v17802_v13 = vld [vmem:[#allocation11 + $0x134] sm:$0xf]  ;;  %v15362_v62 = vld [vmem:[#allocation11 + $0x148] sm:$0xf0]  ;;  %v16698_v44 = vld [vmem:[#allocation11 + $0xbc0] sm:$0xf0] }
 0x68a   :  { %10820 = vmatpush.bf16.msrb.mxu1 %v16321_v55  ;;  %v10557_v55 = vpop.f32.mrf.mxu0  ;;  %v10570_v41 = vpop.f32.mrf.mxu1  ;;  %10644 = vmatpush.bf16.msrb.mxu3 %v16553_v36  ;;  %v15365_v29 = vor.u32 %v17802_v13, %v15362_v62  ;;  %v17909_v46 = vld [vmem:[#allocation11 + $0x48c] sm:$0xf]  ;;  %v17865_v13 = vld [vmem:[#allocation11 + $0x324] sm:$0xf0] }
 0x68b   :  { %v15885_v55 = vor.u32 %v17933_v42, %v15882_v52  ;;  %v15858_v41 = vld [vmem:[#allocation11 + $0x530] sm:$0xf0] }
 0x68c   :  { %10808 = vmatpush.bf16.msrb.mxu0 %v16105_v63  ;;  %v17967_v63 = vld [vmem:[#allocation11 + $0x654] sm:$0xf0]  ;;  %10735 = vmatpush.bf16.msrb.mxu2 %v16365_v7  ;;  %v15672_v7 = vld [vmem:[#allocation11 + $0x3a0] sm:$0xf] }
 0x68d   :  { %v16009_v33 = vor.u32 %v17967_v63, %v16008_v60  ;;  %10645 = vmatmul.bf16.vlgmr.msrb.gmra.mxu3 %v18901_v38  ;;  %v15338_v60 = vld [vmem:[#allocation11 + $0x118] sm:$0xf0]  ;;  %v17844_v63 = vld [vmem:[#allocation11 + $0x284] sm:$0xf] }
 0x68e   :  { %10821 = vmatpush.bf16.msrb.mxu1 %v16297_v22  ;;  %v18015_v22 = vld [vmem:[#allocation11 + $0x7d4] sm:$0xf0]  ;;  %10689 = vmatpush.bf16.msra.mxu3 %v15957_v49  ;;  %v17796_v49 = vld [vmem:[#allocation11 + $0x104] sm:$0xf] }
 0x68f   :  { %v16201_v59 = vor.u32 %v18015_v22, %v16200_v35  ;;  %10736 = vmatmul.bf16.vlgmr.msrb.gmra.mxu2 %v18878_v21  ;;  %v15530_v35 = vld [vmem:[#allocation11 + $0x298] sm:$0xf0]  ;;  %v15341_v22 = vor.u32 %v17796_v49, %v15338_v60  ;;  %v18099_v49 = vld [vmem:[#allocation11 + $0xa74] sm:$0xf0] }
 0x690   :  { %10809 = vmatpush.bf16.msrb.mxu0 %v16081_v1  ;;  %v16176_v1 = vld [vmem:[#allocation11 + $0x790] sm:$0xf]  ;;  %10780 = vmatpush.bf16.msra.mxu2 %v15769_v17  ;;  %v15861_v17 = vor.u32 %v17927_v12, %v15858_v41  ;;  %v16722_v12 = vld [vmem:[#allocation11 + $0xbf0] sm:$0xf0] }
 0x691   :  { %v16177_v14 = vor.u32 %v18009_v18, %v16176_v1  ;;  %v15506_v1 = vld [vmem:[#allocation11 + $0x268] sm:$0xf0] }
 0x692   :  { %10822 = vmatpush.bf16.msrb.mxu1 %v16273_v32  ;;  %v15720_v32 = vld [vmem:[#allocation11 + $0x400] sm:$0xf]  ;;  %10690 = vmatpush.bf16.msra.mxu3 %v15933_v53  ;;  %v18945_v47 = vpop.f32.mrf.mxu2  ;;  %v15314_v53 = vld [vmem:[#allocation11 + $0xe8] sm:$0xf0] }
 0x693   :  { %v15721_v30 = vor.u32 %v17895_v25, %v15720_v32  ;;  %v17915_v25 = vld [vmem:[#allocation11 + $0x4bc] sm:$0xf] }
 0x694   :  { %10810 = vmatpush.bf16.msrb.mxu0 %v16057_v31  ;;  %10781 = vmatpush.bf16.msra.mxu2 %v15745_v2  ;;  %v15389_v31 = vor.u32 %v17808_v39, %v15386_v26  ;;  %v15810_v39 = vld [vmem:[#allocation11 + $0x4d0] sm:$0xf0]  ;;  %v15624_v26 = vld [vmem:[#allocation11 + $0x340] sm:$0xf] }
 0x695   :  { %v15625_v42 = vor.u32 %v17871_v4, %v15624_v26  ;;  %v16674_v4 = vld [vmem:[#allocation11 + $0xb90] sm:$0xf0] }
 0x696   :  { %10823 = vmatpush.bf16.msrb.mxu1 %v16249_v37  ;;  %v15696_v37 = vld [vmem:[#allocation11 + $0x3d0] sm:$0xf]  ;;  %10691 = vmatpush.bf16.msra.mxu3 %v15909_v51  ;;  %v17832_v51 = vld [vmem:[#allocation11 + $0x224] sm:$0xf] }
 0x697   :  { %v15697_v36 = vor.u32 %v17889_v43, %v15696_v37  ;;  %v15600_v43 = vld [vmem:[#allocation11 + $0x310] sm:$0xf] }
 0x698   :  { %10811 = vmatpush.bf16.msrb.mxu0 %v16033_v11  ;;  %10782 = vmatpush.bf16.msra.mxu2 %v15721_v30  ;;  %v15557_v11 = vor.u32 %v17850_v58, %v15554_v8  ;;  %v15482_v30 = vld [vmem:[#allocation11 + $0x238] sm:$0xf0]  ;;  %v17778_v58 = vld [vmem:[#allocation11 + $0x74] sm:$0xf]  ;;  %v15266_v8 = vld [vmem:[#allocation11 + $0x88] sm:$0xf0]  ;;  %v15601_v60 = vor.u32 %v17865_v13, %v15600_v43 }
 0x699   :  { %v15485_v62 = vor.u32 %v17832_v51, %v15482_v30  ;;  %v18000_v51 = vld [vmem:[#allocation11 + $0x764] sm:$0xf]  ;;  %v16154_v30 = vld [vmem:[#allocation11 + $0x778] sm:$0xf0]  ;;  %v18125_v13 = vld [vmem:[#allocation11 + $0xb4c] sm:$0xf] }
 0x69a   :  { %10824 = vmatpush.bf16.msrb.mxu1 %v16225_v6  ;;  %v17883_v6 = vld [vmem:[#allocation11 + $0x3b4] sm:$0xf0]  ;;  %10692 = vmatpush.bf16.msra.mxu3 %v15885_v55  ;;  %v10531_v37 = vpop.f32.mrf.mxu2  ;;  %v17826_v55 = vld [vmem:[#allocation11 + $0x1f4] sm:$0xf]  ;;  %v16157_v43 = vor.u32 %v18000_v51, %v16154_v30 }
 0x69b   :  { %v15673_v15 = vor.u32 %v17883_v6, %v15672_v7  ;;  %v16536_v6 = vld [vmem:[#allocation11 + $0xa60] sm:$0xf] }
 0x69c   :  { %10812 = vmatpush.bf16.msrb.mxu0 %v16009_v33  ;;  %10783 = vmatpush.bf16.msra.mxu2 %v15697_v36  ;;  %v15533_v33 = vor.u32 %v17844_v63, %v15530_v35  ;;  %v15458_v36 = vld [vmem:[#allocation11 + $0x208] sm:$0xf0]  ;;  %v15269_v63 = vor.u32 %v17778_v58, %v15266_v8  ;;  %v16537_v45 = vor.u32 %v18099_v49, %v16536_v6  ;;  %v16464_v58 = vld [vmem:[#allocation11 + $0x9d0] sm:$0xf]  ;;  %v18119_v49 = vld [vmem:[#allocation11 + $0xb1c] sm:$0xf] }
 0x69d   :  { %v15461_v35 = vor.u32 %v17826_v55, %v15458_v36  ;;  %v18081_v55 = vld [vmem:[#allocation11 + $0x9e4] sm:$0xf0]  ;;  %v17994_v36 = vld [vmem:[#allocation11 + $0x734] sm:$0xf] }
 0x69e   :  { %10825 = vmatpush.bf16.msrb.mxu1 %v16201_v59  ;;  %v17790_v59 = vld [vmem:[#allocation11 + $0xd4] sm:$0xf]  ;;  %10693 = vmatpush.bf16.msra.mxu3 %v15861_v17 }
 0x69f   :  { %v15317_v32 = vor.u32 %v17790_v59, %v15314_v53  ;;  %v16512_v59 = vld [vmem:[#allocation11 + $0xa30] sm:$0xf]  ;;  %v18093_v53 = vld [vmem:[#allocation11 + $0xa44] sm:$0xf0] }
 0x6a0   :  { %10813 = vmatpush.bf16.msrb.mxu0 %v15985_v28  ;;  %v18947_v18 = vpop.f32.mrf.mxu0  ;;  %10784 = vmatpush.bf16.msra.mxu2 %v15673_v15  ;;  %v15509_v28 = vor.u32 %v17838_v16, %v15506_v1  ;;  %v17772_v15 = vld [vmem:[#allocation11 + $0x44] sm:$0xf]  ;;  %v17766_v1 = vld [vmem:[#allocation11 + $0x14] sm:$0xf]  ;;  %v16513_v26 = vor.u32 %v18093_v53, %v16512_v59 }
 0x6a2   :  { %10826 = vmatpush.bf16.msrb.mxu1 %v16177_v14  ;;  %v18949_v2 = vpop.f32.mrf.mxu1  ;;  %v15290_v14 = vld [vmem:[#allocation11 + $0xb8] sm:$0xf0]  ;;  %10694 = vmatpush.bf16.msra.mxu3 %v15837_v50  ;;  %v15437_v50 = vor.u32 %v17820_v48, %v15434_v54 }
 0x6a3   :  { %10814 = vmatmul.bf16.vlgmr.msrb.gmra.mxu0 %v18839_v0  ;;  %v15293_v52 = vor.u32 %v17784_v19, %v15290_v14  ;;  %v16488_v19 = vld [vmem:[#allocation11 + $0xa00] sm:$0xf]  ;;  %v18087_v14 = vld [vmem:[#allocation11 + $0xa14] sm:$0xf0]  ;;  %v16298_v54 = vld [vmem:[#allocation11 + $0x898] sm:$0xf0] }
 0x6a4   :  { %10858 = vmatpush.bf16.msra.mxu0 %v15389_v31  ;;  %v15813_v31 = vor.u32 %v17915_v25, %v15810_v39  ;;  %10785 = vmatpush.bf16.msra.mxu2 %v15649_v34  ;;  %v17814_v25 = vld [vmem:[#allocation11 + $0x194] sm:$0xf]  ;;  %v15410_v39 = vld [vmem:[#allocation11 + $0x1a8] sm:$0xf0] }
 0x6a5   :  { %10827 = vmatmul.bf16.vlgmr.msrb.gmra.mxu1 %v18851_v57 }
 0x6a6   :  { %10871 = vmatpush.bf16.msra.mxu1 %v15581_v9  ;;  %v15786_v9 = vld [vmem:[#allocation11 + $0x4a0] sm:$0xf0]  ;;  %10695 = vmatpush.bf16.msra.mxu3 %v15813_v31 }
 0x6a8   :  { %10859 = vmatpush.bf16.msra.mxu0 %v15365_v29  ;;  %v18143_v29 = vld [vmem:[#allocation11 + $0xbdc] sm:$0xf]  ;;  %v10609_v41 = vpop.f32.mrf.mxu0  ;;  %10786 = vmatpush.bf16.msra.mxu2 %v15625_v42 }
 0x6a9   :  { %v16725_v17 = vor.u32 %v18143_v29, %v16722_v12  ;;  %v16346_v42 = vld [vmem:[#allocation11 + $0x8f8] sm:$0xf0]  ;;  %v16130_v29 = vld [vmem:[#allocation11 + $0x748] sm:$0xf0]  ;;  %v18042_v12 = vld [vmem:[#allocation11 + $0x8b4] sm:$0xf] }
 0x6aa   :  { %10872 = vmatpush.bf16.msra.mxu1 %v15557_v11  ;;  %v10622_v7 = vpop.f32.mrf.mxu1  ;;  %v15789_v11 = vor.u32 %v17909_v46, %v15786_v9  ;;  %v18048_v46 = vld [vmem:[#allocation11 + $0x8e4] sm:$0xf]  ;;  %v16489_v9 = vor.u32 %v18087_v14, %v16488_v19  ;;  %v16322_v41 = vld [vmem:[#allocation11 + $0x8c8] sm:$0xf0]  ;;  %v16133_v6 = vor.u32 %v17994_v36, %v16130_v29 }
 0x6ab   :  { %v16349_v8 = vor.u32 %v18048_v46, %v16346_v42  ;;  %v16578_v46 = vld [vmem:[#allocation11 + $0xad0] sm:$0xf0]  ;;  %v16392_v42 = vld [vmem:[#allocation11 + $0x940] sm:$0xf] }
 0x6ac   :  { %10860 = vmatpush.bf16.msra.mxu0 %v15341_v22  ;;  %v15242_v22 = vld [vmem:[#allocation11 + $0x58] sm:$0xf0]  ;;  %10696 = vmatpush.bf16.msra.mxu3 %v15789_v11  ;;  %v16465_v11 = vor.u32 %v18081_v55, %v16464_v58  ;;  %v18101_v55 = vld [vmem:[#allocation11 + $0xa8c] sm:$0xf] }
 0x6ad   :  { %10787 = vmatpush.bf16.msra.mxu2 %v15601_v60  ;;  %v15245_v16 = vor.u32 %v17772_v15, %v15242_v22  ;;  %v16626_v60 = vld [vmem:[#allocation11 + $0xb30] sm:$0xf0]  ;;  %v17988_v15 = vld [vmem:[#allocation11 + $0x704] sm:$0xf]  ;;  %v16106_v22 = vld [vmem:[#allocation11 + $0x718] sm:$0xf0] }
 0x6ae   :  { %10873 = vmatpush.bf16.msra.mxu1 %v15533_v33  ;;  %v18137_v33 = vld [vmem:[#allocation11 + $0xbac] sm:$0xf]  ;;  %v18955_v48 = vpop.f32.mrf.mxu3  ;;  %v16109_v53 = vor.u32 %v17988_v15, %v16106_v22  ;;  %v16250_v58 = vld [vmem:[#allocation11 + $0x838] sm:$0xf0]  ;;  %v15960_v15 = vld [vmem:[#allocation11 + $0x5e0] sm:$0xf] }
 0x6af   :  { %v16701_v34 = vor.u32 %v18137_v33, %v16698_v44  ;;  %10697 = vmatmul.bf16.vlgmr.msra.gmra.mxu3 %v18855_v40  ;;  %v16629_v33 = vor.u32 %v18119_v49, %v16626_v60  ;;  %v8409_v44 = vperm.slane %v18933_v27, 3  ;;  %v17970_v49 = vld [vmem:[#allocation11 + $0x674] sm:$0xf]  ;;  %v16034_v60 = vld [vmem:[#allocation11 + $0x688] sm:$0xf0] }
 0x6b0   :  { %10861 = vmatpush.bf16.msra.mxu0 %v15317_v32  ;;  %10741 = vmatpush.bf16.msrb.mxu3 %v16725_v17  ;;  %v15218_v32 = vld [vmem:[#allocation11 + $0x28] sm:$0xf0]  ;;  %v18075_v17 = vld [vmem:[#allocation11 + $0x9b4] sm:$0xf0] }
 0x6b1   :  { %10832 = vmatpush.bf16.msrb.mxu2 %v16537_v45  ;;  %v15221_v31 = vor.u32 %v17766_v1, %v15218_v32  ;;  %v18036_v45 = vld [vmem:[#allocation11 + $0x884] sm:$0xf]  ;;  %v18069_v32 = vld [vmem:[#allocation11 + $0x984] sm:$0xf0]  ;;  %v17955_v22 = vld [vmem:[#allocation11 + $0x5f4] sm:$0xf0] }
 0x6b2   :  { %10874 = vmatpush.bf16.msra.mxu1 %v15509_v28  ;;  %v18131_v28 = vld [vmem:[#allocation11 + $0xb7c] sm:$0xf]  ;;  %10788 = vmatmul.bf16.vlgmr.msra.gmra.mxu2 %v18822_v3  ;;  %v16602_v1 = vld [vmem:[#allocation11 + $0xb00] sm:$0xf0] }
 0x6b3   :  { %v16677_v37 = vor.u32 %v18131_v28, %v16674_v4  ;;  %v18030_v28 = vld [vmem:[#allocation11 + $0x854] sm:$0xf]  ;;  %v16274_v4 = vld [vmem:[#allocation11 + $0x868] sm:$0xf0] }
 0x6b4   :  { %10862 = vmatpush.bf16.msra.mxu0 %v15293_v52  ;;  %10742 = vmatpush.bf16.msrb.mxu3 %v16701_v34  ;;  %v15413_v52 = vor.u32 %v17814_v25, %v15410_v39  ;;  %v16301_v34 = vor.u32 %v18036_v45, %v16298_v54  ;;  %v17982_v25 = vld [vmem:[#allocation11 + $0x6d4] sm:$0xf]  ;;  %v16082_v39 = vld [vmem:[#allocation11 + $0x6e8] sm:$0xf0]  ;;  %v10439_v45 = vadd.f32 %v18955_v48, %v18931_v56  ;;  %v17949_v56 = vld [vmem:[#allocation11 + $0x5c4] sm:$0xf0] }
 0x6b5   :  { %10833 = vmatpush.bf16.msrb.mxu2 %v16513_v26  ;;  %v16085_v30 = vor.u32 %v17982_v25, %v16082_v39 }
 0x6b6   :  { %10875 = vmatpush.bf16.msra.mxu1 %v15485_v62  ;;  %v16650_v62 = vld [vmem:[#allocation11 + $0xb60] sm:$0xf0]  ;;  %v16734_v48 = vmul.f32 -1.442695, %v10439_v45 }
 0x6b7   :  { %v16653_v7 = vor.u32 %v18125_v13, %v16650_v62  ;;  %v10440_v13 = vpop.f32.mrf.mxu3  ;;  %v18024_v62 = vld [vmem:[#allocation11 + $0x824] sm:$0xf] }
 0x6b8   :  { %10863 = vmatpush.bf16.msra.mxu0 %v15269_v63  ;;  %10743 = vmatpush.bf16.msrb.mxu3 %v16677_v37  ;;  %v16440_v63 = vld [vmem:[#allocation11 + $0x9a0] sm:$0xf]  ;;  %v18063_v37 = vld [vmem:[#allocation11 + $0x954] sm:$0xf0]  ;;  %18160 = vpow2.f32 %v16734_v48  ;;  %v17892_v13 = vld [vmem:[#allocation11 + $0x404] sm:$0xf] }
 0x6b9   :  { %10834 = vmatpush.bf16.msrb.mxu2 %v16489_v9  ;;  %v16441_v59 = vor.u32 %v18075_v17, %v16440_v63  ;;  %v17976_v9 = vld [vmem:[#allocation11 + $0x6a4] sm:$0xf]  ;;  %v16393_v36 = vor.u32 %v18063_v37, %v16392_v42  ;;  %v18018_v63 = vld [vmem:[#allocation11 + $0x7f4] sm:$0xf]  ;;  %v16226_v17 = vld [vmem:[#allocation11 + $0x808] sm:$0xf0] }
 0x6ba   :  { %10876 = vmatpush.bf16.msra.mxu1 %v15461_v35  ;;  %v16325_v35 = vor.u32 %v18042_v12, %v16322_v41  ;;  %v16554_v41 = vld [vmem:[#allocation11 + $0xaa0] sm:$0xf0]  ;;  %v18006_v42 = vld [vmem:[#allocation11 + $0x794] sm:$0xf]  ;;  %v16178_v37 = vld [vmem:[#allocation11 + $0x7a8] sm:$0xf0] }
 0x6bc   :  { %10864 = vmatpush.bf16.msra.mxu0 %v15245_v16  ;;  %10744 = vmatpush.bf16.msrb.mxu3 %v16653_v7  ;;  %v10581_v16 = vpop.f32.mrf.mxu2  ;;  %v16368_v7 = vld [vmem:[#allocation11 + $0x910] sm:$0xf] }
 0x6bd   :  { %10835 = vmatpush.bf16.msrb.mxu2 %v16465_v11  ;;  %v18057_v11 = vld [vmem:[#allocation11 + $0x924] sm:$0xf0] }
 0x6be   :  { %10877 = vmatpush.bf16.msra.mxu1 %v15437_v50  ;;  %v16416_v50 = vld [vmem:[#allocation11 + $0x970] sm:$0xf] }
 0x6bf   :  { %v16417_v51 = vor.u32 %v18069_v32, %v16416_v50  ;;  %v17964_v50 = vld [vmem:[#allocation11 + $0x644] sm:$0xf]  ;;  %v10490_v39 = vpop.f32.mrf.mxu3 }
 0x6c0   :  { %10865 = vmatpush.bf16.msra.mxu0 %v15221_v31  ;;  %v10659_v26 = vpop.f32.mrf.mxu0  ;;  %10745 = vmatpush.bf16.msrb.mxu3 %v16629_v33  ;;  %v18107_v31 = vld [vmem:[#allocation11 + $0xabc] sm:$0xf]  ;;  %v16557_v33 = vor.u32 %v18101_v55, %v16554_v41  ;;  %v18012_v32 = vld [vmem:[#allocation11 + $0x7c4] sm:$0xf]  ;;  %v17937_v41 = vld [vmem:[#allocation11 + $0x564] sm:$0xf0] }
 0x6c1   :  { %v10660_v27 = vadd.f32 %v10659_v26, %v8409_v44  ;;  %10836 = vmatpush.bf16.msrb.mxu2 %v16441_v59  ;;  %v17904_v44 = vld [vmem:[#allocation11 + $0x464] sm:$0xf]  ;;  %v15770_v59 = vld [vmem:[#allocation11 + $0x478] sm:$0xf0] }
 0x6c2   :  { %10878 = vmatpush.bf16.msra.mxu1 %v15413_v52  ;;  %v10672_v19 = vpop.f32.mrf.mxu1  ;;  %v16277_v52 = vor.u32 %v18030_v28, %v16274_v4  ;;  %v15773_v25 = vor.u32 %v17904_v44, %v15770_v59  ;;  %v16202_v26 = vld [vmem:[#allocation11 + $0x7d8] sm:$0xf0]  ;;  %v15936_v28 = vld [vmem:[#allocation11 + $0x5b0] sm:$0xf]  ;;  %v17898_v4 = vld [vmem:[#allocation11 + $0x434] sm:$0xf] }
 0x6c3   :  { %10866 = vmatmul.bf16.vlgmr.msra.gmra.mxu0 %v18818_v24  ;;  %v18113_v24 = vld [vmem:[#allocation11 + $0xaec] sm:$0xf]  ;;  %v15840_v59 = vld [vmem:[#allocation11 + $0x4f0] sm:$0xf] }
 0x6c4   :  { %10910 = vmatpush.bf16.msrb.mxu0 %v16157_v43  ;;  %v16605_v14 = vor.u32 %v18113_v24, %v16602_v1  ;;  %v16058_v43 = vld [vmem:[#allocation11 + $0x6b8] sm:$0xf0]  ;;  %v10583_v12 = vpop.f32.mrf.mxu2  ;;  %v16229_v24 = vor.u32 %v18018_v63, %v16226_v17  ;;  %v15961_v1 = vor.u32 %v17955_v22, %v15960_v15  ;;  %v15864_v63 = vld [vmem:[#allocation11 + $0x520] sm:$0xf]  ;;  %v17880_v17 = vld [vmem:[#allocation11 + $0x3a4] sm:$0xf] }
 0x6c5   :  { %10879 = vmatmul.bf16.vlgmr.msra.gmra.mxu1 %v18820_v10  ;;  %v18959_v10 = vadd.f32 %v10581_v16, %v18936_v23  ;;  %v18961_v23 = vadd.f32 %v10672_v19, %v10660_v27  ;;  %10837 = vmatpush.bf16.msrb.mxu2 %v16417_v51  ;;  %v16061_v29 = vor.u32 %v17976_v9, %v16058_v43  ;;  %v15746_v27 = vld [vmem:[#allocation11 + $0x448] sm:$0xf0]  ;;  %v15912_v9 = vld [vmem:[#allocation11 + $0x580] sm:$0xf]  ;;  %v17943_v43 = vld [vmem:[#allocation11 + $0x594] sm:$0xf0] }
 0x6c6   :  { %10923 = vmatpush.bf16.msrb.mxu1 %v16349_v8  ;;  %10746 = vmatpush.bf16.msrb.mxu3 %v16605_v14  ;;  %v16581_v8 = vor.u32 %v18107_v31, %v16578_v46  ;;  %v16037_v16 = vor.u32 %v17970_v49, %v16034_v60  ;;  %v10491_v14 = vadd.f32 %v10490_v39, %v18939_v5  ;;  %v17958_v31 = vld [vmem:[#allocation11 + $0x614] sm:$0xf]  ;;  %v15986_v46 = vld [vmem:[#allocation11 + $0x628] sm:$0xf0]  ;;  %v15888_v12 = vld [vmem:[#allocation11 + $0x550] sm:$0xf] }
 0x6c7   :  { %v16205_v51 = vor.u32 %v18012_v32, %v16202_v26  ;;  %v15913_v55 = vor.u32 %v17943_v43, %v15912_v9  ;;  %v15889_v49 = vor.u32 %v17937_v41, %v15888_v12  ;;  %v15674_v15 = vld [vmem:[#allocation11 + $0x3b8] sm:$0xf0]  ;;  %v15816_v32 = vld [vmem:[#allocation11 + $0x4c0] sm:$0xf]  ;;  %v17868_v39 = vld [vmem:[#allocation11 + $0x344] sm:$0xf] }
 0x6c8   :  { %10911 = vmatpush.bf16.msrb.mxu0 %v16133_v6  ;;  %v16253_v6 = vor.u32 %v18024_v62, %v16250_v58  ;;  %v15722_v62 = vld [vmem:[#allocation11 + $0x418] sm:$0xf0]  ;;  %v15989_v58 = vor.u32 %v17958_v31, %v15986_v46  ;;  %v10504_v5 = vadd.f32 %v18922_v20, %v10491_v14  ;;  %v17913_v14 = vld [vmem:[#allocation11 + $0x4a4] sm:$0xf0]  ;;  %v16728_v31 = vld [vmem:[#allocation11 + $0xbe0] sm:$0xf] }
 0x6c9   :  { %10838 = vmatpush.bf16.msrb.mxu2 %v16393_v36  ;;  %v15725_v36 = vor.u32 %v17892_v13, %v15722_v62  ;;  %v15626_v26 = vld [vmem:[#allocation11 + $0x358] sm:$0xf0]  ;;  %v18147_v46 = vld [vmem:[#allocation11 + $0xbf4] sm:$0xf0]  ;;  %v18090_v12 = vld [vmem:[#allocation11 + $0xa34] sm:$0xf] }
 0x6ca   :  { %10924 = vmatpush.bf16.msrb.mxu1 %v16325_v35  ;;  %v10661_v35 = vpop.f32.mrf.mxu0  ;;  %10747 = vmatpush.bf16.msrb.mxu3 %v16581_v8  ;;  %v10674_v54 = vpop.f32.mrf.mxu1  ;;  %v16181_v8 = vor.u32 %v18006_v42, %v16178_v37  ;;  %v10517_v60 = vadd.f32 %v18924_v61, %v10504_v5  ;;  %v15629_v48 = vor.u32 %v17868_v39, %v15626_v26  ;;  %v16538_v37 = vld [vmem:[#allocation11 + $0xa78] sm:$0xf0]  ;;  %v16514_v41 = vld [vmem:[#allocation11 + $0xa48] sm:$0xf0]  ;;  %v18123_v39 = vld [vmem:[#allocation11 + $0xb34] sm:$0xf0] }
 0x6cb   :  { %v17931_v35 = vld [vmem:[#allocation11 + $0x534] sm:$0xf0] }
 0x6cc   :  { %10912 = vmatpush.bf16.msrb.mxu0 %v16109_v53  ;;  %v16369_v53 = vor.u32 %v18057_v11, %v16368_v7  ;;  %v17886_v7 = vld [vmem:[#allocation11 + $0x3d4] sm:$0xf]  ;;  %v15698_v11 = vld [vmem:[#allocation11 + $0x3e8] sm:$0xf0]  ;;  %v15865_v45 = vor.u32 %v17931_v35, %v15864_v63  ;;  %v10530_v54 = vadd.f32 %v18945_v47, %v10517_v60  ;;  %v18135_v60 = vld [vmem:[#allocation11 + $0xb94] sm:$0xf0] }
 0x6cd   :  { %v15701_v20 = vor.u32 %v17886_v7, %v15698_v11  ;;  %v16490_v63 = vld [vmem:[#allocation11 + $0xa18] sm:$0xf0] }
 0x6ce   :  { %10925 = vmatpush.bf16.msrb.mxu1 %v16301_v34  ;;  %v16010_v34 = vld [vmem:[#allocation11 + $0x658] sm:$0xf0]  ;;  %10748 = vmatpush.bf16.msrb.mxu3 %v16557_v33  ;;  %v15677_v33 = vor.u32 %v17880_v17, %v15674_v15 }
 0x6cf   :  { %10839 = vmatpush.bf16.msrb.mxu2 %v16369_v53  ;;  %v16013_v19 = vor.u32 %v17964_v50, %v16010_v34  ;;  %v17925_v53 = vld [vmem:[#allocation11 + $0x504] sm:$0xf0] }
 0x6d0   :  { %10913 = vmatpush.bf16.msrb.mxu0 %v16085_v30  ;;  %v15937_v30 = vor.u32 %v17949_v56, %v15936_v28  ;;  %v15841_v34 = vor.u32 %v17925_v53, %v15840_v59  ;;  %v18078_v59 = vld [vmem:[#allocation11 + $0x9d4] sm:$0xf]  ;;  %v16466_v53 = vld [vmem:[#allocation11 + $0x9e8] sm:$0xf0] }
 0x6d1   :  { %10749 = vmatmul.bf16.vlgmr.msrb.gmra.mxu3 %v18901_v38 }
 0x6d2   :  { %10926 = vmatpush.bf16.msrb.mxu1 %v16277_v52  ;;  %10793 = vmatpush.bf16.msra.mxu3 %v15961_v1  ;;  %v15749_v52 = vor.u32 %v17898_v4, %v15746_v27  ;;  %v18975_v44 = vpop.f32.mrf.mxu2 }
 0x6d3   :  { %10884 = vmatpush.bf16.msra.mxu2 %v15773_v25  ;;  %v17919_v25 = vld [vmem:[#allocation11 + $0x4d4] sm:$0xf0] }
 0x6d4   :  { %10914 = vmatpush.bf16.msrb.mxu0 %v16061_v29  ;;  %10840 = vmatmul.bf16.vlgmr.msrb.gmra.mxu2 %v18878_v21  ;;  %v10492_v29 = vpop.f32.mrf.mxu3  ;;  %v15817_v28 = vor.u32 %v17919_v25, %v15816_v32  ;;  %v16469_v32 = vor.u32 %v18078_v59, %v16466_v53  ;;  %v16632_v25 = vld [vmem:[#allocation11 + $0xb20] sm:$0xf]  ;;  %v16370_v53 = vld [vmem:[#allocation11 + $0x928] sm:$0xf0] }
 0x6d5   :  { %v18141_v29 = vld [vmem:[#allocation11 + $0xbc4] sm:$0xf0] }
 0x6d6   :  { %10927 = vmatpush.bf16.msrb.mxu1 %v16253_v6  ;;  %10794 = vmatpush.bf16.msra.mxu3 %v15937_v30  ;;  %v18161_v6 = vpop.eup %18160  ;;  %v15602_v30 = vld [vmem:[#allocation11 + $0x328] sm:$0xf0] }
 0x6d7   :  { %10885 = vmatpush.bf16.msra.mxu2 %v15749_v52  ;;  %v18971_v22 = vadd.f32 1.0, %v18161_v6  ;;  %v18096_v52 = vld [vmem:[#allocation11 + $0xa64] sm:$0xf]  ;;  %v16517_v6 = vor.u32 %v18090_v12, %v16514_v41 }
 0x6d8   :  { %10915 = vmatpush.bf16.msrb.mxu0 %v16037_v16 }
 0x6d9   :  { %18162 = vrcp.f32 %v18971_v22  ;;  %vm10991_vm0 = vweird.f32 %v18971_v22 }
 0x6da   :  { %10928 = vmatpush.bf16.msrb.mxu1 %v16229_v24  ;;  %10795 = vmatpush.bf16.msra.mxu3 %v15913_v55  ;;  %v17874_v24 = vld [vmem:[#allocation11 + $0x374] sm:$0xf]  ;;  %v10635_v4 = vpop.f32.mrf.mxu2  ;;  %v16541_v55 = vor.u32 %v18096_v52, %v16538_v37  ;;  %v19020_v52 = vld [vmem:[#allocation13] sm:$0x3f]  ;;  %v16608_v37 = vld [vmem:[#allocation11 + $0xaf0] sm:$0xf] }
 0x6db   :  { %10886 = vmatpush.bf16.msra.mxu2 %v15725_v36  ;;  %v16704_v36 = vld [vmem:[#allocation11 + $0xbb0] sm:$0xf] }
 0x6dc   :  { %10916 = vmatpush.bf16.msrb.mxu0 %v16013_v19  ;;  %v10542_v61 = vpop.f32.mrf.mxu3  ;;  %v15792_v19 = vld [vmem:[#allocation11 + $0x490] sm:$0xf]  ;;  %v16705_v11 = vor.u32 %v18141_v29, %v16704_v36 }
 0x6dd   :  { %v10543_v16 = vadd.f32 %v10542_v61, %v10530_v54  ;;  %v15793_v62 = vor.u32 %v17913_v14, %v15792_v19  ;;  %v18129_v61 = vld [vmem:[#allocation11 + $0xb64] sm:$0xf0]  ;;  %v16633_v14 = vor.u32 %v18123_v39, %v16632_v25  ;;  %v17940_v25 = vld [vmem:[#allocation11 + $0x584] sm:$0xf]  ;;  %v15914_v39 = vld [vmem:[#allocation11 + $0x598] sm:$0xf0] }
 0x6de   :  { %10929 = vmatpush.bf16.msrb.mxu1 %v16205_v51  ;;  %10796 = vmatpush.bf16.msra.mxu3 %v15889_v49  ;;  %v17862_v51 = vld [vmem:[#allocation11 + $0x314] sm:$0xf]  ;;  %v16680_v49 = vld [vmem:[#allocation11 + $0xb80] sm:$0xf] }
 0x6df   :  { %10887 = vmatpush.bf16.msra.mxu2 %v15701_v20  ;;  %v18982_v56 = vpop.eup %18162  ;;  %v15605_v5 = vor.u32 %v17862_v51, %v15602_v30  ;;  %v18084_v20 = vld [vmem:[#allocation11 + $0xa04] sm:$0xf]  ;;  %v16681_v15 = vor.u32 %v18135_v60, %v16680_v49  ;;  %v16584_v49 = vld [vmem:[#allocation11 + $0xac0] sm:$0xf]  ;;  %v18111_v60 = vld [vmem:[#allocation11 + $0xad4] sm:$0xf0] }
 0x6e0   :  { %10917 = vmatpush.bf16.msrb.mxu0 %v15989_v58  ;;  %v18978_v1 = vpop.f32.mrf.mxu0  ;;  %v10987_v43 = vmul.f32 %v18982_v56, %v18971_v22  ;;  %v16493_v54 = vor.u32 %v18084_v20, %v16490_v63  ;;  %vm10992_vm1 = vweird.f32 %v18982_v56  ;;  %v18060_v20 = vld [vmem:[#allocation11 + $0x944] sm:$0xf]  ;;  %v16394_v63 = vld [vmem:[#allocation11 + $0x958] sm:$0xf0]  ;;  %v17922_v51 = vld [vmem:[#allocation11 + $0x4f4] sm:$0xf] }
 0x6e1   :  { %vm19004_vm3 = vmor %vm10991_vm0, %vm10992_vm1 }
 0x6e2   :  { %10930 = vmatpush.bf16.msrb.mxu1 %v16181_v8  ;;  %10797 = vmatpush.bf16.msra.mxu3 %v15865_v45  ;;  %v18980_v50 = vpop.f32.mrf.mxu1  ;;  %v16729_v8 = vor.u32 %v18147_v46, %v16728_v31  ;;  %v10988_v7 = vsub.f32 1.0, %v10987_v43 }
 0x6e3   :  { %10918 = vmatmul.bf16.vlgmr.msrb.gmra.mxu0 %v18839_v0  ;;  %v15650_v0 = vld [vmem:[#allocation11 + $0x388] sm:$0xf0]  ;;  %10888 = vmatpush.bf16.msra.mxu2 %v15677_v33  ;;  %v16656_v33 = vld [vmem:[#allocation11 + $0xb50] sm:$0xf] }
 0x6e4   :  { %v15653_v47 = vor.u32 %v17874_v24, %v15650_v0  ;;  %v10544_v27 = vpop.f32.mrf.mxu3  ;;  %v10989_v35 = vmul.f32 %v18982_v56, %v10988_v7 }
 0x6e5   :  { %10931 = vmatmul.bf16.vlgmr.msrb.gmra.mxu1 %v18851_v57  ;;  %v16735_v57 = vmul.f32 -1.442695, %v10543_v16 }
 0x6e6   :  { %10798 = vmatpush.bf16.msra.mxu3 %v15841_v34  ;;  %v10990_v24 = vadd.f32 %v18982_v56, %v10989_v35  ;;  %v10995_v34 = vand.u32 2147483647, %v18971_v22 }
 0x6e7   :  { %18164 = vpow2.f32 %v16735_v57  ;;  %10889 = vmatpush.bf16.msra.mxu2 %v15653_v47  ;;  %v16657_v57 = vor.u32 %v18129_v61, %v16656_v33  ;;  %v18105_v33 = vld [vmem:[#allocation11 + $0xaa4] sm:$0xf0]  ;;  %v18054_v61 = vld [vmem:[#allocation11 + $0x914] sm:$0xf] }
 0x6e8   :  { %v10713_v42 = vpop.f32.mrf.mxu0  ;;  %v10994_v27 = vsel %vm19004_vm3, %v18982_v56, %v10990_v24  ;;  %vm19012_vm5 = vcmp.eq.f32.partialorder %v10995_v34, 8.507059e+37  ;;  %v8410_v56 = vperm.slane %v19020_v52, 4  ;;  %v15962_v24 = vld [vmem:[#allocation11 + $0x5f8] sm:$0xf0] }
 0x6ea   :  { %10799 = vmatpush.bf16.msra.mxu3 %v15817_v28  ;;  %v10726_v13 = vpop.f32.mrf.mxu1  ;;  %v18072_v28 = vld [vmem:[#allocation11 + $0x9a4] sm:$0xf] }
 0x6eb   :  { %10890 = vmatpush.bf16.msra.mxu2 %v15629_v48  ;;  %v16442_v48 = vld [vmem:[#allocation11 + $0x9b8] sm:$0xf0] }
 0x6ec   :  { %v16445_v46 = vor.u32 %v18072_v28, %v16442_v48  ;;  %v17934_v28 = vld [vmem:[#allocation11 + $0x554] sm:$0xf]  ;;  %v15890_v48 = vld [vmem:[#allocation11 + $0x568] sm:$0xf0] }
 0x6ed   :  { %v18165_v9 = vpop.eup %18164  ;;  %v15893_v4 = vor.u32 %v17934_v28, %v15890_v48 }
 0x6ee   :  { %v18986_v58 = vadd.f32 1.0, %v18165_v9  ;;  %10800 = vmatpush.bf16.msra.mxu3 %v15793_v62  ;;  %v18117_v9 = vld [vmem:[#allocation11 + $0xb04] sm:$0xf0] }
 0x6ef   :  { %10891 = vmatpush.bf16.msra.mxu2 %v15605_v5  ;;  %v16418_v5 = vld [vmem:[#allocation11 + $0x988] sm:$0xf0]  ;;  %v16609_v7 = vor.u32 %v18117_v9, %v16608_v37 }
 0x6f0   :  { %18166 = vrcp.f32 %v18986_v58  ;;  %v11012_v0 = vand.u32 2147483648, %v18986_v58  ;;  %v11010_v26 = vand.u32 2147483647, %v18986_v58  ;;  %vm11006_vm4 = vweird.f32 %v18986_v58  ;;  %v10594_v42 = vpop.f32.mrf.mxu3 }
 0x6f1   :  { %10801 = vmatmul.bf16.vlgmr.msra.gmra.mxu3 %v18855_v40  ;;  %v10595_v13 = vadd.f32 %v10594_v42, %v18959_v10 }
 0x6f2   :  { %10845 = vmatpush.bf16.msrb.mxu3 %v16729_v8  ;;  %10892 = vmatmul.bf16.vlgmr.msra.gmra.mxu2 %v18822_v3  ;;  %v10997_v3 = vand.u32 2147483648, %v18971_v22  ;;  %v11013_v31 = vor.u32 1.1754944e-38, %v11012_v0  ;;  %vm11011_vm7 = vcmp.eq.f32.partialorder %v11010_v26, 8.507059e+37  ;;  %v10685_v62 = vpop.f32.mrf.mxu2  ;;  %v15917_v26 = vor.u32 %v17940_v25, %v15914_v39 }
 0x6f3   :  { %10936 = vmatpush.bf16.msrb.mxu2 %v16541_v55  ;;  %v19029_v36 = vadd.f32 %v10685_v62, %v18961_v23  ;;  %v10608_v12 = vadd.f32 %v18947_v18, %v10595_v13  ;;  %v16585_v23 = vor.u32 %v18111_v60, %v16584_v49  ;;  %v16397_v18 = vor.u32 %v18060_v20, %v16394_v63  ;;  %v15794_v13 = vld [vmem:[#allocation11 + $0x4a8] sm:$0xf0]  ;;  %v16682_v49 = vld [vmem:[#allocation11 + $0xb98] sm:$0xf0]  ;;  %v18126_v20 = vld [vmem:[#allocation11 + $0xb54] sm:$0xf] }
 0x6f4   :  { %v10998_v30 = vor.u32 1.1754944e-38, %v10997_v3  ;;  %v16658_v63 = vld [vmem:[#allocation11 + $0xb68] sm:$0xf0] }
 0x6f5   :  { %v10621_v35 = vadd.f32 %v18949_v2, %v10608_v12 }
 0x6f6   :  { %v18167_v17 = vpop.eup %18166  ;;  %10846 = vmatpush.bf16.msrb.mxu3 %v16705_v11  ;;  %v10999_v8 = vsel %vm19012_vm5, %v10998_v30, %v10994_v27  ;;  %v17928_v27 = vld [vmem:[#allocation11 + $0x524] sm:$0xf]  ;;  %v15842_v30 = vld [vmem:[#allocation11 + $0x508] sm:$0xf0] }
 0x6f7   :  { %v11002_v45 = vmul.f32 %v18167_v17, %v18986_v58  ;;  %10937 = vmatpush.bf16.msrb.mxu2 %v16517_v6  ;;  %vm11007_vm2 = vweird.f32 %v18167_v17  ;;  %v18066_v58 = vld [vmem:[#allocation11 + $0x974] sm:$0xf] }
 0x6f8   :  { %vm19016_vm6 = vmor %vm11006_vm4, %vm11007_vm2  ;;  %v16421_v10 = vor.u32 %v18066_v58, %v16418_v5  ;;  %v18144_v58 = vld [vmem:[#allocation11 + $0xbe4] sm:$0xf]  ;;  %v16730_v5 = vld [vmem:[#allocation11 + $0xbf8] sm:$0xf0] }
 0x6f9   :  { %v11003_v16 = vsub.f32 1.0, %v11002_v45  ;;  %v10596_v45 = vpop.f32.mrf.mxu3  ;;  %v16733_v12 = vor.u32 %v18144_v58, %v16730_v5 }
 0x6fa   :  { %10847 = vmatpush.bf16.msrb.mxu3 %v16681_v15  ;;  %v19036_v15 = vadd.f32 %v18975_v44, %v10621_v35  ;;  %v10687_v59 = vpop.f32.mrf.mxu2  ;;  %v15938_v44 = vld [vmem:[#allocation11 + $0x5c8] sm:$0xf0]  ;;  %v16661_v35 = vor.u32 %v18126_v20, %v16658_v63 }
 0x6fb   :  { %v11004_v47 = vmul.f32 %v18167_v17, %v11003_v16  ;;  %10938 = vmatpush.bf16.msrb.mxu2 %v16493_v54  ;;  %v16560_v54 = vld [vmem:[#allocation11 + $0xa90] sm:$0xf]  ;;  %v17952_v16 = vld [vmem:[#allocation11 + $0x5e4] sm:$0xf]  ;;  %v8411_v59 = vperm.slane %v19020_v52, 5 }
 0x6fc   :  { %v16561_v2 = vor.u32 %v18105_v33, %v16560_v54  ;;  %v15965_v34 = vor.u32 %v17952_v16, %v15962_v24  ;;  %v18114_v54 = vld [vmem:[#allocation11 + $0xaf4] sm:$0xf]  ;;  %v16610_v33 = vld [vmem:[#allocation11 + $0xb08] sm:$0xf0]  ;;  %v18108_v24 = vld [vmem:[#allocation11 + $0xac4] sm:$0xf] }
 0x6fd   :  { %v11005_v19 = vadd.f32 %v18167_v17, %v11004_v47  ;;  %v17946_v47 = vld [vmem:[#allocation11 + $0x5b4] sm:$0xf]  ;;  %v16613_v16 = vor.u32 %v18114_v54, %v16610_v33 }
 0x6fe   :  { %10848 = vmatpush.bf16.msrb.mxu3 %v16657_v57  ;;  %v16373_v57 = vor.u32 %v18054_v61, %v16370_v53 }
 0x6ff   :  { %10939 = vmatpush.bf16.msrb.mxu2 %v16469_v32  ;;  %v11009_v43 = vsel %vm19016_vm6, %v18167_v17, %v11005_v19  ;;  %v15941_v32 = vor.u32 %v17946_v47, %v15938_v44  ;;  %v15866_v19 = vld [vmem:[#allocation11 + $0x538] sm:$0xf0]  ;;  %v18102_v44 = vld [vmem:[#allocation11 + $0xa94] sm:$0xf] }
 0x700   :  { %v11014_v55 = vsel %vm11011_vm7, %v11013_v31, %v11009_v43  ;;  %v10763_v41 = vpop.f32.mrf.mxu0  ;;  %v17910_v43 = vld [vmem:[#allocation11 + $0x494] sm:$0xf] }
 0x701   :  { %v11076_v29 = vpack.c.bf16 %v11014_v55, %v10999_v8  ;;  %v10764_v11 = vadd.f32 %v10763_v41, %v8410_v56  ;;  %v15818_v56 = vld [vmem:[#allocation11 + $0x4d8] sm:$0xf0]  ;;  %v15797_v55 = vor.u32 %v17910_v43, %v15794_v13 }
 0x702   :  { %10849 = vmatpush.bf16.msrb.mxu3 %v16633_v14  ;;  %v10776_v6 = vpop.f32.mrf.mxu1  ;;  %v15869_v14 = vor.u32 %v17928_v27, %v15866_v19 }
 0x703   :  { %10940 = vmatpush.bf16.msrb.mxu2 %v16445_v46  ;;  %11079 = vst [vmem:[#allocation14] sm:$0xff] %v11076_v29  ;;  %v19033_v17 = vadd.f32 %v10776_v6, %v10764_v11  ;;  %v15845_v46 = vor.u32 %v17922_v51, %v15842_v30  ;;  %v16706_v11 = vld [vmem:[#allocation11 + $0xbc8] sm:$0xf0] }
 0x706   :  { %10850 = vmatpush.bf16.msrb.mxu3 %v16609_v7  ;;  %v18138_v7 = vld [vmem:[#allocation11 + $0xbb4] sm:$0xf] }
 0x707   :  { %10941 = vmatpush.bf16.msrb.mxu2 %v16421_v10  ;;  %v16709_v6 = vor.u32 %v18138_v7, %v16706_v11  ;;  %v18132_v10 = vld [vmem:[#allocation11 + $0xb84] sm:$0xf] }
 0x708   :  { %v10765_v3 = vpop.f32.mrf.mxu0  ;;  %v16685_v60 = vor.u32 %v18132_v10, %v16682_v49 }
 0x709   :  { %v16586_v3 = vld [vmem:[#allocation11 + $0xad8] sm:$0xf0] }
 0x70a   :  { %10851 = vmatpush.bf16.msrb.mxu3 %v16585_v23  ;;  %v10778_v0 = vpop.f32.mrf.mxu1  ;;  %v18120_v23 = vld [vmem:[#allocation11 + $0xb24] sm:$0xf] }
 0x70b   :  { %10942 = vmatpush.bf16.msrb.mxu2 %v16397_v18  ;;  %v16634_v18 = vld [vmem:[#allocation11 + $0xb38] sm:$0xf0] }
 0x70c   :  { %v16637_v45 = vor.u32 %v18120_v23, %v16634_v18 }
 0x70e   :  { %10852 = vmatpush.bf16.msrb.mxu3 %v16561_v2 }
 0x70f   :  { %10943 = vmatpush.bf16.msrb.mxu2 %v16373_v57 }
 0x710   :  { %v10646_v22 = vpop.f32.mrf.mxu3 }
 0x711   :  { %10853 = vmatmul.bf16.vlgmr.msrb.gmra.mxu3 %v18901_v38 }
 0x712   :  { %10897 = vmatpush.bf16.msra.mxu3 %v15965_v34  ;;  %10944 = vmatmul.bf16.vlgmr.msrb.gmra.mxu2 %v18878_v21  ;;  %v19040_v31 = vpop.f32.mrf.mxu2  ;;  %v17916_v21 = vld [vmem:[#allocation11 + $0x4c4] sm:$0xf]  ;;  %v16589_v34 = vor.u32 %v18108_v24, %v16586_v3 }
 0x713   :  { %v15821_v9 = vor.u32 %v17916_v21, %v15818_v56 }
 0x716   :  { %10898 = vmatpush.bf16.msra.mxu3 %v15941_v32  ;;  %v16562_v32 = vld [vmem:[#allocation11 + $0xaa8] sm:$0xf0] }
 0x717   :  { %v16565_v39 = vor.u32 %v18102_v44, %v16562_v32 }
 0x718   :  { %v10648_v62 = vpop.f32.mrf.mxu3 }
 0x71a   :  { %10899 = vmatpush.bf16.msra.mxu3 %v15917_v26  ;;  %v10739_v8 = vpop.f32.mrf.mxu2  ;;  %v10647_v26 = vadd.f32 %v10646_v22, %v19036_v15 }
 0x71c   :  { %v16736_v48 = vmul.f32 -1.442695, %v10647_v26 }
 0x71e   :  { %10900 = vmatpush.bf16.msra.mxu3 %v15893_v4  ;;  %18168 = vpow2.f32 %v16736_v48 }
 0x720   :  { %v19042_v42 = vpop.f32.mrf.mxu0 }
 0x722   :  { %10901 = vmatpush.bf16.msra.mxu3 %v15869_v14  ;;  %v19044_v37 = vpop.f32.mrf.mxu1 }
 0x724   :  { %v18169_v19 = vpop.eup %18168 }
 0x725   :  { %v10982_v51 = vadd.f32 1.0, %v18169_v19 }
 0x726   :  { %10902 = vmatpush.bf16.msra.mxu3 %v15845_v46 }
 0x727   :  { %18170 = vrcp.f32 %v10982_v51  ;;  %vm11021_vm9 = vweird.f32 %v10982_v51 }
 0x728   :  { %v10817_v29 = vpop.f32.mrf.mxu0 }
 0x72a   :  { %10903 = vmatpush.bf16.msra.mxu3 %v15821_v9  ;;  %v10830_v41 = vpop.f32.mrf.mxu1 }
 0x72b   :  { %v11027_v41 = vand.u32 2147483648, %v10982_v51 }
 0x72d   :  { %v11028_v20 = vor.u32 1.1754944e-38, %v11027_v41 }
 0x72e   :  { %10904 = vmatpush.bf16.msra.mxu3 %v15797_v55 }
 0x731   :  { %10905 = vmatmul.bf16.vlgmr.msra.gmra.mxu3 %v18855_v40 }
 0x732   :  { %10949 = vmatpush.bf16.msrb.mxu3 %v16733_v12  ;;  %v10698_v61 = vpop.f32.mrf.mxu3 }
 0x733   :  { %v10699_v4 = vadd.f32 %v10698_v61, %v19029_v36 }
 0x735   :  { %v10789_v53 = vpop.f32.mrf.mxu2  ;;  %v10712_v27 = vadd.f32 %v18978_v1, %v10699_v4 }
 0x736   :  { %10950 = vmatpush.bf16.msrb.mxu3 %v16709_v6  ;;  %v19049_v40 = vadd.f32 %v10789_v53, %v19033_v17  ;;  %v11025_v6 = vand.u32 2147483647, %v10982_v51 }
 0x737   :  { %v10725_v14 = vadd.f32 %v18980_v50, %v10712_v27 }
 0x738   :  { %vm11026_vm14 = vcmp.eq.f32.partialorder %v11025_v6, 8.507059e+37 }
 0x739   :  { %v10738_v30 = vadd.f32 %v19040_v31, %v10725_v14 }
 0x73a   :  { %10951 = vmatpush.bf16.msrb.mxu3 %v16685_v60  ;;  %v10700_v25 = vpop.f32.mrf.mxu3 }
 0x73d   :  { %v10791_v52 = vpop.f32.mrf.mxu2 }
 0x73e   :  { %10952 = vmatpush.bf16.msrb.mxu3 %v16661_v35 }
 0x740   :  { %v10867_v2 = vpop.f32.mrf.mxu0 }
 0x741   :  { %v10868_v0 = vadd.f32 %v10867_v2, %v8411_v59 }
 0x742   :  { %10953 = vmatpush.bf16.msrb.mxu3 %v16637_v45  ;;  %v10880_v57 = vpop.f32.mrf.mxu1 }
 0x743   :  { %v19051_v47 = vadd.f32 %v10880_v57, %v10868_v0 }
 0x746   :  { %10954 = vmatpush.bf16.msrb.mxu3 %v16613_v16 }
 0x748   :  { %v10869_v28 = vpop.f32.mrf.mxu0 }
 0x74a   :  { %10955 = vmatpush.bf16.msrb.mxu3 %v16589_v34  ;;  %v10882_v17 = vpop.f32.mrf.mxu1 }
 0x74e   :  { %10956 = vmatpush.bf16.msrb.mxu3 %v16565_v39 }
 0x751   :  { %10957 = vmatmul.bf16.vlgmr.msrb.gmra.mxu3 %v18901_v38  ;;  %v18171_v38 = vpop.eup %18170 }
 0x752   :  { %v11017_v62 = vmul.f32 %v18171_v38, %v10982_v51  ;;  %vm11022_vm8 = vweird.f32 %v18171_v38 }
 0x753   :  { %vm11023_vm11 = vmor %vm11021_vm9, %vm11022_vm8 }
 0x754   :  { %v10750_v46 = vpop.f32.mrf.mxu3  ;;  %v11018_v50 = vsub.f32 1.0, %v11017_v62 }
 0x755   :  { %v10751_v21 = vadd.f32 %v10750_v46, %v10738_v30 }
 0x756   :  { %v11019_v8 = vmul.f32 %v18171_v38, %v11018_v50 }
 0x757   :  { %v10841_v15 = vpop.f32.mrf.mxu2  ;;  %v16737_v22 = vmul.f32 -1.442695, %v10751_v21 }
 0x758   :  { %v11020_v12 = vadd.f32 %v18171_v38, %v11019_v8 }
 0x759   :  { %18172 = vpow2.f32 %v16737_v22 }
 0x75a   :  { %v11024_v49 = vsel %vm11023_vm11, %v18171_v38, %v11020_v12 }
 0x75b   :  { %v11029_v18 = vsel %vm11026_vm14, %v11028_v20, %v11024_v49 }
 0x75c   :  { %v10752_v43 = vpop.f32.mrf.mxu3 }
 0x75f   :  { %v10843_v36 = vpop.f32.mrf.mxu2  ;;  %v18173_v13 = vpop.eup %18172 }
 0x760   :  { %v10919_v56 = vpop.f32.mrf.mxu0  ;;  %v10983_v58 = vadd.f32 1.0, %v18173_v13 }
 0x762   :  { %v10932_v9 = vpop.f32.mrf.mxu1  ;;  %18174 = vrcp.f32 %v10983_v58  ;;  %v11042_v7 = vand.u32 2147483648, %v10983_v58  ;;  %v11040_v10 = vand.u32 2147483647, %v10983_v58  ;;  %vm11036_vm12 = vweird.f32 %v10983_v58 }
 0x764   :  { %v11043_v63 = vor.u32 1.1754944e-38, %v11042_v7  ;;  %vm11041_vm15 = vcmp.eq.f32.partialorder %v11040_v10, 8.507059e+37 }
 0x768   :  { %v10921_v1 = vpop.f32.mrf.mxu0  ;;  %v18175_v31 = vpop.eup %18174 }
 0x769   :  { %v11032_v55 = vmul.f32 %v18175_v31, %v10983_v58  ;;  %vm11037_vm10 = vweird.f32 %v18175_v31 }
 0x76a   :  { %v10934_v5 = vpop.f32.mrf.mxu1  ;;  %vm11038_vm13 = vmor %vm11036_vm12, %vm11037_vm10 }
 0x76b   :  { %v11033_v29 = vsub.f32 1.0, %v11032_v55 }
 0x76d   :  { %v11034_v11 = vmul.f32 %v18175_v31, %v11033_v29 }
 0x76f   :  { %v11035_v60 = vadd.f32 %v18175_v31, %v11034_v11 }
 0x771   :  { %v11039_v35 = vsel %vm11038_vm13, %v18175_v31, %v11035_v60 }
 0x772   :  { %v11044_v45 = vsel %vm11041_vm15, %v11043_v63, %v11039_v35 }
 0x773   :  { %v11077_v61 = vpack.c.bf16 %v11044_v45, %v11029_v18 }
 0x774   :  { %v10802_v23 = vpop.f32.mrf.mxu3 }
 0x775   :  { %v10803_v54 = vadd.f32 %v10802_v23, %v19049_v40  ;;  %v10893_v33 = vpop.f32.mrf.mxu2  ;;  %11080 = vst [vmem:[#allocation14 + $0x8] sm:$0xff] %v11077_v61 }
 0x776   :  { %v10894_v59 = vadd.f32 %v10893_v33, %v19051_v47 }
 0x777   :  { %v10816_v53 = vadd.f32 %v19042_v42, %v10803_v54 }
 0x779   :  { %v10829_v16 = vadd.f32 %v19044_v37, %v10816_v53 }
 0x77b   :  { %v10842_v24 = vadd.f32 %v10841_v15, %v10829_v16 }
 0x77c   :  { %v10804_v3 = vpop.f32.mrf.mxu3 }
 0x77d   :  { %v10895_v2 = vpop.f32.mrf.mxu2 }
 0x794   :  { %v10854_v0 = vpop.f32.mrf.mxu3 }
 0x795   :  { %v10945_v57 = vpop.f32.mrf.mxu2  ;;  %v10855_v52 = vadd.f32 %v10854_v0, %v10842_v24 }
 0x797   :  { %v16738_v40 = vmul.f32 -1.442695, %v10855_v52 }
 0x799   :  { %18176 = vpow2.f32 %v16738_v40 }
 0x79c   :  { %v10856_v34 = vpop.f32.mrf.mxu3 }
 0x79d   :  { %v10947_v44 = vpop.f32.mrf.mxu2 }
 0x79f   :  { %v18177_v47 = vpop.eup %18176 }
 0x7a0   :  { %v10984_v42 = vadd.f32 1.0, %v18177_v47 }
 0x7a2   :  { %18178 = vrcp.f32 %v10984_v42  ;;  %vm11051_vm1 = vweird.f32 %v10984_v42  ;;  %v11055_v13 = vand.u32 2147483647, %v10984_v42 }
 0x7a4   :  { %vm11056_vm6 = vcmp.eq.f32.partialorder %v11055_v13, 8.507059e+37 }
 0x7a8   :  { %v18179_v27 = vpop.eup %18178 }
 0x7a9   :  { %v11047_v51 = vmul.f32 %v18179_v27, %v10984_v42  ;;  %vm11052_vm0 = vweird.f32 %v18179_v27 }
 0x7aa   :  { %vm11053_vm3 = vmor %vm11051_vm1, %vm11052_vm0 }
 0x7ab   :  { %v11048_v46 = vsub.f32 1.0, %v11047_v51 }
 0x7ad   :  { %v11049_v21 = vmul.f32 %v18179_v27, %v11048_v46 }
 0x7af   :  { %v11050_v38 = vadd.f32 %v18179_v27, %v11049_v21 }
 0x7b1   :  { %v11054_v1 = vsel %vm11053_vm3, %v18179_v27, %v11050_v38 }
 0x7b4   :  { %v10906_v32 = vpop.f32.mrf.mxu3 }
 0x7b5   :  { %v10907_v39 = vadd.f32 %v10906_v32, %v10894_v59 }
 0x7b7   :  { %v10920_v26 = vadd.f32 %v10919_v56, %v10907_v39 }
 0x7b9   :  { %v10933_v28 = vadd.f32 %v10932_v9, %v10920_v26  ;;  %v11057_v9 = vand.u32 2147483648, %v10984_v42 }
 0x7bb   :  { %v10946_v17 = vadd.f32 %v10945_v57, %v10933_v28  ;;  %v11058_v5 = vor.u32 1.1754944e-38, %v11057_v9 }
 0x7bc   :  { %v10908_v25 = vpop.f32.mrf.mxu3 }
 0x7bd   :  { %v11059_v31 = vsel %vm11056_vm6, %v11058_v5, %v11054_v1 }
 0x7d4   :  { %v10958_v48 = vpop.f32.mrf.mxu3 }
 0x7d5   :  { %v10959_v37 = vadd.f32 %v10958_v48, %v10946_v17 }
 0x7d7   :  { %v16739_v4 = vmul.f32 -1.442695, %v10959_v37 }
 0x7d9   :  { %18180 = vpow2.f32 %v16739_v4 }
 0x7dc   :  { %v10960_v19 = vpop.f32.mrf.mxu3 }
 0x7df   :  { %v18181_v14 = vpop.eup %18180 }
 0x7e0   :  { %v10985_v30 = vadd.f32 1.0, %v18181_v14 }
 0x7e2   :  { %18182 = vrcp.f32 %v10985_v30  ;;  %v11072_v43 = vand.u32 2147483648, %v10985_v30  ;;  %v11070_v62 = vand.u32 2147483647, %v10985_v30  ;;  %vm11066_vm4 = vweird.f32 %v10985_v30 }
 0x7e4   :  { %v11073_v50 = vor.u32 1.1754944e-38, %v11072_v43  ;;  %vm11071_vm7 = vcmp.eq.f32.partialorder %v11070_v62, 8.507059e+37 }
 0x7e8   :  { %v18183_v15 = vpop.eup %18182 }
 0x7e9   :  { %v11062_v22 = vmul.f32 %v18183_v15, %v10985_v30  ;;  %vm11067_vm2 = vweird.f32 %v18183_v15 }
 0x7ea   :  { %vm11068_vm5 = vmor %vm11066_vm4, %vm11067_vm2 }
 0x7eb   :  { %v11063_v56 = vsub.f32 1.0, %v11062_v22 }
 0x7ed   :  { %v11064_v36 = vmul.f32 %v18183_v15, %v11063_v56 }
 0x7ef   :  { %v11065_v58 = vadd.f32 %v18183_v15, %v11064_v36 }
 0x7f1   :  { %v11069_v8 = vsel %vm11068_vm5, %v18183_v15, %v11065_v58 }
 0x7f2   :  { %v11074_v55 = vsel %vm11071_vm7, %v11073_v50, %v11069_v8 }
 0x7f3   :  { %v11078_v29 = vpack.c.bf16 %v11074_v55, %v11059_v31 }
 0x7f5   :  { %11081 = vst [vmem:[#allocation14 + $0x10] sm:$0xff] %v11078_v29 }
 0x7f6   :  { %11092 = dma.vmem_to_hbm [thread:$0]  %s11088_s6, 384, %s11090_s14, [#allocation4]  }
 0x7f7   :  { %18392 = dma.done.wait [#allocation4], 384  }
 0x7f8   :  { %18393 = vsyncadd [#allocation4], 4294966912 }
 0x7f9   :  { %11097 = vsyncpa [#allocation3], 1 }
 0x7fa   :  { %11098 = vsyncpa [#allocation6], 1 }
 0x7fb   :  { %11099 = vsyncpa [#allocation9], 1 }
 0x7fc   :  { %11100 = vsyncpa [#allocation12], 1 }
 0x7fd   :  { %11101 = vsyncpa [#allocation4], 1 }

</bundles_post_ra>
